<compile_context>
chip_gen: v7x
topology: tpu7x:2x2x1
jax: 0.10.0
libtpu: 0.0.40
codegen_flags: <defaults>
</compile_context>

<pallas_src>
import math
from functools import partial

import numpy as np
import jax
import jax.numpy as jnp
from jax.experimental import pallas as pl
from jax.experimental.pallas import tpu as pltpu

# ---- config (mirrors cfg['MODEL']['Conceptualizing_Alignment']) ----
NUM_CONCEPT = 8
CONCEPT_DIM = 64          # divisible by NUM_HEADS and by 2
SAMPLE_NUM = 2
INPUT_DIM = 512
NUM_HEADS = 8
LN_EPS = 1e-5


# ---------------- in-kernel math helpers ----------------
def _erf(x):
    # Abramowitz & Stegun 7.1.26 (|err| <= 1.5e-7); torch.nn.GELU is erf-based.
    a1, a2, a3, a4, a5 = (0.254829592, -0.284496736, 1.421413741,
                          -1.453152027, 1.061405429)
    p = 0.3275911
    ax = jnp.abs(x)
    t = 1.0 / (1.0 + p * ax)
    poly = ((((a5 * t + a4) * t + a3) * t + a2) * t + a1) * t
    y = 1.0 - poly * jnp.exp(-ax * ax)
    return jnp.where(x >= 0.0, y, -y)


def _gelu(x):                 # exact GELU (torch.nn.GELU default)
    return 0.5 * x * (1.0 + _erf(x * 0.7071067811865476))


def _quick_gelu(x):           # QuickGELU
    return x * jax.nn.sigmoid(1.702 * x)


def _layernorm(x, g, b):      # torch.nn.LayerNorm (biased var, eps=1e-5)
    m = jnp.mean(x, axis=-1, keepdims=True)
    v = jnp.mean(jnp.square(x - m), axis=-1, keepdims=True)
    return (x - m) * jax.lax.rsqrt(v + LN_EPS) * g + b


def _matmul_nt(a, b):         # a @ b.T on the MXU (no explicit transpose)
    return jax.lax.dot_general(
        a, b, (((1,), (1,)), ((), ())), preferred_element_type=jnp.float32)


def _softmax_last(a):         # softmax over the lane (last) axis
    e = jnp.exp(a - jnp.max(a, axis=-1, keepdims=True))
    return e * pl.reciprocal(jnp.sum(e, axis=-1, keepdims=True), approx=True)


def _full_spec(shape):
    nd = len(shape)
    return pl.BlockSpec(tuple(shape), lambda i, _n=nd: (0,) * _n)


def _smem_spec():
    return pl.BlockSpec(memory_space=pltpu.MemorySpace.SMEM)


# =====================================================================
# Stage 1: concept projections + temporal weighting/fusion + logits_ori
# =====================================================================
def _stage1_kernel(ev_ref, txt_ref,
                   ew1, eb1, ew2, eb2, tw1, tb1, tw2, tb2,
                   p_ref, selbr_ref, scale_ref,
                   ev_fused_ref, txt_c_ref, logits_ori_ref,
                   *, B_ev, T, B_txt):
    ev_flat = ev_ref[...]                       # (R = B_ev*T, 512)
    txt_f = txt_ref[...]                        # (B_txt, 512)

    # Concept_Project_function: Linear -> QuickGELU -> Linear  (lane-dense, 512 wide)
    h = _quick_gelu(jnp.dot(ev_flat, ew1[...], preferred_element_type=jnp.float32) + eb1[...])
    ev_c = jnp.dot(h, ew2[...], preferred_element_type=jnp.float32) + eb2[...]       # (R, 512)
    h = _quick_gelu(jnp.dot(txt_f, tw1[...], preferred_element_type=jnp.float32) + tb1[...])
    txt_c = jnp.dot(h, tw2[...], preferred_element_type=jnp.float32) + tb2[...]      # (B_txt, 512)
    txt_c_ref[...] = txt_c

    # T_weight = softmax_T( mean_{b_ev, b_txt} <ev_concept[t,b], txt_concept[c]> )
    s = _matmul_nt(txt_c, ev_c)                                    # (B_txt, R)
    sp = jnp.dot(s, p_ref[...], preferred_element_type=jnp.float32)  # same-t averaging (/B_ev)
    raw = jnp.sum(sp, axis=0, keepdims=True) * (1.0 / B_txt)       # (1, R), value depends only on t
    # softmax over the R vector (each t repeated B_ev times) == softmax_T / B_ev
    tw_r = _softmax_last(raw) * float(B_ev)                        # (1, R) -> softmax_T[t(r)]

    # temporal fusion as one matmul: ev_fused[b] = sum_t w[t] * ev_c[b*T+t]
    w_fuse = selbr_ref[...] * tw_r                                 # (B_ev, R)
    ev_fused_ref[...] = jnp.dot(w_fuse, ev_c, preferred_element_type=jnp.float32)   # (B_ev, 512)

    # logits_ori = logit_scale * ev_f.mean(1) @ txt_f.T
    ev_mean = jnp.dot(selbr_ref[...], ev_flat,
                      preferred_element_type=jnp.float32) * (1.0 / T)                # (B_ev, 512)
    logits_ori_ref[...] = scale_ref[0] * _matmul_nt(ev_mean, txt_f)


def _stage1(ev_flat, txt_f, ep, tp, P, sel_br, scale, B_ev, T, B_txt):
    nd = tp['w2'].shape[1]
    arrs = [ev_flat, txt_f,
            ep['w1'], ep['b1'], ep['w2'], ep['b2'],
            tp['w1'], tp['b1'], tp['w2'], tp['b2'],
            P, sel_br]
    in_specs = [_full_spec(a.shape) for a in arrs] + [_smem_spec()]
    return pl.pallas_call(
        partial(_stage1_kernel, B_ev=B_ev, T=T, B_txt=B_txt),
        out_shape=(jax.ShapeDtypeStruct((B_ev, nd), jnp.float32),
                   jax.ShapeDtypeStruct((B_txt, nd), jnp.float32),
                   jax.ShapeDtypeStruct((B_ev, B_txt), jnp.float32)),
        grid=(1,),
        in_specs=in_specs,
        out_specs=(_full_spec((B_ev, nd)),
                   _full_spec((B_txt, nd)),
                   _full_spec((B_ev, B_txt))),
    )(*arrs, scale)


# =====================================================================
# Stage 2: both DisTrans encoders + eval sampling slice + logits
# =====================================================================
_DISTRANS_KEYS = ('fc_w', 'fc_b', 'n1_g', 'n1_b', 'qkv_w',
                  'mu_w', 'mu_b', 'ls_w', 'ls_b',
                  'n2_g', 'n2_b', 'n3_g', 'n3_b',
                  'mfc1_w', 'mfc1_b', 'mfc2_w', 'mfc2_b',
                  'lfc1_w', 'lfc1_b', 'lfc2_w', 'lfc2_b')
_N_DIS = len(_DISTRANS_KEYS)


def _distrans_block(x, w, attn_bias, num_heads):
    """DisTrans forward with batch folded into rows; attn_bias makes attention
    block-diagonal so tokens only attend within their own batch element."""
    (fc_w, fc_b, n1_g, n1_b, qkv_w, mu_w, mu_b, ls_w, ls_b,
     n2_g, n2_b, n3_g, n3_b, mfc1_w, mfc1_b, mfc2_w, mfc2_b,
     lfc1_w, lfc1_b, lfc2_w, lfc2_b) = w
    M, C = x.shape
    hd = C // num_heads
    sc = float(hd) ** -0.5
    half = num_heads // 2

    h = _gelu(jnp.dot(x, fc_w[...], preferred_element_type=jnp.float32) + fc_b[...])
    h = _layernorm(h, n1_g[...], n1_b[...])
    qkv = jnp.dot(h, qkv_w[...], preferred_element_type=jnp.float32)    # (M, 3C) = [q|k|v]

    # accumulate attention heads directly into mu_proj / logsig_proj (no concat)
    mu_lin = jnp.zeros((M, C), jnp.float32) + mu_b[...]
    ls_lin = jnp.zeros((M, C), jnp.float32) + ls_b[...]
    mu_w_v = mu_w[...]
    ls_w_v = ls_w[...]
    for hh in range(num_heads):
        q = qkv[:, hh * hd:(hh + 1) * hd]
        k = qkv[:, C + hh * hd:C + (hh + 1) * hd]
        v = qkv[:, 2 * C + hh * hd:2 * C + (hh + 1) * hd]
        a = _matmul_nt(q, k) * sc + attn_bias          # (M, M), cross-batch masked
        a = _softmax_last(a)
        ho = jnp.dot(a, v, preferred_element_type=jnp.float32)          # (M, hd)
        if hh < half:   # heads 0..H/2-1 -> mu channels [0, C/2)
            mu_lin = mu_lin + jnp.dot(ho, mu_w_v[hh * hd:(hh + 1) * hd, :],
                                      preferred_element_type=jnp.float32)
        else:           # heads H/2..H-1 -> logsigma channels [C/2, C)
            g = hh - half
            ls_lin = ls_lin + jnp.dot(ho, ls_w_v[g * hd:(g + 1) * hd, :],
                                      preferred_element_type=jnp.float32)

    mu = x + mu_lin                                   # residual (drop_path = Identity)
    z = _layernorm(mu, n2_g[...], n2_b[...])
    z = _gelu(jnp.dot(z, mfc1_w[...], preferred_element_type=jnp.float32) + mfc1_b[...])
    mu = mu + jnp.dot(z, mfc2_w[...], preferred_element_type=jnp.float32) + mfc2_b[...]

    z = _layernorm(ls_lin, n3_g[...], n3_b[...])
    z = _gelu(jnp.dot(z, lfc1_w[...], preferred_element_type=jnp.float32) + lfc1_b[...])
    logsig = ls_lin + jnp.dot(z, lfc2_w[...], preferred_element_type=jnp.float32) + lfc2_b[...]
    return mu, logsig


def _stage2_kernel(*refs, num_heads):
    (x_ev_ref, x_txt_ref, mask_ev_ref, mask_txt_ref,
     sel_ev_ref, sel_txt_ref, eps_ev_ref, eps_txt_ref) = refs[:8]
    ev_w = refs[8:8 + _N_DIS]
    txt_w = refs[8 + _N_DIS:8 + 2 * _N_DIS]
    scale_ref = refs[8 + 2 * _N_DIS]
    logits_ref = refs[8 + 2 * _N_DIS + 1]

    ev_mu, ev_ls = _distrans_block(x_ev_ref[...], ev_w, mask_ev_ref[...], num_heads)
    txt_mu, txt_ls = _distrans_block(x_txt_ref[...], txt_w, mask_txt_ref[...], num_heads)

    # eval branch only needs the last (sample, concept) slice of the sampled embeds:
    #   embeds[-1, :, -1, :] = mu[:, N-1, :] + exp(logsigma[:, N-1, :]) * eps
    sel_ev = sel_ev_ref[...]                          # (B_ev, B_ev*N) row selector (n = N-1)
    sel_txt = sel_txt_ref[...]
    ev_e = (jnp.dot(sel_ev, ev_mu, preferred_element_type=jnp.float32)
            + jnp.exp(jnp.dot(sel_ev, ev_ls, preferred_element_type=jnp.float32))
            * eps_ev_ref[...])
    txt_e = (jnp.dot(sel_txt, txt_mu, preferred_element_type=jnp.float32)
             + jnp.exp(jnp.dot(sel_txt, txt_ls, preferred_element_type=jnp.float32))
             * eps_txt_ref[...])
    logits_ref[...] = scale_ref[0] * _matmul_nt(ev_e, txt_e)


def _stage2(x_ev_tok, x_txt_tok, mask_ev, mask_txt, sel_ev, sel_txt,
            eps_ev, eps_txt, ev_gau, txt_gau, scale, B_ev, B_txt, num_heads):
    ev_w = [ev_gau[k] for k in _DISTRANS_KEYS]
    txt_w = [txt_gau[k] for k in _DISTRANS_KEYS]
    arrs = [x_ev_tok, x_txt_tok, mask_ev, mask_txt, sel_ev, sel_txt,
            eps_ev, eps_txt] + ev_w + txt_w
    in_specs = [_full_spec(a.shape) for a in arrs] + [_smem_spec()]
    return pl.pallas_call(
        partial(_stage2_kernel, num_heads=num_heads),
        out_shape=jax.ShapeDtypeStruct((B_ev, B_txt), jnp.float32),
        grid=(1,),
        in_specs=in_specs,
        out_specs=_full_spec((B_ev, B_txt)),
    )(*arrs, scale)


# ---------------- deterministic parameter init (PyTorch Linear default dist) ----------------
def _linear_init(key, fan_in, fan_out, bias=True):
    kw, kb = jax.random.split(key)
    bound = 1.0 / math.sqrt(fan_in)
    w = jax.random.uniform(kw, (fan_in, fan_out), jnp.float32, -bound, bound)
    b = jax.random.uniform(kb, (1, fan_out), jnp.float32, -bound, bound) if bias else None
    return w, b


def _distrans_init(key, dim):
    ks = jax.random.split(key, 8)
    fc_w, fc_b = _linear_init(ks[0], dim, dim)
    qkv_w, _ = _linear_init(ks[1], dim, 3 * dim, bias=False)
    mu_w, mu_b = _linear_init(ks[2], dim // 2, dim)
    ls_w, ls_b = _linear_init(ks[3], dim // 2, dim)
    mfc1_w, mfc1_b = _linear_init(ks[4], dim, 4 * dim)
    mfc2_w, mfc2_b = _linear_init(ks[5], 4 * dim, dim)
    lfc1_w, lfc1_b = _linear_init(ks[6], dim, 4 * dim)
    lfc2_w, lfc2_b = _linear_init(ks[7], 4 * dim, dim)
    ones = jnp.ones((1, dim), jnp.float32)
    zeros = jnp.zeros((1, dim), jnp.float32)
    return dict(fc_w=fc_w, fc_b=fc_b, n1_g=ones, n1_b=zeros, qkv_w=qkv_w,
                mu_w=mu_w, mu_b=mu_b, ls_w=ls_w, ls_b=ls_b,
                n2_g=ones, n2_b=zeros, n3_g=ones, n3_b=zeros,
                mfc1_w=mfc1_w, mfc1_b=mfc1_b, mfc2_w=mfc2_w, mfc2_b=mfc2_b,
                lfc1_w=lfc1_w, lfc1_b=lfc1_b, lfc2_w=lfc2_w, lfc2_b=lfc2_b)


def init_params(key):
    k_txt, k_ev, k_evg, k_txtg = jax.random.split(key, 4)
    params = {}
    for name, k in (('txt_proj', k_txt), ('ev_proj', k_ev)):
        k1, k2 = jax.random.split(k)
        w1, b1 = _linear_init(k1, INPUT_DIM, INPUT_DIM)
        w2, b2 = _linear_init(k2, INPUT_DIM, NUM_CONCEPT * CONCEPT_DIM)
        params[name] = dict(w1=w1, b1=b1, w2=w2, b2=b2)
    # NOTE: txt/ev_Concept_fusion submodules exist in __init__ but are never used in forward.
    params['ev_gau'] = _distrans_init(k_evg, CONCEPT_DIM)
    params['txt_gau'] = _distrans_init(k_txtg, CONCEPT_DIM)
    return params


# ---------------- full forward (eval mode) ----------------
def conceptualizing_alignment3_forward(params, ev_f, txt_f, actual_event_length,
                                       logit_scale, sample_key):
    """Eval-mode forward: returns (logits, logits_ori)."""
    # TODO(synk): the training branch depends on `symmetric_cross_entropy_loss`
    # (undefined in the provided source); only eval-mode outputs are implemented.
    del actual_event_length  # unused by the reference forward as well
    B_ev, T, ev_dim = ev_f.shape
    B_txt = txt_f.shape[0]
    N, D = NUM_CONCEPT, CONCEPT_DIM
    R = B_ev * T

    # Static selector matrices (trace-time numpy) -> no in-kernel iota/mod/reshape.
    r = np.arange(R)
    P = jnp.asarray((r[:, None] % T == r[None, :] % T).astype(np.float32) / B_ev)       # (R, R)
    sel_br = jnp.asarray((r[None, :] // T == np.arange(B_ev)[:, None]).astype(np.float32))  # (B_ev, R)
    m_ev = np.arange(B_ev * N)
    mask_ev = jnp.asarray(np.where(m_ev[:, None] // N == m_ev[None, :] // N,
                                   0.0, -1e30).astype(np.float32))                       # (B_ev*N,)^2
    sel_ev = jnp.asarray((m_ev[None, :] ==
                          (np.arange(B_ev) * N + N - 1)[:, None]).astype(np.float32))    # (B_ev, B_ev*N)
    m_txt = np.arange(B_txt * N)
    mask_txt = jnp.asarray(np.where(m_txt[:, None] // N == m_txt[None, :] // N,
                                    0.0, -1e30).astype(np.float32))
    sel_txt = jnp.asarray((m_txt[None, :] ==
                           (np.arange(B_txt) * N + N - 1)[:, None]).astype(np.float32))

    scale = jnp.full((1,), logit_scale, jnp.float32)
    ev_flat = ev_f.reshape(R, ev_dim)

    # Kernel 1: projections + temporal weighting/fusion + logits_ori
    ev_fused, txt_concept, logits_ori = _stage1(
        ev_flat, txt_f, params['ev_proj'], params['txt_proj'], P, sel_br, scale,
        B_ev, T, B_txt)

    # free wrapper-side reshapes to token layout (row = b*N + n, channels = D)
    x_ev_tok = ev_fused.reshape(B_ev * N, D)
    x_txt_tok = txt_concept.reshape(B_txt * N, D)

    # eval-mode dead-code elimination: only the last (sample, concept) slice matters,
    # so only a (B, D) gaussian eps is needed (jax.random instead of torch.randn).
    k_ev, k_txt = jax.random.split(sample_key)
    eps_ev = jax.random.normal(k_ev, (B_ev, D), jnp.float32)
    eps_txt = jax.random.normal(k_txt, (B_txt, D), jnp.float32)

    # Kernel 2: DisTrans x2 + sampling slice + logits
    logits = _stage2(x_ev_tok, x_txt_tok, mask_ev, mask_txt, sel_ev, sel_txt,
                     eps_ev, eps_txt, params['ev_gau'], params['txt_gau'], scale,
                     B_ev, B_txt, NUM_HEADS)
    return logits, logits_ori


if __name__ == "__main__":
    key = jax.random.PRNGKey(0)
    k_params, k_ev, k_txt, k_sample = jax.random.split(key, 4)

    params = init_params(k_params)
    B_ev, T, B_txt = 2, 4, 2
    ev_f = jax.random.normal(k_ev, (B_ev, T, INPUT_DIM), jnp.float32)
    txt_f = jax.random.normal(k_txt, (B_txt, INPUT_DIM), jnp.float32)
    actual_event_length = jnp.full((B_ev,), T, jnp.int32)
    logit_scale = 100.0

    fwd = jax.jit(conceptualizing_alignment3_forward)
    logits, logits_ori = fwd(params, ev_f, txt_f, actual_event_length,
                             logit_scale, k_sample)
    jax.block_until_ready((logits, logits_ori))
    assert logits.shape == (B_ev, B_txt) and logits_ori.shape == (B_ev, B_txt)
    assert bool(jnp.all(jnp.isfinite(logits))) and bool(jnp.all(jnp.isfinite(logits_ori)))
    print("KERNEL_OK")
</pallas_src>

<mosaic_0001>
module attributes {stable_mosaic.version = 11 : i64} {
  func.func @_stage1_kernel(%arg0: i32, %arg1: memref<8x512xf32, #tpu.memory_space<vmem>>, %arg2: memref<2x512xf32, #tpu.memory_space<vmem>>, %arg3: memref<512x512xf32, #tpu.memory_space<vmem>>, %arg4: memref<1x512xf32, #tpu.memory_space<vmem>>, %arg5: memref<512x512xf32, #tpu.memory_space<vmem>>, %arg6: memref<1x512xf32, #tpu.memory_space<vmem>>, %arg7: memref<512x512xf32, #tpu.memory_space<vmem>>, %arg8: memref<1x512xf32, #tpu.memory_space<vmem>>, %arg9: memref<512x512xf32, #tpu.memory_space<vmem>>, %arg10: memref<1x512xf32, #tpu.memory_space<vmem>>, %arg11: memref<8x8xf32, #tpu.memory_space<vmem>>, %arg12: memref<2x8xf32, #tpu.memory_space<vmem>>, %arg13: memref<1xf32, #tpu.memory_space<smem>>, %arg14: memref<2x512xf32, #tpu.memory_space<vmem>>, %arg15: memref<2x512xf32, #tpu.memory_space<vmem>>, %arg16: memref<2x2xf32, #tpu.memory_space<vmem>>) attributes {dimension_semantics = [#tpu.dimension_semantics<arbitrary>], iteration_bounds = array<i64: 1>, scalar_prefetch = 0 : i64, scratch_operands = 0 : i64, tpu.core_type = #tpu.core_type<tc>, window_params = [{pipeline_mode = #tpu.pipeline_mode<synchronous>, transform_indices = @transform_0, window_bounds = array<i64: 8, 512>}, {pipeline_mode = #tpu.pipeline_mode<synchronous>, transform_indices = @transform_1, window_bounds = array<i64: 2, 512>}, {pipeline_mode = #tpu.pipeline_mode<synchronous>, transform_indices = @transform_2, window_bounds = array<i64: 512, 512>}, {pipeline_mode = #tpu.pipeline_mode<synchronous>, transform_indices = @transform_3, window_bounds = array<i64: 1, 512>}, {pipeline_mode = #tpu.pipeline_mode<synchronous>, transform_indices = @transform_4, window_bounds = array<i64: 512, 512>}, {pipeline_mode = #tpu.pipeline_mode<synchronous>, transform_indices = @transform_5, window_bounds = array<i64: 1, 512>}, {pipeline_mode = #tpu.pipeline_mode<synchronous>, transform_indices = @transform_6, window_bounds = array<i64: 512, 512>}, {pipeline_mode = #tpu.pipeline_mode<synchronous>, transform_indices = @transform_7, window_bounds = array<i64: 1, 512>}, {pipeline_mode = #tpu.pipeline_mode<synchronous>, transform_indices = @transform_8, window_bounds = array<i64: 512, 512>}, {pipeline_mode = #tpu.pipeline_mode<synchronous>, transform_indices = @transform_9, window_bounds = array<i64: 1, 512>}, {pipeline_mode = #tpu.pipeline_mode<synchronous>, transform_indices = @transform_10, window_bounds = array<i64: 8, 8>}, {pipeline_mode = #tpu.pipeline_mode<synchronous>, transform_indices = @transform_11, window_bounds = array<i64: 2, 8>}, {transform_indices = @transform_12, window_bounds = array<i64: 1>}, {pipeline_mode = #tpu.pipeline_mode<synchronous>, transform_indices = @transform_13, window_bounds = array<i64: 2, 512>}, {pipeline_mode = #tpu.pipeline_mode<synchronous>, transform_indices = @transform_14, window_bounds = array<i64: 2, 512>}, {pipeline_mode = #tpu.pipeline_mode<synchronous>, transform_indices = @transform_15, window_bounds = array<i64: 2, 2>}]} {
    %c0 = arith.constant 0 : index
    %c0_0 = arith.constant 0 : index
    %0 = vector.load %arg1[%c0, %c0_0] : memref<8x512xf32, #tpu.memory_space<vmem>>, vector<8x512xf32>
    %c0_1 = arith.constant 0 : index
    %c0_2 = arith.constant 0 : index
    %1 = vector.load %arg2[%c0_1, %c0_2] : memref<2x512xf32, #tpu.memory_space<vmem>>, vector<2x512xf32>
    %c0_3 = arith.constant 0 : index
    %c0_4 = arith.constant 0 : index
    %2 = vector.load %arg3[%c0_3, %c0_4] : memref<512x512xf32, #tpu.memory_space<vmem>>, vector<512x512xf32>
    %cst = arith.constant dense<0.000000e+00> : vector<8x512xf32>
    %3 = tpu.matmul %0, %2, %cst {dimension_numbers = #tpu.dot_dimension_numbers<[1], [0], [0], [1], [0, 0, 1, 1], [], []>} : vector<8x512xf32>, vector<512x512xf32>, vector<8x512xf32> -> vector<8x512xf32>
    %c0_5 = arith.constant 0 : index
    %c0_6 = arith.constant 0 : index
    %4 = vector.load %arg4[%c0_5, %c0_6] : memref<1x512xf32, #tpu.memory_space<vmem>>, vector<1x512xf32>
    %5 = vector.broadcast %4 : vector<1x512xf32> to vector<8x512xf32>
    %6 = arith.addf %3, %5 : vector<8x512xf32>
    %cst_7 = arith.constant 1.702000e+00 : f32
    %7 = vector.broadcast %cst_7 : f32 to vector<8x512xf32>
    %8 = arith.mulf %7, %6 : vector<8x512xf32>
    %9 = arith.negf %8 : vector<8x512xf32>
    %10 = math.exp %9 : vector<8x512xf32>
    %cst_8 = arith.constant 1.000000e+00 : f32
    %11 = vector.broadcast %cst_8 : f32 to vector<8x512xf32>
    %12 = arith.addf %11, %10 : vector<8x512xf32>
    %13 = arith.divf %11, %12 : vector<8x512xf32>
    %14 = arith.mulf %6, %13 : vector<8x512xf32>
    %c0_9 = arith.constant 0 : index
    %c0_10 = arith.constant 0 : index
    %15 = vector.load %arg5[%c0_9, %c0_10] : memref<512x512xf32, #tpu.memory_space<vmem>>, vector<512x512xf32>
    %cst_11 = arith.constant dense<0.000000e+00> : vector<8x512xf32>
    %16 = tpu.matmul %14, %15, %cst_11 {dimension_numbers = #tpu.dot_dimension_numbers<[1], [0], [0], [1], [0, 0, 1, 1], [], []>} : vector<8x512xf32>, vector<512x512xf32>, vector<8x512xf32> -> vector<8x512xf32>
    %c0_12 = arith.constant 0 : index
    %c0_13 = arith.constant 0 : index
    %17 = vector.load %arg6[%c0_12, %c0_13] : memref<1x512xf32, #tpu.memory_space<vmem>>, vector<1x512xf32>
    %18 = vector.broadcast %17 : vector<1x512xf32> to vector<8x512xf32>
    %19 = arith.addf %16, %18 : vector<8x512xf32>
    %c0_14 = arith.constant 0 : index
    %c0_15 = arith.constant 0 : index
    %20 = vector.load %arg7[%c0_14, %c0_15] : memref<512x512xf32, #tpu.memory_space<vmem>>, vector<512x512xf32>
    %cst_16 = arith.constant dense<0.000000e+00> : vector<2x512xf32>
    %21 = tpu.matmul %1, %20, %cst_16 {dimension_numbers = #tpu.dot_dimension_numbers<[1], [0], [0], [1], [0, 0, 1, 1], [], []>} : vector<2x512xf32>, vector<512x512xf32>, vector<2x512xf32> -> vector<2x512xf32>
    %c0_17 = arith.constant 0 : index
    %c0_18 = arith.constant 0 : index
    %22 = vector.load %arg8[%c0_17, %c0_18] : memref<1x512xf32, #tpu.memory_space<vmem>>, vector<1x512xf32>
    %23 = vector.broadcast %22 : vector<1x512xf32> to vector<2x512xf32>
    %24 = arith.addf %21, %23 : vector<2x512xf32>
    %cst_19 = arith.constant 1.702000e+00 : f32
    %25 = vector.broadcast %cst_19 : f32 to vector<2x512xf32>
    %26 = arith.mulf %25, %24 : vector<2x512xf32>
    %27 = arith.negf %26 : vector<2x512xf32>
    %28 = math.exp %27 : vector<2x512xf32>
    %cst_20 = arith.constant 1.000000e+00 : f32
    %29 = vector.broadcast %cst_20 : f32 to vector<2x512xf32>
    %30 = arith.addf %29, %28 : vector<2x512xf32>
    %31 = arith.divf %29, %30 : vector<2x512xf32>
    %32 = arith.mulf %24, %31 : vector<2x512xf32>
    %c0_21 = arith.constant 0 : index
    %c0_22 = arith.constant 0 : index
    %33 = vector.load %arg9[%c0_21, %c0_22] : memref<512x512xf32, #tpu.memory_space<vmem>>, vector<512x512xf32>
    %cst_23 = arith.constant dense<0.000000e+00> : vector<2x512xf32>
    %34 = tpu.matmul %32, %33, %cst_23 {dimension_numbers = #tpu.dot_dimension_numbers<[1], [0], [0], [1], [0, 0, 1, 1], [], []>} : vector<2x512xf32>, vector<512x512xf32>, vector<2x512xf32> -> vector<2x512xf32>
    %c0_24 = arith.constant 0 : index
    %c0_25 = arith.constant 0 : index
    %35 = vector.load %arg10[%c0_24, %c0_25] : memref<1x512xf32, #tpu.memory_space<vmem>>, vector<1x512xf32>
    %36 = vector.broadcast %35 : vector<1x512xf32> to vector<2x512xf32>
    %37 = arith.addf %34, %36 : vector<2x512xf32>
    %c0_26 = arith.constant 0 : index
    %c0_27 = arith.constant 0 : index
    %38 = vector.load %arg15[%c0_26, %c0_27] : memref<2x512xf32, #tpu.memory_space<vmem>>, vector<2x512xf32>
    tpu.vector_store %arg15[%c0_26, %c0_27], %37 {strides = array<i32>} : memref<2x512xf32, #tpu.memory_space<vmem>>, vector<2x512xf32>,
    %cst_28 = arith.constant dense<0.000000e+00> : vector<2x8xf32>
    %39 = tpu.matmul %37, %19, %cst_28 {dimension_numbers = #tpu.dot_dimension_numbers<[1], [1], [0], [0], [0, 0, 1, 0], [], []>} : vector<2x512xf32>, vector<8x512xf32>, vector<2x8xf32> -> vector<2x8xf32>
    %c0_29 = arith.constant 0 : index
    %c0_30 = arith.constant 0 : index
    %40 = vector.load %arg11[%c0_29, %c0_30] : memref<8x8xf32, #tpu.memory_space<vmem>>, vector<8x8xf32>
    %cst_31 = arith.constant dense<0.000000e+00> : vector<2x8xf32>
    %41 = tpu.matmul %39, %40, %cst_31 {dimension_numbers = #tpu.dot_dimension_numbers<[1], [0], [0], [1], [0, 0, 1, 1], [], []>} : vector<2x8xf32>, vector<8x8xf32>, vector<2x8xf32> -> vector<2x8xf32>
    %cst_32 = arith.constant dense<0.000000e+00> : vector<8xf32>
    %42 = vector.multi_reduction <add>, %41, %cst_32 [0] : vector<2x8xf32> to vector<8xf32>
    %43 = vector.shape_cast %42 : vector<8xf32> to vector<1x8xf32>
    %cst_33 = arith.constant 5.000000e-01 : f32
    %44 = vector.broadcast %cst_33 : f32 to vector<1x8xf32>
    %45 = arith.mulf %43, %44 : vector<1x8xf32>
    %cst_34 = arith.constant dense<0xFF800000> : vector<1xf32>
    %46 = vector.multi_reduction <maximumf>, %45, %cst_34 [1] : vector<1x8xf32> to vector<1xf32>
    %47 = vector.shape_cast %46 : vector<1xf32> to vector<1x1xf32>
    %48 = vector.broadcast %47 : vector<1x1xf32> to vector<1x8xf32>
    %49 = arith.subf %45, %48 : vector<1x8xf32>
    %50 = math.exp %49 : vector<1x8xf32>
    %cst_35 = arith.constant dense<0.000000e+00> : vector<1xf32>
    %51 = vector.multi_reduction <add>, %50, %cst_35 [1] : vector<1x8xf32> to vector<1xf32>
    %52 = vector.shape_cast %51 : vector<1xf32> to vector<1x1xf32>
    %53 = tpu.reciprocal %52 {approx = true} : vector<1x1xf32> -> vector<1x1xf32>
    %54 = vector.broadcast %53 : vector<1x1xf32> to vector<1x8xf32>
    %55 = arith.mulf %50, %54 : vector<1x8xf32>
    %cst_36 = arith.constant 2.000000e+00 : f32
    %56 = vector.broadcast %cst_36 : f32 to vector<1x8xf32>
    %57 = arith.mulf %55, %56 : vector<1x8xf32>
    %c0_37 = arith.constant 0 : index
    %c0_38 = arith.constant 0 : index
    %58 = vector.load %arg12[%c0_37, %c0_38] : memref<2x8xf32, #tpu.memory_space<vmem>>, vector<2x8xf32>
    %59 = vector.broadcast %57 : vector<1x8xf32> to vector<2x8xf32>
    %60 = arith.mulf %58, %59 : vector<2x8xf32>
    %cst_39 = arith.constant dense<0.000000e+00> : vector<2x512xf32>
    %61 = tpu.matmul %60, %19, %cst_39 {dimension_numbers = #tpu.dot_dimension_numbers<[1], [0], [0], [1], [0, 0, 1, 1], [], []>} : vector<2x8xf32>, vector<8x512xf32>, vector<2x512xf32> -> vector<2x512xf32>
    %c0_40 = arith.constant 0 : index
    %c0_41 = arith.constant 0 : index
    %62 = vector.load %arg14[%c0_40, %c0_41] : memref<2x512xf32, #tpu.memory_space<vmem>>, vector<2x512xf32>
    tpu.vector_store %arg14[%c0_40, %c0_41], %61 {strides = array<i32>} : memref<2x512xf32, #tpu.memory_space<vmem>>, vector<2x512xf32>,
    %c0_42 = arith.constant 0 : index
    %c0_43 = arith.constant 0 : index
    %63 = vector.load %arg12[%c0_42, %c0_43] : memref<2x8xf32, #tpu.memory_space<vmem>>, vector<2x8xf32>
    %cst_44 = arith.constant dense<0.000000e+00> : vector<2x512xf32>
    %64 = tpu.matmul %63, %0, %cst_44 {dimension_numbers = #tpu.dot_dimension_numbers<[1], [0], [0], [1], [0, 0, 1, 1], [], []>} : vector<2x8xf32>, vector<8x512xf32>, vector<2x512xf32> -> vector<2x512xf32>
    %cst_45 = arith.constant 2.500000e-01 : f32
    %65 = vector.broadcast %cst_45 : f32 to vector<2x512xf32>
    %66 = arith.mulf %64, %65 : vector<2x512xf32>
    %c0_46 = arith.constant 0 : index
    %67 = memref.load %arg13[%c0_46] : memref<1xf32, #tpu.memory_space<smem>>
    %cst_47 = arith.constant dense<0.000000e+00> : vector<2x2xf32>
    %68 = tpu.matmul %66, %1, %cst_47 {dimension_numbers = #tpu.dot_dimension_numbers<[1], [1], [0], [0], [0, 0, 1, 0], [], []>} : vector<2x512xf32>, vector<2x512xf32>, vector<2x2xf32> -> vector<2x2xf32>
    %69 = vector.broadcast %67 : f32 to vector<2x2xf32>
    %70 = arith.mulf %69, %68 : vector<2x2xf32>
    %c0_48 = arith.constant 0 : index
    %c0_49 = arith.constant 0 : index
    %71 = vector.load %arg16[%c0_48, %c0_49] : memref<2x2xf32, #tpu.memory_space<vmem>>, vector<2x2xf32>
    tpu.vector_store %arg16[%c0_48, %c0_49], %70 {strides = array<i32>} : memref<2x2xf32, #tpu.memory_space<vmem>>, vector<2x2xf32>,
    return
  }
  func.func @transform_0(%arg0: i32) -> (i32, i32) {
    %c0_i32 = arith.constant 0 : i32
    %c0_i32_0 = arith.constant 0 : i32
    %c0_i32_1 = arith.constant 0 : i32
    return %c0_i32, %c0_i32_0 : i32, i32
  }
  func.func @transform_1(%arg0: i32) -> (i32, i32) {
    %c0_i32 = arith.constant 0 : i32
    %c0_i32_0 = arith.constant 0 : i32
    %c0_i32_1 = arith.constant 0 : i32
    return %c0_i32, %c0_i32_0 : i32, i32
  }
  func.func @transform_2(%arg0: i32) -> (i32, i32) {
    %c0_i32 = arith.constant 0 : i32
    %c0_i32_0 = arith.constant 0 : i32
    %c0_i32_1 = arith.constant 0 : i32
    return %c0_i32, %c0_i32_0 : i32, i32
  }
  func.func @transform_3(%arg0: i32) -> (i32, i32) {
    %c0_i32 = arith.constant 0 : i32
    %c0_i32_0 = arith.constant 0 : i32
    %c0_i32_1 = arith.constant 0 : i32
    return %c0_i32, %c0_i32_0 : i32, i32
  }
  func.func @transform_4(%arg0: i32) -> (i32, i32) {
    %c0_i32 = arith.constant 0 : i32
    %c0_i32_0 = arith.constant 0 : i32
    %c0_i32_1 = arith.constant 0 : i32
    return %c0_i32, %c0_i32_0 : i32, i32
  }
  func.func @transform_5(%arg0: i32) -> (i32, i32) {
    %c0_i32 = arith.constant 0 : i32
    %c0_i32_0 = arith.constant 0 : i32
    %c0_i32_1 = arith.constant 0 : i32
    return %c0_i32, %c0_i32_0 : i32, i32
  }
  func.func @transform_6(%arg0: i32) -> (i32, i32) {
    %c0_i32 = arith.constant 0 : i32
    %c0_i32_0 = arith.constant 0 : i32
    %c0_i32_1 = arith.constant 0 : i32
    return %c0_i32, %c0_i32_0 : i32, i32
  }
  func.func @transform_7(%arg0: i32) -> (i32, i32) {
    %c0_i32 = arith.constant 0 : i32
    %c0_i32_0 = arith.constant 0 : i32
    %c0_i32_1 = arith.constant 0 : i32
    return %c0_i32, %c0_i32_0 : i32, i32
  }
  func.func @transform_8(%arg0: i32) -> (i32, i32) {
    %c0_i32 = arith.constant 0 : i32
    %c0_i32_0 = arith.constant 0 : i32
    %c0_i32_1 = arith.constant 0 : i32
    return %c0_i32, %c0_i32_0 : i32, i32
  }
  func.func @transform_9(%arg0: i32) -> (i32, i32) {
    %c0_i32 = arith.constant 0 : i32
    %c0_i32_0 = arith.constant 0 : i32
    %c0_i32_1 = arith.constant 0 : i32
    return %c0_i32, %c0_i32_0 : i32, i32
  }
  func.func @transform_10(%arg0: i32) -> (i32, i32) {
    %c0_i32 = arith.constant 0 : i32
    %c0_i32_0 = arith.constant 0 : i32
    %c0_i32_1 = arith.constant 0 : i32
    return %c0_i32, %c0_i32_0 : i32, i32
  }
  func.func @transform_11(%arg0: i32) -> (i32, i32) {
    %c0_i32 = arith.constant 0 : i32
    %c0_i32_0 = arith.constant 0 : i32
    %c0_i32_1 = arith.constant 0 : i32
    return %c0_i32, %c0_i32_0 : i32, i32
  }
  func.func @transform_12(%arg0: i32) -> i32 {
    %c0_i32 = arith.constant 0 : i32
    %c0_i32_0 = arith.constant 0 : i32
    return %c0_i32 : i32
  }
  func.func @transform_13(%arg0: i32) -> (i32, i32) {
    %c0_i32 = arith.constant 0 : i32
    %c0_i32_0 = arith.constant 0 : i32
    %c0_i32_1 = arith.constant 0 : i32
    return %c0_i32, %c0_i32_0 : i32, i32
  }
  func.func @transform_14(%arg0: i32) -> (i32, i32) {
    %c0_i32 = arith.constant 0 : i32
    %c0_i32_0 = arith.constant 0 : i32
    %c0_i32_1 = arith.constant 0 : i32
    return %c0_i32, %c0_i32_0 : i32, i32
  }
  func.func @transform_15(%arg0: i32) -> (i32, i32) {
    %c0_i32 = arith.constant 0 : i32
    %c0_i32_0 = arith.constant 0 : i32
    %c0_i32_1 = arith.constant 0 : i32
    return %c0_i32, %c0_i32_0 : i32, i32
  }
}

module attributes {stable_mosaic.version = 11 : i64} {
  func.func @_stage2_kernel(%arg0: i32, %arg1: memref<16x64xf32, #tpu.memory_space<vmem>>, %arg2: memref<16x64xf32, #tpu.memory_space<vmem>>, %arg3: memref<16x16xf32, #tpu.memory_space<vmem>>, %arg4: memref<16x16xf32, #tpu.memory_space<vmem>>, %arg5: memref<2x16xf32, #tpu.memory_space<vmem>>, %arg6: memref<2x16xf32, #tpu.memory_space<vmem>>, %arg7: memref<2x64xf32, #tpu.memory_space<vmem>>, %arg8: memref<2x64xf32, #tpu.memory_space<vmem>>, %arg9: memref<64x64xf32, #tpu.memory_space<vmem>>, %arg10: memref<1x64xf32, #tpu.memory_space<vmem>>, %arg11: memref<1x64xf32, #tpu.memory_space<vmem>>, %arg12: memref<1x64xf32, #tpu.memory_space<vmem>>, %arg13: memref<64x192xf32, #tpu.memory_space<vmem>>, %arg14: memref<32x64xf32, #tpu.memory_space<vmem>>, %arg15: memref<1x64xf32, #tpu.memory_space<vmem>>, %arg16: memref<32x64xf32, #tpu.memory_space<vmem>>, %arg17: memref<1x64xf32, #tpu.memory_space<vmem>>, %arg18: memref<1x64xf32, #tpu.memory_space<vmem>>, %arg19: memref<1x64xf32, #tpu.memory_space<vmem>>, %arg20: memref<1x64xf32, #tpu.memory_space<vmem>>, %arg21: memref<1x64xf32, #tpu.memory_space<vmem>>, %arg22: memref<64x256xf32, #tpu.memory_space<vmem>>, %arg23: memref<1x256xf32, #tpu.memory_space<vmem>>, %arg24: memref<256x64xf32, #tpu.memory_space<vmem>>, %arg25: memref<1x64xf32, #tpu.memory_space<vmem>>, %arg26: memref<64x256xf32, #tpu.memory_space<vmem>>, %arg27: memref<1x256xf32, #tpu.memory_space<vmem>>, %arg28: memref<256x64xf32, #tpu.memory_space<vmem>>, %arg29: memref<1x64xf32, #tpu.memory_space<vmem>>, %arg30: memref<64x64xf32, #tpu.memory_space<vmem>>, %arg31: memref<1x64xf32, #tpu.memory_space<vmem>>, %arg32: memref<1x64xf32, #tpu.memory_space<vmem>>, %arg33: memref<1x64xf32, #tpu.memory_space<vmem>>, %arg34: memref<64x192xf32, #tpu.memory_space<vmem>>, %arg35: memref<32x64xf32, #tpu.memory_space<vmem>>, %arg36: memref<1x64xf32, #tpu.memory_space<vmem>>, %arg37: memref<32x64xf32, #tpu.memory_space<vmem>>, %arg38: memref<1x64xf32, #tpu.memory_space<vmem>>, %arg39: memref<1x64xf32, #tpu.memory_space<vmem>>, %arg40: memref<1x64xf32, #tpu.memory_space<vmem>>, %arg41: memref<1x64xf32, #tpu.memory_space<vmem>>, %arg42: memref<1x64xf32, #tpu.memory_space<vmem>>, %arg43: memref<64x256xf32, #tpu.memory_space<vmem>>, %arg44: memref<1x256xf32, #tpu.memory_space<vmem>>, %arg45: memref<256x64xf32, #tpu.memory_space<vmem>>, %arg46: memref<1x64xf32, #tpu.memory_space<vmem>>, %arg47: memref<64x256xf32, #tpu.memory_space<vmem>>, %arg48: memref<1x256xf32, #tpu.memory_space<vmem>>, %arg49: memref<256x64xf32, #tpu.memory_space<vmem>>, %arg50: memref<1x64xf32, #tpu.memory_space<vmem>>, %arg51: memref<1xf32, #tpu.memory_space<smem>>, %arg52: memref<2x2xf32, #tpu.memory_space<vmem>>) attributes {dimension_semantics = [#tpu.dimension_semantics<arbitrary>], iteration_bounds = array<i64: 1>, scalar_prefetch = 0 : i64, scratch_operands = 0 : i64, tpu.core_type = #tpu.core_type<tc>, window_params = [{pipeline_mode = #tpu.pipeline_mode<synchronous>, transform_indices = @transform_0, window_bounds = array<i64: 16, 64>}, {pipeline_mode = #tpu.pipeline_mode<synchronous>, transform_indices = @transform_1, window_bounds = array<i64: 16, 64>}, {pipeline_mode = #tpu.pipeline_mode<synchronous>, transform_indices = @transform_2, window_bounds = array<i64: 16, 16>}, {pipeline_mode = #tpu.pipeline_mode<synchronous>, transform_indices = @transform_3, window_bounds = array<i64: 16, 16>}, {pipeline_mode = #tpu.pipeline_mode<synchronous>, transform_indices = @transform_4, window_bounds = array<i64: 2, 16>}, {pipeline_mode = #tpu.pipeline_mode<synchronous>, transform_indices = @transform_5, window_bounds = array<i64: 2, 16>}, {pipeline_mode = #tpu.pipeline_mode<synchronous>, transform_indices = @transform_6, window_bounds = array<i64: 2, 64>}, {pipeline_mode = #tpu.pipeline_mode<synchronous>, transform_indices = @transform_7, window_bounds = array<i64: 2, 64>}, {pipeline_mode = #tpu.pipeline_mode<synchronous>, transform_indices = @transform_8, window_bounds = array<i64: 64, 64>}, {pipeline_mode = #tpu.pipeline_mode<synchronous>, transform_indices = @transform_9, window_bounds = array<i64: 1, 64>}, {pipeline_mode = #tpu.pipeline_mode<synchronous>, transform_indices = @transform_10, window_bounds = array<i64: 1, 64>}, {pipeline_mode = #tpu.pipeline_mode<synchronous>, transform_indices = @transform_11, window_bounds = array<i64: 1, 64>}, {pipeline_mode = #tpu.pipeline_mode<synchronous>, transform_indices = @transform_12, window_bounds = array<i64: 64, 192>}, {pipeline_mode = #tpu.pipeline_mode<synchronous>, transform_indices = @transform_13, window_bounds = array<i64: 32, 64>}, {pipeline_mode = #tpu.pipeline_mode<synchronous>, transform_indices = @transform_14, window_bounds = array<i64: 1, 64>}, {pipeline_mode = #tpu.pipeline_mode<synchronous>, transform_indices = @transform_15, window_bounds = array<i64: 32, 64>}, {pipeline_mode = #tpu.pipeline_mode<synchronous>, transform_indices = @transform_16, window_bounds = array<i64: 1, 64>}, {pipeline_mode = #tpu.pipeline_mode<synchronous>, transform_indices = @transform_17, window_bounds = array<i64: 1, 64>}, {pipeline_mode = #tpu.pipeline_mode<synchronous>, transform_indices = @transform_18, window_bounds = array<i64: 1, 64>}, {pipeline_mode = #tpu.pipeline_mode<synchronous>, transform_indices = @transform_19, window_bounds = array<i64: 1, 64>}, {pipeline_mode = #tpu.pipeline_mode<synchronous>, transform_indices = @transform_20, window_bounds = array<i64: 1, 64>}, {pipeline_mode = #tpu.pipeline_mode<synchronous>, transform_indices = @transform_21, window_bounds = array<i64: 64, 256>}, {pipeline_mode = #tpu.pipeline_mode<synchronous>, transform_indices = @transform_22, window_bounds = array<i64: 1, 256>}, {pipeline_mode = #tpu.pipeline_mode<synchronous>, transform_indices = @transform_23, window_bounds = array<i64: 256, 64>}, {pipeline_mode = #tpu.pipeline_mode<synchronous>, transform_indices = @transform_24, window_bounds = array<i64: 1, 64>}, {pipeline_mode = #tpu.pipeline_mode<synchronous>, transform_indices = @transform_25, window_bounds = array<i64: 64, 256>}, {pipeline_mode = #tpu.pipeline_mode<synchronous>, transform_indices = @transform_26, window_bounds = array<i64: 1, 256>}, {pipeline_mode = #tpu.pipeline_mode<synchronous>, transform_indices = @transform_27, window_bounds = array<i64: 256, 64>}, {pipeline_mode = #tpu.pipeline_mode<synchronous>, transform_indices = @transform_28, window_bounds = array<i64: 1, 64>}, {pipeline_mode = #tpu.pipeline_mode<synchronous>, transform_indices = @transform_29, window_bounds = array<i64: 64, 64>}, {pipeline_mode = #tpu.pipeline_mode<synchronous>, transform_indices = @transform_30, window_bounds = array<i64: 1, 64>}, {pipeline_mode = #tpu.pipeline_mode<synchronous>, transform_indices = @transform_31, window_bounds = array<i64: 1, 64>}, {pipeline_mode = #tpu.pipeline_mode<synchronous>, transform_indices = @transform_32, window_bounds = array<i64: 1, 64>}, {pipeline_mode = #tpu.pipeline_mode<synchronous>, transform_indices = @transform_33, window_bounds = array<i64: 64, 192>}, {pipeline_mode = #tpu.pipeline_mode<synchronous>, transform_indices = @transform_34, window_bounds = array<i64: 32, 64>}, {pipeline_mode = #tpu.pipeline_mode<synchronous>, transform_indices = @transform_35, window_bounds = array<i64: 1, 64>}, {pipeline_mode = #tpu.pipeline_mode<synchronous>, transform_indices = @transform_36, window_bounds = array<i64: 32, 64>}, {pipeline_mode = #tpu.pipeline_mode<synchronous>, transform_indices = @transform_37, window_bounds = array<i64: 1, 64>}, {pipeline_mode = #tpu.pipeline_mode<synchronous>, transform_indices = @transform_38, window_bounds = array<i64: 1, 64>}, {pipeline_mode = #tpu.pipeline_mode<synchronous>, transform_indices = @transform_39, window_bounds = array<i64: 1, 64>}, {pipeline_mode = #tpu.pipeline_mode<synchronous>, transform_indices = @transform_40, window_bounds = array<i64: 1, 64>}, {pipeline_mode = #tpu.pipeline_mode<synchronous>, transform_indices = @transform_41, window_bounds = array<i64: 1, 64>}, {pipeline_mode = #tpu.pipeline_mode<synchronous>, transform_indices = @transform_42, window_bounds = array<i64: 64, 256>}, {pipeline_mode = #tpu.pipeline_mode<synchronous>, transform_indices = @transform_43, window_bounds = array<i64: 1, 256>}, {pipeline_mode = #tpu.pipeline_mode<synchronous>, transform_indices = @transform_44, window_bounds = array<i64: 256, 64>}, {pipeline_mode = #tpu.pipeline_mode<synchronous>, transform_indices = @transform_45, window_bounds = array<i64: 1, 64>}, {pipeline_mode = #tpu.pipeline_mode<synchronous>, transform_indices = @transform_46, window_bounds = array<i64: 64, 256>}, {pipeline_mode = #tpu.pipeline_mode<synchronous>, transform_indices = @transform_47, window_bounds = array<i64: 1, 256>}, {pipeline_mode = #tpu.pipeline_mode<synchronous>, transform_indices = @transform_48, window_bounds = array<i64: 256, 64>}, {pipeline_mode = #tpu.pipeline_mode<synchronous>, transform_indices = @transform_49, window_bounds = array<i64: 1, 64>}, {transform_indices = @transform_50, window_bounds = array<i64: 1>}, {pipeline_mode = #tpu.pipeline_mode<synchronous>, transform_indices = @transform_51, window_bounds = array<i64: 2, 2>}]} {
    %c0 = arith.constant 0 : index
    %c0_0 = arith.constant 0 : index
    %0 = vector.load %arg1[%c0, %c0_0] : memref<16x64xf32, #tpu.memory_space<vmem>>, vector<16x64xf32>
    %c0_1 = arith.constant 0 : index
    %c0_2 = arith.constant 0 : index
    %1 = vector.load %arg3[%c0_1, %c0_2] : memref<16x16xf32, #tpu.memory_space<vmem>>, vector<16x16xf32>
    %c0_3 = arith.constant 0 : index
    %c0_4 = arith.constant 0 : index
    %2 = vector.load %arg9[%c0_3, %c0_4] : memref<64x64xf32, #tpu.memory_space<vmem>>, vector<64x64xf32>
    %cst = arith.constant dense<0.000000e+00> : vector<16x64xf32>
    %3 = tpu.matmul %0, %2, %cst {dimension_numbers = #tpu.dot_dimension_numbers<[1], [0], [0], [1], [0, 0, 1, 1], [], []>} : vector<16x64xf32>, vector<64x64xf32>, vector<16x64xf32> -> vector<16x64xf32>
    %c0_5 = arith.constant 0 : index
    %c0_6 = arith.constant 0 : index
    %4 = vector.load %arg10[%c0_5, %c0_6] : memref<1x64xf32, #tpu.memory_space<vmem>>, vector<1x64xf32>
    %5 = vector.broadcast %4 : vector<1x64xf32> to vector<16x64xf32>
    %6 = arith.addf %3, %5 : vector<16x64xf32>
    %cst_7 = arith.constant 5.000000e-01 : f32
    %7 = vector.broadcast %cst_7 : f32 to vector<16x64xf32>
    %8 = arith.mulf %7, %6 : vector<16x64xf32>
    %cst_8 = arith.constant 0.707106769 : f32
    %9 = vector.broadcast %cst_8 : f32 to vector<16x64xf32>
    %10 = arith.mulf %6, %9 : vector<16x64xf32>
    %11 = math.absf %10 : vector<16x64xf32>
    %cst_9 = arith.constant 0.327591091 : f32
    %12 = vector.broadcast %cst_9 : f32 to vector<16x64xf32>
    %13 = arith.mulf %12, %11 : vector<16x64xf32>
    %cst_10 = arith.constant 1.000000e+00 : f32
    %14 = vector.broadcast %cst_10 : f32 to vector<16x64xf32>
    %15 = arith.addf %14, %13 : vector<16x64xf32>
    %cst_11 = arith.constant 1.000000e+00 : f32
    %16 = vector.broadcast %cst_11 : f32 to vector<16x64xf32>
    %17 = arith.divf %16, %15 : vector<16x64xf32>
    %cst_12 = arith.constant 1.06140542 : f32
    %18 = vector.broadcast %cst_12 : f32 to vector<16x64xf32>
    %19 = arith.mulf %18, %17 : vector<16x64xf32>
    %cst_13 = arith.constant -1.45315206 : f32
    %20 = vector.broadcast %cst_13 : f32 to vector<16x64xf32>
    %21 = arith.addf %19, %20 : vector<16x64xf32>
    %22 = arith.mulf %21, %17 : vector<16x64xf32>
    %cst_14 = arith.constant 1.42141378 : f32
    %23 = vector.broadcast %cst_14 : f32 to vector<16x64xf32>
    %24 = arith.addf %22, %23 : vector<16x64xf32>
    %25 = arith.mulf %24, %17 : vector<16x64xf32>
    %cst_15 = arith.constant -0.284496725 : f32
    %26 = vector.broadcast %cst_15 : f32 to vector<16x64xf32>
    %27 = arith.addf %25, %26 : vector<16x64xf32>
    %28 = arith.mulf %27, %17 : vector<16x64xf32>
    %cst_16 = arith.constant 0.254829586 : f32
    %29 = vector.broadcast %cst_16 : f32 to vector<16x64xf32>
    %30 = arith.addf %28, %29 : vector<16x64xf32>
    %31 = arith.mulf %30, %17 : vector<16x64xf32>
    %cst_17 = arith.constant 0.000000e+00 : f32
    %32 = vector.broadcast %cst_17 : f32 to vector<16x64xf32>
    %33 = arith.subf %32, %11 : vector<16x64xf32>
    %34 = arith.mulf %33, %11 : vector<16x64xf32>
    %35 = math.exp %34 : vector<16x64xf32>
    %36 = arith.mulf %31, %35 : vector<16x64xf32>
    %cst_18 = arith.constant 1.000000e+00 : f32
    %37 = vector.broadcast %cst_18 : f32 to vector<16x64xf32>
    %38 = arith.subf %37, %36 : vector<16x64xf32>
    %cst_19 = arith.constant 0.000000e+00 : f32
    %39 = vector.broadcast %cst_19 : f32 to vector<16x64xf32>
    %40 = arith.cmpf oge, %10, %39 : vector<16x64xf32>
    %cst_20 = arith.constant 0.000000e+00 : f32
    %41 = vector.broadcast %cst_20 : f32 to vector<16x64xf32>
    %42 = arith.subf %41, %38 : vector<16x64xf32>
    %43 = arith.select %40, %38, %42 : vector<16x64xi1>, vector<16x64xf32>
    %cst_21 = arith.constant 1.000000e+00 : f32
    %44 = vector.broadcast %cst_21 : f32 to vector<16x64xf32>
    %45 = arith.addf %44, %43 : vector<16x64xf32>
    %46 = arith.mulf %8, %45 : vector<16x64xf32>
    %c0_22 = arith.constant 0 : index
    %c0_23 = arith.constant 0 : index
    %47 = vector.load %arg11[%c0_22, %c0_23] : memref<1x64xf32, #tpu.memory_space<vmem>>, vector<1x64xf32>
    %c0_24 = arith.constant 0 : index
    %c0_25 = arith.constant 0 : index
    %48 = vector.load %arg12[%c0_24, %c0_25] : memref<1x64xf32, #tpu.memory_space<vmem>>, vector<1x64xf32>
    %cst_26 = arith.constant dense<0.000000e+00> : vector<16xf32>
    %49 = vector.multi_reduction <add>, %46, %cst_26 [1] : vector<16x64xf32> to vector<16xf32>
    %50 = vector.shape_cast %49 : vector<16xf32> to vector<16x1xf32>
    %cst_27 = arith.constant 6.400000e+01 : f32
    %51 = vector.broadcast %cst_27 : f32 to vector<16x1xf32>
    %52 = arith.divf %50, %51 : vector<16x1xf32>
    %53 = vector.broadcast %52 : vector<16x1xf32> to vector<16x64xf32>
    %54 = arith.subf %46, %53 : vector<16x64xf32>
    %55 = arith.mulf %54, %54 : vector<16x64xf32>
    %cst_28 = arith.constant dense<0.000000e+00> : vector<16xf32>
    %56 = vector.multi_reduction <add>, %55, %cst_28 [1] : vector<16x64xf32> to vector<16xf32>
    %57 = vector.shape_cast %56 : vector<16xf32> to vector<16x1xf32>
    %cst_29 = arith.constant 6.400000e+01 : f32
    %58 = vector.broadcast %cst_29 : f32 to vector<16x1xf32>
    %59 = arith.divf %57, %58 : vector<16x1xf32>
    %60 = vector.broadcast %52 : vector<16x1xf32> to vector<16x64xf32>
    %61 = arith.subf %46, %60 : vector<16x64xf32>
    %cst_30 = arith.constant 9.99999974E-6 : f32
    %62 = vector.broadcast %cst_30 : f32 to vector<16x1xf32>
    %63 = arith.addf %59, %62 : vector<16x1xf32>
    %64 = math.rsqrt %63 : vector<16x1xf32>
    %65 = vector.broadcast %64 : vector<16x1xf32> to vector<16x64xf32>
    %66 = arith.mulf %61, %65 : vector<16x64xf32>
    %67 = vector.broadcast %47 : vector<1x64xf32> to vector<16x64xf32>
    %68 = arith.mulf %66, %67 : vector<16x64xf32>
    %69 = vector.broadcast %48 : vector<1x64xf32> to vector<16x64xf32>
    %70 = arith.addf %68, %69 : vector<16x64xf32>
    %c0_31 = arith.constant 0 : index
    %c0_32 = arith.constant 0 : index
    %71 = vector.load %arg13[%c0_31, %c0_32] : memref<64x192xf32, #tpu.memory_space<vmem>>, vector<64x192xf32>
    %cst_33 = arith.constant dense<0.000000e+00> : vector<16x192xf32>
    %72 = tpu.matmul %70, %71, %cst_33 {dimension_numbers = #tpu.dot_dimension_numbers<[1], [0], [0], [1], [0, 0, 1, 1], [], []>} : vector<16x64xf32>, vector<64x192xf32>, vector<16x192xf32> -> vector<16x192xf32>
    %cst_34 = arith.constant 0.000000e+00 : f32
    %73 = vector.broadcast %cst_34 : f32 to vector<16x64xf32>
    %c0_35 = arith.constant 0 : index
    %c0_36 = arith.constant 0 : index
    %74 = vector.load %arg15[%c0_35, %c0_36] : memref<1x64xf32, #tpu.memory_space<vmem>>, vector<1x64xf32>
    %75 = vector.broadcast %74 : vector<1x64xf32> to vector<16x64xf32>
    %76 = arith.addf %73, %75 : vector<16x64xf32>
    %cst_37 = arith.constant 0.000000e+00 : f32
    %77 = vector.broadcast %cst_37 : f32 to vector<16x64xf32>
    %c0_38 = arith.constant 0 : index
    %c0_39 = arith.constant 0 : index
    %78 = vector.load %arg17[%c0_38, %c0_39] : memref<1x64xf32, #tpu.memory_space<vmem>>, vector<1x64xf32>
    %79 = vector.broadcast %78 : vector<1x64xf32> to vector<16x64xf32>
    %80 = arith.addf %77, %79 : vector<16x64xf32>
    %c0_40 = arith.constant 0 : index
    %c0_41 = arith.constant 0 : index
    %81 = vector.load %arg14[%c0_40, %c0_41] : memref<32x64xf32, #tpu.memory_space<vmem>>, vector<32x64xf32>
    %c0_42 = arith.constant 0 : index
    %c0_43 = arith.constant 0 : index
    %82 = vector.load %arg16[%c0_42, %c0_43] : memref<32x64xf32, #tpu.memory_space<vmem>>, vector<32x64xf32>
    %83 = vector.extract_strided_slice %72 {offsets = [0, 0], sizes = [16, 8], strides = [1, 1]} : vector<16x192xf32> to vector<16x8xf32>
    %84 = vector.extract_strided_slice %72 {offsets = [0, 64], sizes = [16, 8], strides = [1, 1]} : vector<16x192xf32> to vector<16x8xf32>
    %85 = vector.extract_strided_slice %72 {offsets = [0, 128], sizes = [16, 8], strides = [1, 1]} : vector<16x192xf32> to vector<16x8xf32>
    %cst_44 = arith.constant dense<0.000000e+00> : vector<16x16xf32>
    %86 = tpu.matmul %83, %84, %cst_44 {dimension_numbers = #tpu.dot_dimension_numbers<[1], [1], [0], [0], [0, 0, 1, 0], [], []>} : vector<16x8xf32>, vector<16x8xf32>, vector<16x16xf32> -> vector<16x16xf32>
    %cst_45 = arith.constant 0.353553385 : f32
    %87 = vector.broadcast %cst_45 : f32 to vector<16x16xf32>
    %88 = arith.mulf %86, %87 : vector<16x16xf32>
    %89 = arith.addf %88, %1 : vector<16x16xf32>
    %cst_46 = arith.constant dense<0xFF800000> : vector<16xf32>
    %90 = vector.multi_reduction <maximumf>, %89, %cst_46 [1] : vector<16x16xf32> to vector<16xf32>
    %91 = vector.shape_cast %90 : vector<16xf32> to vector<16x1xf32>
    %92 = vector.broadcast %91 : vector<16x1xf32> to vector<16x16xf32>
    %93 = arith.subf %89, %92 : vector<16x16xf32>
    %94 = math.exp %93 : vector<16x16xf32>
    %cst_47 = arith.constant dense<0.000000e+00> : vector<16xf32>
    %95 = vector.multi_reduction <add>, %94, %cst_47 [1] : vector<16x16xf32> to vector<16xf32>
    %96 = vector.shape_cast %95 : vector<16xf32> to vector<16x1xf32>
    %97 = tpu.reciprocal %96 {approx = true} : vector<16x1xf32> -> vector<16x1xf32>
    %98 = vector.broadcast %97 : vector<16x1xf32> to vector<16x16xf32>
    %99 = arith.mulf %94, %98 : vector<16x16xf32>
    %cst_48 = arith.constant dense<0.000000e+00> : vector<16x8xf32>
    %100 = tpu.matmul %99, %85, %cst_48 {dimension_numbers = #tpu.dot_dimension_numbers<[1], [0], [0], [1], [0, 0, 1, 1], [], []>} : vector<16x16xf32>, vector<16x8xf32>, vector<16x8xf32> -> vector<16x8xf32>
    %101 = vector.extract_strided_slice %81 {offsets = [0, 0], sizes = [8, 64], strides = [1, 1]} : vector<32x64xf32> to vector<8x64xf32>
    %cst_49 = arith.constant dense<0.000000e+00> : vector<16x64xf32>
    %102 = tpu.matmul %100, %101, %cst_49 {dimension_numbers = #tpu.dot_dimension_numbers<[1], [0], [0], [1], [0, 0, 1, 1], [], []>} : vector<16x8xf32>, vector<8x64xf32>, vector<16x64xf32> -> vector<16x64xf32>
    %103 = arith.addf %76, %102 : vector<16x64xf32>
    %104 = vector.extract_strided_slice %72 {offsets = [0, 8], sizes = [16, 8], strides = [1, 1]} : vector<16x192xf32> to vector<16x8xf32>
    %105 = vector.extract_strided_slice %72 {offsets = [0, 72], sizes = [16, 8], strides = [1, 1]} : vector<16x192xf32> to vector<16x8xf32>
    %106 = vector.extract_strided_slice %72 {offsets = [0, 136], sizes = [16, 8], strides = [1, 1]} : vector<16x192xf32> to vector<16x8xf32>
    %cst_50 = arith.constant dense<0.000000e+00> : vector<16x16xf32>
    %107 = tpu.matmul %104, %105, %cst_50 {dimension_numbers = #tpu.dot_dimension_numbers<[1], [1], [0], [0], [0, 0, 1, 0], [], []>} : vector<16x8xf32>, vector<16x8xf32>, vector<16x16xf32> -> vector<16x16xf32>
    %cst_51 = arith.constant 0.353553385 : f32
    %108 = vector.broadcast %cst_51 : f32 to vector<16x16xf32>
    %109 = arith.mulf %107, %108 : vector<16x16xf32>
    %110 = arith.addf %109, %1 : vector<16x16xf32>
    %cst_52 = arith.constant dense<0xFF800000> : vector<16xf32>
    %111 = vector.multi_reduction <maximumf>, %110, %cst_52 [1] : vector<16x16xf32> to vector<16xf32>
    %112 = vector.shape_cast %111 : vector<16xf32> to vector<16x1xf32>
    %113 = vector.broadcast %112 : vector<16x1xf32> to vector<16x16xf32>
    %114 = arith.subf %110, %113 : vector<16x16xf32>
    %115 = math.exp %114 : vector<16x16xf32>
    %cst_53 = arith.constant dense<0.000000e+00> : vector<16xf32>
    %116 = vector.multi_reduction <add>, %115, %cst_53 [1] : vector<16x16xf32> to vector<16xf32>
    %117 = vector.shape_cast %116 : vector<16xf32> to vector<16x1xf32>
    %118 = tpu.reciprocal %117 {approx = true} : vector<16x1xf32> -> vector<16x1xf32>
    %119 = vector.broadcast %118 : vector<16x1xf32> to vector<16x16xf32>
    %120 = arith.mulf %115, %119 : vector<16x16xf32>
    %cst_54 = arith.constant dense<0.000000e+00> : vector<16x8xf32>
    %121 = tpu.matmul %120, %106, %cst_54 {dimension_numbers = #tpu.dot_dimension_numbers<[1], [0], [0], [1], [0, 0, 1, 1], [], []>} : vector<16x16xf32>, vector<16x8xf32>, vector<16x8xf32> -> vector<16x8xf32>
    %122 = vector.extract_strided_slice %81 {offsets = [8, 0], sizes = [8, 64], strides = [1, 1]} : vector<32x64xf32> to vector<8x64xf32>
    %cst_55 = arith.constant dense<0.000000e+00> : vector<16x64xf32>
    %123 = tpu.matmul %121, %122, %cst_55 {dimension_numbers = #tpu.dot_dimension_numbers<[1], [0], [0], [1], [0, 0, 1, 1], [], []>} : vector<16x8xf32>, vector<8x64xf32>, vector<16x64xf32> -> vector<16x64xf32>
    %124 = arith.addf %103, %123 : vector<16x64xf32>
    %125 = vector.extract_strided_slice %72 {offsets = [0, 16], sizes = [16, 8], strides = [1, 1]} : vector<16x192xf32> to vector<16x8xf32>
    %126 = vector.extract_strided_slice %72 {offsets = [0, 80], sizes = [16, 8], strides = [1, 1]} : vector<16x192xf32> to vector<16x8xf32>
    %127 = vector.extract_strided_slice %72 {offsets = [0, 144], sizes = [16, 8], strides = [1, 1]} : vector<16x192xf32> to vector<16x8xf32>
    %cst_56 = arith.constant dense<0.000000e+00> : vector<16x16xf32>
    %128 = tpu.matmul %125, %126, %cst_56 {dimension_numbers = #tpu.dot_dimension_numbers<[1], [1], [0], [0], [0, 0, 1, 0], [], []>} : vector<16x8xf32>, vector<16x8xf32>, vector<16x16xf32> -> vector<16x16xf32>
    %cst_57 = arith.constant 0.353553385 : f32
    %129 = vector.broadcast %cst_57 : f32 to vector<16x16xf32>
    %130 = arith.mulf %128, %129 : vector<16x16xf32>
    %131 = arith.addf %130, %1 : vector<16x16xf32>
    %cst_58 = arith.constant dense<0xFF800000> : vector<16xf32>
    %132 = vector.multi_reduction <maximumf>, %131, %cst_58 [1] : vector<16x16xf32> to vector<16xf32>
    %133 = vector.shape_cast %132 : vector<16xf32> to vector<16x1xf32>
    %134 = vector.broadcast %133 : vector<16x1xf32> to vector<16x16xf32>
    %135 = arith.subf %131, %134 : vector<16x16xf32>
    %136 = math.exp %135 : vector<16x16xf32>
    %cst_59 = arith.constant dense<0.000000e+00> : vector<16xf32>
    %137 = vector.multi_reduction <add>, %136, %cst_59 [1] : vector<16x16xf32> to vector<16xf32>
    %138 = vector.shape_cast %137 : vector<16xf32> to vector<16x1xf32>
    %139 = tpu.reciprocal %138 {approx = true} : vector<16x1xf32> -> vector<16x1xf32>
    %140 = vector.broadcast %139 : vector<16x1xf32> to vector<16x16xf32>
    %141 = arith.mulf %136, %140 : vector<16x16xf32>
    %cst_60 = arith.constant dense<0.000000e+00> : vector<16x8xf32>
    %142 = tpu.matmul %141, %127, %cst_60 {dimension_numbers = #tpu.dot_dimension_numbers<[1], [0], [0], [1], [0, 0, 1, 1], [], []>} : vector<16x16xf32>, vector<16x8xf32>, vector<16x8xf32> -> vector<16x8xf32>
    %143 = vector.extract_strided_slice %81 {offsets = [16, 0], sizes = [8, 64], strides = [1, 1]} : vector<32x64xf32> to vector<8x64xf32>
    %cst_61 = arith.constant dense<0.000000e+00> : vector<16x64xf32>
    %144 = tpu.matmul %142, %143, %cst_61 {dimension_numbers = #tpu.dot_dimension_numbers<[1], [0], [0], [1], [0, 0, 1, 1], [], []>} : vector<16x8xf32>, vector<8x64xf32>, vector<16x64xf32> -> vector<16x64xf32>
    %145 = arith.addf %124, %144 : vector<16x64xf32>
    %146 = vector.extract_strided_slice %72 {offsets = [0, 24], sizes = [16, 8], strides = [1, 1]} : vector<16x192xf32> to vector<16x8xf32>
    %147 = vector.extract_strided_slice %72 {offsets = [0, 88], sizes = [16, 8], strides = [1, 1]} : vector<16x192xf32> to vector<16x8xf32>
    %148 = vector.extract_strided_slice %72 {offsets = [0, 152], sizes = [16, 8], strides = [1, 1]} : vector<16x192xf32> to vector<16x8xf32>
    %cst_62 = arith.constant dense<0.000000e+00> : vector<16x16xf32>
    %149 = tpu.matmul %146, %147, %cst_62 {dimension_numbers = #tpu.dot_dimension_numbers<[1], [1], [0], [0], [0, 0, 1, 0], [], []>} : vector<16x8xf32>, vector<16x8xf32>, vector<16x16xf32> -> vector<16x16xf32>
    %cst_63 = arith.constant 0.353553385 : f32
    %150 = vector.broadcast %cst_63 : f32 to vector<16x16xf32>
    %151 = arith.mulf %149, %150 : vector<16x16xf32>
    %152 = arith.addf %151, %1 : vector<16x16xf32>
    %cst_64 = arith.constant dense<0xFF800000> : vector<16xf32>
    %153 = vector.multi_reduction <maximumf>, %152, %cst_64 [1] : vector<16x16xf32> to vector<16xf32>
    %154 = vector.shape_cast %153 : vector<16xf32> to vector<16x1xf32>
    %155 = vector.broadcast %154 : vector<16x1xf32> to vector<16x16xf32>
    %156 = arith.subf %152, %155 : vector<16x16xf32>
    %157 = math.exp %156 : vector<16x16xf32>
    %cst_65 = arith.constant dense<0.000000e+00> : vector<16xf32>
    %158 = vector.multi_reduction <add>, %157, %cst_65 [1] : vector<16x16xf32> to vector<16xf32>
    %159 = vector.shape_cast %158 : vector<16xf32> to vector<16x1xf32>
    %160 = tpu.reciprocal %159 {approx = true} : vector<16x1xf32> -> vector<16x1xf32>
    %161 = vector.broadcast %160 : vector<16x1xf32> to vector<16x16xf32>
    %162 = arith.mulf %157, %161 : vector<16x16xf32>
    %cst_66 = arith.constant dense<0.000000e+00> : vector<16x8xf32>
    %163 = tpu.matmul %162, %148, %cst_66 {dimension_numbers = #tpu.dot_dimension_numbers<[1], [0], [0], [1], [0, 0, 1, 1], [], []>} : vector<16x16xf32>, vector<16x8xf32>, vector<16x8xf32> -> vector<16x8xf32>
    %164 = vector.extract_strided_slice %81 {offsets = [24, 0], sizes = [8, 64], strides = [1, 1]} : vector<32x64xf32> to vector<8x64xf32>
    %cst_67 = arith.constant dense<0.000000e+00> : vector<16x64xf32>
    %165 = tpu.matmul %163, %164, %cst_67 {dimension_numbers = #tpu.dot_dimension_numbers<[1], [0], [0], [1], [0, 0, 1, 1], [], []>} : vector<16x8xf32>, vector<8x64xf32>, vector<16x64xf32> -> vector<16x64xf32>
    %166 = arith.addf %145, %165 : vector<16x64xf32>
    %167 = vector.extract_strided_slice %72 {offsets = [0, 32], sizes = [16, 8], strides = [1, 1]} : vector<16x192xf32> to vector<16x8xf32>
    %168 = vector.extract_strided_slice %72 {offsets = [0, 96], sizes = [16, 8], strides = [1, 1]} : vector<16x192xf32> to vector<16x8xf32>
    %169 = vector.extract_strided_slice %72 {offsets = [0, 160], sizes = [16, 8], strides = [1, 1]} : vector<16x192xf32> to vector<16x8xf32>
    %cst_68 = arith.constant dense<0.000000e+00> : vector<16x16xf32>
    %170 = tpu.matmul %167, %168, %cst_68 {dimension_numbers = #tpu.dot_dimension_numbers<[1], [1], [0], [0], [0, 0, 1, 0], [], []>} : vector<16x8xf32>, vector<16x8xf32>, vector<16x16xf32> -> vector<16x16xf32>
    %cst_69 = arith.constant 0.353553385 : f32
    %171 = vector.broadcast %cst_69 : f32 to vector<16x16xf32>
    %172 = arith.mulf %170, %171 : vector<16x16xf32>
    %173 = arith.addf %172, %1 : vector<16x16xf32>
    %cst_70 = arith.constant dense<0xFF800000> : vector<16xf32>
    %174 = vector.multi_reduction <maximumf>, %173, %cst_70 [1] : vector<16x16xf32> to vector<16xf32>
    %175 = vector.shape_cast %174 : vector<16xf32> to vector<16x1xf32>
    %176 = vector.broadcast %175 : vector<16x1xf32> to vector<16x16xf32>
    %177 = arith.subf %173, %176 : vector<16x16xf32>
    %178 = math.exp %177 : vector<16x16xf32>
    %cst_71 = arith.constant dense<0.000000e+00> : vector<16xf32>
    %179 = vector.multi_reduction <add>, %178, %cst_71 [1] : vector<16x16xf32> to vector<16xf32>
    %180 = vector.shape_cast %179 : vector<16xf32> to vector<16x1xf32>
    %181 = tpu.reciprocal %180 {approx = true} : vector<16x1xf32> -> vector<16x1xf32>
    %182 = vector.broadcast %181 : vector<16x1xf32> to vector<16x16xf32>
    %183 = arith.mulf %178, %182 : vector<16x16xf32>
    %cst_72 = arith.constant dense<0.000000e+00> : vector<16x8xf32>
    %184 = tpu.matmul %183, %169, %cst_72 {dimension_numbers = #tpu.dot_dimension_numbers<[1], [0], [0], [1], [0, 0, 1, 1], [], []>} : vector<16x16xf32>, vector<16x8xf32>, vector<16x8xf32> -> vector<16x8xf32>
    %185 = vector.extract_strided_slice %82 {offsets = [0, 0], sizes = [8, 64], strides = [1, 1]} : vector<32x64xf32> to vector<8x64xf32>
    %cst_73 = arith.constant dense<0.000000e+00> : vector<16x64xf32>
    %186 = tpu.matmul %184, %185, %cst_73 {dimension_numbers = #tpu.dot_dimension_numbers<[1], [0], [0], [1], [0, 0, 1, 1], [], []>} : vector<16x8xf32>, vector<8x64xf32>, vector<16x64xf32> -> vector<16x64xf32>
    %187 = arith.addf %80, %186 : vector<16x64xf32>
    %188 = vector.extract_strided_slice %72 {offsets = [0, 40], sizes = [16, 8], strides = [1, 1]} : vector<16x192xf32> to vector<16x8xf32>
    %189 = vector.extract_strided_slice %72 {offsets = [0, 104], sizes = [16, 8], strides = [1, 1]} : vector<16x192xf32> to vector<16x8xf32>
    %190 = vector.extract_strided_slice %72 {offsets = [0, 168], sizes = [16, 8], strides = [1, 1]} : vector<16x192xf32> to vector<16x8xf32>
    %cst_74 = arith.constant dense<0.000000e+00> : vector<16x16xf32>
    %191 = tpu.matmul %188, %189, %cst_74 {dimension_numbers = #tpu.dot_dimension_numbers<[1], [1], [0], [0], [0, 0, 1, 0], [], []>} : vector<16x8xf32>, vector<16x8xf32>, vector<16x16xf32> -> vector<16x16xf32>
    %cst_75 = arith.constant 0.353553385 : f32
    %192 = vector.broadcast %cst_75 : f32 to vector<16x16xf32>
    %193 = arith.mulf %191, %192 : vector<16x16xf32>
    %194 = arith.addf %193, %1 : vector<16x16xf32>
    %cst_76 = arith.constant dense<0xFF800000> : vector<16xf32>
    %195 = vector.multi_reduction <maximumf>, %194, %cst_76 [1] : vector<16x16xf32> to vector<16xf32>
    %196 = vector.shape_cast %195 : vector<16xf32> to vector<16x1xf32>
    %197 = vector.broadcast %196 : vector<16x1xf32> to vector<16x16xf32>
    %198 = arith.subf %194, %197 : vector<16x16xf32>
    %199 = math.exp %198 : vector<16x16xf32>
    %cst_77 = arith.constant dense<0.000000e+00> : vector<16xf32>
    %200 = vector.multi_reduction <add>, %199, %cst_77 [1] : vector<16x16xf32> to vector<16xf32>
    %201 = vector.shape_cast %200 : vector<16xf32> to vector<16x1xf32>
    %202 = tpu.reciprocal %201 {approx = true} : vector<16x1xf32> -> vector<16x1xf32>
    %203 = vector.broadcast %202 : vector<16x1xf32> to vector<16x16xf32>
    %204 = arith.mulf %199, %203 : vector<16x16xf32>
    %cst_78 = arith.constant dense<0.000000e+00> : vector<16x8xf32>
    %205 = tpu.matmul %204, %190, %cst_78 {dimension_numbers = #tpu.dot_dimension_numbers<[1], [0], [0], [1], [0, 0, 1, 1], [], []>} : vector<16x16xf32>, vector<16x8xf32>, vector<16x8xf32> -> vector<16x8xf32>
    %206 = vector.extract_strided_slice %82 {offsets = [8, 0], sizes = [8, 64], strides = [1, 1]} : vector<32x64xf32> to vector<8x64xf32>
    %cst_79 = arith.constant dense<0.000000e+00> : vector<16x64xf32>
    %207 = tpu.matmul %205, %206, %cst_79 {dimension_numbers = #tpu.dot_dimension_numbers<[1], [0], [0], [1], [0, 0, 1, 1], [], []>} : vector<16x8xf32>, vector<8x64xf32>, vector<16x64xf32> -> vector<16x64xf32>
    %208 = arith.addf %187, %207 : vector<16x64xf32>
    %209 = vector.extract_strided_slice %72 {offsets = [0, 48], sizes = [16, 8], strides = [1, 1]} : vector<16x192xf32> to vector<16x8xf32>
    %210 = vector.extract_strided_slice %72 {offsets = [0, 112], sizes = [16, 8], strides = [1, 1]} : vector<16x192xf32> to vector<16x8xf32>
    %211 = vector.extract_strided_slice %72 {offsets = [0, 176], sizes = [16, 8], strides = [1, 1]} : vector<16x192xf32> to vector<16x8xf32>
    %cst_80 = arith.constant dense<0.000000e+00> : vector<16x16xf32>
    %212 = tpu.matmul %209, %210, %cst_80 {dimension_numbers = #tpu.dot_dimension_numbers<[1], [1], [0], [0], [0, 0, 1, 0], [], []>} : vector<16x8xf32>, vector<16x8xf32>, vector<16x16xf32> -> vector<16x16xf32>
    %cst_81 = arith.constant 0.353553385 : f32
    %213 = vector.broadcast %cst_81 : f32 to vector<16x16xf32>
    %214 = arith.mulf %212, %213 : vector<16x16xf32>
    %215 = arith.addf %214, %1 : vector<16x16xf32>
    %cst_82 = arith.constant dense<0xFF800000> : vector<16xf32>
    %216 = vector.multi_reduction <maximumf>, %215, %cst_82 [1] : vector<16x16xf32> to vector<16xf32>
    %217 = vector.shape_cast %216 : vector<16xf32> to vector<16x1xf32>
    %218 = vector.broadcast %217 : vector<16x1xf32> to vector<16x16xf32>
    %219 = arith.subf %215, %218 : vector<16x16xf32>
    %220 = math.exp %219 : vector<16x16xf32>
    %cst_83 = arith.constant dense<0.000000e+00> : vector<16xf32>
    %221 = vector.multi_reduction <add>, %220, %cst_83 [1] : vector<16x16xf32> to vector<16xf32>
    %222 = vector.shape_cast %221 : vector<16xf32> to vector<16x1xf32>
    %223 = tpu.reciprocal %222 {approx = true} : vector<16x1xf32> -> vector<16x1xf32>
    %224 = vector.broadcast %223 : vector<16x1xf32> to vector<16x16xf32>
    %225 = arith.mulf %220, %224 : vector<16x16xf32>
    %cst_84 = arith.constant dense<0.000000e+00> : vector<16x8xf32>
    %226 = tpu.matmul %225, %211, %cst_84 {dimension_numbers = #tpu.dot_dimension_numbers<[1], [0], [0], [1], [0, 0, 1, 1], [], []>} : vector<16x16xf32>, vector<16x8xf32>, vector<16x8xf32> -> vector<16x8xf32>
    %227 = vector.extract_strided_slice %82 {offsets = [16, 0], sizes = [8, 64], strides = [1, 1]} : vector<32x64xf32> to vector<8x64xf32>
    %cst_85 = arith.constant dense<0.000000e+00> : vector<16x64xf32>
    %228 = tpu.matmul %226, %227, %cst_85 {dimension_numbers = #tpu.dot_dimension_numbers<[1], [0], [0], [1], [0, 0, 1, 1], [], []>} : vector<16x8xf32>, vector<8x64xf32>, vector<16x64xf32> -> vector<16x64xf32>
    %229 = arith.addf %208, %228 : vector<16x64xf32>
    %230 = vector.extract_strided_slice %72 {offsets = [0, 56], sizes = [16, 8], strides = [1, 1]} : vector<16x192xf32> to vector<16x8xf32>
    %231 = vector.extract_strided_slice %72 {offsets = [0, 120], sizes = [16, 8], strides = [1, 1]} : vector<16x192xf32> to vector<16x8xf32>
    %232 = vector.extract_strided_slice %72 {offsets = [0, 184], sizes = [16, 8], strides = [1, 1]} : vector<16x192xf32> to vector<16x8xf32>
    %cst_86 = arith.constant dense<0.000000e+00> : vector<16x16xf32>
    %233 = tpu.matmul %230, %231, %cst_86 {dimension_numbers = #tpu.dot_dimension_numbers<[1], [1], [0], [0], [0, 0, 1, 0], [], []>} : vector<16x8xf32>, vector<16x8xf32>, vector<16x16xf32> -> vector<16x16xf32>
    %cst_87 = arith.constant 0.353553385 : f32
    %234 = vector.broadcast %cst_87 : f32 to vector<16x16xf32>
    %235 = arith.mulf %233, %234 : vector<16x16xf32>
    %236 = arith.addf %235, %1 : vector<16x16xf32>
    %cst_88 = arith.constant dense<0xFF800000> : vector<16xf32>
    %237 = vector.multi_reduction <maximumf>, %236, %cst_88 [1] : vector<16x16xf32> to vector<16xf32>
    %238 = vector.shape_cast %237 : vector<16xf32> to vector<16x1xf32>
    %239 = vector.broadcast %238 : vector<16x1xf32> to vector<16x16xf32>
    %240 = arith.subf %236, %239 : vector<16x16xf32>
    %241 = math.exp %240 : vector<16x16xf32>
    %cst_89 = arith.constant dense<0.000000e+00> : vector<16xf32>
    %242 = vector.multi_reduction <add>, %241, %cst_89 [1] : vector<16x16xf32> to vector<16xf32>
    %243 = vector.shape_cast %242 : vector<16xf32> to vector<16x1xf32>
    %244 = tpu.reciprocal %243 {approx = true} : vector<16x1xf32> -> vector<16x1xf32>
    %245 = vector.broadcast %244 : vector<16x1xf32> to vector<16x16xf32>
    %246 = arith.mulf %241, %245 : vector<16x16xf32>
    %cst_90 = arith.constant dense<0.000000e+00> : vector<16x8xf32>
    %247 = tpu.matmul %246, %232, %cst_90 {dimension_numbers = #tpu.dot_dimension_numbers<[1], [0], [0], [1], [0, 0, 1, 1], [], []>} : vector<16x16xf32>, vector<16x8xf32>, vector<16x8xf32> -> vector<16x8xf32>
    %248 = vector.extract_strided_slice %82 {offsets = [24, 0], sizes = [8, 64], strides = [1, 1]} : vector<32x64xf32> to vector<8x64xf32>
    %cst_91 = arith.constant dense<0.000000e+00> : vector<16x64xf32>
    %249 = tpu.matmul %247, %248, %cst_91 {dimension_numbers = #tpu.dot_dimension_numbers<[1], [0], [0], [1], [0, 0, 1, 1], [], []>} : vector<16x8xf32>, vector<8x64xf32>, vector<16x64xf32> -> vector<16x64xf32>
    %250 = arith.addf %229, %249 : vector<16x64xf32>
    %251 = arith.addf %0, %166 : vector<16x64xf32>
    %c0_92 = arith.constant 0 : index
    %c0_93 = arith.constant 0 : index
    %252 = vector.load %arg18[%c0_92, %c0_93] : memref<1x64xf32, #tpu.memory_space<vmem>>, vector<1x64xf32>
    %c0_94 = arith.constant 0 : index
    %c0_95 = arith.constant 0 : index
    %253 = vector.load %arg19[%c0_94, %c0_95] : memref<1x64xf32, #tpu.memory_space<vmem>>, vector<1x64xf32>
    %cst_96 = arith.constant dense<0.000000e+00> : vector<16xf32>
    %254 = vector.multi_reduction <add>, %251, %cst_96 [1] : vector<16x64xf32> to vector<16xf32>
    %255 = vector.shape_cast %254 : vector<16xf32> to vector<16x1xf32>
    %cst_97 = arith.constant 6.400000e+01 : f32
    %256 = vector.broadcast %cst_97 : f32 to vector<16x1xf32>
    %257 = arith.divf %255, %256 : vector<16x1xf32>
    %258 = vector.broadcast %257 : vector<16x1xf32> to vector<16x64xf32>
    %259 = arith.subf %251, %258 : vector<16x64xf32>
    %260 = arith.mulf %259, %259 : vector<16x64xf32>
    %cst_98 = arith.constant dense<0.000000e+00> : vector<16xf32>
    %261 = vector.multi_reduction <add>, %260, %cst_98 [1] : vector<16x64xf32> to vector<16xf32>
    %262 = vector.shape_cast %261 : vector<16xf32> to vector<16x1xf32>
    %cst_99 = arith.constant 6.400000e+01 : f32
    %263 = vector.broadcast %cst_99 : f32 to vector<16x1xf32>
    %264 = arith.divf %262, %263 : vector<16x1xf32>
    %265 = vector.broadcast %257 : vector<16x1xf32> to vector<16x64xf32>
    %266 = arith.subf %251, %265 : vector<16x64xf32>
    %cst_100 = arith.constant 9.99999974E-6 : f32
    %267 = vector.broadcast %cst_100 : f32 to vector<16x1xf32>
    %268 = arith.addf %264, %267 : vector<16x1xf32>
    %269 = math.rsqrt %268 : vector<16x1xf32>
    %270 = vector.broadcast %269 : vector<16x1xf32> to vector<16x64xf32>
    %271 = arith.mulf %266, %270 : vector<16x64xf32>
    %272 = vector.broadcast %252 : vector<1x64xf32> to vector<16x64xf32>
    %273 = arith.mulf %271, %272 : vector<16x64xf32>
    %274 = vector.broadcast %253 : vector<1x64xf32> to vector<16x64xf32>
    %275 = arith.addf %273, %274 : vector<16x64xf32>
    %c0_101 = arith.constant 0 : index
    %c0_102 = arith.constant 0 : index
    %276 = vector.load %arg22[%c0_101, %c0_102] : memref<64x256xf32, #tpu.memory_space<vmem>>, vector<64x256xf32>
    %cst_103 = arith.constant dense<0.000000e+00> : vector<16x256xf32>
    %277 = tpu.matmul %275, %276, %cst_103 {dimension_numbers = #tpu.dot_dimension_numbers<[1], [0], [0], [1], [0, 0, 1, 1], [], []>} : vector<16x64xf32>, vector<64x256xf32>, vector<16x256xf32> -> vector<16x256xf32>
    %c0_104 = arith.constant 0 : index
    %c0_105 = arith.constant 0 : index
    %278 = vector.load %arg23[%c0_104, %c0_105] : memref<1x256xf32, #tpu.memory_space<vmem>>, vector<1x256xf32>
    %279 = vector.broadcast %278 : vector<1x256xf32> to vector<16x256xf32>
    %280 = arith.addf %277, %279 : vector<16x256xf32>
    %cst_106 = arith.constant 5.000000e-01 : f32
    %281 = vector.broadcast %cst_106 : f32 to vector<16x256xf32>
    %282 = arith.mulf %281, %280 : vector<16x256xf32>
    %cst_107 = arith.constant 0.707106769 : f32
    %283 = vector.broadcast %cst_107 : f32 to vector<16x256xf32>
    %284 = arith.mulf %280, %283 : vector<16x256xf32>
    %285 = math.absf %284 : vector<16x256xf32>
    %cst_108 = arith.constant 0.327591091 : f32
    %286 = vector.broadcast %cst_108 : f32 to vector<16x256xf32>
    %287 = arith.mulf %286, %285 : vector<16x256xf32>
    %cst_109 = arith.constant 1.000000e+00 : f32
    %288 = vector.broadcast %cst_109 : f32 to vector<16x256xf32>
    %289 = arith.addf %288, %287 : vector<16x256xf32>
    %cst_110 = arith.constant 1.000000e+00 : f32
    %290 = vector.broadcast %cst_110 : f32 to vector<16x256xf32>
    %291 = arith.divf %290, %289 : vector<16x256xf32>
    %cst_111 = arith.constant 1.06140542 : f32
    %292 = vector.broadcast %cst_111 : f32 to vector<16x256xf32>
    %293 = arith.mulf %292, %291 : vector<16x256xf32>
    %cst_112 = arith.constant -1.45315206 : f32
    %294 = vector.broadcast %cst_112 : f32 to vector<16x256xf32>
    %295 = arith.addf %293, %294 : vector<16x256xf32>
    %296 = arith.mulf %295, %291 : vector<16x256xf32>
    %cst_113 = arith.constant 1.42141378 : f32
    %297 = vector.broadcast %cst_113 : f32 to vector<16x256xf32>
    %298 = arith.addf %296, %297 : vector<16x256xf32>
    %299 = arith.mulf %298, %291 : vector<16x256xf32>
    %cst_114 = arith.constant -0.284496725 : f32
    %300 = vector.broadcast %cst_114 : f32 to vector<16x256xf32>
    %301 = arith.addf %299, %300 : vector<16x256xf32>
    %302 = arith.mulf %301, %291 : vector<16x256xf32>
    %cst_115 = arith.constant 0.254829586 : f32
    %303 = vector.broadcast %cst_115 : f32 to vector<16x256xf32>
    %304 = arith.addf %302, %303 : vector<16x256xf32>
    %305 = arith.mulf %304, %291 : vector<16x256xf32>
    %cst_116 = arith.constant 0.000000e+00 : f32
    %306 = vector.broadcast %cst_116 : f32 to vector<16x256xf32>
    %307 = arith.subf %306, %285 : vector<16x256xf32>
    %308 = arith.mulf %307, %285 : vector<16x256xf32>
    %309 = math.exp %308 : vector<16x256xf32>
    %310 = arith.mulf %305, %309 : vector<16x256xf32>
    %cst_117 = arith.constant 1.000000e+00 : f32
    %311 = vector.broadcast %cst_117 : f32 to vector<16x256xf32>
    %312 = arith.subf %311, %310 : vector<16x256xf32>
    %cst_118 = arith.constant 0.000000e+00 : f32
    %313 = vector.broadcast %cst_118 : f32 to vector<16x256xf32>
    %314 = arith.cmpf oge, %284, %313 : vector<16x256xf32>
    %cst_119 = arith.constant 0.000000e+00 : f32
    %315 = vector.broadcast %cst_119 : f32 to vector<16x256xf32>
    %316 = arith.subf %315, %312 : vector<16x256xf32>
    %317 = arith.select %314, %312, %316 : vector<16x256xi1>, vector<16x256xf32>
    %cst_120 = arith.constant 1.000000e+00 : f32
    %318 = vector.broadcast %cst_120 : f32 to vector<16x256xf32>
    %319 = arith.addf %318, %317 : vector<16x256xf32>
    %320 = arith.mulf %282, %319 : vector<16x256xf32>
    %c0_121 = arith.constant 0 : index
    %c0_122 = arith.constant 0 : index
    %321 = vector.load %arg24[%c0_121, %c0_122] : memref<256x64xf32, #tpu.memory_space<vmem>>, vector<256x64xf32>
    %cst_123 = arith.constant dense<0.000000e+00> : vector<16x64xf32>
    %322 = tpu.matmul %320, %321, %cst_123 {dimension_numbers = #tpu.dot_dimension_numbers<[1], [0], [0], [1], [0, 0, 1, 1], [], []>} : vector<16x256xf32>, vector<256x64xf32>, vector<16x64xf32> -> vector<16x64xf32>
    %323 = arith.addf %251, %322 : vector<16x64xf32>
    %c0_124 = arith.constant 0 : index
    %c0_125 = arith.constant 0 : index
    %324 = vector.load %arg25[%c0_124, %c0_125] : memref<1x64xf32, #tpu.memory_space<vmem>>, vector<1x64xf32>
    %325 = vector.broadcast %324 : vector<1x64xf32> to vector<16x64xf32>
    %326 = arith.addf %323, %325 : vector<16x64xf32>
    %c0_126 = arith.constant 0 : index
    %c0_127 = arith.constant 0 : index
    %327 = vector.load %arg20[%c0_126, %c0_127] : memref<1x64xf32, #tpu.memory_space<vmem>>, vector<1x64xf32>
    %c0_128 = arith.constant 0 : index
    %c0_129 = arith.constant 0 : index
    %328 = vector.load %arg21[%c0_128, %c0_129] : memref<1x64xf32, #tpu.memory_space<vmem>>, vector<1x64xf32>
    %cst_130 = arith.constant dense<0.000000e+00> : vector<16xf32>
    %329 = vector.multi_reduction <add>, %250, %cst_130 [1] : vector<16x64xf32> to vector<16xf32>
    %330 = vector.shape_cast %329 : vector<16xf32> to vector<16x1xf32>
    %cst_131 = arith.constant 6.400000e+01 : f32
    %331 = vector.broadcast %cst_131 : f32 to vector<16x1xf32>
    %332 = arith.divf %330, %331 : vector<16x1xf32>
    %333 = vector.broadcast %332 : vector<16x1xf32> to vector<16x64xf32>
    %334 = arith.subf %250, %333 : vector<16x64xf32>
    %335 = arith.mulf %334, %334 : vector<16x64xf32>
    %cst_132 = arith.constant dense<0.000000e+00> : vector<16xf32>
    %336 = vector.multi_reduction <add>, %335, %cst_132 [1] : vector<16x64xf32> to vector<16xf32>
    %337 = vector.shape_cast %336 : vector<16xf32> to vector<16x1xf32>
    %cst_133 = arith.constant 6.400000e+01 : f32
    %338 = vector.broadcast %cst_133 : f32 to vector<16x1xf32>
    %339 = arith.divf %337, %338 : vector<16x1xf32>
    %340 = vector.broadcast %332 : vector<16x1xf32> to vector<16x64xf32>
    %341 = arith.subf %250, %340 : vector<16x64xf32>
    %cst_134 = arith.constant 9.99999974E-6 : f32
    %342 = vector.broadcast %cst_134 : f32 to vector<16x1xf32>
    %343 = arith.addf %339, %342 : vector<16x1xf32>
    %344 = math.rsqrt %343 : vector<16x1xf32>
    %345 = vector.broadcast %344 : vector<16x1xf32> to vector<16x64xf32>
    %346 = arith.mulf %341, %345 : vector<16x64xf32>
    %347 = vector.broadcast %327 : vector<1x64xf32> to vector<16x64xf32>
    %348 = arith.mulf %346, %347 : vector<16x64xf32>
    %349 = vector.broadcast %328 : vector<1x64xf32> to vector<16x64xf32>
    %350 = arith.addf %348, %349 : vector<16x64xf32>
    %c0_135 = arith.constant 0 : index
    %c0_136 = arith.constant 0 : index
    %351 = vector.load %arg26[%c0_135, %c0_136] : memref<64x256xf32, #tpu.memory_space<vmem>>, vector<64x256xf32>
    %cst_137 = arith.constant dense<0.000000e+00> : vector<16x256xf32>
    %352 = tpu.matmul %350, %351, %cst_137 {dimension_numbers = #tpu.dot_dimension_numbers<[1], [0], [0], [1], [0, 0, 1, 1], [], []>} : vector<16x64xf32>, vector<64x256xf32>, vector<16x256xf32> -> vector<16x256xf32>
    %c0_138 = arith.constant 0 : index
    %c0_139 = arith.constant 0 : index
    %353 = vector.load %arg27[%c0_138, %c0_139] : memref<1x256xf32, #tpu.memory_space<vmem>>, vector<1x256xf32>
    %354 = vector.broadcast %353 : vector<1x256xf32> to vector<16x256xf32>
    %355 = arith.addf %352, %354 : vector<16x256xf32>
    %cst_140 = arith.constant 5.000000e-01 : f32
    %356 = vector.broadcast %cst_140 : f32 to vector<16x256xf32>
    %357 = arith.mulf %356, %355 : vector<16x256xf32>
    %cst_141 = arith.constant 0.707106769 : f32
    %358 = vector.broadcast %cst_141 : f32 to vector<16x256xf32>
    %359 = arith.mulf %355, %358 : vector<16x256xf32>
    %360 = math.absf %359 : vector<16x256xf32>
    %cst_142 = arith.constant 0.327591091 : f32
    %361 = vector.broadcast %cst_142 : f32 to vector<16x256xf32>
    %362 = arith.mulf %361, %360 : vector<16x256xf32>
    %cst_143 = arith.constant 1.000000e+00 : f32
    %363 = vector.broadcast %cst_143 : f32 to vector<16x256xf32>
    %364 = arith.addf %363, %362 : vector<16x256xf32>
    %cst_144 = arith.constant 1.000000e+00 : f32
    %365 = vector.broadcast %cst_144 : f32 to vector<16x256xf32>
    %366 = arith.divf %365, %364 : vector<16x256xf32>
    %cst_145 = arith.constant 1.06140542 : f32
    %367 = vector.broadcast %cst_145 : f32 to vector<16x256xf32>
    %368 = arith.mulf %367, %366 : vector<16x256xf32>
    %cst_146 = arith.constant -1.45315206 : f32
    %369 = vector.broadcast %cst_146 : f32 to vector<16x256xf32>
    %370 = arith.addf %368, %369 : vector<16x256xf32>
    %371 = arith.mulf %370, %366 : vector<16x256xf32>
    %cst_147 = arith.constant 1.42141378 : f32
    %372 = vector.broadcast %cst_147 : f32 to vector<16x256xf32>
    %373 = arith.addf %371, %372 : vector<16x256xf32>
    %374 = arith.mulf %373, %366 : vector<16x256xf32>
    %cst_148 = arith.constant -0.284496725 : f32
    %375 = vector.broadcast %cst_148 : f32 to vector<16x256xf32>
    %376 = arith.addf %374, %375 : vector<16x256xf32>
    %377 = arith.mulf %376, %366 : vector<16x256xf32>
    %cst_149 = arith.constant 0.254829586 : f32
    %378 = vector.broadcast %cst_149 : f32 to vector<16x256xf32>
    %379 = arith.addf %377, %378 : vector<16x256xf32>
    %380 = arith.mulf %379, %366 : vector<16x256xf32>
    %cst_150 = arith.constant 0.000000e+00 : f32
    %381 = vector.broadcast %cst_150 : f32 to vector<16x256xf32>
    %382 = arith.subf %381, %360 : vector<16x256xf32>
    %383 = arith.mulf %382, %360 : vector<16x256xf32>
    %384 = math.exp %383 : vector<16x256xf32>
    %385 = arith.mulf %380, %384 : vector<16x256xf32>
    %cst_151 = arith.constant 1.000000e+00 : f32
    %386 = vector.broadcast %cst_151 : f32 to vector<16x256xf32>
    %387 = arith.subf %386, %385 : vector<16x256xf32>
    %cst_152 = arith.constant 0.000000e+00 : f32
    %388 = vector.broadcast %cst_152 : f32 to vector<16x256xf32>
    %389 = arith.cmpf oge, %359, %388 : vector<16x256xf32>
    %cst_153 = arith.constant 0.000000e+00 : f32
    %390 = vector.broadcast %cst_153 : f32 to vector<16x256xf32>
    %391 = arith.subf %390, %387 : vector<16x256xf32>
    %392 = arith.select %389, %387, %391 : vector<16x256xi1>, vector<16x256xf32>
    %cst_154 = arith.constant 1.000000e+00 : f32
    %393 = vector.broadcast %cst_154 : f32 to vector<16x256xf32>
    %394 = arith.addf %393, %392 : vector<16x256xf32>
    %395 = arith.mulf %357, %394 : vector<16x256xf32>
    %c0_155 = arith.constant 0 : index
    %c0_156 = arith.constant 0 : index
    %396 = vector.load %arg28[%c0_155, %c0_156] : memref<256x64xf32, #tpu.memory_space<vmem>>, vector<256x64xf32>
    %cst_157 = arith.constant dense<0.000000e+00> : vector<16x64xf32>
    %397 = tpu.matmul %395, %396, %cst_157 {dimension_numbers = #tpu.dot_dimension_numbers<[1], [0], [0], [1], [0, 0, 1, 1], [], []>} : vector<16x256xf32>, vector<256x64xf32>, vector<16x64xf32> -> vector<16x64xf32>
    %398 = arith.addf %250, %397 : vector<16x64xf32>
    %c0_158 = arith.constant 0 : index
    %c0_159 = arith.constant 0 : index
    %399 = vector.load %arg29[%c0_158, %c0_159] : memref<1x64xf32, #tpu.memory_space<vmem>>, vector<1x64xf32>
    %400 = vector.broadcast %399 : vector<1x64xf32> to vector<16x64xf32>
    %401 = arith.addf %398, %400 : vector<16x64xf32>
    %c0_160 = arith.constant 0 : index
    %c0_161 = arith.constant 0 : index
    %402 = vector.load %arg2[%c0_160, %c0_161] : memref<16x64xf32, #tpu.memory_space<vmem>>, vector<16x64xf32>
    %c0_162 = arith.constant 0 : index
    %c0_163 = arith.constant 0 : index
    %403 = vector.load %arg4[%c0_162, %c0_163] : memref<16x16xf32, #tpu.memory_space<vmem>>, vector<16x16xf32>
    %c0_164 = arith.constant 0 : index
    %c0_165 = arith.constant 0 : index
    %404 = vector.load %arg30[%c0_164, %c0_165] : memref<64x64xf32, #tpu.memory_space<vmem>>, vector<64x64xf32>
    %cst_166 = arith.constant dense<0.000000e+00> : vector<16x64xf32>
    %405 = tpu.matmul %402, %404, %cst_166 {dimension_numbers = #tpu.dot_dimension_numbers<[1], [0], [0], [1], [0, 0, 1, 1], [], []>} : vector<16x64xf32>, vector<64x64xf32>, vector<16x64xf32> -> vector<16x64xf32>
    %c0_167 = arith.constant 0 : index
    %c0_168 = arith.constant 0 : index
    %406 = vector.load %arg31[%c0_167, %c0_168] : memref<1x64xf32, #tpu.memory_space<vmem>>, vector<1x64xf32>
    %407 = vector.broadcast %406 : vector<1x64xf32> to vector<16x64xf32>
    %408 = arith.addf %405, %407 : vector<16x64xf32>
    %cst_169 = arith.constant 5.000000e-01 : f32
    %409 = vector.broadcast %cst_169 : f32 to vector<16x64xf32>
    %410 = arith.mulf %409, %408 : vector<16x64xf32>
    %cst_170 = arith.constant 0.707106769 : f32
    %411 = vector.broadcast %cst_170 : f32 to vector<16x64xf32>
    %412 = arith.mulf %408, %411 : vector<16x64xf32>
    %413 = math.absf %412 : vector<16x64xf32>
    %cst_171 = arith.constant 0.327591091 : f32
    %414 = vector.broadcast %cst_171 : f32 to vector<16x64xf32>
    %415 = arith.mulf %414, %413 : vector<16x64xf32>
    %cst_172 = arith.constant 1.000000e+00 : f32
    %416 = vector.broadcast %cst_172 : f32 to vector<16x64xf32>
    %417 = arith.addf %416, %415 : vector<16x64xf32>
    %cst_173 = arith.constant 1.000000e+00 : f32
    %418 = vector.broadcast %cst_173 : f32 to vector<16x64xf32>
    %419 = arith.divf %418, %417 : vector<16x64xf32>
    %cst_174 = arith.constant 1.06140542 : f32
    %420 = vector.broadcast %cst_174 : f32 to vector<16x64xf32>
    %421 = arith.mulf %420, %419 : vector<16x64xf32>
    %cst_175 = arith.constant -1.45315206 : f32
    %422 = vector.broadcast %cst_175 : f32 to vector<16x64xf32>
    %423 = arith.addf %421, %422 : vector<16x64xf32>
    %424 = arith.mulf %423, %419 : vector<16x64xf32>
    %cst_176 = arith.constant 1.42141378 : f32
    %425 = vector.broadcast %cst_176 : f32 to vector<16x64xf32>
    %426 = arith.addf %424, %425 : vector<16x64xf32>
    %427 = arith.mulf %426, %419 : vector<16x64xf32>
    %cst_177 = arith.constant -0.284496725 : f32
    %428 = vector.broadcast %cst_177 : f32 to vector<16x64xf32>
    %429 = arith.addf %427, %428 : vector<16x64xf32>
    %430 = arith.mulf %429, %419 : vector<16x64xf32>
    %cst_178 = arith.constant 0.254829586 : f32
    %431 = vector.broadcast %cst_178 : f32 to vector<16x64xf32>
    %432 = arith.addf %430, %431 : vector<16x64xf32>
    %433 = arith.mulf %432, %419 : vector<16x64xf32>
    %cst_179 = arith.constant 0.000000e+00 : f32
    %434 = vector.broadcast %cst_179 : f32 to vector<16x64xf32>
    %435 = arith.subf %434, %413 : vector<16x64xf32>
    %436 = arith.mulf %435, %413 : vector<16x64xf32>
    %437 = math.exp %436 : vector<16x64xf32>
    %438 = arith.mulf %433, %437 : vector<16x64xf32>
    %cst_180 = arith.constant 1.000000e+00 : f32
    %439 = vector.broadcast %cst_180 : f32 to vector<16x64xf32>
    %440 = arith.subf %439, %438 : vector<16x64xf32>
    %cst_181 = arith.constant 0.000000e+00 : f32
    %441 = vector.broadcast %cst_181 : f32 to vector<16x64xf32>
    %442 = arith.cmpf oge, %412, %441 : vector<16x64xf32>
    %cst_182 = arith.constant 0.000000e+00 : f32
    %443 = vector.broadcast %cst_182 : f32 to vector<16x64xf32>
    %444 = arith.subf %443, %440 : vector<16x64xf32>
    %445 = arith.select %442, %440, %444 : vector<16x64xi1>, vector<16x64xf32>
    %cst_183 = arith.constant 1.000000e+00 : f32
    %446 = vector.broadcast %cst_183 : f32 to vector<16x64xf32>
    %447 = arith.addf %446, %445 : vector<16x64xf32>
    %448 = arith.mulf %410, %447 : vector<16x64xf32>
    %c0_184 = arith.constant 0 : index
    %c0_185 = arith.constant 0 : index
    %449 = vector.load %arg32[%c0_184, %c0_185] : memref<1x64xf32, #tpu.memory_space<vmem>>, vector<1x64xf32>
    %c0_186 = arith.constant 0 : index
    %c0_187 = arith.constant 0 : index
    %450 = vector.load %arg33[%c0_186, %c0_187] : memref<1x64xf32, #tpu.memory_space<vmem>>, vector<1x64xf32>
    %cst_188 = arith.constant dense<0.000000e+00> : vector<16xf32>
    %451 = vector.multi_reduction <add>, %448, %cst_188 [1] : vector<16x64xf32> to vector<16xf32>
    %452 = vector.shape_cast %451 : vector<16xf32> to vector<16x1xf32>
    %cst_189 = arith.constant 6.400000e+01 : f32
    %453 = vector.broadcast %cst_189 : f32 to vector<16x1xf32>
    %454 = arith.divf %452, %453 : vector<16x1xf32>
    %455 = vector.broadcast %454 : vector<16x1xf32> to vector<16x64xf32>
    %456 = arith.subf %448, %455 : vector<16x64xf32>
    %457 = arith.mulf %456, %456 : vector<16x64xf32>
    %cst_190 = arith.constant dense<0.000000e+00> : vector<16xf32>
    %458 = vector.multi_reduction <add>, %457, %cst_190 [1] : vector<16x64xf32> to vector<16xf32>
    %459 = vector.shape_cast %458 : vector<16xf32> to vector<16x1xf32>
    %cst_191 = arith.constant 6.400000e+01 : f32
    %460 = vector.broadcast %cst_191 : f32 to vector<16x1xf32>
    %461 = arith.divf %459, %460 : vector<16x1xf32>
    %462 = vector.broadcast %454 : vector<16x1xf32> to vector<16x64xf32>
    %463 = arith.subf %448, %462 : vector<16x64xf32>
    %cst_192 = arith.constant 9.99999974E-6 : f32
    %464 = vector.broadcast %cst_192 : f32 to vector<16x1xf32>
    %465 = arith.addf %461, %464 : vector<16x1xf32>
    %466 = math.rsqrt %465 : vector<16x1xf32>
    %467 = vector.broadcast %466 : vector<16x1xf32> to vector<16x64xf32>
    %468 = arith.mulf %463, %467 : vector<16x64xf32>
    %469 = vector.broadcast %449 : vector<1x64xf32> to vector<16x64xf32>
    %470 = arith.mulf %468, %469 : vector<16x64xf32>
    %471 = vector.broadcast %450 : vector<1x64xf32> to vector<16x64xf32>
    %472 = arith.addf %470, %471 : vector<16x64xf32>
    %c0_193 = arith.constant 0 : index
    %c0_194 = arith.constant 0 : index
    %473 = vector.load %arg34[%c0_193, %c0_194] : memref<64x192xf32, #tpu.memory_space<vmem>>, vector<64x192xf32>
    %cst_195 = arith.constant dense<0.000000e+00> : vector<16x192xf32>
    %474 = tpu.matmul %472, %473, %cst_195 {dimension_numbers = #tpu.dot_dimension_numbers<[1], [0], [0], [1], [0, 0, 1, 1], [], []>} : vector<16x64xf32>, vector<64x192xf32>, vector<16x192xf32> -> vector<16x192xf32>
    %cst_196 = arith.constant 0.000000e+00 : f32
    %475 = vector.broadcast %cst_196 : f32 to vector<16x64xf32>
    %c0_197 = arith.constant 0 : index
    %c0_198 = arith.constant 0 : index
    %476 = vector.load %arg36[%c0_197, %c0_198] : memref<1x64xf32, #tpu.memory_space<vmem>>, vector<1x64xf32>
    %477 = vector.broadcast %476 : vector<1x64xf32> to vector<16x64xf32>
    %478 = arith.addf %475, %477 : vector<16x64xf32>
    %cst_199 = arith.constant 0.000000e+00 : f32
    %479 = vector.broadcast %cst_199 : f32 to vector<16x64xf32>
    %c0_200 = arith.constant 0 : index
    %c0_201 = arith.constant 0 : index
    %480 = vector.load %arg38[%c0_200, %c0_201] : memref<1x64xf32, #tpu.memory_space<vmem>>, vector<1x64xf32>
    %481 = vector.broadcast %480 : vector<1x64xf32> to vector<16x64xf32>
    %482 = arith.addf %479, %481 : vector<16x64xf32>
    %c0_202 = arith.constant 0 : index
    %c0_203 = arith.constant 0 : index
    %483 = vector.load %arg35[%c0_202, %c0_203] : memref<32x64xf32, #tpu.memory_space<vmem>>, vector<32x64xf32>
    %c0_204 = arith.constant 0 : index
    %c0_205 = arith.constant 0 : index
    %484 = vector.load %arg37[%c0_204, %c0_205] : memref<32x64xf32, #tpu.memory_space<vmem>>, vector<32x64xf32>
    %485 = vector.extract_strided_slice %474 {offsets = [0, 0], sizes = [16, 8], strides = [1, 1]} : vector<16x192xf32> to vector<16x8xf32>
    %486 = vector.extract_strided_slice %474 {offsets = [0, 64], sizes = [16, 8], strides = [1, 1]} : vector<16x192xf32> to vector<16x8xf32>
    %487 = vector.extract_strided_slice %474 {offsets = [0, 128], sizes = [16, 8], strides = [1, 1]} : vector<16x192xf32> to vector<16x8xf32>
    %cst_206 = arith.constant dense<0.000000e+00> : vector<16x16xf32>
    %488 = tpu.matmul %485, %486, %cst_206 {dimension_numbers = #tpu.dot_dimension_numbers<[1], [1], [0], [0], [0, 0, 1, 0], [], []>} : vector<16x8xf32>, vector<16x8xf32>, vector<16x16xf32> -> vector<16x16xf32>
    %cst_207 = arith.constant 0.353553385 : f32
    %489 = vector.broadcast %cst_207 : f32 to vector<16x16xf32>
    %490 = arith.mulf %488, %489 : vector<16x16xf32>
    %491 = arith.addf %490, %403 : vector<16x16xf32>
    %cst_208 = arith.constant dense<0xFF800000> : vector<16xf32>
    %492 = vector.multi_reduction <maximumf>, %491, %cst_208 [1] : vector<16x16xf32> to vector<16xf32>
    %493 = vector.shape_cast %492 : vector<16xf32> to vector<16x1xf32>
    %494 = vector.broadcast %493 : vector<16x1xf32> to vector<16x16xf32>
    %495 = arith.subf %491, %494 : vector<16x16xf32>
    %496 = math.exp %495 : vector<16x16xf32>
    %cst_209 = arith.constant dense<0.000000e+00> : vector<16xf32>
    %497 = vector.multi_reduction <add>, %496, %cst_209 [1] : vector<16x16xf32> to vector<16xf32>
    %498 = vector.shape_cast %497 : vector<16xf32> to vector<16x1xf32>
    %499 = tpu.reciprocal %498 {approx = true} : vector<16x1xf32> -> vector<16x1xf32>
    %500 = vector.broadcast %499 : vector<16x1xf32> to vector<16x16xf32>
    %501 = arith.mulf %496, %500 : vector<16x16xf32>
    %cst_210 = arith.constant dense<0.000000e+00> : vector<16x8xf32>
    %502 = tpu.matmul %501, %487, %cst_210 {dimension_numbers = #tpu.dot_dimension_numbers<[1], [0], [0], [1], [0, 0, 1, 1], [], []>} : vector<16x16xf32>, vector<16x8xf32>, vector<16x8xf32> -> vector<16x8xf32>
    %503 = vector.extract_strided_slice %483 {offsets = [0, 0], sizes = [8, 64], strides = [1, 1]} : vector<32x64xf32> to vector<8x64xf32>
    %cst_211 = arith.constant dense<0.000000e+00> : vector<16x64xf32>
    %504 = tpu.matmul %502, %503, %cst_211 {dimension_numbers = #tpu.dot_dimension_numbers<[1], [0], [0], [1], [0, 0, 1, 1], [], []>} : vector<16x8xf32>, vector<8x64xf32>, vector<16x64xf32> -> vector<16x64xf32>
    %505 = arith.addf %478, %504 : vector<16x64xf32>
    %506 = vector.extract_strided_slice %474 {offsets = [0, 8], sizes = [16, 8], strides = [1, 1]} : vector<16x192xf32> to vector<16x8xf32>
    %507 = vector.extract_strided_slice %474 {offsets = [0, 72], sizes = [16, 8], strides = [1, 1]} : vector<16x192xf32> to vector<16x8xf32>
    %508 = vector.extract_strided_slice %474 {offsets = [0, 136], sizes = [16, 8], strides = [1, 1]} : vector<16x192xf32> to vector<16x8xf32>
    %cst_212 = arith.constant dense<0.000000e+00> : vector<16x16xf32>
    %509 = tpu.matmul %506, %507, %cst_212 {dimension_numbers = #tpu.dot_dimension_numbers<[1], [1], [0], [0], [0, 0, 1, 0], [], []>} : vector<16x8xf32>, vector<16x8xf32>, vector<16x16xf32> -> vector<16x16xf32>
    %cst_213 = arith.constant 0.353553385 : f32
    %510 = vector.broadcast %cst_213 : f32 to vector<16x16xf32>
    %511 = arith.mulf %509, %510 : vector<16x16xf32>
    %512 = arith.addf %511, %403 : vector<16x16xf32>
    %cst_214 = arith.constant dense<0xFF800000> : vector<16xf32>
    %513 = vector.multi_reduction <maximumf>, %512, %cst_214 [1] : vector<16x16xf32> to vector<16xf32>
    %514 = vector.shape_cast %513 : vector<16xf32> to vector<16x1xf32>
    %515 = vector.broadcast %514 : vector<16x1xf32> to vector<16x16xf32>
    %516 = arith.subf %512, %515 : vector<16x16xf32>
    %517 = math.exp %516 : vector<16x16xf32>
    %cst_215 = arith.constant dense<0.000000e+00> : vector<16xf32>
    %518 = vector.multi_reduction <add>, %517, %cst_215 [1] : vector<16x16xf32> to vector<16xf32>
    %519 = vector.shape_cast %518 : vector<16xf32> to vector<16x1xf32>
    %520 = tpu.reciprocal %519 {approx = true} : vector<16x1xf32> -> vector<16x1xf32>
    %521 = vector.broadcast %520 : vector<16x1xf32> to vector<16x16xf32>
    %522 = arith.mulf %517, %521 : vector<16x16xf32>
    %cst_216 = arith.constant dense<0.000000e+00> : vector<16x8xf32>
    %523 = tpu.matmul %522, %508, %cst_216 {dimension_numbers = #tpu.dot_dimension_numbers<[1], [0], [0], [1], [0, 0, 1, 1], [], []>} : vector<16x16xf32>, vector<16x8xf32>, vector<16x8xf32> -> vector<16x8xf32>
    %524 = vector.extract_strided_slice %483 {offsets = [8, 0], sizes = [8, 64], strides = [1, 1]} : vector<32x64xf32> to vector<8x64xf32>
    %cst_217 = arith.constant dense<0.000000e+00> : vector<16x64xf32>
    %525 = tpu.matmul %523, %524, %cst_217 {dimension_numbers = #tpu.dot_dimension_numbers<[1], [0], [0], [1], [0, 0, 1, 1], [], []>} : vector<16x8xf32>, vector<8x64xf32>, vector<16x64xf32> -> vector<16x64xf32>
    %526 = arith.addf %505, %525 : vector<16x64xf32>
    %527 = vector.extract_strided_slice %474 {offsets = [0, 16], sizes = [16, 8], strides = [1, 1]} : vector<16x192xf32> to vector<16x8xf32>
    %528 = vector.extract_strided_slice %474 {offsets = [0, 80], sizes = [16, 8], strides = [1, 1]} : vector<16x192xf32> to vector<16x8xf32>
    %529 = vector.extract_strided_slice %474 {offsets = [0, 144], sizes = [16, 8], strides = [1, 1]} : vector<16x192xf32> to vector<16x8xf32>
    %cst_218 = arith.constant dense<0.000000e+00> : vector<16x16xf32>
    %530 = tpu.matmul %527, %528, %cst_218 {dimension_numbers = #tpu.dot_dimension_numbers<[1], [1], [0], [0], [0, 0, 1, 0], [], []>} : vector<16x8xf32>, vector<16x8xf32>, vector<16x16xf32> -> vector<16x16xf32>
    %cst_219 = arith.constant 0.353553385 : f32
    %531 = vector.broadcast %cst_219 : f32 to vector<16x16xf32>
    %532 = arith.mulf %530, %531 : vector<16x16xf32>
    %533 = arith.addf %532, %403 : vector<16x16xf32>
    %cst_220 = arith.constant dense<0xFF800000> : vector<16xf32>
    %534 = vector.multi_reduction <maximumf>, %533, %cst_220 [1] : vector<16x16xf32> to vector<16xf32>
    %535 = vector.shape_cast %534 : vector<16xf32> to vector<16x1xf32>
    %536 = vector.broadcast %535 : vector<16x1xf32> to vector<16x16xf32>
    %537 = arith.subf %533, %536 : vector<16x16xf32>
    %538 = math.exp %537 : vector<16x16xf32>
    %cst_221 = arith.constant dense<0.000000e+00> : vector<16xf32>
    %539 = vector.multi_reduction <add>, %538, %cst_221 [1] : vector<16x16xf32> to vector<16xf32>
    %540 = vector.shape_cast %539 : vector<16xf32> to vector<16x1xf32>
    %541 = tpu.reciprocal %540 {approx = true} : vector<16x1xf32> -> vector<16x1xf32>
    %542 = vector.broadcast %541 : vector<16x1xf32> to vector<16x16xf32>
    %543 = arith.mulf %538, %542 : vector<16x16xf32>
    %cst_222 = arith.constant dense<0.000000e+00> : vector<16x8xf32>
    %544 = tpu.matmul %543, %529, %cst_222 {dimension_numbers = #tpu.dot_dimension_numbers<[1], [0], [0], [1], [0, 0, 1, 1], [], []>} : vector<16x16xf32>, vector<16x8xf32>, vector<16x8xf32> -> vector<16x8xf32>
    %545 = vector.extract_strided_slice %483 {offsets = [16, 0], sizes = [8, 64], strides = [1, 1]} : vector<32x64xf32> to vector<8x64xf32>
    %cst_223 = arith.constant dense<0.000000e+00> : vector<16x64xf32>
    %546 = tpu.matmul %544, %545, %cst_223 {dimension_numbers = #tpu.dot_dimension_numbers<[1], [0], [0], [1], [0, 0, 1, 1], [], []>} : vector<16x8xf32>, vector<8x64xf32>, vector<16x64xf32> -> vector<16x64xf32>
    %547 = arith.addf %526, %546 : vector<16x64xf32>
    %548 = vector.extract_strided_slice %474 {offsets = [0, 24], sizes = [16, 8], strides = [1, 1]} : vector<16x192xf32> to vector<16x8xf32>
    %549 = vector.extract_strided_slice %474 {offsets = [0, 88], sizes = [16, 8], strides = [1, 1]} : vector<16x192xf32> to vector<16x8xf32>
    %550 = vector.extract_strided_slice %474 {offsets = [0, 152], sizes = [16, 8], strides = [1, 1]} : vector<16x192xf32> to vector<16x8xf32>
    %cst_224 = arith.constant dense<0.000000e+00> : vector<16x16xf32>
    %551 = tpu.matmul %548, %549, %cst_224 {dimension_numbers = #tpu.dot_dimension_numbers<[1], [1], [0], [0], [0, 0, 1, 0], [], []>} : vector<16x8xf32>, vector<16x8xf32>, vector<16x16xf32> -> vector<16x16xf32>
    %cst_225 = arith.constant 0.353553385 : f32
    %552 = vector.broadcast %cst_225 : f32 to vector<16x16xf32>
    %553 = arith.mulf %551, %552 : vector<16x16xf32>
    %554 = arith.addf %553, %403 : vector<16x16xf32>
    %cst_226 = arith.constant dense<0xFF800000> : vector<16xf32>
    %555 = vector.multi_reduction <maximumf>, %554, %cst_226 [1] : vector<16x16xf32> to vector<16xf32>
    %556 = vector.shape_cast %555 : vector<16xf32> to vector<16x1xf32>
    %557 = vector.broadcast %556 : vector<16x1xf32> to vector<16x16xf32>
    %558 = arith.subf %554, %557 : vector<16x16xf32>
    %559 = math.exp %558 : vector<16x16xf32>
    %cst_227 = arith.constant dense<0.000000e+00> : vector<16xf32>
    %560 = vector.multi_reduction <add>, %559, %cst_227 [1] : vector<16x16xf32> to vector<16xf32>
    %561 = vector.shape_cast %560 : vector<16xf32> to vector<16x1xf32>
    %562 = tpu.reciprocal %561 {approx = true} : vector<16x1xf32> -> vector<16x1xf32>
    %563 = vector.broadcast %562 : vector<16x1xf32> to vector<16x16xf32>
    %564 = arith.mulf %559, %563 : vector<16x16xf32>
    %cst_228 = arith.constant dense<0.000000e+00> : vector<16x8xf32>
    %565 = tpu.matmul %564, %550, %cst_228 {dimension_numbers = #tpu.dot_dimension_numbers<[1], [0], [0], [1], [0, 0, 1, 1], [], []>} : vector<16x16xf32>, vector<16x8xf32>, vector<16x8xf32> -> vector<16x8xf32>
    %566 = vector.extract_strided_slice %483 {offsets = [24, 0], sizes = [8, 64], strides = [1, 1]} : vector<32x64xf32> to vector<8x64xf32>
    %cst_229 = arith.constant dense<0.000000e+00> : vector<16x64xf32>
    %567 = tpu.matmul %565, %566, %cst_229 {dimension_numbers = #tpu.dot_dimension_numbers<[1], [0], [0], [1], [0, 0, 1, 1], [], []>} : vector<16x8xf32>, vector<8x64xf32>, vector<16x64xf32> -> vector<16x64xf32>
    %568 = arith.addf %547, %567 : vector<16x64xf32>
    %569 = vector.extract_strided_slice %474 {offsets = [0, 32], sizes = [16, 8], strides = [1, 1]} : vector<16x192xf32> to vector<16x8xf32>
    %570 = vector.extract_strided_slice %474 {offsets = [0, 96], sizes = [16, 8], strides = [1, 1]} : vector<16x192xf32> to vector<16x8xf32>
    %571 = vector.extract_strided_slice %474 {offsets = [0, 160], sizes = [16, 8], strides = [1, 1]} : vector<16x192xf32> to vector<16x8xf32>
    %cst_230 = arith.constant dense<0.000000e+00> : vector<16x16xf32>
    %572 = tpu.matmul %569, %570, %cst_230 {dimension_numbers = #tpu.dot_dimension_numbers<[1], [1], [0], [0], [0, 0, 1, 0], [], []>} : vector<16x8xf32>, vector<16x8xf32>, vector<16x16xf32> -> vector<16x16xf32>
    %cst_231 = arith.constant 0.353553385 : f32
    %573 = vector.broadcast %cst_231 : f32 to vector<16x16xf32>
    %574 = arith.mulf %572, %573 : vector<16x16xf32>
    %575 = arith.addf %574, %403 : vector<16x16xf32>
    %cst_232 = arith.constant dense<0xFF800000> : vector<16xf32>
    %576 = vector.multi_reduction <maximumf>, %575, %cst_232 [1] : vector<16x16xf32> to vector<16xf32>
    %577 = vector.shape_cast %576 : vector<16xf32> to vector<16x1xf32>
    %578 = vector.broadcast %577 : vector<16x1xf32> to vector<16x16xf32>
    %579 = arith.subf %575, %578 : vector<16x16xf32>
    %580 = math.exp %579 : vector<16x16xf32>
    %cst_233 = arith.constant dense<0.000000e+00> : vector<16xf32>
    %581 = vector.multi_reduction <add>, %580, %cst_233 [1] : vector<16x16xf32> to vector<16xf32>
    %582 = vector.shape_cast %581 : vector<16xf32> to vector<16x1xf32>
    %583 = tpu.reciprocal %582 {approx = true} : vector<16x1xf32> -> vector<16x1xf32>
    %584 = vector.broadcast %583 : vector<16x1xf32> to vector<16x16xf32>
    %585 = arith.mulf %580, %584 : vector<16x16xf32>
    %cst_234 = arith.constant dense<0.000000e+00> : vector<16x8xf32>
    %586 = tpu.matmul %585, %571, %cst_234 {dimension_numbers = #tpu.dot_dimension_numbers<[1], [0], [0], [1], [0, 0, 1, 1], [], []>} : vector<16x16xf32>, vector<16x8xf32>, vector<16x8xf32> -> vector<16x8xf32>
    %587 = vector.extract_strided_slice %484 {offsets = [0, 0], sizes = [8, 64], strides = [1, 1]} : vector<32x64xf32> to vector<8x64xf32>
    %cst_235 = arith.constant dense<0.000000e+00> : vector<16x64xf32>
    %588 = tpu.matmul %586, %587, %cst_235 {dimension_numbers = #tpu.dot_dimension_numbers<[1], [0], [0], [1], [0, 0, 1, 1], [], []>} : vector<16x8xf32>, vector<8x64xf32>, vector<16x64xf32> -> vector<16x64xf32>
    %589 = arith.addf %482, %588 : vector<16x64xf32>
    %590 = vector.extract_strided_slice %474 {offsets = [0, 40], sizes = [16, 8], strides = [1, 1]} : vector<16x192xf32> to vector<16x8xf32>
    %591 = vector.extract_strided_slice %474 {offsets = [0, 104], sizes = [16, 8], strides = [1, 1]} : vector<16x192xf32> to vector<16x8xf32>
    %592 = vector.extract_strided_slice %474 {offsets = [0, 168], sizes = [16, 8], strides = [1, 1]} : vector<16x192xf32> to vector<16x8xf32>
    %cst_236 = arith.constant dense<0.000000e+00> : vector<16x16xf32>
    %593 = tpu.matmul %590, %591, %cst_236 {dimension_numbers = #tpu.dot_dimension_numbers<[1], [1], [0], [0], [0, 0, 1, 0], [], []>} : vector<16x8xf32>, vector<16x8xf32>, vector<16x16xf32> -> vector<16x16xf32>
    %cst_237 = arith.constant 0.353553385 : f32
    %594 = vector.broadcast %cst_237 : f32 to vector<16x16xf32>
    %595 = arith.mulf %593, %594 : vector<16x16xf32>
    %596 = arith.addf %595, %403 : vector<16x16xf32>
    %cst_238 = arith.constant dense<0xFF800000> : vector<16xf32>
    %597 = vector.multi_reduction <maximumf>, %596, %cst_238 [1] : vector<16x16xf32> to vector<16xf32>
    %598 = vector.shape_cast %597 : vector<16xf32> to vector<16x1xf32>
    %599 = vector.broadcast %598 : vector<16x1xf32> to vector<16x16xf32>
    %600 = arith.subf %596, %599 : vector<16x16xf32>
    %601 = math.exp %600 : vector<16x16xf32>
    %cst_239 = arith.constant dense<0.000000e+00> : vector<16xf32>
    %602 = vector.multi_reduction <add>, %601, %cst_239 [1] : vector<16x16xf32> to vector<16xf32>
    %603 = vector.shape_cast %602 : vector<16xf32> to vector<16x1xf32>
    %604 = tpu.reciprocal %603 {approx = true} : vector<16x1xf32> -> vector<16x1xf32>
    %605 = vector.broadcast %604 : vector<16x1xf32> to vector<16x16xf32>
    %606 = arith.mulf %601, %605 : vector<16x16xf32>
    %cst_240 = arith.constant dense<0.000000e+00> : vector<16x8xf32>
    %607 = tpu.matmul %606, %592, %cst_240 {dimension_numbers = #tpu.dot_dimension_numbers<[1], [0], [0], [1], [0, 0, 1, 1], [], []>} : vector<16x16xf32>, vector<16x8xf32>, vector<16x8xf32> -> vector<16x8xf32>
    %608 = vector.extract_strided_slice %484 {offsets = [8, 0], sizes = [8, 64], strides = [1, 1]} : vector<32x64xf32> to vector<8x64xf32>
    %cst_241 = arith.constant dense<0.000000e+00> : vector<16x64xf32>
    %609 = tpu.matmul %607, %608, %cst_241 {dimension_numbers = #tpu.dot_dimension_numbers<[1], [0], [0], [1], [0, 0, 1, 1], [], []>} : vector<16x8xf32>, vector<8x64xf32>, vector<16x64xf32> -> vector<16x64xf32>
    %610 = arith.addf %589, %609 : vector<16x64xf32>
    %611 = vector.extract_strided_slice %474 {offsets = [0, 48], sizes = [16, 8], strides = [1, 1]} : vector<16x192xf32> to vector<16x8xf32>
    %612 = vector.extract_strided_slice %474 {offsets = [0, 112], sizes = [16, 8], strides = [1, 1]} : vector<16x192xf32> to vector<16x8xf32>
    %613 = vector.extract_strided_slice %474 {offsets = [0, 176], sizes = [16, 8], strides = [1, 1]} : vector<16x192xf32> to vector<16x8xf32>
    %cst_242 = arith.constant dense<0.000000e+00> : vector<16x16xf32>
    %614 = tpu.matmul %611, %612, %cst_242 {dimension_numbers = #tpu.dot_dimension_numbers<[1], [1], [0], [0], [0, 0, 1, 0], [], []>} : vector<16x8xf32>, vector<16x8xf32>, vector<16x16xf32> -> vector<16x16xf32>
    %cst_243 = arith.constant 0.353553385 : f32
    %615 = vector.broadcast %cst_243 : f32 to vector<16x16xf32>
    %616 = arith.mulf %614, %615 : vector<16x16xf32>
    %617 = arith.addf %616, %403 : vector<16x16xf32>
    %cst_244 = arith.constant dense<0xFF800000> : vector<16xf32>
    %618 = vector.multi_reduction <maximumf>, %617, %cst_244 [1] : vector<16x16xf32> to vector<16xf32>
    %619 = vector.shape_cast %618 : vector<16xf32> to vector<16x1xf32>
    %620 = vector.broadcast %619 : vector<16x1xf32> to vector<16x16xf32>
    %621 = arith.subf %617, %620 : vector<16x16xf32>
    %622 = math.exp %621 : vector<16x16xf32>
    %cst_245 = arith.constant dense<0.000000e+00> : vector<16xf32>
    %623 = vector.multi_reduction <add>, %622, %cst_245 [1] : vector<16x16xf32> to vector<16xf32>
    %624 = vector.shape_cast %623 : vector<16xf32> to vector<16x1xf32>
    %625 = tpu.reciprocal %624 {approx = true} : vector<16x1xf32> -> vector<16x1xf32>
    %626 = vector.broadcast %625 : vector<16x1xf32> to vector<16x16xf32>
    %627 = arith.mulf %622, %626 : vector<16x16xf32>
    %cst_246 = arith.constant dense<0.000000e+00> : vector<16x8xf32>
    %628 = tpu.matmul %627, %613, %cst_246 {dimension_numbers = #tpu.dot_dimension_numbers<[1], [0], [0], [1], [0, 0, 1, 1], [], []>} : vector<16x16xf32>, vector<16x8xf32>, vector<16x8xf32> -> vector<16x8xf32>
    %629 = vector.extract_strided_slice %484 {offsets = [16, 0], sizes = [8, 64], strides = [1, 1]} : vector<32x64xf32> to vector<8x64xf32>
    %cst_247 = arith.constant dense<0.000000e+00> : vector<16x64xf32>
    %630 = tpu.matmul %628, %629, %cst_247 {dimension_numbers = #tpu.dot_dimension_numbers<[1], [0], [0], [1], [0, 0, 1, 1], [], []>} : vector<16x8xf32>, vector<8x64xf32>, vector<16x64xf32> -> vector<16x64xf32>
    %631 = arith.addf %610, %630 : vector<16x64xf32>
    %632 = vector.extract_strided_slice %474 {offsets = [0, 56], sizes = [16, 8], strides = [1, 1]} : vector<16x192xf32> to vector<16x8xf32>
    %633 = vector.extract_strided_slice %474 {offsets = [0, 120], sizes = [16, 8], strides = [1, 1]} : vector<16x192xf32> to vector<16x8xf32>
    %634 = vector.extract_strided_slice %474 {offsets = [0, 184], sizes = [16, 8], strides = [1, 1]} : vector<16x192xf32> to vector<16x8xf32>
    %cst_248 = arith.constant dense<0.000000e+00> : vector<16x16xf32>
    %635 = tpu.matmul %632, %633, %cst_248 {dimension_numbers = #tpu.dot_dimension_numbers<[1], [1], [0], [0], [0, 0, 1, 0], [], []>} : vector<16x8xf32>, vector<16x8xf32>, vector<16x16xf32> -> vector<16x16xf32>
    %cst_249 = arith.constant 0.353553385 : f32
    %636 = vector.broadcast %cst_249 : f32 to vector<16x16xf32>
    %637 = arith.mulf %635, %636 : vector<16x16xf32>
    %638 = arith.addf %637, %403 : vector<16x16xf32>
    %cst_250 = arith.constant dense<0xFF800000> : vector<16xf32>
    %639 = vector.multi_reduction <maximumf>, %638, %cst_250 [1] : vector<16x16xf32> to vector<16xf32>
    %640 = vector.shape_cast %639 : vector<16xf32> to vector<16x1xf32>
    %641 = vector.broadcast %640 : vector<16x1xf32> to vector<16x16xf32>
    %642 = arith.subf %638, %641 : vector<16x16xf32>
    %643 = math.exp %642 : vector<16x16xf32>
    %cst_251 = arith.constant dense<0.000000e+00> : vector<16xf32>
    %644 = vector.multi_reduction <add>, %643, %cst_251 [1] : vector<16x16xf32> to vector<16xf32>
    %645 = vector.shape_cast %644 : vector<16xf32> to vector<16x1xf32>
    %646 = tpu.reciprocal %645 {approx = true} : vector<16x1xf32> -> vector<16x1xf32>
    %647 = vector.broadcast %646 : vector<16x1xf32> to vector<16x16xf32>
    %648 = arith.mulf %643, %647 : vector<16x16xf32>
    %cst_252 = arith.constant dense<0.000000e+00> : vector<16x8xf32>
    %649 = tpu.matmul %648, %634, %cst_252 {dimension_numbers = #tpu.dot_dimension_numbers<[1], [0], [0], [1], [0, 0, 1, 1], [], []>} : vector<16x16xf32>, vector<16x8xf32>, vector<16x8xf32> -> vector<16x8xf32>
    %650 = vector.extract_strided_slice %484 {offsets = [24, 0], sizes = [8, 64], strides = [1, 1]} : vector<32x64xf32> to vector<8x64xf32>
    %cst_253 = arith.constant dense<0.000000e+00> : vector<16x64xf32>
    %651 = tpu.matmul %649, %650, %cst_253 {dimension_numbers = #tpu.dot_dimension_numbers<[1], [0], [0], [1], [0, 0, 1, 1], [], []>} : vector<16x8xf32>, vector<8x64xf32>, vector<16x64xf32> -> vector<16x64xf32>
    %652 = arith.addf %631, %651 : vector<16x64xf32>
    %653 = arith.addf %402, %568 : vector<16x64xf32>
    %c0_254 = arith.constant 0 : index
    %c0_255 = arith.constant 0 : index
    %654 = vector.load %arg39[%c0_254, %c0_255] : memref<1x64xf32, #tpu.memory_space<vmem>>, vector<1x64xf32>
    %c0_256 = arith.constant 0 : index
    %c0_257 = arith.constant 0 : index
    %655 = vector.load %arg40[%c0_256, %c0_257] : memref<1x64xf32, #tpu.memory_space<vmem>>, vector<1x64xf32>
    %cst_258 = arith.constant dense<0.000000e+00> : vector<16xf32>
    %656 = vector.multi_reduction <add>, %653, %cst_258 [1] : vector<16x64xf32> to vector<16xf32>
    %657 = vector.shape_cast %656 : vector<16xf32> to vector<16x1xf32>
    %cst_259 = arith.constant 6.400000e+01 : f32
    %658 = vector.broadcast %cst_259 : f32 to vector<16x1xf32>
    %659 = arith.divf %657, %658 : vector<16x1xf32>
    %660 = vector.broadcast %659 : vector<16x1xf32> to vector<16x64xf32>
    %661 = arith.subf %653, %660 : vector<16x64xf32>
    %662 = arith.mulf %661, %661 : vector<16x64xf32>
    %cst_260 = arith.constant dense<0.000000e+00> : vector<16xf32>
    %663 = vector.multi_reduction <add>, %662, %cst_260 [1] : vector<16x64xf32> to vector<16xf32>
    %664 = vector.shape_cast %663 : vector<16xf32> to vector<16x1xf32>
    %cst_261 = arith.constant 6.400000e+01 : f32
    %665 = vector.broadcast %cst_261 : f32 to vector<16x1xf32>
    %666 = arith.divf %664, %665 : vector<16x1xf32>
    %667 = vector.broadcast %659 : vector<16x1xf32> to vector<16x64xf32>
    %668 = arith.subf %653, %667 : vector<16x64xf32>
    %cst_262 = arith.constant 9.99999974E-6 : f32
    %669 = vector.broadcast %cst_262 : f32 to vector<16x1xf32>
    %670 = arith.addf %666, %669 : vector<16x1xf32>
    %671 = math.rsqrt %670 : vector<16x1xf32>
    %672 = vector.broadcast %671 : vector<16x1xf32> to vector<16x64xf32>
    %673 = arith.mulf %668, %672 : vector<16x64xf32>
    %674 = vector.broadcast %654 : vector<1x64xf32> to vector<16x64xf32>
    %675 = arith.mulf %673, %674 : vector<16x64xf32>
    %676 = vector.broadcast %655 : vector<1x64xf32> to vector<16x64xf32>
    %677 = arith.addf %675, %676 : vector<16x64xf32>
    %c0_263 = arith.constant 0 : index
    %c0_264 = arith.constant 0 : index
    %678 = vector.load %arg43[%c0_263, %c0_264] : memref<64x256xf32, #tpu.memory_space<vmem>>, vector<64x256xf32>
    %cst_265 = arith.constant dense<0.000000e+00> : vector<16x256xf32>
    %679 = tpu.matmul %677, %678, %cst_265 {dimension_numbers = #tpu.dot_dimension_numbers<[1], [0], [0], [1], [0, 0, 1, 1], [], []>} : vector<16x64xf32>, vector<64x256xf32>, vector<16x256xf32> -> vector<16x256xf32>
    %c0_266 = arith.constant 0 : index
    %c0_267 = arith.constant 0 : index
    %680 = vector.load %arg44[%c0_266, %c0_267] : memref<1x256xf32, #tpu.memory_space<vmem>>, vector<1x256xf32>
    %681 = vector.broadcast %680 : vector<1x256xf32> to vector<16x256xf32>
    %682 = arith.addf %679, %681 : vector<16x256xf32>
    %cst_268 = arith.constant 5.000000e-01 : f32
    %683 = vector.broadcast %cst_268 : f32 to vector<16x256xf32>
    %684 = arith.mulf %683, %682 : vector<16x256xf32>
    %cst_269 = arith.constant 0.707106769 : f32
    %685 = vector.broadcast %cst_269 : f32 to vector<16x256xf32>
    %686 = arith.mulf %682, %685 : vector<16x256xf32>
    %687 = math.absf %686 : vector<16x256xf32>
    %cst_270 = arith.constant 0.327591091 : f32
    %688 = vector.broadcast %cst_270 : f32 to vector<16x256xf32>
    %689 = arith.mulf %688, %687 : vector<16x256xf32>
    %cst_271 = arith.constant 1.000000e+00 : f32
    %690 = vector.broadcast %cst_271 : f32 to vector<16x256xf32>
    %691 = arith.addf %690, %689 : vector<16x256xf32>
    %cst_272 = arith.constant 1.000000e+00 : f32
    %692 = vector.broadcast %cst_272 : f32 to vector<16x256xf32>
    %693 = arith.divf %692, %691 : vector<16x256xf32>
    %cst_273 = arith.constant 1.06140542 : f32
    %694 = vector.broadcast %cst_273 : f32 to vector<16x256xf32>
    %695 = arith.mulf %694, %693 : vector<16x256xf32>
    %cst_274 = arith.constant -1.45315206 : f32
    %696 = vector.broadcast %cst_274 : f32 to vector<16x256xf32>
    %697 = arith.addf %695, %696 : vector<16x256xf32>
    %698 = arith.mulf %697, %693 : vector<16x256xf32>
    %cst_275 = arith.constant 1.42141378 : f32
    %699 = vector.broadcast %cst_275 : f32 to vector<16x256xf32>
    %700 = arith.addf %698, %699 : vector<16x256xf32>
    %701 = arith.mulf %700, %693 : vector<16x256xf32>
    %cst_276 = arith.constant -0.284496725 : f32
    %702 = vector.broadcast %cst_276 : f32 to vector<16x256xf32>
    %703 = arith.addf %701, %702 : vector<16x256xf32>
    %704 = arith.mulf %703, %693 : vector<16x256xf32>
    %cst_277 = arith.constant 0.254829586 : f32
    %705 = vector.broadcast %cst_277 : f32 to vector<16x256xf32>
    %706 = arith.addf %704, %705 : vector<16x256xf32>
    %707 = arith.mulf %706, %693 : vector<16x256xf32>
    %cst_278 = arith.constant 0.000000e+00 : f32
    %708 = vector.broadcast %cst_278 : f32 to vector<16x256xf32>
    %709 = arith.subf %708, %687 : vector<16x256xf32>
    %710 = arith.mulf %709, %687 : vector<16x256xf32>
    %711 = math.exp %710 : vector<16x256xf32>
    %712 = arith.mulf %707, %711 : vector<16x256xf32>
    %cst_279 = arith.constant 1.000000e+00 : f32
    %713 = vector.broadcast %cst_279 : f32 to vector<16x256xf32>
    %714 = arith.subf %713, %712 : vector<16x256xf32>
    %cst_280 = arith.constant 0.000000e+00 : f32
    %715 = vector.broadcast %cst_280 : f32 to vector<16x256xf32>
    %716 = arith.cmpf oge, %686, %715 : vector<16x256xf32>
    %cst_281 = arith.constant 0.000000e+00 : f32
    %717 = vector.broadcast %cst_281 : f32 to vector<16x256xf32>
    %718 = arith.subf %717, %714 : vector<16x256xf32>
    %719 = arith.select %716, %714, %718 : vector<16x256xi1>, vector<16x256xf32>
    %cst_282 = arith.constant 1.000000e+00 : f32
    %720 = vector.broadcast %cst_282 : f32 to vector<16x256xf32>
    %721 = arith.addf %720, %719 : vector<16x256xf32>
    %722 = arith.mulf %684, %721 : vector<16x256xf32>
    %c0_283 = arith.constant 0 : index
    %c0_284 = arith.constant 0 : index
    %723 = vector.load %arg45[%c0_283, %c0_284] : memref<256x64xf32, #tpu.memory_space<vmem>>, vector<256x64xf32>
    %cst_285 = arith.constant dense<0.000000e+00> : vector<16x64xf32>
    %724 = tpu.matmul %722, %723, %cst_285 {dimension_numbers = #tpu.dot_dimension_numbers<[1], [0], [0], [1], [0, 0, 1, 1], [], []>} : vector<16x256xf32>, vector<256x64xf32>, vector<16x64xf32> -> vector<16x64xf32>
    %725 = arith.addf %653, %724 : vector<16x64xf32>
    %c0_286 = arith.constant 0 : index
    %c0_287 = arith.constant 0 : index
    %726 = vector.load %arg46[%c0_286, %c0_287] : memref<1x64xf32, #tpu.memory_space<vmem>>, vector<1x64xf32>
    %727 = vector.broadcast %726 : vector<1x64xf32> to vector<16x64xf32>
    %728 = arith.addf %725, %727 : vector<16x64xf32>
    %c0_288 = arith.constant 0 : index
    %c0_289 = arith.constant 0 : index
    %729 = vector.load %arg41[%c0_288, %c0_289] : memref<1x64xf32, #tpu.memory_space<vmem>>, vector<1x64xf32>
    %c0_290 = arith.constant 0 : index
    %c0_291 = arith.constant 0 : index
    %730 = vector.load %arg42[%c0_290, %c0_291] : memref<1x64xf32, #tpu.memory_space<vmem>>, vector<1x64xf32>
    %cst_292 = arith.constant dense<0.000000e+00> : vector<16xf32>
    %731 = vector.multi_reduction <add>, %652, %cst_292 [1] : vector<16x64xf32> to vector<16xf32>
    %732 = vector.shape_cast %731 : vector<16xf32> to vector<16x1xf32>
    %cst_293 = arith.constant 6.400000e+01 : f32
    %733 = vector.broadcast %cst_293 : f32 to vector<16x1xf32>
    %734 = arith.divf %732, %733 : vector<16x1xf32>
    %735 = vector.broadcast %734 : vector<16x1xf32> to vector<16x64xf32>
    %736 = arith.subf %652, %735 : vector<16x64xf32>
    %737 = arith.mulf %736, %736 : vector<16x64xf32>
    %cst_294 = arith.constant dense<0.000000e+00> : vector<16xf32>
    %738 = vector.multi_reduction <add>, %737, %cst_294 [1] : vector<16x64xf32> to vector<16xf32>
    %739 = vector.shape_cast %738 : vector<16xf32> to vector<16x1xf32>
    %cst_295 = arith.constant 6.400000e+01 : f32
    %740 = vector.broadcast %cst_295 : f32 to vector<16x1xf32>
    %741 = arith.divf %739, %740 : vector<16x1xf32>
    %742 = vector.broadcast %734 : vector<16x1xf32> to vector<16x64xf32>
    %743 = arith.subf %652, %742 : vector<16x64xf32>
    %cst_296 = arith.constant 9.99999974E-6 : f32
    %744 = vector.broadcast %cst_296 : f32 to vector<16x1xf32>
    %745 = arith.addf %741, %744 : vector<16x1xf32>
    %746 = math.rsqrt %745 : vector<16x1xf32>
    %747 = vector.broadcast %746 : vector<16x1xf32> to vector<16x64xf32>
    %748 = arith.mulf %743, %747 : vector<16x64xf32>
    %749 = vector.broadcast %729 : vector<1x64xf32> to vector<16x64xf32>
    %750 = arith.mulf %748, %749 : vector<16x64xf32>
    %751 = vector.broadcast %730 : vector<1x64xf32> to vector<16x64xf32>
    %752 = arith.addf %750, %751 : vector<16x64xf32>
    %c0_297 = arith.constant 0 : index
    %c0_298 = arith.constant 0 : index
    %753 = vector.load %arg47[%c0_297, %c0_298] : memref<64x256xf32, #tpu.memory_space<vmem>>, vector<64x256xf32>
    %cst_299 = arith.constant dense<0.000000e+00> : vector<16x256xf32>
    %754 = tpu.matmul %752, %753, %cst_299 {dimension_numbers = #tpu.dot_dimension_numbers<[1], [0], [0], [1], [0, 0, 1, 1], [], []>} : vector<16x64xf32>, vector<64x256xf32>, vector<16x256xf32> -> vector<16x256xf32>
    %c0_300 = arith.constant 0 : index
    %c0_301 = arith.constant 0 : index
    %755 = vector.load %arg48[%c0_300, %c0_301] : memref<1x256xf32, #tpu.memory_space<vmem>>, vector<1x256xf32>
    %756 = vector.broadcast %755 : vector<1x256xf32> to vector<16x256xf32>
    %757 = arith.addf %754, %756 : vector<16x256xf32>
    %cst_302 = arith.constant 5.000000e-01 : f32
    %758 = vector.broadcast %cst_302 : f32 to vector<16x256xf32>
    %759 = arith.mulf %758, %757 : vector<16x256xf32>
    %cst_303 = arith.constant 0.707106769 : f32
    %760 = vector.broadcast %cst_303 : f32 to vector<16x256xf32>
    %761 = arith.mulf %757, %760 : vector<16x256xf32>
    %762 = math.absf %761 : vector<16x256xf32>
    %cst_304 = arith.constant 0.327591091 : f32
    %763 = vector.broadcast %cst_304 : f32 to vector<16x256xf32>
    %764 = arith.mulf %763, %762 : vector<16x256xf32>
    %cst_305 = arith.constant 1.000000e+00 : f32
    %765 = vector.broadcast %cst_305 : f32 to vector<16x256xf32>
    %766 = arith.addf %765, %764 : vector<16x256xf32>
    %cst_306 = arith.constant 1.000000e+00 : f32
    %767 = vector.broadcast %cst_306 : f32 to vector<16x256xf32>
    %768 = arith.divf %767, %766 : vector<16x256xf32>
    %cst_307 = arith.constant 1.06140542 : f32
    %769 = vector.broadcast %cst_307 : f32 to vector<16x256xf32>
    %770 = arith.mulf %769, %768 : vector<16x256xf32>
    %cst_308 = arith.constant -1.45315206 : f32
    %771 = vector.broadcast %cst_308 : f32 to vector<16x256xf32>
    %772 = arith.addf %770, %771 : vector<16x256xf32>
    %773 = arith.mulf %772, %768 : vector<16x256xf32>
    %cst_309 = arith.constant 1.42141378 : f32
    %774 = vector.broadcast %cst_309 : f32 to vector<16x256xf32>
    %775 = arith.addf %773, %774 : vector<16x256xf32>
    %776 = arith.mulf %775, %768 : vector<16x256xf32>
    %cst_310 = arith.constant -0.284496725 : f32
    %777 = vector.broadcast %cst_310 : f32 to vector<16x256xf32>
    %778 = arith.addf %776, %777 : vector<16x256xf32>
    %779 = arith.mulf %778, %768 : vector<16x256xf32>
    %cst_311 = arith.constant 0.254829586 : f32
    %780 = vector.broadcast %cst_311 : f32 to vector<16x256xf32>
    %781 = arith.addf %779, %780 : vector<16x256xf32>
    %782 = arith.mulf %781, %768 : vector<16x256xf32>
    %cst_312 = arith.constant 0.000000e+00 : f32
    %783 = vector.broadcast %cst_312 : f32 to vector<16x256xf32>
    %784 = arith.subf %783, %762 : vector<16x256xf32>
    %785 = arith.mulf %784, %762 : vector<16x256xf32>
    %786 = math.exp %785 : vector<16x256xf32>
    %787 = arith.mulf %782, %786 : vector<16x256xf32>
    %cst_313 = arith.constant 1.000000e+00 : f32
    %788 = vector.broadcast %cst_313 : f32 to vector<16x256xf32>
    %789 = arith.subf %788, %787 : vector<16x256xf32>
    %cst_314 = arith.constant 0.000000e+00 : f32
    %790 = vector.broadcast %cst_314 : f32 to vector<16x256xf32>
    %791 = arith.cmpf oge, %761, %790 : vector<16x256xf32>
    %cst_315 = arith.constant 0.000000e+00 : f32
    %792 = vector.broadcast %cst_315 : f32 to vector<16x256xf32>
    %793 = arith.subf %792, %789 : vector<16x256xf32>
    %794 = arith.select %791, %789, %793 : vector<16x256xi1>, vector<16x256xf32>
    %cst_316 = arith.constant 1.000000e+00 : f32
    %795 = vector.broadcast %cst_316 : f32 to vector<16x256xf32>
    %796 = arith.addf %795, %794 : vector<16x256xf32>
    %797 = arith.mulf %759, %796 : vector<16x256xf32>
    %c0_317 = arith.constant 0 : index
    %c0_318 = arith.constant 0 : index
    %798 = vector.load %arg49[%c0_317, %c0_318] : memref<256x64xf32, #tpu.memory_space<vmem>>, vector<256x64xf32>
    %cst_319 = arith.constant dense<0.000000e+00> : vector<16x64xf32>
    %799 = tpu.matmul %797, %798, %cst_319 {dimension_numbers = #tpu.dot_dimension_numbers<[1], [0], [0], [1], [0, 0, 1, 1], [], []>} : vector<16x256xf32>, vector<256x64xf32>, vector<16x64xf32> -> vector<16x64xf32>
    %800 = arith.addf %652, %799 : vector<16x64xf32>
    %c0_320 = arith.constant 0 : index
    %c0_321 = arith.constant 0 : index
    %801 = vector.load %arg50[%c0_320, %c0_321] : memref<1x64xf32, #tpu.memory_space<vmem>>, vector<1x64xf32>
    %802 = vector.broadcast %801 : vector<1x64xf32> to vector<16x64xf32>
    %803 = arith.addf %800, %802 : vector<16x64xf32>
    %c0_322 = arith.constant 0 : index
    %c0_323 = arith.constant 0 : index
    %804 = vector.load %arg5[%c0_322, %c0_323] : memref<2x16xf32, #tpu.memory_space<vmem>>, vector<2x16xf32>
    %c0_324 = arith.constant 0 : index
    %c0_325 = arith.constant 0 : index
    %805 = vector.load %arg6[%c0_324, %c0_325] : memref<2x16xf32, #tpu.memory_space<vmem>>, vector<2x16xf32>
    %cst_326 = arith.constant dense<0.000000e+00> : vector<2x64xf32>
    %806 = tpu.matmul %804, %326, %cst_326 {dimension_numbers = #tpu.dot_dimension_numbers<[1], [0], [0], [1], [0, 0, 1, 1], [], []>} : vector<2x16xf32>, vector<16x64xf32>, vector<2x64xf32> -> vector<2x64xf32>
    %cst_327 = arith.constant dense<0.000000e+00> : vector<2x64xf32>
    %807 = tpu.matmul %804, %401, %cst_327 {dimension_numbers = #tpu.dot_dimension_numbers<[1], [0], [0], [1], [0, 0, 1, 1], [], []>} : vector<2x16xf32>, vector<16x64xf32>, vector<2x64xf32> -> vector<2x64xf32>
    %808 = math.exp %807 : vector<2x64xf32>
    %c0_328 = arith.constant 0 : index
    %c0_329 = arith.constant 0 : index
    %809 = vector.load %arg7[%c0_328, %c0_329] : memref<2x64xf32, #tpu.memory_space<vmem>>, vector<2x64xf32>
    %810 = arith.mulf %808, %809 : vector<2x64xf32>
    %811 = arith.addf %806, %810 : vector<2x64xf32>
    %cst_330 = arith.constant dense<0.000000e+00> : vector<2x64xf32>
    %812 = tpu.matmul %805, %728, %cst_330 {dimension_numbers = #tpu.dot_dimension_numbers<[1], [0], [0], [1], [0, 0, 1, 1], [], []>} : vector<2x16xf32>, vector<16x64xf32>, vector<2x64xf32> -> vector<2x64xf32>
    %cst_331 = arith.constant dense<0.000000e+00> : vector<2x64xf32>
    %813 = tpu.matmul %805, %803, %cst_331 {dimension_numbers = #tpu.dot_dimension_numbers<[1], [0], [0], [1], [0, 0, 1, 1], [], []>} : vector<2x16xf32>, vector<16x64xf32>, vector<2x64xf32> -> vector<2x64xf32>
    %814 = math.exp %813 : vector<2x64xf32>
    %c0_332 = arith.constant 0 : index
    %c0_333 = arith.constant 0 : index
    %815 = vector.load %arg8[%c0_332, %c0_333] : memref<2x64xf32, #tpu.memory_space<vmem>>, vector<2x64xf32>
    %816 = arith.mulf %814, %815 : vector<2x64xf32>
    %817 = arith.addf %812, %816 : vector<2x64xf32>
    %c0_334 = arith.constant 0 : index
    %818 = memref.load %arg51[%c0_334] : memref<1xf32, #tpu.memory_space<smem>>
    %cst_335 = arith.constant dense<0.000000e+00> : vector<2x2xf32>
    %819 = tpu.matmul %811, %817, %cst_335 {dimension_numbers = #tpu.dot_dimension_numbers<[1], [1], [0], [0], [0, 0, 1, 0], [], []>} : vector<2x64xf32>, vector<2x64xf32>, vector<2x2xf32> -> vector<2x2xf32>
    %820 = vector.broadcast %818 : f32 to vector<2x2xf32>
    %821 = arith.mulf %820, %819 : vector<2x2xf32>
    %c0_336 = arith.constant 0 : index
    %c0_337 = arith.constant 0 : index
    %822 = vector.load %arg52[%c0_336, %c0_337] : memref<2x2xf32, #tpu.memory_space<vmem>>, vector<2x2xf32>
    tpu.vector_store %arg52[%c0_336, %c0_337], %821 {strides = array<i32>} : memref<2x2xf32, #tpu.memory_space<vmem>>, vector<2x2xf32>,
    return
  }
  func.func @transform_0(%arg0: i32) -> (i32, i32) {
    %c0_i32 = arith.constant 0 : i32
    %c0_i32_0 = arith.constant 0 : i32
    %c0_i32_1 = arith.constant 0 : i32
    return %c0_i32, %c0_i32_0 : i32, i32
  }
  func.func @transform_1(%arg0: i32) -> (i32, i32) {
    %c0_i32 = arith.constant 0 : i32
    %c0_i32_0 = arith.constant 0 : i32
    %c0_i32_1 = arith.constant 0 : i32
    return %c0_i32, %c0_i32_0 : i32, i32
  }
  func.func @transform_2(%arg0: i32) -> (i32, i32) {
    %c0_i32 = arith.constant 0 : i32
    %c0_i32_0 = arith.constant 0 : i32
    %c0_i32_1 = arith.constant 0 : i32
    return %c0_i32, %c0_i32_0 : i32, i32
  }
  func.func @transform_3(%arg0: i32) -> (i32, i32) {
    %c0_i32 = arith.constant 0 : i32
    %c0_i32_0 = arith.constant 0 : i32
    %c0_i32_1 = arith.constant 0 : i32
    return %c0_i32, %c0_i32_0 : i32, i32
  }
  func.func @transform_4(%arg0: i32) -> (i32, i32) {
    %c0_i32 = arith.constant 0 : i32
    %c0_i32_0 = arith.constant 0 : i32
    %c0_i32_1 = arith.constant 0 : i32
    return %c0_i32, %c0_i32_0 : i32, i32
  }
  func.func @transform_5(%arg0: i32) -> (i32, i32) {
    %c0_i32 = arith.constant 0 : i32
    %c0_i32_0 = arith.constant 0 : i32
    %c0_i32_1 = arith.constant 0 : i32
    return %c0_i32, %c0_i32_0 : i32, i32
  }
  func.func @transform_6(%arg0: i32) -> (i32, i32) {
    %c0_i32 = arith.constant 0 : i32
    %c0_i32_0 = arith.constant 0 : i32
    %c0_i32_1 = arith.constant 0 : i32
    return %c0_i32, %c0_i32_0 : i32, i32
  }
  func.func @transform_7(%arg0: i32) -> (i32, i32) {
    %c0_i32 = arith.constant 0 : i32
    %c0_i32_0 = arith.constant 0 : i32
    %c0_i32_1 = arith.constant 0 : i32
    return %c0_i32, %c0_i32_0 : i32, i32
  }
  func.func @transform_8(%arg0: i32) -> (i32, i32) {
    %c0_i32 = arith.constant 0 : i32
    %c0_i32_0 = arith.constant 0 : i32
    %c0_i32_1 = arith.constant 0 : i32
    return %c0_i32, %c0_i32_0 : i32, i32
  }
  func.func @transform_9(%arg0: i32) -> (i32, i32) {
    %c0_i32 = arith.constant 0 : i32
    %c0_i32_0 = arith.constant 0 : i32
    %c0_i32_1 = arith.constant 0 : i32
    return %c0_i32, %c0_i32_0 : i32, i32
  }
  func.func @transform_10(%arg0: i32) -> (i32, i32) {
    %c0_i32 = arith.constant 0 : i32
    %c0_i32_0 = arith.constant 0 : i32
    %c0_i32_1 = arith.constant 0 : i32
    return %c0_i32, %c0_i32_0 : i32, i32
  }
  func.func @transform_11(%arg0: i32) -> (i32, i32) {
    %c0_i32 = arith.constant 0 : i32
    %c0_i32_0 = arith.constant 0 : i32
    %c0_i32_1 = arith.constant 0 : i32
    return %c0_i32, %c0_i32_0 : i32, i32
  }
  func.func @transform_12(%arg0: i32) -> (i32, i32) {
    %c0_i32 = arith.constant 0 : i32
    %c0_i32_0 = arith.constant 0 : i32
    %c0_i32_1 = arith.constant 0 : i32
    return %c0_i32, %c0_i32_0 : i32, i32
  }
  func.func @transform_13(%arg0: i32) -> (i32, i32) {
    %c0_i32 = arith.constant 0 : i32
    %c0_i32_0 = arith.constant 0 : i32
    %c0_i32_1 = arith.constant 0 : i32
    return %c0_i32, %c0_i32_0 : i32, i32
  }
  func.func @transform_14(%arg0: i32) -> (i32, i32) {
    %c0_i32 = arith.constant 0 : i32
    %c0_i32_0 = arith.constant 0 : i32
    %c0_i32_1 = arith.constant 0 : i32
    return %c0_i32, %c0_i32_0 : i32, i32
  }
  func.func @transform_15(%arg0: i32) -> (i32, i32) {
    %c0_i32 = arith.constant 0 : i32
    %c0_i32_0 = arith.constant 0 : i32
    %c0_i32_1 = arith.constant 0 : i32
    return %c0_i32, %c0_i32_0 : i32, i32
  }
  func.func @transform_16(%arg0: i32) -> (i32, i32) {
    %c0_i32 = arith.constant 0 : i32
    %c0_i32_0 = arith.constant 0 : i32
    %c0_i32_1 = arith.constant 0 : i32
    return %c0_i32, %c0_i32_0 : i32, i32
  }
  func.func @transform_17(%arg0: i32) -> (i32, i32) {
    %c0_i32 = arith.constant 0 : i32
    %c0_i32_0 = arith.constant 0 : i32
    %c0_i32_1 = arith.constant 0 : i32
    return %c0_i32, %c0_i32_0 : i32, i32
  }
  func.func @transform_18(%arg0: i32) -> (i32, i32) {
    %c0_i32 = arith.constant 0 : i32
    %c0_i32_0 = arith.constant 0 : i32
    %c0_i32_1 = arith.constant 0 : i32
    return %c0_i32, %c0_i32_0 : i32, i32
  }
  func.func @transform_19(%arg0: i32) -> (i32, i32) {
    %c0_i32 = arith.constant 0 : i32
    %c0_i32_0 = arith.constant 0 : i32
    %c0_i32_1 = arith.constant 0 : i32
    return %c0_i32, %c0_i32_0 : i32, i32
  }
  func.func @transform_20(%arg0: i32) -> (i32, i32) {
    %c0_i32 = arith.constant 0 : i32
    %c0_i32_0 = arith.constant 0 : i32
    %c0_i32_1 = arith.constant 0 : i32
    return %c0_i32, %c0_i32_0 : i32, i32
  }
  func.func @transform_21(%arg0: i32) -> (i32, i32) {
    %c0_i32 = arith.constant 0 : i32
    %c0_i32_0 = arith.constant 0 : i32
    %c0_i32_1 = arith.constant 0 : i32
    return %c0_i32, %c0_i32_0 : i32, i32
  }
  func.func @transform_22(%arg0: i32) -> (i32, i32) {
    %c0_i32 = arith.constant 0 : i32
    %c0_i32_0 = arith.constant 0 : i32
    %c0_i32_1 = arith.constant 0 : i32
    return %c0_i32, %c0_i32_0 : i32, i32
  }
  func.func @transform_23(%arg0: i32) -> (i32, i32) {
    %c0_i32 = arith.constant 0 : i32
    %c0_i32_0 = arith.constant 0 : i32
    %c0_i32_1 = arith.constant 0 : i32
    return %c0_i32, %c0_i32_0 : i32, i32
  }
  func.func @transform_24(%arg0: i32) -> (i32, i32) {
    %c0_i32 = arith.constant 0 : i32
    %c0_i32_0 = arith.constant 0 : i32
    %c0_i32_1 = arith.constant 0 : i32
    return %c0_i32, %c0_i32_0 : i32, i32
  }
  func.func @transform_25(%arg0: i32) -> (i32, i32) {
    %c0_i32 = arith.constant 0 : i32
    %c0_i32_0 = arith.constant 0 : i32
    %c0_i32_1 = arith.constant 0 : i32
    return %c0_i32, %c0_i32_0 : i32, i32
  }
  func.func @transform_26(%arg0: i32) -> (i32, i32) {
    %c0_i32 = arith.constant 0 : i32
    %c0_i32_0 = arith.constant 0 : i32
    %c0_i32_1 = arith.constant 0 : i32
    return %c0_i32, %c0_i32_0 : i32, i32
  }
  func.func @transform_27(%arg0: i32) -> (i32, i32) {
    %c0_i32 = arith.constant 0 : i32
    %c0_i32_0 = arith.constant 0 : i32
    %c0_i32_1 = arith.constant 0 : i32
    return %c0_i32, %c0_i32_0 : i32, i32
  }
  func.func @transform_28(%arg0: i32) -> (i32, i32) {
    %c0_i32 = arith.constant 0 : i32
    %c0_i32_0 = arith.constant 0 : i32
    %c0_i32_1 = arith.constant 0 : i32
    return %c0_i32, %c0_i32_0 : i32, i32
  }
  func.func @transform_29(%arg0: i32) -> (i32, i32) {
    %c0_i32 = arith.constant 0 : i32
    %c0_i32_0 = arith.constant 0 : i32
    %c0_i32_1 = arith.constant 0 : i32
    return %c0_i32, %c0_i32_0 : i32, i32
  }
  func.func @transform_30(%arg0: i32) -> (i32, i32) {
    %c0_i32 = arith.constant 0 : i32
    %c0_i32_0 = arith.constant 0 : i32
    %c0_i32_1 = arith.constant 0 : i32
    return %c0_i32, %c0_i32_0 : i32, i32
  }
  func.func @transform_31(%arg0: i32) -> (i32, i32) {
    %c0_i32 = arith.constant 0 : i32
    %c0_i32_0 = arith.constant 0 : i32
    %c0_i32_1 = arith.constant 0 : i32
    return %c0_i32, %c0_i32_0 : i32, i32
  }
  func.func @transform_32(%arg0: i32) -> (i32, i32) {
    %c0_i32 = arith.constant 0 : i32
    %c0_i32_0 = arith.constant 0 : i32
    %c0_i32_1 = arith.constant 0 : i32
    return %c0_i32, %c0_i32_0 : i32, i32
  }
  func.func @transform_33(%arg0: i32) -> (i32, i32) {
    %c0_i32 = arith.constant 0 : i32
    %c0_i32_0 = arith.constant 0 : i32
    %c0_i32_1 = arith.constant 0 : i32
    return %c0_i32, %c0_i32_0 : i32, i32
  }
  func.func @transform_34(%arg0: i32) -> (i32, i32) {
    %c0_i32 = arith.constant 0 : i32
    %c0_i32_0 = arith.constant 0 : i32
    %c0_i32_1 = arith.constant 0 : i32
    return %c0_i32, %c0_i32_0 : i32, i32
  }
  func.func @transform_35(%arg0: i32) -> (i32, i32) {
    %c0_i32 = arith.constant 0 : i32
    %c0_i32_0 = arith.constant 0 : i32
    %c0_i32_1 = arith.constant 0 : i32
    return %c0_i32, %c0_i32_0 : i32, i32
  }
  func.func @transform_36(%arg0: i32) -> (i32, i32) {
    %c0_i32 = arith.constant 0 : i32
    %c0_i32_0 = arith.constant 0 : i32
    %c0_i32_1 = arith.constant 0 : i32
    return %c0_i32, %c0_i32_0 : i32, i32
  }
  func.func @transform_37(%arg0: i32) -> (i32, i32) {
    %c0_i32 = arith.constant 0 : i32
    %c0_i32_0 = arith.constant 0 : i32
    %c0_i32_1 = arith.constant 0 : i32
    return %c0_i32, %c0_i32_0 : i32, i32
  }
  func.func @transform_38(%arg0: i32) -> (i32, i32) {
    %c0_i32 = arith.constant 0 : i32
    %c0_i32_0 = arith.constant 0 : i32
    %c0_i32_1 = arith.constant 0 : i32
    return %c0_i32, %c0_i32_0 : i32, i32
  }
  func.func @transform_39(%arg0: i32) -> (i32, i32) {
    %c0_i32 = arith.constant 0 : i32
    %c0_i32_0 = arith.constant 0 : i32
    %c0_i32_1 = arith.constant 0 : i32
    return %c0_i32, %c0_i32_0 : i32, i32
  }
  func.func @transform_40(%arg0: i32) -> (i32, i32) {
    %c0_i32 = arith.constant 0 : i32
    %c0_i32_0 = arith.constant 0 : i32
    %c0_i32_1 = arith.constant 0 : i32
    return %c0_i32, %c0_i32_0 : i32, i32
  }
  func.func @transform_41(%arg0: i32) -> (i32, i32) {
    %c0_i32 = arith.constant 0 : i32
    %c0_i32_0 = arith.constant 0 : i32
    %c0_i32_1 = arith.constant 0 : i32
    return %c0_i32, %c0_i32_0 : i32, i32
  }
  func.func @transform_42(%arg0: i32) -> (i32, i32) {
    %c0_i32 = arith.constant 0 : i32
    %c0_i32_0 = arith.constant 0 : i32
    %c0_i32_1 = arith.constant 0 : i32
    return %c0_i32, %c0_i32_0 : i32, i32
  }
  func.func @transform_43(%arg0: i32) -> (i32, i32) {
    %c0_i32 = arith.constant 0 : i32
    %c0_i32_0 = arith.constant 0 : i32
    %c0_i32_1 = arith.constant 0 : i32
    return %c0_i32, %c0_i32_0 : i32, i32
  }
  func.func @transform_44(%arg0: i32) -> (i32, i32) {
    %c0_i32 = arith.constant 0 : i32
    %c0_i32_0 = arith.constant 0 : i32
    %c0_i32_1 = arith.constant 0 : i32
    return %c0_i32, %c0_i32_0 : i32, i32
  }
  func.func @transform_45(%arg0: i32) -> (i32, i32) {
    %c0_i32 = arith.constant 0 : i32
    %c0_i32_0 = arith.constant 0 : i32
    %c0_i32_1 = arith.constant 0 : i32
    return %c0_i32, %c0_i32_0 : i32, i32
  }
  func.func @transform_46(%arg0: i32) -> (i32, i32) {
    %c0_i32 = arith.constant 0 : i32
    %c0_i32_0 = arith.constant 0 : i32
    %c0_i32_1 = arith.constant 0 : i32
    return %c0_i32, %c0_i32_0 : i32, i32
  }
  func.func @transform_47(%arg0: i32) -> (i32, i32) {
    %c0_i32 = arith.constant 0 : i32
    %c0_i32_0 = arith.constant 0 : i32
    %c0_i32_1 = arith.constant 0 : i32
    return %c0_i32, %c0_i32_0 : i32, i32
  }
  func.func @transform_48(%arg0: i32) -> (i32, i32) {
    %c0_i32 = arith.constant 0 : i32
    %c0_i32_0 = arith.constant 0 : i32
    %c0_i32_1 = arith.constant 0 : i32
    return %c0_i32, %c0_i32_0 : i32, i32
  }
  func.func @transform_49(%arg0: i32) -> (i32, i32) {
    %c0_i32 = arith.constant 0 : i32
    %c0_i32_0 = arith.constant 0 : i32
    %c0_i32_1 = arith.constant 0 : i32
    return %c0_i32, %c0_i32_0 : i32, i32
  }
  func.func @transform_50(%arg0: i32) -> i32 {
    %c0_i32 = arith.constant 0 : i32
    %c0_i32_0 = arith.constant 0 : i32
    return %c0_i32 : i32
  }
  func.func @transform_51(%arg0: i32) -> (i32, i32) {
    %c0_i32 = arith.constant 0 : i32
    %c0_i32_0 = arith.constant 0 : i32
    %c0_i32_1 = arith.constant 0 : i32
    return %c0_i32, %c0_i32_0 : i32, i32
  }
}

</mosaic_0001>

<bundles_post_ra>
// kernel: conceptualizing_alignment3_forward.4
= control target key start
LH: loop header
LB: loop body
LE: loop exit
PB: predicated region body
PF: predicated region fallthrough
CT: control target
= control target key end

     0   :  { %22 = vsyncpa [#allocation4], 0  ;;  %s4793_s0 = inlined_call_operand.vmem [shape: f32[8,512], index: 0, kind: input, shape index: {}]   ;;  %s4794_s1 = inlined_call_operand.vmem [shape: f32[2,512], index: 1, kind: input, shape index: {}]   ;;  %s4795_s2 = inlined_call_operand.hbm [shape: f32[512,512], index: 2, kind: input, shape index: {}]   ;;  %s4796_s3 = inlined_call_operand.vmem [shape: f32[1,512], index: 3, kind: input, shape index: {}]   ;;  %s4797_s4 = inlined_call_operand.hbm [shape: f32[512,512], index: 4, kind: input, shape index: {}]   ;;  %s4798_s5 = inlined_call_operand.vmem [shape: f32[1,512], index: 5, kind: input, shape index: {}]   ;;  %s4799_s6 = inlined_call_operand.hbm [shape: f32[512,512], index: 6, kind: input, shape index: {}]   ;;  %s4800_s7 = inlined_call_operand.vmem [shape: f32[1,512], index: 7, kind: input, shape index: {}]   ;;  %s4801_s8 = inlined_call_operand.hbm [shape: f32[512,512], index: 8, kind: input, shape index: {}]   ;;  %s4802_s9 = inlined_call_operand.vmem [shape: f32[1,512], index: 9, kind: input, shape index: {}]   ;;  %s4803_s10 = inlined_call_operand.vmem [shape: f32[8,8], index: 10, kind: input, shape index: {}]   ;;  %s4804_s11 = inlined_call_operand.vmem [shape: f32[2,8], index: 11, kind: input, shape index: {}]   ;;  %s4805_s12 = inlined_call_operand.<no memory space> [shape: f32[1], index: 12, kind: input, shape index: {}]   ;;  %s4806_s13 = inlined_call_operand.vmem [shape: f32[2,512], index: 13, kind: output, shape index: {0}]   ;;  %s4807_s14 = inlined_call_operand.vmem [shape: f32[2,512], index: 14, kind: output, shape index: {1}]   ;;  %s4808_s15 = inlined_call_operand.hbm [shape: f32[2,2], index: 15, kind: output, shape index: {2}]  }
   0x1   :  { %23 = vsyncpa [#allocation7], 0 }
   0x2   :  { %24 = vsyncpa [#allocation10], 0 }
   0x3   :  { %25 = vsyncpa [#allocation5], 0  ;;  %s4441_s18 = smov [#allocation6]   ;;  %s4442_s20 = smov [#allocation3]  }
   0x4   :  { %s49_s19 = sshll.u32 %s4441_s18, 4  ;;  %s35_s21 = sshll.u32 %s4442_s20, 4  ;;  %s50_s19 = int_to_ptr.vmem [resolvable:$true] %s49_s19  ;;  %s4531_s21 = int_to_ptr.vmem [resolvable:$true] %s35_s21 }
   0x5   :  { %s4323_s24 = scalar_lea.hbm %s4797_s4, 32768 }
   0x6   :  { %p4324_p0 = scmp.ne.s32.totalorder %s4797_s4, %s4323_s24  ;;  %p4327_p1 = scmp.lt.u32.totalorder %s4323_s24, %s4797_s4 }
   0x8   :  { %p4329_p2 = pnand %p4327_p1, %p4324_p0 }
   0xa   :  { %4332 = shalt.err (!%p4329_p2)
}
   0xb   :  { %s4333_s29 = scalar_lea.vmem %s50_s19, 32768  ;;  %p4338_p4 = scmp.lt.s32.totalorder %s50_s19, %s50_s19 }
   0xc   :  { %p4334_p3 = scmp.ne.s32.totalorder %s50_s19, %s4333_s29  ;;  %p4339_p5 = scmp.lt.s32.totalorder %s4333_s29, %s4333_s29 }
   0xe   :  { %p4340_p6 = por %p4339_p5, %p4338_p4 }
  0x10   :  { %p4341_p7 = pnand %p4340_p6, %p4334_p3 }
  0x12   :  { %4344 = shalt.err (!%p4341_p7)
}
  0x13   :  { %s4443_s30 = smov 512   ;;  %s4444_s16 = smov 32  }
  0x14   :  { %55 = dma.hbm_to_vmem [thread:$0]  %s4797_s4, 32768, %s50_s19, [#allocation7], %s4443_s30, %s4443_s30, %s4444_s16  }
  0x15   :  { %s4345_s23 = scalar_lea.hbm %s4795_s2, 32768 }
  0x16   :  { %p4346_p8 = scmp.ne.s32.totalorder %s4795_s2, %s4345_s23  ;;  %p4349_p9 = scmp.lt.u32.totalorder %s4345_s23, %s4795_s2 }
  0x18   :  { %p4351_p10 = pnand %p4349_p9, %p4346_p8 }
  0x1a   :  { %4354 = shalt.err (!%p4351_p10)
}
  0x1b   :  { %s4355_s28 = scalar_lea.vmem %s4531_s21, 32768  ;;  %p4360_p12 = scmp.lt.s32.totalorder %s4531_s21, %s4531_s21 }
  0x1c   :  { %p4356_p11 = scmp.ne.s32.totalorder %s4531_s21, %s4355_s28  ;;  %p4361_p13 = scmp.lt.s32.totalorder %s4355_s28, %s4355_s28 }
  0x1e   :  { %p4362_p0 = por %p4361_p13, %p4360_p12 }
  0x20   :  { %p4363_p1 = pnand %p4362_p0, %p4356_p11 }
  0x22   :  { %4366 = shalt.err (!%p4363_p1)
}
  0x23   :  { %41 = dma.hbm_to_vmem [thread:$0]  %s4795_s2, 32768, %s4531_s21, [#allocation4], %s4443_s30, %s4443_s30, %s4444_s16  }
  0x24   :  { %s4445_s29 = smov [#allocation8]   ;;  %s4446_s18 = smov [#allocation9]  }
  0x25   :  { %s63_s17 = sshll.u32 %s4445_s29, 4  ;;  %s77_s20 = sshll.u32 %s4446_s18, 4  ;;  %s64_s17 = int_to_ptr.vmem [resolvable:$true] %s63_s17  ;;  %s4568_s20 = int_to_ptr.vmem [resolvable:$true] %s77_s20 }
  0x26   :  { %s4367_s24 = scalar_lea.hbm %s4799_s6, 32768 }
  0x27   :  { %p4368_p2 = scmp.ne.s32.totalorder %s4799_s6, %s4367_s24  ;;  %p4371_p3 = scmp.lt.u32.totalorder %s4367_s24, %s4799_s6 }
  0x29   :  { %p4373_p4 = pnand %p4371_p3, %p4368_p2 }
  0x2b   :  { %4376 = shalt.err (!%p4373_p4)
}
  0x2c   :  { %s4377_s2 = scalar_lea.vmem %s64_s17, 32768  ;;  %p4382_p6 = scmp.lt.s32.totalorder %s64_s17, %s64_s17 }
  0x2d   :  { %p4378_p5 = scmp.ne.s32.totalorder %s64_s17, %s4377_s2  ;;  %p4383_p7 = scmp.lt.s32.totalorder %s4377_s2, %s4377_s2 }
  0x2f   :  { %p4384_p8 = por %p4383_p7, %p4382_p6 }
  0x31   :  { %p4385_p9 = pnand %p4384_p8, %p4378_p5 }
  0x33   :  { %4388 = shalt.err (!%p4385_p9)
}
  0x34   :  { %69 = dma.hbm_to_vmem [thread:$0]  %s4799_s6, 32768, %s64_s17, [#allocation7], %s4443_s30, %s4443_s30, %s4444_s16  }
  0x35   :  { %s4389_s18 = scalar_lea.hbm %s4801_s8, 32768 }
  0x36   :  { %p4390_p10 = scmp.ne.s32.totalorder %s4801_s8, %s4389_s18  ;;  %p4393_p11 = scmp.lt.u32.totalorder %s4389_s18, %s4801_s8 }
  0x38   :  { %p4395_p12 = pnand %p4393_p11, %p4390_p10 }
  0x3a   :  { %4398 = shalt.err (!%p4395_p12)
}
  0x3b   :  { %s4399_s26 = scalar_lea.vmem %s4568_s20, 32768  ;;  %p4404_p0 = scmp.lt.s32.totalorder %s4568_s20, %s4568_s20 }
  0x3c   :  { %p4400_p13 = scmp.ne.s32.totalorder %s4568_s20, %s4399_s26  ;;  %p4405_p1 = scmp.lt.s32.totalorder %s4399_s26, %s4399_s26 }
  0x3e   :  { %p4406_p2 = por %p4405_p1, %p4404_p0 }
  0x40   :  { %p4407_p3 = pnand %p4406_p2, %p4400_p13 }
  0x42   :  { %4410 = shalt.err (!%p4407_p3)
}
  0x43   :  { %83 = dma.hbm_to_vmem [thread:$0]  %s4801_s8, 32768, %s4568_s20, [#allocation10], %s4443_s30, %s4443_s30, %s4444_s16  }
  0x44   :  { %4433 = dma.done.wait [#allocation4], 32768  }
  0x45   :  { %4434 = vsyncadd [#allocation4], 4294934528 }
  0x46   :  { %4435 = dma.done.wait [#allocation7], 65536  }
  0x47   :  { %4436 = vsyncadd [#allocation7], 4294901760 }
  0x48   :  { %4437 = dma.done.wait [#allocation10], 32768  }
  0x49   :  { %4438 = vsyncadd [#allocation10], 4294934528  ;;  %v110_v0 = vld [vmem:[#allocation3 + $0x8] sm:$0xff]  ;;  %v112_v2 = vld [vmem:[#allocation3 + $0x18] sm:$0xff]  ;;  %vm4449_vm0 = vmmov 0   ;;  %vm2607_vm1 = vcmask 64512  }
  0x4a   :  { %v114_v1 = vld [vmem:[#allocation3 + $0x28] sm:$0xff]  ;;  %v116_v4 = vld [vmem:[#allocation3 + $0x38] sm:$0xff]  ;;  %v109_v5 = vld [vmem:[#allocation3] sm:$0xff]  ;;  %vm2681_vm2 = vcmask 58368   ;;  %vm3165_vm3 = vcmask 9216  }
  0x4b   :  { %v3212_v3 = vpack.c.bf16 %v114_v1, %v110_v0  ;;  %v113_v6 = vld [vmem:[#allocation3 + $0x20] sm:$0xff]  ;;  %v3340_v7 = vpack.c.bf16 %v116_v4, %v112_v2  ;;  %v111_v9 = vld [vmem:[#allocation3 + $0x10] sm:$0xff]  ;;  %v118_v11 = vld [vmem:[#allocation3 + $0x48] sm:$0xff] }
  0x4c   :  { %v3214_v8 = vpack.c.bf16 %v113_v6, %v109_v5  ;;  %v115_v10 = vld [vmem:[#allocation3 + $0x30] sm:$0xff]  ;;  %v122_v13 = vld [vmem:[#allocation3 + $0x68] sm:$0xff]  ;;  %v120_v14 = vld [vmem:[#allocation3 + $0x58] sm:$0xff] }
  0x4d   :  { %3213 = vmatprep.subr.bf16.mxu0 %v3212_v3  ;;  %v3342_v12 = vpack.c.bf16 %v115_v10, %v111_v9  ;;  %v124_v15 = vld [vmem:[#allocation3 + $0x78] sm:$0xff]  ;;  %3341 = vmatprep.subr.bf16.mxu1 %v3340_v7  ;;  %v3216_v16 = vpack.c.bf16 %v122_v13, %v118_v11  ;;  %v117_v18 = vld [vmem:[#allocation3 + $0x40] sm:$0xff]  ;;  %v119_v20 = vld [vmem:[#allocation3 + $0x50] sm:$0xff] }
  0x4e   :  { %3215 = vmatpush1.bf16.msra.mxu0 %v3214_v8  ;;  %v3344_v17 = vpack.c.bf16 %v124_v15, %v120_v14  ;;  %v121_v19 = vld [vmem:[#allocation3 + $0x60] sm:$0xff]  ;;  %v123_v22 = vld [vmem:[#allocation3 + $0x70] sm:$0xff]  ;;  %v126_v23 = vld [vmem:[#allocation3 + $0x88] sm:$0xff] }
  0x4f   :  { %3343 = vmatpush1.bf16.msra.mxu1 %v3342_v12  ;;  %v3218_v21 = vpack.c.bf16 %v121_v19, %v117_v18  ;;  %v130_v24 = vld [vmem:[#allocation3 + $0xa8] sm:$0xff]  ;;  %3217 = vmatprep.subr.bf16.mxu0 %v3216_v16  ;;  %v3346_v25 = vpack.c.bf16 %v123_v22, %v119_v20  ;;  %v128_v27 = vld [vmem:[#allocation3 + $0x98] sm:$0xff]  ;;  %v125_v29 = vld [vmem:[#allocation3 + $0x80] sm:$0xff] }
  0x50   :  { %3345 = vmatprep.subr.bf16.mxu1 %v3344_v17  ;;  %v3220_v26 = vpack.c.bf16 %v130_v24, %v126_v23  ;;  %v132_v28 = vld [vmem:[#allocation3 + $0xb8] sm:$0xff]  ;;  %v129_v31 = vld [vmem:[#allocation3 + $0xa0] sm:$0xff]  ;;  %v127_v32 = vld [vmem:[#allocation3 + $0x90] sm:$0xff] }
  0x51   :  { %v3348_v30 = vpack.c.bf16 %v132_v28, %v128_v27  ;;  %v131_v33 = vld [vmem:[#allocation3 + $0xb0] sm:$0xff]  ;;  %v3222_v34 = vpack.c.bf16 %v129_v31, %v125_v29  ;;  %v134_v35 = vld [vmem:[#allocation3 + $0xc8] sm:$0xff]  ;;  %v136_v37 = vld [vmem:[#allocation3 + $0xd8] sm:$0xff] }
  0x52   :  { %3219 = vmatpush1.bf16.msra.mxu0 %v3218_v21  ;;  %v138_v36 = vld [vmem:[#allocation3 + $0xe8] sm:$0xff]  ;;  %v3350_v38 = vpack.c.bf16 %v131_v33, %v127_v32  ;;  %v140_v40 = vld [vmem:[#allocation3 + $0xf8] sm:$0xff]  ;;  %v133_v41 = vld [vmem:[#allocation3 + $0xc0] sm:$0xff] }
  0x53   :  { %3347 = vmatpush1.bf16.msra.mxu1 %v3346_v25  ;;  %3221 = vmatprep.subr.bf16.mxu0 %v3220_v26  ;;  %v3224_v39 = vpack.c.bf16 %v138_v36, %v134_v35  ;;  %v137_v42 = vld [vmem:[#allocation3 + $0xe0] sm:$0xff]  ;;  %v3352_v43 = vpack.c.bf16 %v140_v40, %v136_v37  ;;  %v135_v44 = vld [vmem:[#allocation3 + $0xd0] sm:$0xff]  ;;  %v142_v46 = vld [vmem:[#allocation3 + $0x108] sm:$0xff] }
  0x54   :  { %3349 = vmatprep.subr.bf16.mxu1 %v3348_v30  ;;  %v139_v45 = vld [vmem:[#allocation3 + $0xf0] sm:$0xff]  ;;  %v146_v47 = vld [vmem:[#allocation3 + $0x128] sm:$0xff]  ;;  %v144_v48 = vld [vmem:[#allocation3 + $0x118] sm:$0xff]  ;;  %v3226_v50 = vpack.c.bf16 %v137_v42, %v133_v41 }
  0x55   :  { %v148_v49 = vld [vmem:[#allocation3 + $0x138] sm:$0xff]  ;;  %v3354_v51 = vpack.c.bf16 %v139_v45, %v135_v44  ;;  %v3228_v52 = vpack.c.bf16 %v146_v47, %v142_v46  ;;  %v141_v53 = vld [vmem:[#allocation3 + $0x100] sm:$0xff]  ;;  %v143_v55 = vld [vmem:[#allocation3 + $0x110] sm:$0xff] }
  0x56   :  { %3223 = vmatpush1.bf16.msra.mxu0 %v3222_v34  ;;  %v145_v54 = vld [vmem:[#allocation3 + $0x120] sm:$0xff]  ;;  %v3356_v56 = vpack.c.bf16 %v148_v49, %v144_v48  ;;  %v147_v57 = vld [vmem:[#allocation3 + $0x130] sm:$0xff]  ;;  %v150_v58 = vld [vmem:[#allocation3 + $0x148] sm:$0xff] }
  0x57   :  { %3351 = vmatpush1.bf16.msra.mxu1 %v3350_v38  ;;  %3225 = vmatprep.subr.bf16.mxu0 %v3224_v39  ;;  %v154_v59 = vld [vmem:[#allocation3 + $0x168] sm:$0xff]  ;;  %v152_v60 = vld [vmem:[#allocation3 + $0x158] sm:$0xff]  ;;  %v3230_v62 = vpack.c.bf16 %v145_v54, %v141_v53  ;;  %v3358_v63 = vpack.c.bf16 %v147_v57, %v143_v55  ;;  %v149_v1 = vld [vmem:[#allocation3 + $0x140] sm:$0xff] }
  0x58   :  { %3353 = vmatprep.subr.bf16.mxu1 %v3352_v43  ;;  %v156_v61 = vld [vmem:[#allocation3 + $0x178] sm:$0xff]  ;;  %v3232_v0 = vpack.c.bf16 %v154_v59, %v150_v58  ;;  %v153_v2 = vld [vmem:[#allocation3 + $0x160] sm:$0xff]  ;;  %v151_v3 = vld [vmem:[#allocation3 + $0x150] sm:$0xff] }
  0x59   :  { %v3360_v4 = vpack.c.bf16 %v156_v61, %v152_v60  ;;  %v155_v5 = vld [vmem:[#allocation3 + $0x170] sm:$0xff]  ;;  %v158_v6 = vld [vmem:[#allocation3 + $0x188] sm:$0xff]  ;;  %v160_v8 = vld [vmem:[#allocation3 + $0x198] sm:$0xff]  ;;  %v3234_v10 = vpack.c.bf16 %v153_v2, %v149_v1 }
  0x5a   :  { %3227 = vmatpush1.bf16.msra.mxu0 %v3226_v50  ;;  %v162_v7 = vld [vmem:[#allocation3 + $0x1a8] sm:$0xff]  ;;  %v164_v9 = vld [vmem:[#allocation3 + $0x1b8] sm:$0xff]  ;;  %v3362_v11 = vpack.c.bf16 %v155_v5, %v151_v3  ;;  %v157_v13 = vld [vmem:[#allocation3 + $0x180] sm:$0xff] }
  0x5b   :  { %3355 = vmatpush1.bf16.msra.mxu1 %v3354_v51  ;;  %3229 = vmatprep.subr.bf16.mxu0 %v3228_v52  ;;  %v3236_v12 = vpack.c.bf16 %v162_v7, %v158_v6  ;;  %v161_v14 = vld [vmem:[#allocation3 + $0x1a0] sm:$0xff]  ;;  %v159_v15 = vld [vmem:[#allocation3 + $0x190] sm:$0xff]  ;;  %v3364_v16 = vpack.c.bf16 %v164_v9, %v160_v8  ;;  %v166_v18 = vld [vmem:[#allocation3 + $0x1c8] sm:$0xff] }
  0x5c   :  { %3357 = vmatprep.subr.bf16.mxu1 %v3356_v56  ;;  %v163_v17 = vld [vmem:[#allocation3 + $0x1b0] sm:$0xff]  ;;  %v170_v19 = vld [vmem:[#allocation3 + $0x1e8] sm:$0xff]  ;;  %v168_v20 = vld [vmem:[#allocation3 + $0x1d8] sm:$0xff]  ;;  %v3238_v22 = vpack.c.bf16 %v161_v14, %v157_v13 }
  0x5d   :  { %v172_v21 = vld [vmem:[#allocation3 + $0x1f8] sm:$0xff]  ;;  %v3366_v23 = vpack.c.bf16 %v163_v17, %v159_v15  ;;  %v3240_v24 = vpack.c.bf16 %v170_v19, %v166_v18  ;;  %v165_v25 = vld [vmem:[#allocation3 + $0x1c0] sm:$0xff]  ;;  %v167_v27 = vld [vmem:[#allocation3 + $0x1d0] sm:$0xff] }
  0x5e   :  { %3231 = vmatpush1.bf16.msra.mxu0 %v3230_v62  ;;  %v169_v26 = vld [vmem:[#allocation3 + $0x1e0] sm:$0xff]  ;;  %v3368_v28 = vpack.c.bf16 %v172_v21, %v168_v20  ;;  %v171_v29 = vld [vmem:[#allocation3 + $0x1f0] sm:$0xff]  ;;  %v174_v30 = vld [vmem:[#allocation3 + $0x208] sm:$0xff] }
  0x5f   :  { %3359 = vmatpush1.bf16.msra.mxu1 %v3358_v63  ;;  %3233 = vmatprep.subr.bf16.mxu0 %v3232_v0  ;;  %v178_v31 = vld [vmem:[#allocation3 + $0x228] sm:$0xff]  ;;  %v176_v32 = vld [vmem:[#allocation3 + $0x218] sm:$0xff]  ;;  %v3242_v34 = vpack.c.bf16 %v169_v26, %v165_v25  ;;  %v3370_v35 = vpack.c.bf16 %v171_v29, %v167_v27  ;;  %v173_v37 = vld [vmem:[#allocation3 + $0x200] sm:$0xff] }
  0x60   :  { %3361 = vmatprep.subr.bf16.mxu1 %v3360_v4  ;;  %v180_v33 = vld [vmem:[#allocation3 + $0x238] sm:$0xff]  ;;  %v3244_v36 = vpack.c.bf16 %v178_v31, %v174_v30  ;;  %v177_v38 = vld [vmem:[#allocation3 + $0x220] sm:$0xff]  ;;  %v175_v39 = vld [vmem:[#allocation3 + $0x210] sm:$0xff] }
  0x61   :  { %v3372_v40 = vpack.c.bf16 %v180_v33, %v176_v32  ;;  %v179_v41 = vld [vmem:[#allocation3 + $0x230] sm:$0xff]  ;;  %v182_v42 = vld [vmem:[#allocation3 + $0x248] sm:$0xff]  ;;  %v184_v44 = vld [vmem:[#allocation3 + $0x258] sm:$0xff]  ;;  %v3246_v46 = vpack.c.bf16 %v177_v38, %v173_v37 }
  0x62   :  { %3235 = vmatpush1.bf16.msra.mxu0 %v3234_v10  ;;  %v186_v43 = vld [vmem:[#allocation3 + $0x268] sm:$0xff]  ;;  %v188_v45 = vld [vmem:[#allocation3 + $0x278] sm:$0xff]  ;;  %v3374_v47 = vpack.c.bf16 %v179_v41, %v175_v39  ;;  %v181_v49 = vld [vmem:[#allocation3 + $0x240] sm:$0xff] }
  0x63   :  { %3363 = vmatpush1.bf16.msra.mxu1 %v3362_v11  ;;  %3237 = vmatprep.subr.bf16.mxu0 %v3236_v12  ;;  %v3248_v48 = vpack.c.bf16 %v186_v43, %v182_v42  ;;  %v185_v50 = vld [vmem:[#allocation3 + $0x260] sm:$0xff]  ;;  %v183_v51 = vld [vmem:[#allocation3 + $0x250] sm:$0xff]  ;;  %v3376_v52 = vpack.c.bf16 %v188_v45, %v184_v44  ;;  %v190_v54 = vld [vmem:[#allocation3 + $0x288] sm:$0xff] }
  0x64   :  { %3365 = vmatprep.subr.bf16.mxu1 %v3364_v16  ;;  %v187_v53 = vld [vmem:[#allocation3 + $0x270] sm:$0xff]  ;;  %v194_v55 = vld [vmem:[#allocation3 + $0x2a8] sm:$0xff]  ;;  %v192_v56 = vld [vmem:[#allocation3 + $0x298] sm:$0xff]  ;;  %v3250_v58 = vpack.c.bf16 %v185_v50, %v181_v49 }
  0x65   :  { %v196_v57 = vld [vmem:[#allocation3 + $0x2b8] sm:$0xff]  ;;  %v3378_v59 = vpack.c.bf16 %v187_v53, %v183_v51  ;;  %v3252_v60 = vpack.c.bf16 %v194_v55, %v190_v54  ;;  %v189_v61 = vld [vmem:[#allocation3 + $0x280] sm:$0xff]  ;;  %v191_v63 = vld [vmem:[#allocation3 + $0x290] sm:$0xff] }
  0x66   :  { %3239 = vmatpush1.bf16.msra.mxu0 %v3238_v22  ;;  %v193_v62 = vld [vmem:[#allocation3 + $0x2a0] sm:$0xff]  ;;  %v3380_v0 = vpack.c.bf16 %v196_v57, %v192_v56  ;;  %v195_v1 = vld [vmem:[#allocation3 + $0x2b0] sm:$0xff]  ;;  %v198_v2 = vld [vmem:[#allocation3 + $0x2c8] sm:$0xff] }
  0x67   :  { %3367 = vmatpush1.bf16.msra.mxu1 %v3366_v23  ;;  %3241 = vmatprep.subr.bf16.mxu0 %v3240_v24  ;;  %v202_v3 = vld [vmem:[#allocation3 + $0x2e8] sm:$0xff]  ;;  %v200_v4 = vld [vmem:[#allocation3 + $0x2d8] sm:$0xff]  ;;  %v3254_v6 = vpack.c.bf16 %v193_v62, %v189_v61  ;;  %v197_v7 = vld [vmem:[#allocation3 + $0x2c0] sm:$0xff]  ;;  %v3382_v8 = vpack.c.bf16 %v195_v1, %v191_v63 }
  0x68   :  { %3369 = vmatprep.subr.bf16.mxu1 %v3368_v28  ;;  %v204_v5 = vld [vmem:[#allocation3 + $0x2f8] sm:$0xff]  ;;  %v3256_v9 = vpack.c.bf16 %v202_v3, %v198_v2  ;;  %v201_v10 = vld [vmem:[#allocation3 + $0x2e0] sm:$0xff]  ;;  %v199_v11 = vld [vmem:[#allocation3 + $0x2d0] sm:$0xff] }
  0x69   :  { %v203_v12 = vld [vmem:[#allocation3 + $0x2f0] sm:$0xff]  ;;  %v3384_v13 = vpack.c.bf16 %v204_v5, %v200_v4  ;;  %v206_v14 = vld [vmem:[#allocation3 + $0x308] sm:$0xff]  ;;  %v208_v17 = vld [vmem:[#allocation3 + $0x318] sm:$0xff]  ;;  %v3258_v19 = vpack.c.bf16 %v201_v10, %v197_v7 }
  0x6a   :  { %3243 = vmatpush1.bf16.msra.mxu0 %v3242_v34  ;;  %v210_v15 = vld [vmem:[#allocation3 + $0x328] sm:$0xff]  ;;  %v212_v18 = vld [vmem:[#allocation3 + $0x338] sm:$0xff]  ;;  %v3386_v20 = vpack.c.bf16 %v203_v12, %v199_v11  ;;  %v205_v22 = vld [vmem:[#allocation3 + $0x300] sm:$0xff] }
  0x6b   :  { %3371 = vmatpush1.bf16.msra.mxu1 %v3370_v35  ;;  %3245 = vmatprep.subr.bf16.mxu0 %v3244_v36  ;;  %v105_v16 = vld [vmem:[%s4793_s0 + $0x8] sm:$0xff]  ;;  %v3260_v21 = vpack.c.bf16 %v210_v15, %v206_v14  ;;  %v209_v23 = vld [vmem:[#allocation3 + $0x320] sm:$0xff]  ;;  %v207_v24 = vld [vmem:[#allocation3 + $0x310] sm:$0xff]  ;;  %v3388_v25 = vpack.c.bf16 %v212_v18, %v208_v17 }
  0x6c   :  { %3373 = vmatprep.subr.bf16.mxu1 %v3372_v40  ;;  %451 = vmatprep.mubr.f32.mxu0 %v105_v16  ;;  %v211_v26 = vld [vmem:[#allocation3 + $0x330] sm:$0xff]  ;;  %v214_v27 = vld [vmem:[#allocation3 + $0x348] sm:$0xff]  ;;  %v216_v29 = vld [vmem:[#allocation3 + $0x358] sm:$0xff]  ;;  %v3262_v31 = vpack.c.bf16 %v209_v23, %v205_v22 }
  0x6d   :  { %593 = vmatprep.mubr.f32.mxu1 %v105_v16  ;;  %v218_v28 = vld [vmem:[#allocation3 + $0x368] sm:$0xff]  ;;  %v220_v30 = vld [vmem:[#allocation3 + $0x378] sm:$0xff]  ;;  %v3390_v32 = vpack.c.bf16 %v211_v26, %v207_v24  ;;  %v213_v34 = vld [vmem:[#allocation3 + $0x340] sm:$0xff] }
  0x6e   :  { %3247 = vmatpush1.bf16.msra.mxu0 %v3246_v46  ;;  %v3264_v33 = vpack.c.bf16 %v218_v28, %v214_v27  ;;  %v217_v35 = vld [vmem:[#allocation3 + $0x360] sm:$0xff]  ;;  %v215_v36 = vld [vmem:[#allocation3 + $0x350] sm:$0xff]  ;;  %v3392_v37 = vpack.c.bf16 %v220_v30, %v216_v29  ;;  %v222_v39 = vld [vmem:[#allocation3 + $0x388] sm:$0xff] }
  0x6f   :  { %3375 = vmatpush1.bf16.msra.mxu1 %v3374_v47  ;;  %3249 = vmatprep.subr.bf16.mxu0 %v3248_v48  ;;  %v219_v38 = vld [vmem:[#allocation3 + $0x370] sm:$0xff]  ;;  %v226_v40 = vld [vmem:[#allocation3 + $0x3a8] sm:$0xff]  ;;  %v224_v41 = vld [vmem:[#allocation3 + $0x398] sm:$0xff]  ;;  %v3266_v43 = vpack.c.bf16 %v217_v35, %v213_v34 }
  0x70   :  { %3377 = vmatprep.subr.bf16.mxu1 %v3376_v52  ;;  %v228_v42 = vld [vmem:[#allocation3 + $0x3b8] sm:$0xff]  ;;  %v3394_v44 = vpack.c.bf16 %v219_v38, %v215_v36  ;;  %v3268_v45 = vpack.c.bf16 %v226_v40, %v222_v39  ;;  %v221_v46 = vld [vmem:[#allocation3 + $0x380] sm:$0xff]  ;;  %v223_v48 = vld [vmem:[#allocation3 + $0x390] sm:$0xff] }
  0x71   :  { %v225_v47 = vld [vmem:[#allocation3 + $0x3a0] sm:$0xff]  ;;  %v3396_v49 = vpack.c.bf16 %v228_v42, %v224_v41  ;;  %v227_v50 = vld [vmem:[#allocation3 + $0x3b0] sm:$0xff]  ;;  %v230_v51 = vld [vmem:[#allocation3 + $0x3c8] sm:$0xff] }
  0x72   :  { %3251 = vmatpush1.bf16.msra.mxu0 %v3250_v58  ;;  %v234_v52 = vld [vmem:[#allocation3 + $0x3e8] sm:$0xff]  ;;  %v232_v53 = vld [vmem:[#allocation3 + $0x3d8] sm:$0xff]  ;;  %v3270_v55 = vpack.c.bf16 %v225_v47, %v221_v46  ;;  %v3398_v56 = vpack.c.bf16 %v227_v50, %v223_v48  ;;  %v229_v58 = vld [vmem:[#allocation3 + $0x3c0] sm:$0xff] }
  0x73   :  { %3379 = vmatpush1.bf16.msra.mxu1 %v3378_v59  ;;  %3253 = vmatprep.subr.bf16.mxu0 %v3252_v60  ;;  %v236_v54 = vld [vmem:[#allocation3 + $0x3f8] sm:$0xff]  ;;  %v3272_v57 = vpack.c.bf16 %v234_v52, %v230_v51  ;;  %v233_v59 = vld [vmem:[#allocation3 + $0x3e0] sm:$0xff]  ;;  %v231_v60 = vld [vmem:[#allocation3 + $0x3d0] sm:$0xff] }
  0x74   :  { %3381 = vmatprep.subr.bf16.mxu1 %v3380_v0  ;;  %v3400_v61 = vpack.c.bf16 %v236_v54, %v232_v53  ;;  %v235_v62 = vld [vmem:[#allocation3 + $0x3f0] sm:$0xff]  ;;  %v238_v63 = vld [vmem:[#allocation3 + $0x408] sm:$0xff]  ;;  %v240_v1 = vld [vmem:[#allocation3 + $0x418] sm:$0xff]  ;;  %v3274_v3 = vpack.c.bf16 %v233_v59, %v229_v58 }
  0x75   :  { %v242_v0 = vld [vmem:[#allocation3 + $0x428] sm:$0xff]  ;;  %v244_v2 = vld [vmem:[#allocation3 + $0x438] sm:$0xff]  ;;  %v3402_v4 = vpack.c.bf16 %v235_v62, %v231_v60  ;;  %v241_v7 = vld [vmem:[#allocation3 + $0x420] sm:$0xff] }
  0x76   :  { %3255 = vmatpush1.bf16.msra.mxu0 %v3254_v6  ;;  %v3276_v5 = vpack.c.bf16 %v242_v0, %v238_v63  ;;  %v237_v6 = vld [vmem:[#allocation3 + $0x400] sm:$0xff]  ;;  %v243_v10 = vld [vmem:[#allocation3 + $0x430] sm:$0xff]  ;;  %v246_v11 = vld [vmem:[#allocation3 + $0x448] sm:$0xff] }
  0x77   :  { %3383 = vmatpush1.bf16.msra.mxu1 %v3382_v8  ;;  %3257 = vmatprep.subr.bf16.mxu0 %v3256_v9  ;;  %v239_v8 = vld [vmem:[#allocation3 + $0x410] sm:$0xff]  ;;  %v3404_v9 = vpack.c.bf16 %v244_v2, %v240_v1  ;;  %v250_v12 = vld [vmem:[#allocation3 + $0x468] sm:$0xff]  ;;  %v252_v14 = vld [vmem:[#allocation3 + $0x478] sm:$0xff]  ;;  %v3278_v16 = vpack.c.bf16 %v241_v7, %v237_v6 }
  0x78   :  { %3385 = vmatprep.subr.bf16.mxu1 %v3384_v13  ;;  %v248_v13 = vld [vmem:[#allocation3 + $0x458] sm:$0xff]  ;;  %v104_v15 = vld [vmem:[%s4793_s0] sm:$0xff]  ;;  %v3406_v17 = vpack.c.bf16 %v243_v10, %v239_v8  ;;  %v3280_v18 = vpack.c.bf16 %v250_v12, %v246_v11  ;;  %v251_v23 = vld [vmem:[#allocation3 + $0x470] sm:$0xff] }
  0x79   :  { %v3408_v22 = vpack.c.bf16 %v252_v14, %v248_v13  ;;  %v254_v24 = vld [vmem:[#allocation3 + $0x488] sm:$0xff]  ;;  %v256_v26 = vld [vmem:[#allocation3 + $0x498] sm:$0xff]  ;;  %v259_v35 = vld [vmem:[#allocation3 + $0x4b0] sm:$0xff] }
  0x7a   :  { %3259 = vmatpush1.bf16.msra.mxu0 %v3258_v19  ;;  %v245_v19 = vld [vmem:[#allocation3 + $0x440] sm:$0xff]  ;;  %v260_v27 = vld [vmem:[#allocation3 + $0x4b8] sm:$0xff]  ;;  %v262_v36 = vld [vmem:[#allocation3 + $0x4c8] sm:$0xff] }
  0x7b   :  { %3387 = vmatpush1.bf16.msra.mxu1 %v3386_v20  ;;  %3261 = vmatprep.subr.bf16.mxu0 %v3260_v21  ;;  %v249_v20 = vld [vmem:[#allocation3 + $0x460] sm:$0xff]  ;;  %v247_v21 = vld [vmem:[#allocation3 + $0x450] sm:$0xff]  ;;  %v3412_v34 = vpack.c.bf16 %v260_v27, %v256_v26  ;;  %v264_v38 = vld [vmem:[#allocation3 + $0x4d8] sm:$0xff] }
  0x7c   :  { %3389 = vmatprep.subr.bf16.mxu1 %v3388_v25  ;;  %v258_v25 = vld [vmem:[#allocation3 + $0x4a8] sm:$0xff]  ;;  %v3282_v28 = vpack.c.bf16 %v249_v20, %v245_v19  ;;  %v3410_v29 = vpack.c.bf16 %v251_v23, %v247_v21  ;;  %v268_v39 = vld [vmem:[#allocation3 + $0x4f8] sm:$0xff]  ;;  %v267_v47 = vld [vmem:[#allocation3 + $0x4f0] sm:$0xff] }
  0x7d   :  { %v3284_v30 = vpack.c.bf16 %v258_v25, %v254_v24  ;;  %v3416_v46 = vpack.c.bf16 %v268_v39, %v264_v38  ;;  %v270_v48 = vld [vmem:[#allocation3 + $0x508] sm:$0xff]  ;;  %v272_v50 = vld [vmem:[#allocation3 + $0x518] sm:$0xff]  ;;  %v275_v59 = vld [vmem:[#allocation3 + $0x530] sm:$0xff] }
  0x7e   :  { %3263 = vmatpush1.bf16.msra.mxu0 %v3262_v31  ;;  %v253_v31 = vld [vmem:[#allocation3 + $0x480] sm:$0xff]  ;;  %v276_v51 = vld [vmem:[#allocation3 + $0x538] sm:$0xff]  ;;  %v278_v60 = vld [vmem:[#allocation3 + $0x548] sm:$0xff] }
  0x7f   :  { %3391 = vmatpush1.bf16.msra.mxu1 %v3390_v32  ;;  %3265 = vmatprep.subr.bf16.mxu0 %v3264_v33  ;;  %v257_v32 = vld [vmem:[#allocation3 + $0x4a0] sm:$0xff]  ;;  %v255_v33 = vld [vmem:[#allocation3 + $0x490] sm:$0xff]  ;;  %v3420_v58 = vpack.c.bf16 %v276_v51, %v272_v50  ;;  %v280_v62 = vld [vmem:[#allocation3 + $0x558] sm:$0xff] }
  0x80   :  { %3393 = vmatprep.subr.bf16.mxu1 %v3392_v37  ;;  %v266_v37 = vld [vmem:[#allocation3 + $0x4e8] sm:$0xff]  ;;  %v3286_v40 = vpack.c.bf16 %v257_v32, %v253_v31  ;;  %v3414_v41 = vpack.c.bf16 %v259_v35, %v255_v33  ;;  %v284_v63 = vld [vmem:[#allocation3 + $0x578] sm:$0xff]  ;;  %v283_v7 = vld [vmem:[#allocation3 + $0x570] sm:$0xff] }
  0x81   :  { %v3288_v42 = vpack.c.bf16 %v266_v37, %v262_v36  ;;  %v3424_v6 = vpack.c.bf16 %v284_v63, %v280_v62  ;;  %v286_v8 = vld [vmem:[#allocation3 + $0x588] sm:$0xff]  ;;  %v288_v10 = vld [vmem:[#allocation3 + $0x598] sm:$0xff]  ;;  %v285_v13 = vld [vmem:[#allocation3 + $0x580] sm:$0xff] }
  0x82   :  { %3267 = vmatpush1.bf16.msra.mxu0 %v3266_v43  ;;  %v261_v43 = vld [vmem:[#allocation3 + $0x4c0] sm:$0xff]  ;;  %v292_v11 = vld [vmem:[#allocation3 + $0x5b8] sm:$0xff]  ;;  %v294_v20 = vld [vmem:[#allocation3 + $0x5c8] sm:$0xff] }
  0x83   :  { %3395 = vmatpush1.bf16.msra.mxu1 %v3394_v44  ;;  %3269 = vmatprep.subr.bf16.mxu0 %v3268_v45  ;;  %v265_v44 = vld [vmem:[#allocation3 + $0x4e0] sm:$0xff]  ;;  %v263_v45 = vld [vmem:[#allocation3 + $0x4d0] sm:$0xff]  ;;  %v3428_v19 = vpack.c.bf16 %v292_v11, %v288_v10  ;;  %v298_v21 = vld [vmem:[#allocation3 + $0x5e8] sm:$0xff] }
  0x84   :  { %3397 = vmatprep.subr.bf16.mxu1 %v3396_v49  ;;  %v274_v49 = vld [vmem:[#allocation3 + $0x528] sm:$0xff]  ;;  %v3290_v52 = vpack.c.bf16 %v265_v44, %v261_v43  ;;  %v3418_v53 = vpack.c.bf16 %v267_v47, %v263_v45  ;;  %v296_v23 = vld [vmem:[#allocation3 + $0x5d8] sm:$0xff]  ;;  %v3304_v27 = vpack.c.bf16 %v298_v21, %v294_v20  ;;  %v299_v32 = vld [vmem:[#allocation3 + $0x5f0] sm:$0xff] }
  0x85   :  { %v3292_v54 = vpack.c.bf16 %v274_v49, %v270_v48  ;;  %v300_v24 = vld [vmem:[#allocation3 + $0x5f8] sm:$0xff]  ;;  %v302_v33 = vld [vmem:[#allocation3 + $0x608] sm:$0xff]  ;;  %v307_v44 = vld [vmem:[#allocation3 + $0x630] sm:$0xff] }
  0x86   :  { %3271 = vmatpush1.bf16.msra.mxu0 %v3270_v55  ;;  %v269_v55 = vld [vmem:[#allocation3 + $0x500] sm:$0xff]  ;;  %v3432_v31 = vpack.c.bf16 %v300_v24, %v296_v23  ;;  %v304_v35 = vld [vmem:[#allocation3 + $0x618] sm:$0xff]  ;;  %v310_v45 = vld [vmem:[#allocation3 + $0x648] sm:$0xff] }
  0x87   :  { %3399 = vmatpush1.bf16.msra.mxu1 %v3398_v56  ;;  %3273 = vmatprep.subr.bf16.mxu0 %v3272_v57  ;;  %v273_v56 = vld [vmem:[#allocation3 + $0x520] sm:$0xff]  ;;  %v271_v57 = vld [vmem:[#allocation3 + $0x510] sm:$0xff]  ;;  %v308_v36 = vld [vmem:[#allocation3 + $0x638] sm:$0xff] }
  0x88   :  { %3401 = vmatprep.subr.bf16.mxu1 %v3400_v61  ;;  %v282_v61 = vld [vmem:[#allocation3 + $0x568] sm:$0xff]  ;;  %v3294_v0 = vpack.c.bf16 %v273_v56, %v269_v55  ;;  %v3422_v1 = vpack.c.bf16 %v275_v59, %v271_v57  ;;  %v3436_v43 = vpack.c.bf16 %v308_v36, %v304_v35  ;;  %v312_v47 = vld [vmem:[#allocation3 + $0x658] sm:$0xff]  ;;  %v315_v56 = vld [vmem:[#allocation3 + $0x670] sm:$0xff] }
  0x89   :  { %v3296_v2 = vpack.c.bf16 %v282_v61, %v278_v60  ;;  %v316_v48 = vld [vmem:[#allocation3 + $0x678] sm:$0xff]  ;;  %v318_v57 = vld [vmem:[#allocation3 + $0x688] sm:$0xff]  ;;  %v333_v24 = vld [vmem:[#allocation3 + $0x700] sm:$0xff] }
  0x8a   :  { %3275 = vmatpush1.bf16.msra.mxu0 %v3274_v3  ;;  %v277_v3 = vld [vmem:[#allocation3 + $0x540] sm:$0xff]  ;;  %v3440_v55 = vpack.c.bf16 %v316_v48, %v312_v47  ;;  %v320_v59 = vld [vmem:[#allocation3 + $0x698] sm:$0xff] }
  0x8b   :  { %3403 = vmatpush1.bf16.msra.mxu1 %v3402_v4  ;;  %3277 = vmatprep.subr.bf16.mxu0 %v3276_v5  ;;  %v281_v4 = vld [vmem:[#allocation3 + $0x560] sm:$0xff]  ;;  %v279_v5 = vld [vmem:[#allocation3 + $0x550] sm:$0xff]  ;;  %v324_v60 = vld [vmem:[#allocation3 + $0x6b8] sm:$0xff] }
  0x8c   :  { %3405 = vmatprep.subr.bf16.mxu1 %v3404_v9  ;;  %v290_v9 = vld [vmem:[#allocation3 + $0x5a8] sm:$0xff]  ;;  %v3298_v12 = vpack.c.bf16 %v281_v4, %v277_v3  ;;  %v3426_v14 = vpack.c.bf16 %v283_v7, %v279_v5  ;;  %v3444_v3 = vpack.c.bf16 %v324_v60, %v320_v59  ;;  %v323_v4 = vld [vmem:[#allocation3 + $0x6b0] sm:$0xff]  ;;  %v328_v7 = vld [vmem:[#allocation3 + $0x6d8] sm:$0xff] }
  0x8d   :  { %452 = vmatmul.mubr.f32.vlgmr.msra.gmra.mrb[0].mxu0 %v104_v15  ;;  %v326_v5 = vld [vmem:[#allocation3 + $0x6c8] sm:$0xff]  ;;  %v340_v20 = vld [vmem:[#allocation3 + $0x738] sm:$0xff]  ;;  %v341_v36 = vld [vmem:[#allocation3 + $0x740] sm:$0xff] }
  0x8e   :  { %3279 = vmatpush1.bf16.msra.mxu0 %v3278_v16  ;;  %594 = vmatmul.mubr.f32.vlgmr.msra.gmra.mrb[0].mxu1 %v104_v15  ;;  %v3300_v15 = vpack.c.bf16 %v290_v9, %v286_v8  ;;  %v289_v16 = vld [vmem:[#allocation3 + $0x5a0] sm:$0xff]  ;;  %v332_v8 = vld [vmem:[#allocation3 + $0x6f8] sm:$0xff] }
  0x8f   :  { %3407 = vmatpush1.bf16.msra.mxu1 %v3406_v17  ;;  %3281 = vmatprep.subr.bf16.mxu0 %v3280_v18  ;;  %v287_v17 = vld [vmem:[#allocation3 + $0x590] sm:$0xff]  ;;  %v3302_v25 = vpack.c.bf16 %v289_v16, %v285_v13  ;;  %v329_v13 = vld [vmem:[#allocation3 + $0x6e0] sm:$0xff] }
  0x90   :  { %3409 = vmatprep.subr.bf16.mxu1 %v3408_v22  ;;  %v291_v18 = vld [vmem:[#allocation3 + $0x5b0] sm:$0xff]  ;;  %v107_v22 = vld [vmem:[%s4793_s0 + $0x18] sm:$0xff]  ;;  %v349_v48 = vld [vmem:[#allocation3 + $0x780] sm:$0xff] }
  0x91   :  { %522 = vmatprep.mubr.f32.mxu0 %v107_v22  ;;  %664 = vmatprep.mubr.f32.mxu1 %v107_v22  ;;  %v3430_v26 = vpack.c.bf16 %v291_v18, %v287_v17  ;;  %v331_v16 = vld [vmem:[#allocation3 + $0x6f0] sm:$0xff]  ;;  %v334_v17 = vld [vmem:[#allocation3 + $0x708] sm:$0xff]  ;;  %v357_v60 = vld [vmem:[#allocation3 + $0x7c0] sm:$0xff] }
  0x92   :  { %3283 = vmatpush1.bf16.msra.mxu0 %v3282_v28  ;;  %v293_v28 = vld [vmem:[#allocation3 + $0x5c0] sm:$0xff]  ;;  %v338_v18 = vld [vmem:[#allocation3 + $0x728] sm:$0xff] }
  0x93   :  { %3411 = vmatpush1.bf16.msra.mxu1 %v3410_v29  ;;  %3285 = vmatprep.subr.bf16.mxu0 %v3284_v30  ;;  %v297_v29 = vld [vmem:[#allocation3 + $0x5e0] sm:$0xff]  ;;  %v295_v30 = vld [vmem:[#allocation3 + $0x5d0] sm:$0xff]  ;;  %v3324_v23 = vpack.c.bf16 %v338_v18, %v334_v17 }
  0x94   :  { %3413 = vmatprep.subr.bf16.mxu1 %v3412_v34  ;;  %v306_v34 = vld [vmem:[#allocation3 + $0x628] sm:$0xff]  ;;  %v3306_v37 = vpack.c.bf16 %v297_v29, %v293_v28  ;;  %v3434_v38 = vpack.c.bf16 %v299_v32, %v295_v30  ;;  %v339_v28 = vld [vmem:[#allocation3 + $0x730] sm:$0xff]  ;;  %v348_v32 = vld [vmem:[#allocation3 + $0x778] sm:$0xff] }
  0x95   :  { %v3308_v39 = vpack.c.bf16 %v306_v34, %v302_v33  ;;  %v342_v29 = vld [vmem:[#allocation3 + $0x748] sm:$0xff]  ;;  %v106_v17 = vld [vmem:[%s4793_s0 + $0x10] sm:$0xff] }
  0x96   :  { %3287 = vmatpush1.bf16.msra.mxu0 %v3286_v40  ;;  %v301_v40 = vld [vmem:[#allocation3 + $0x600] sm:$0xff]  ;;  %v346_v30 = vld [vmem:[#allocation3 + $0x768] sm:$0xff] }
  0x97   :  { %3415 = vmatpush1.bf16.msra.mxu1 %v3414_v41  ;;  %3289 = vmatprep.subr.bf16.mxu0 %v3288_v42  ;;  %v305_v41 = vld [vmem:[#allocation3 + $0x620] sm:$0xff]  ;;  %v303_v42 = vld [vmem:[#allocation3 + $0x610] sm:$0xff]  ;;  %v3328_v35 = vpack.c.bf16 %v346_v30, %v342_v29  ;;  %v726_v29 = vld [vmem:[#allocation6 + $0xb8] sm:$0xff] }
  0x98   :  { %3417 = vmatprep.subr.bf16.mxu1 %v3416_v46  ;;  %v314_v46 = vld [vmem:[#allocation3 + $0x668] sm:$0xff]  ;;  %v3310_v49 = vpack.c.bf16 %v305_v41, %v301_v40  ;;  %v3438_v50 = vpack.c.bf16 %v307_v44, %v303_v42  ;;  %v347_v40 = vld [vmem:[#allocation3 + $0x770] sm:$0xff]  ;;  %v356_v44 = vld [vmem:[#allocation3 + $0x7b8] sm:$0xff] }
  0x99   :  { %v3312_v51 = vpack.c.bf16 %v314_v46, %v310_v45  ;;  %v350_v41 = vld [vmem:[#allocation3 + $0x788] sm:$0xff] }
  0x9a   :  { %3291 = vmatpush1.bf16.msra.mxu0 %v3290_v52  ;;  %v309_v52 = vld [vmem:[#allocation3 + $0x640] sm:$0xff]  ;;  %v354_v42 = vld [vmem:[#allocation3 + $0x7a8] sm:$0xff] }
  0x9b   :  { %3419 = vmatpush1.bf16.msra.mxu1 %v3418_v53  ;;  %3293 = vmatprep.subr.bf16.mxu0 %v3292_v54  ;;  %v313_v53 = vld [vmem:[#allocation3 + $0x660] sm:$0xff]  ;;  %v311_v54 = vld [vmem:[#allocation3 + $0x650] sm:$0xff]  ;;  %v3332_v47 = vpack.c.bf16 %v354_v42, %v350_v41  ;;  %v734_v41 = vld [vmem:[#allocation6 + $0xf8] sm:$0xff] }
  0x9c   :  { %3421 = vmatprep.subr.bf16.mxu1 %v3420_v58  ;;  %v322_v58 = vld [vmem:[#allocation3 + $0x6a8] sm:$0xff]  ;;  %v3314_v61 = vpack.c.bf16 %v313_v53, %v309_v52  ;;  %v3442_v62 = vpack.c.bf16 %v315_v56, %v311_v54  ;;  %v355_v52 = vld [vmem:[#allocation3 + $0x7b0] sm:$0xff]  ;;  %v364_v56 = vld [vmem:[#allocation3 + $0x7f8] sm:$0xff] }
  0x9d   :  { %v3316_v63 = vpack.c.bf16 %v322_v58, %v318_v57  ;;  %v358_v53 = vld [vmem:[#allocation3 + $0x7c8] sm:$0xff] }
  0x9e   :  { %3295 = vmatpush1.bf16.msra.mxu0 %v3294_v0  ;;  %v317_v0 = vld [vmem:[#allocation3 + $0x680] sm:$0xff]  ;;  %v362_v54 = vld [vmem:[#allocation3 + $0x7e8] sm:$0xff] }
  0x9f   :  { %3423 = vmatpush1.bf16.msra.mxu1 %v3422_v1  ;;  %3297 = vmatprep.subr.bf16.mxu0 %v3296_v2  ;;  %v321_v1 = vld [vmem:[#allocation3 + $0x6a0] sm:$0xff]  ;;  %v319_v2 = vld [vmem:[#allocation3 + $0x690] sm:$0xff]  ;;  %v3336_v59 = vpack.c.bf16 %v362_v54, %v358_v53  ;;  %v742_v53 = vld [vmem:[#allocation6 + $0x138] sm:$0xff] }
  0xa0   :  { %3425 = vmatprep.subr.bf16.mxu1 %v3424_v6  ;;  %v330_v6 = vld [vmem:[#allocation3 + $0x6e8] sm:$0xff]  ;;  %v3318_v9 = vpack.c.bf16 %v321_v1, %v317_v0  ;;  %v3446_v10 = vpack.c.bf16 %v323_v4, %v319_v2  ;;  %v363_v0 = vld [vmem:[#allocation3 + $0x7f0] sm:$0xff]  ;;  %v710_v4 = vld [vmem:[#allocation6 + $0x38] sm:$0xff] }
  0xa1   :  { %v3320_v11 = vpack.c.bf16 %v330_v6, %v326_v5  ;;  %v704_v1 = vld [vmem:[#allocation6 + $0x8] sm:$0xff] }
  0xa2   :  { %3299 = vmatpush1.bf16.msra.mxu0 %v3298_v12  ;;  %v325_v12 = vld [vmem:[#allocation3 + $0x6c0] sm:$0xff]  ;;  %v708_v2 = vld [vmem:[#allocation6 + $0x28] sm:$0xff] }
  0xa3   :  { %3427 = vmatpush1.bf16.msra.mxu1 %v3426_v14  ;;  %3301 = vmatprep.subr.bf16.mxu0 %v3300_v15  ;;  %v327_v14 = vld [vmem:[#allocation3 + $0x6d0] sm:$0xff]  ;;  %v3448_v15 = vpack.c.bf16 %v332_v8, %v328_v7  ;;  %v3322_v21 = vpack.c.bf16 %v329_v13, %v325_v12  ;;  %v3468_v7 = vpack.c.bf16 %v708_v2, %v704_v1  ;;  %v703_v8 = vld [vmem:[#allocation6] sm:$0xff]  ;;  %v712_v13 = vld [vmem:[#allocation6 + $0x48] sm:$0xff] }
  0xa4   :  { %3429 = vmatprep.subr.bf16.mxu1 %v3428_v19  ;;  %v336_v19 = vld [vmem:[#allocation3 + $0x718] sm:$0xff]  ;;  %v3450_v22 = vpack.c.bf16 %v331_v16, %v327_v14  ;;  %v709_v12 = vld [vmem:[#allocation6 + $0x30] sm:$0xff]  ;;  %v716_v14 = vld [vmem:[#allocation6 + $0x68] sm:$0xff] }
  0xa5   :  { %v718_v16 = vld [vmem:[#allocation6 + $0x78] sm:$0xff] }
  0xa6   :  { %3303 = vmatpush1.bf16.msra.mxu0 %v3302_v25  ;;  %v337_v25 = vld [vmem:[#allocation3 + $0x720] sm:$0xff]  ;;  %v750_v1 = vld [vmem:[#allocation6 + $0x178] sm:$0xff] }
  0xa7   :  { %3431 = vmatpush1.bf16.msra.mxu1 %v3430_v26  ;;  %3305 = vmatprep.subr.bf16.mxu0 %v3304_v27  ;;  %v335_v26 = vld [vmem:[#allocation3 + $0x710] sm:$0xff]  ;;  %v3452_v27 = vpack.c.bf16 %v340_v20, %v336_v19  ;;  %v3326_v33 = vpack.c.bf16 %v337_v25, %v333_v24  ;;  %v3472_v20 = vpack.c.bf16 %v716_v14, %v712_v13  ;;  %v758_v13 = vld [vmem:[#allocation6 + $0x1b8] sm:$0xff] }
  0xa8   :  { %3433 = vmatprep.subr.bf16.mxu1 %v3432_v31  ;;  %v344_v31 = vld [vmem:[#allocation3 + $0x758] sm:$0xff]  ;;  %v3454_v34 = vpack.c.bf16 %v339_v28, %v335_v26  ;;  %v717_v25 = vld [vmem:[#allocation6 + $0x70] sm:$0xff]  ;;  %v720_v26 = vld [vmem:[#allocation6 + $0x88] sm:$0xff] }
  0xa9   :  { %v722_v28 = vld [vmem:[#allocation6 + $0x98] sm:$0xff] }
  0xaa   :  { %3307 = vmatpush1.bf16.msra.mxu0 %v3306_v37  ;;  %v345_v37 = vld [vmem:[#allocation3 + $0x760] sm:$0xff] }
  0xab   :  { %3435 = vmatpush1.bf16.msra.mxu1 %v3434_v38  ;;  %3309 = vmatprep.subr.bf16.mxu0 %v3308_v39  ;;  %v343_v38 = vld [vmem:[#allocation3 + $0x750] sm:$0xff]  ;;  %v3456_v39 = vpack.c.bf16 %v348_v32, %v344_v31  ;;  %v3330_v45 = vpack.c.bf16 %v345_v37, %v341_v36  ;;  %v3604_v36 = vpack.c.bf16 %v726_v29, %v722_v28  ;;  %v759_v29 = vld [vmem:[#allocation6 + $0x1c0] sm:$0xff] }
  0xac   :  { %3437 = vmatprep.subr.bf16.mxu1 %v3436_v43  ;;  %v352_v43 = vld [vmem:[#allocation3 + $0x798] sm:$0xff]  ;;  %v3458_v46 = vpack.c.bf16 %v347_v40, %v343_v38  ;;  %v725_v37 = vld [vmem:[#allocation6 + $0xb0] sm:$0xff]  ;;  %v728_v38 = vld [vmem:[#allocation6 + $0xc8] sm:$0xff] }
  0xad   :  { %v730_v40 = vld [vmem:[#allocation6 + $0xd8] sm:$0xff] }
  0xae   :  { %3311 = vmatpush1.bf16.msra.mxu0 %v3310_v49  ;;  %v353_v49 = vld [vmem:[#allocation3 + $0x7a0] sm:$0xff] }
  0xaf   :  { %3439 = vmatpush1.bf16.msra.mxu1 %v3438_v50  ;;  %3313 = vmatprep.subr.bf16.mxu0 %v3312_v51  ;;  %v351_v50 = vld [vmem:[#allocation3 + $0x790] sm:$0xff]  ;;  %v3460_v51 = vpack.c.bf16 %v356_v44, %v352_v43  ;;  %v3334_v57 = vpack.c.bf16 %v353_v49, %v349_v48  ;;  %v3608_v48 = vpack.c.bf16 %v734_v41, %v730_v40  ;;  %v774_v40 = vld [vmem:[#allocation6 + $0x238] sm:$0xff]  ;;  %v767_v41 = vld [vmem:[#allocation6 + $0x200] sm:$0xff] }
  0xb0   :  { %3441 = vmatprep.subr.bf16.mxu1 %v3440_v55  ;;  %v360_v55 = vld [vmem:[#allocation3 + $0x7d8] sm:$0xff]  ;;  %v3462_v58 = vpack.c.bf16 %v355_v52, %v351_v50  ;;  %v733_v49 = vld [vmem:[#allocation6 + $0xf0] sm:$0xff]  ;;  %v736_v50 = vld [vmem:[#allocation6 + $0x108] sm:$0xff] }
  0xb1   :  { %v738_v52 = vld [vmem:[#allocation6 + $0x118] sm:$0xff] }
  0xb2   :  { %3315 = vmatpush1.bf16.msra.mxu0 %v3314_v61  ;;  %v361_v61 = vld [vmem:[#allocation3 + $0x7e0] sm:$0xff] }
  0xb3   :  { %3443 = vmatpush1.bf16.msra.mxu1 %v3442_v62  ;;  %3317 = vmatprep.subr.bf16.mxu0 %v3316_v63  ;;  %v359_v62 = vld [vmem:[#allocation3 + $0x7d0] sm:$0xff]  ;;  %v3464_v63 = vpack.c.bf16 %v364_v56, %v360_v55  ;;  %v3338_v5 = vpack.c.bf16 %v361_v61, %v357_v60  ;;  %v3612_v60 = vpack.c.bf16 %v742_v53, %v738_v52  ;;  %v782_v52 = vld [vmem:[#allocation6 + $0x278] sm:$0xff]  ;;  %v775_v53 = vld [vmem:[#allocation6 + $0x240] sm:$0xff] }
  0xb4   :  { %3445 = vmatprep.subr.bf16.mxu1 %v3444_v3  ;;  %v706_v3 = vld [vmem:[#allocation6 + $0x18] sm:$0xff]  ;;  %v3466_v6 = vpack.c.bf16 %v363_v0, %v359_v62  ;;  %v741_v61 = vld [vmem:[#allocation6 + $0x130] sm:$0xff]  ;;  %v744_v62 = vld [vmem:[#allocation6 + $0x148] sm:$0xff] }
  0xb5   :  { %v746_v0 = vld [vmem:[#allocation6 + $0x158] sm:$0xff] }
  0xb6   :  { %3319 = vmatpush1.bf16.msra.mxu0 %v3318_v9  ;;  %v707_v9 = vld [vmem:[#allocation6 + $0x20] sm:$0xff] }
  0xb7   :  { %3447 = vmatpush1.bf16.msra.mxu1 %v3446_v10  ;;  %3321 = vmatprep.subr.bf16.mxu0 %v3320_v11  ;;  %v705_v10 = vld [vmem:[#allocation6 + $0x10] sm:$0xff]  ;;  %v3596_v11 = vpack.c.bf16 %v710_v4, %v706_v3  ;;  %v3470_v18 = vpack.c.bf16 %v707_v9, %v703_v8  ;;  %v3616_v8 = vpack.c.bf16 %v750_v1, %v746_v0  ;;  %v790_v0 = vld [vmem:[#allocation6 + $0x2b8] sm:$0xff]  ;;  %v783_v1 = vld [vmem:[#allocation6 + $0x280] sm:$0xff] }
  0xb8   :  { %3449 = vmatprep.subr.bf16.mxu1 %v3448_v15  ;;  %v714_v15 = vld [vmem:[#allocation6 + $0x58] sm:$0xff]  ;;  %v3598_v19 = vpack.c.bf16 %v709_v12, %v705_v10  ;;  %v749_v9 = vld [vmem:[#allocation6 + $0x170] sm:$0xff]  ;;  %v752_v10 = vld [vmem:[#allocation6 + $0x188] sm:$0xff] }
  0xb9   :  { %v3600_v24 = vpack.c.bf16 %v718_v16, %v714_v15  ;;  %v754_v12 = vld [vmem:[#allocation6 + $0x198] sm:$0xff] }
  0xba   :  { %3323 = vmatpush1.bf16.msra.mxu0 %v3322_v21  ;;  %v711_v21 = vld [vmem:[#allocation6 + $0x40] sm:$0xff] }
  0xbb   :  { %3451 = vmatpush1.bf16.msra.mxu1 %v3450_v22  ;;  %3325 = vmatprep.subr.bf16.mxu0 %v3324_v23  ;;  %v715_v22 = vld [vmem:[#allocation6 + $0x60] sm:$0xff]  ;;  %v713_v23 = vld [vmem:[#allocation6 + $0x50] sm:$0xff] }
  0xbc   :  { %3453 = vmatprep.subr.bf16.mxu1 %v3452_v27  ;;  %v724_v27 = vld [vmem:[#allocation6 + $0xa8] sm:$0xff]  ;;  %v3474_v30 = vpack.c.bf16 %v715_v22, %v711_v21  ;;  %v3602_v31 = vpack.c.bf16 %v717_v25, %v713_v23  ;;  %v757_v21 = vld [vmem:[#allocation6 + $0x1b0] sm:$0xff]  ;;  %v766_v25 = vld [vmem:[#allocation6 + $0x1f8] sm:$0xff] }
  0xbd   :  { %v3476_v32 = vpack.c.bf16 %v724_v27, %v720_v26  ;;  %v760_v22 = vld [vmem:[#allocation6 + $0x1c8] sm:$0xff] }
  0xbe   :  { %3327 = vmatpush1.bf16.msra.mxu0 %v3326_v33  ;;  %v719_v33 = vld [vmem:[#allocation6 + $0x80] sm:$0xff]  ;;  %v764_v23 = vld [vmem:[#allocation6 + $0x1e8] sm:$0xff] }
  0xbf   :  { %3455 = vmatpush1.bf16.msra.mxu1 %v3454_v34  ;;  %3329 = vmatprep.subr.bf16.mxu0 %v3328_v35  ;;  %v723_v34 = vld [vmem:[#allocation6 + $0xa0] sm:$0xff]  ;;  %v721_v35 = vld [vmem:[#allocation6 + $0x90] sm:$0xff]  ;;  %v3496_v28 = vpack.c.bf16 %v764_v23, %v760_v22  ;;  %v802_v22 = vld [vmem:[#allocation6 + $0x318] sm:$0xff] }
  0xc0   :  { %3457 = vmatprep.subr.bf16.mxu1 %v3456_v39  ;;  %v732_v39 = vld [vmem:[#allocation6 + $0xe8] sm:$0xff]  ;;  %v3478_v42 = vpack.c.bf16 %v723_v34, %v719_v33  ;;  %v3606_v43 = vpack.c.bf16 %v725_v37, %v721_v35  ;;  %v765_v33 = vld [vmem:[#allocation6 + $0x1f0] sm:$0xff] }
  0xc1   :  { %v3480_v44 = vpack.c.bf16 %v732_v39, %v728_v38  ;;  %v772_v37 = vld [vmem:[#allocation6 + $0x228] sm:$0xff]  ;;  %v770_v38 = vld [vmem:[#allocation6 + $0x218] sm:$0xff] }
  0xc2   :  { %3331 = vmatpush1.bf16.msra.mxu0 %v3330_v45  ;;  %v727_v45 = vld [vmem:[#allocation6 + $0xc0] sm:$0xff] }
  0xc3   :  { %3459 = vmatpush1.bf16.msra.mxu1 %v3458_v46  ;;  %3333 = vmatprep.subr.bf16.mxu0 %v3332_v47  ;;  %v731_v46 = vld [vmem:[#allocation6 + $0xe0] sm:$0xff]  ;;  %v729_v47 = vld [vmem:[#allocation6 + $0xd0] sm:$0xff] }
  0xc4   :  { %3461 = vmatprep.subr.bf16.mxu1 %v3460_v51  ;;  %v740_v51 = vld [vmem:[#allocation6 + $0x128] sm:$0xff]  ;;  %v3482_v54 = vpack.c.bf16 %v731_v46, %v727_v45  ;;  %v3610_v55 = vpack.c.bf16 %v733_v49, %v729_v47  ;;  %v769_v45 = vld [vmem:[#allocation6 + $0x210] sm:$0xff] }
  0xc5   :  { %v3484_v56 = vpack.c.bf16 %v740_v51, %v736_v50  ;;  %v773_v46 = vld [vmem:[#allocation6 + $0x230] sm:$0xff]  ;;  %v780_v49 = vld [vmem:[#allocation6 + $0x268] sm:$0xff]  ;;  %v778_v50 = vld [vmem:[#allocation6 + $0x258] sm:$0xff] }
  0xc6   :  { %3335 = vmatpush1.bf16.msra.mxu0 %v3334_v57  ;;  %v735_v57 = vld [vmem:[#allocation6 + $0x100] sm:$0xff]  ;;  %v3630_v47 = vpack.c.bf16 %v773_v46, %v769_v45  ;;  %v820_v45 = vld [vmem:[#allocation6 + $0x3a8] sm:$0xff]  ;;  %v818_v46 = vld [vmem:[#allocation6 + $0x398] sm:$0xff] }
  0xc7   :  { %3463 = vmatpush1.bf16.msra.mxu1 %v3462_v58  ;;  %3337 = vmatprep.subr.bf16.mxu0 %v3336_v59  ;;  %v739_v58 = vld [vmem:[#allocation6 + $0x120] sm:$0xff]  ;;  %v737_v59 = vld [vmem:[#allocation6 + $0x110] sm:$0xff] }
  0xc8   :  { %3465 = vmatprep.subr.bf16.mxu1 %v3464_v63  ;;  %v748_v63 = vld [vmem:[#allocation6 + $0x168] sm:$0xff]  ;;  %v3486_v2 = vpack.c.bf16 %v739_v58, %v735_v57  ;;  %v3614_v3 = vpack.c.bf16 %v741_v61, %v737_v59  ;;  %v777_v57 = vld [vmem:[#allocation6 + $0x250] sm:$0xff] }
  0xc9   :  { %v3488_v4 = vpack.c.bf16 %v748_v63, %v744_v62  ;;  %v781_v58 = vld [vmem:[#allocation6 + $0x270] sm:$0xff]  ;;  %v788_v61 = vld [vmem:[#allocation6 + $0x2a8] sm:$0xff]  ;;  %v786_v62 = vld [vmem:[#allocation6 + $0x298] sm:$0xff] }
  0xca   :  { %3339 = vmatpush1.bf16.msra.mxu0 %v3338_v5  ;;  %v743_v5 = vld [vmem:[#allocation6 + $0x140] sm:$0xff]  ;;  %v3634_v59 = vpack.c.bf16 %v781_v58, %v777_v57  ;;  %v828_v57 = vld [vmem:[#allocation6 + $0x3e8] sm:$0xff]  ;;  %v826_v58 = vld [vmem:[#allocation6 + $0x3d8] sm:$0xff] }
  0xcb   :  { %3467 = vmatpush1.bf16.msra.mxu1 %v3466_v6  ;;  %3469 = vmatprep.subr.bf16.mxu0 %v3468_v7  ;;  %v747_v6 = vld [vmem:[#allocation6 + $0x160] sm:$0xff]  ;;  %v745_v7 = vld [vmem:[#allocation6 + $0x150] sm:$0xff] }
  0xcc   :  { %3597 = vmatprep.subr.bf16.mxu1 %v3596_v11  ;;  %v756_v11 = vld [vmem:[#allocation6 + $0x1a8] sm:$0xff]  ;;  %v3490_v14 = vpack.c.bf16 %v747_v6, %v743_v5  ;;  %v3618_v15 = vpack.c.bf16 %v749_v9, %v745_v7  ;;  %v785_v5 = vld [vmem:[#allocation6 + $0x290] sm:$0xff] }
  0xcd   :  { %523 = vmatmul.mubr.f32.vlgmr.msra.gmra.mrb[0].mxu0 %v106_v17  ;;  %v3492_v16 = vpack.c.bf16 %v756_v11, %v752_v10  ;;  %v789_v6 = vld [vmem:[#allocation6 + $0x2b0] sm:$0xff]  ;;  %v796_v9 = vld [vmem:[#allocation6 + $0x2e8] sm:$0xff]  ;;  %v794_v10 = vld [vmem:[#allocation6 + $0x2d8] sm:$0xff] }
  0xce   :  { %665 = vmatmul.mubr.f32.vlgmr.msra.gmra.mrb[0].mxu1 %v106_v17  ;;  %3471 = vmatpush1.bf16.msra.mxu0 %v3470_v18  ;;  %v751_v17 = vld [vmem:[#allocation6 + $0x180] sm:$0xff]  ;;  %v3638_v7 = vpack.c.bf16 %v789_v6, %v785_v5  ;;  %v836_v5 = vld [vmem:[#allocation6 + $0x428] sm:$0xff]  ;;  %v834_v6 = vld [vmem:[#allocation6 + $0x418] sm:$0xff] }
  0xcf   :  { %3599 = vmatpush1.bf16.msra.mxu1 %v3598_v19  ;;  %3473 = vmatprep.subr.bf16.mxu0 %v3472_v20  ;;  %v755_v18 = vld [vmem:[#allocation6 + $0x1a0] sm:$0xff]  ;;  %v753_v19 = vld [vmem:[#allocation6 + $0x190] sm:$0xff]  ;;  %v3620_v20 = vpack.c.bf16 %v758_v13, %v754_v12  ;;  %v798_v12 = vld [vmem:[#allocation6 + $0x2f8] sm:$0xff] }
  0xd0   :  { %3601 = vmatprep.subr.bf16.mxu1 %v3600_v24  ;;  %v762_v24 = vld [vmem:[#allocation6 + $0x1d8] sm:$0xff]  ;;  %v3494_v26 = vpack.c.bf16 %v755_v18, %v751_v17  ;;  %v3622_v27 = vpack.c.bf16 %v757_v21, %v753_v19  ;;  %v791_v13 = vld [vmem:[#allocation6 + $0x2c0] sm:$0xff]  ;;  %v793_v17 = vld [vmem:[#allocation6 + $0x2d0] sm:$0xff] }
  0xd1   :  { %v797_v18 = vld [vmem:[#allocation6 + $0x2f0] sm:$0xff]  ;;  %v804_v21 = vld [vmem:[#allocation6 + $0x328] sm:$0xff] }
  0xd2   :  { %3475 = vmatpush1.bf16.msra.mxu0 %v3474_v30  ;;  %v763_v30 = vld [vmem:[#allocation6 + $0x1e0] sm:$0xff]  ;;  %v3642_v19 = vpack.c.bf16 %v797_v18, %v793_v17 }
  0xd3   :  { %3603 = vmatpush1.bf16.msra.mxu1 %v3602_v31  ;;  %3477 = vmatprep.subr.bf16.mxu0 %v3476_v32  ;;  %v3624_v31 = vpack.c.bf16 %v766_v25, %v762_v24  ;;  %v761_v32 = vld [vmem:[#allocation6 + $0x1d0] sm:$0xff]  ;;  %v3498_v34 = vpack.c.bf16 %v763_v30, %v759_v29  ;;  %v806_v24 = vld [vmem:[#allocation6 + $0x338] sm:$0xff]  ;;  %v799_v25 = vld [vmem:[#allocation6 + $0x300] sm:$0xff] }
  0xd4   :  { %3605 = vmatprep.subr.bf16.mxu1 %v3604_v36  ;;  %v3626_v35 = vpack.c.bf16 %v765_v33, %v761_v32  ;;  %v768_v36 = vld [vmem:[#allocation6 + $0x208] sm:$0xff]  ;;  %v801_v29 = vld [vmem:[#allocation6 + $0x310] sm:$0xff] }
  0xd5   :  { %v3500_v39 = vpack.c.bf16 %v772_v37, %v768_v36  ;;  %v805_v30 = vld [vmem:[#allocation6 + $0x330] sm:$0xff]  ;;  %v808_v32 = vld [vmem:[#allocation6 + $0x348] sm:$0xff]  ;;  %v814_v36 = vld [vmem:[#allocation6 + $0x378] sm:$0xff] }
  0xd6   :  { %3479 = vmatpush1.bf16.msra.mxu0 %v3478_v42  ;;  %v771_v42 = vld [vmem:[#allocation6 + $0x220] sm:$0xff]  ;;  %v812_v33 = vld [vmem:[#allocation6 + $0x368] sm:$0xff] }
  0xd7   :  { %3607 = vmatpush1.bf16.msra.mxu1 %v3606_v43  ;;  %3481 = vmatprep.subr.bf16.mxu0 %v3480_v44  ;;  %v3628_v43 = vpack.c.bf16 %v774_v40, %v770_v38  ;;  %v3502_v44 = vpack.c.bf16 %v771_v42, %v767_v41  ;;  %v807_v37 = vld [vmem:[#allocation6 + $0x340] sm:$0xff]  ;;  %v809_v41 = vld [vmem:[#allocation6 + $0x350] sm:$0xff] }
  0xd8   :  { %3609 = vmatprep.subr.bf16.mxu1 %v3608_v48  ;;  %v776_v48 = vld [vmem:[#allocation6 + $0x248] sm:$0xff]  ;;  %v811_v38 = vld [vmem:[#allocation6 + $0x360] sm:$0xff]  ;;  %v813_v42 = vld [vmem:[#allocation6 + $0x370] sm:$0xff] }
  0xd9   :  { %v3504_v51 = vpack.c.bf16 %v780_v49, %v776_v48  ;;  %v3522_v40 = vpack.c.bf16 %v811_v38, %v807_v37  ;;  %v822_v48 = vld [vmem:[#allocation6 + $0x3b8] sm:$0xff]  ;;  %v815_v49 = vld [vmem:[#allocation6 + $0x380] sm:$0xff] }
  0xda   :  { %3483 = vmatpush1.bf16.msra.mxu0 %v3482_v54  ;;  %v779_v54 = vld [vmem:[#allocation6 + $0x260] sm:$0xff] }
  0xdb   :  { %3611 = vmatpush1.bf16.msra.mxu1 %v3610_v55  ;;  %3485 = vmatprep.subr.bf16.mxu0 %v3484_v56  ;;  %v3632_v55 = vpack.c.bf16 %v782_v52, %v778_v50  ;;  %v3506_v56 = vpack.c.bf16 %v779_v54, %v775_v53  ;;  %v819_v50 = vld [vmem:[#allocation6 + $0x3a0] sm:$0xff]  ;;  %v817_v53 = vld [vmem:[#allocation6 + $0x390] sm:$0xff] }
  0xdc   :  { %3613 = vmatprep.subr.bf16.mxu1 %v3612_v60  ;;  %v784_v60 = vld [vmem:[#allocation6 + $0x288] sm:$0xff]  ;;  %v3526_v52 = vpack.c.bf16 %v819_v50, %v815_v49  ;;  %v821_v54 = vld [vmem:[#allocation6 + $0x3b0] sm:$0xff]  ;;  %v831_v38 = vld [vmem:[#allocation6 + $0x400] sm:$0xff] }
  0xdd   :  { %v3508_v63 = vpack.c.bf16 %v788_v61, %v784_v60  ;;  %v830_v60 = vld [vmem:[#allocation6 + $0x3f8] sm:$0xff]  ;;  %v823_v61 = vld [vmem:[#allocation6 + $0x3c0] sm:$0xff] }
  0xde   :  { %3487 = vmatpush1.bf16.msra.mxu0 %v3486_v2  ;;  %v787_v2 = vld [vmem:[#allocation6 + $0x2a0] sm:$0xff] }
  0xdf   :  { %3615 = vmatpush1.bf16.msra.mxu1 %v3614_v3  ;;  %3489 = vmatprep.subr.bf16.mxu0 %v3488_v4  ;;  %v3636_v3 = vpack.c.bf16 %v790_v0, %v786_v62  ;;  %v3510_v4 = vpack.c.bf16 %v787_v2, %v783_v1  ;;  %v827_v62 = vld [vmem:[#allocation6 + $0x3e0] sm:$0xff]  ;;  %v825_v1 = vld [vmem:[#allocation6 + $0x3d0] sm:$0xff] }
  0xe0   :  { %3617 = vmatprep.subr.bf16.mxu1 %v3616_v8  ;;  %v792_v8 = vld [vmem:[#allocation6 + $0x2c8] sm:$0xff]  ;;  %v3530_v0 = vpack.c.bf16 %v827_v62, %v823_v61  ;;  %v829_v2 = vld [vmem:[#allocation6 + $0x3f0] sm:$0xff]  ;;  %v850_v61 = vld [vmem:[#allocation6 + $0x498] sm:$0xff] }
  0xe1   :  { %v3512_v11 = vpack.c.bf16 %v796_v9, %v792_v8  ;;  %v838_v8 = vld [vmem:[#allocation6 + $0x438] sm:$0xff] }
  0xe2   :  { %3491 = vmatpush1.bf16.msra.mxu0 %v3490_v14  ;;  %v795_v14 = vld [vmem:[#allocation6 + $0x2e0] sm:$0xff]  ;;  %v3660_v9 = vpack.c.bf16 %v838_v8, %v834_v6  ;;  %v854_v62 = vld [vmem:[#allocation6 + $0x4b8] sm:$0xff]  ;;  %v849_v6 = vld [vmem:[#allocation6 + $0x490] sm:$0xff] }
  0xe3   :  { %3619 = vmatpush1.bf16.msra.mxu1 %v3618_v15  ;;  %3493 = vmatprep.subr.bf16.mxu0 %v3492_v16  ;;  %v3640_v15 = vpack.c.bf16 %v798_v12, %v794_v10  ;;  %v3514_v16 = vpack.c.bf16 %v795_v14, %v791_v13  ;;  %v367_v10 = vlaneseq  ;;  %v4625_v13 = vld [vmem:[%s4796_s3] sm:$0xf]  ;;  %v856_v8 = vld [vmem:[#allocation6 + $0x4c8] sm:$0xff]  ;;  %s4450_s3 = smov [#allocation11]  }
  0xe4   :  { %3621 = vmatprep.subr.bf16.mxu1 %v3620_v20  ;;  %v800_v20 = vld [vmem:[#allocation6 + $0x308] sm:$0xff]  ;;  %s3177_s29 = sshll.u32 %s4450_s3, 4  ;;  %s3178_s29 = int_to_ptr.vmem [resolvable:$true] %s3177_s29 }
  0xe5   :  { %v3516_v23 = vpack.c.bf16 %v804_v21, %v800_v20  ;;  %p4416_p5 = scmp.lt.s32.totalorder %s3178_s29, %s3178_s29 }
  0xe6   :  { %3495 = vmatpush1.bf16.msra.mxu0 %v3494_v26  ;;  %v803_v26 = vld [vmem:[#allocation6 + $0x320] sm:$0xff] }
  0xe7   :  { %3623 = vmatpush1.bf16.msra.mxu1 %v3622_v27  ;;  %3497 = vmatprep.subr.bf16.mxu0 %v3496_v28  ;;  %v3644_v27 = vpack.c.bf16 %v806_v24, %v802_v22  ;;  %v3518_v28 = vpack.c.bf16 %v803_v26, %v799_v25 }
  0xe8   :  { %3625 = vmatprep.subr.bf16.mxu1 %v3624_v31  ;;  %v3646_v31 = vpack.c.bf16 %v805_v30, %v801_v29 }
  0xea   :  { %3499 = vmatpush1.bf16.msra.mxu0 %v3498_v34  ;;  %v810_v34 = vld [vmem:[#allocation6 + $0x358] sm:$0xff] }
  0xeb   :  { %3627 = vmatpush1.bf16.msra.mxu1 %v3626_v35  ;;  %3501 = vmatprep.subr.bf16.mxu0 %v3500_v39  ;;  %v3520_v35 = vpack.c.bf16 %v812_v33, %v808_v32  ;;  %v3648_v39 = vpack.c.bf16 %v814_v36, %v810_v34 }
  0xec   :  { %3629 = vmatprep.subr.bf16.mxu1 %v3628_v43  ;;  %v3650_v43 = vpack.c.bf16 %v813_v42, %v809_v41  ;;  %v837_v41 = vld [vmem:[#allocation6 + $0x430] sm:$0xff] }
  0xee   :  { %3503 = vmatpush1.bf16.msra.mxu0 %v3502_v44  ;;  %v816_v44 = vld [vmem:[#allocation6 + $0x388] sm:$0xff] }
  0xef   :  { %3631 = vmatpush1.bf16.msra.mxu1 %v3630_v47  ;;  %3505 = vmatprep.subr.bf16.mxu0 %v3504_v51  ;;  %v3524_v47 = vpack.c.bf16 %v820_v45, %v816_v44  ;;  %v3652_v51 = vpack.c.bf16 %v822_v48, %v818_v46  ;;  %v844_v45 = vld [vmem:[#allocation6 + $0x468] sm:$0xff]  ;;  %v842_v46 = vld [vmem:[#allocation6 + $0x458] sm:$0xff] }
  0xf0   :  { %3633 = vmatprep.subr.bf16.mxu1 %v3632_v55  ;;  %v3654_v55 = vpack.c.bf16 %v821_v54, %v817_v53  ;;  %v843_v53 = vld [vmem:[#allocation6 + $0x460] sm:$0xff] }
  0xf2   :  { %3507 = vmatpush1.bf16.msra.mxu0 %v3506_v56  ;;  %v824_v56 = vld [vmem:[#allocation6 + $0x3c8] sm:$0xff] }
  0xf3   :  { %3635 = vmatpush1.bf16.msra.mxu1 %v3634_v59  ;;  %3509 = vmatprep.subr.bf16.mxu0 %v3508_v63  ;;  %v3528_v59 = vpack.c.bf16 %v828_v57, %v824_v56  ;;  %v3656_v63 = vpack.c.bf16 %v830_v60, %v826_v58  ;;  %v845_v56 = vld [vmem:[#allocation6 + $0x470] sm:$0xff]  ;;  %v848_v57 = vld [vmem:[#allocation6 + $0x488] sm:$0xff] }
  0xf4   :  { %3637 = vmatprep.subr.bf16.mxu1 %v3636_v3  ;;  %v3658_v3 = vpack.c.bf16 %v829_v2, %v825_v1  ;;  %v852_v60 = vld [vmem:[#allocation6 + $0x4a8] sm:$0xff]  ;;  %v847_v2 = vld [vmem:[#allocation6 + $0x480] sm:$0xff] }
  0xf6   :  { %3511 = vmatpush1.bf16.msra.mxu0 %v3510_v4  ;;  %v832_v4 = vld [vmem:[#allocation6 + $0x408] sm:$0xff] }
  0xf7   :  { %3639 = vmatpush1.bf16.msra.mxu1 %v3638_v7  ;;  %3513 = vmatprep.subr.bf16.mxu0 %v3512_v11  ;;  %v3532_v7 = vpack.c.bf16 %v836_v5, %v832_v4  ;;  %v4617_v11 = vshrl.u32 %v367_v10, 7  ;;  %v3540_v4 = vpack.c.bf16 %v852_v60, %v848_v57  ;;  %v3668_v5 = vpack.c.bf16 %v854_v62, %v850_v61  ;;  %v858_v10 = vld [vmem:[#allocation6 + $0x4d8] sm:$0xff]  ;;  %v881_v62 = vld [vmem:[#allocation6 + $0x590] sm:$0xff] }
  0xf8   :  { %3641 = vmatprep.subr.bf16.mxu1 %v3640_v15 }
  0xf9   :  { %v4620_v12 = vsub.s32 0, %v4617_v11  ;;  %v4628_v14 = vsub.s32 1, %v4617_v11  ;;  %v4631_v15 = vsub.s32 3, %v4617_v11 }
  0xfa   :  { %3515 = vmatpush1.bf16.msra.mxu0 %v3514_v16 }
  0xfb   :  { %3643 = vmatpush1.bf16.msra.mxu1 %v3642_v19  ;;  %3517 = vmatprep.subr.bf16.mxu0 %v3516_v23  ;;  %v370_v16 = vrot.slane %v4625_v13, %v4620_v12  ;;  %v374_v17 = vrot.slane %v4625_v13, %v4628_v14  ;;  %v382_v18 = vrot.slane %v4625_v13, %v4631_v15 }
  0xfc   :  { %3645 = vmatprep.subr.bf16.mxu1 %v3644_v27 }
  0xfe   :  { %3519 = vmatpush1.bf16.msra.mxu0 %v3518_v28 }
  0xff   :  { %3647 = vmatpush1.bf16.msra.mxu1 %v3646_v31  ;;  %3521 = vmatprep.subr.bf16.mxu0 %v3520_v35 }
 0x100   :  { %3649 = vmatprep.subr.bf16.mxu1 %v3648_v39  ;;  %v835_v39 = vld [vmem:[#allocation6 + $0x420] sm:$0xff] }
 0x101   :  { %v3534_v50 = vpack.c.bf16 %v835_v39, %v831_v38  ;;  %v872_v38 = vld [vmem:[#allocation6 + $0x548] sm:$0xff] }
 0x102   :  { %3523 = vmatpush1.bf16.msra.mxu0 %v3522_v40  ;;  %v833_v40 = vld [vmem:[#allocation6 + $0x410] sm:$0xff]  ;;  %v876_v39 = vld [vmem:[#allocation6 + $0x568] sm:$0xff] }
 0x103   :  { %3651 = vmatpush1.bf16.msra.mxu1 %v3650_v43  ;;  %3525 = vmatprep.subr.bf16.mxu0 %v3524_v47  ;;  %v840_v43 = vld [vmem:[#allocation6 + $0x448] sm:$0xff]  ;;  %v846_v47 = vld [vmem:[#allocation6 + $0x478] sm:$0xff] }
 0x104   :  { %3653 = vmatprep.subr.bf16.mxu1 %v3652_v51  ;;  %v3662_v51 = vpack.c.bf16 %v837_v41, %v833_v40  ;;  %v3536_v58 = vpack.c.bf16 %v844_v45, %v840_v43  ;;  %v874_v40 = vld [vmem:[#allocation6 + $0x558] sm:$0xff]  ;;  %v871_v45 = vld [vmem:[#allocation6 + $0x540] sm:$0xff] }
 0x105   :  { %v878_v41 = vld [vmem:[#allocation6 + $0x578] sm:$0xff] }
 0x106   :  { %3527 = vmatpush1.bf16.msra.mxu0 %v3526_v52  ;;  %v839_v52 = vld [vmem:[#allocation6 + $0x440] sm:$0xff] }
 0x107   :  { %3655 = vmatpush1.bf16.msra.mxu1 %v3654_v55  ;;  %3529 = vmatprep.subr.bf16.mxu0 %v3528_v59  ;;  %v841_v55 = vld [vmem:[#allocation6 + $0x450] sm:$0xff]  ;;  %v3664_v59 = vpack.c.bf16 %v846_v47, %v842_v46  ;;  %v875_v46 = vld [vmem:[#allocation6 + $0x560] sm:$0xff]  ;;  %v3552_v47 = vpack.c.bf16 %v876_v39, %v872_v38 }
 0x108   :  { %3657 = vmatprep.subr.bf16.mxu1 %v3656_v63  ;;  %v3666_v1 = vpack.c.bf16 %v845_v56, %v841_v55  ;;  %v3554_v56 = vpack.c.bf16 %v875_v46, %v871_v45  ;;  %v907_v38 = vld [vmem:[#allocation6 + $0x660] sm:$0xff]  ;;  %v916_v45 = vld [vmem:[#allocation6 + $0x6a8] sm:$0xff]  ;;  %v914_v46 = vld [vmem:[#allocation6 + $0x698] sm:$0xff] }
 0x10a   :  { %3531 = vmatpush1.bf16.msra.mxu0 %v3530_v0  ;;  %v3538_v0 = vpack.c.bf16 %v843_v53, %v839_v52  ;;  %v884_v52 = vld [vmem:[#allocation6 + $0x5a8] sm:$0xff]  ;;  %v882_v53 = vld [vmem:[#allocation6 + $0x598] sm:$0xff] }
 0x10b   :  { %3659 = vmatpush1.bf16.msra.mxu1 %v3658_v3  ;;  %3533 = vmatprep.subr.bf16.mxu0 %v3532_v7  ;;  %v851_v3 = vld [vmem:[#allocation6 + $0x4a0] sm:$0xff]  ;;  %v853_v7 = vld [vmem:[#allocation6 + $0x4b0] sm:$0xff] }
 0x10c   :  { %3661 = vmatprep.subr.bf16.mxu1 %v3660_v9  ;;  %v860_v9 = vld [vmem:[#allocation6 + $0x4e8] sm:$0xff] }
 0x1a0   :  { %v524_v19 = vpop.f32.mrb[0].mxu0 }
 0x1a1   :  { %v4236_v20 = vadd.f32 %v524_v19, %v370_v16  ;;  %v4639_v21 = vpop.f32.mrb[0].mxu1  ;;  %v526_v22 = vpop.f32.mrb[1].mxu0  ;;  %v862_v16 = vld [vmem:[#allocation6 + $0x4f8] sm:$0xff]  ;;  %v855_v19 = vld [vmem:[#allocation6 + $0x4c0] sm:$0xff] }
 0x1a2   :  { %v4237_v23 = vadd.f32 %v526_v22, %v374_v17  ;;  %v668_v24 = vpop.f32.mrb[1].mxu1  ;;  %v3542_v17 = vpack.c.bf16 %v851_v3, %v847_v2  ;;  %v3544_v22 = vpack.c.bf16 %v860_v9, %v856_v8  ;;  %v890_v2 = vld [vmem:[#allocation6 + $0x5d8] sm:$0xff] }
 0x1a3   :  { %v3192_v25 = vmul.f32 -1.702, %v4236_v20  ;;  %v4239_v26 = vadd.f32 %v668_v24, %v382_v18  ;;  %v3670_v18 = vpack.c.bf16 %v853_v7, %v849_v6  ;;  %v857_v24 = vld [vmem:[#allocation6 + $0x4d0] sm:$0xff]  ;;  %v894_v3 = vld [vmem:[#allocation6 + $0x5f8] sm:$0xff]  ;;  %v887_v6 = vld [vmem:[#allocation6 + $0x5c0] sm:$0xff] }
 0x1a4   :  { %v3193_v27 = vmul.f32 -1.702, %v4237_v23  ;;  %v891_v7 = vld [vmem:[#allocation6 + $0x5e0] sm:$0xff]  ;;  %v3688_v9 = vpack.c.bf16 %v894_v3, %v890_v2  ;;  %v921_v2 = vld [vmem:[#allocation6 + $0x6d0] sm:$0xff] }
 0x1a5   :  { %v679_v28 = vmul.f32 1.442695, %v3192_v25  ;;  %v3195_v29 = vmul.f32 -1.702, %v4239_v26  ;;  %v861_v25 = vld [vmem:[#allocation6 + $0x4f0] sm:$0xff] }
 0x1a6   :  { %v681_v30 = vmul.f32 1.442695, %v3193_v27  ;;  %v868_v27 = vld [vmem:[#allocation6 + $0x528] sm:$0xff]  ;;  %v925_v3 = vld [vmem:[#allocation6 + $0x6f0] sm:$0xff] }
 0x1a7   :  { %4283 = vpow2.f32 %v679_v28  ;;  %v685_v31 = vmul.f32 1.442695, %v3195_v29  ;;  %v866_v28 = vld [vmem:[#allocation6 + $0x518] sm:$0xff] }
 0x1a8   :  { %4285 = vpow2.f32 %v681_v30  ;;  %v870_v29 = vld [vmem:[#allocation6 + $0x538] sm:$0xff] }
 0x1a9   :  { %4287 = vpow2.f32 %v685_v31  ;;  %v3674_v31 = vpack.c.bf16 %v861_v25, %v857_v24  ;;  %v895_v24 = vld [vmem:[#allocation6 + $0x600] sm:$0xff] }
 0x1aa   :  { %v899_v25 = vld [vmem:[#allocation6 + $0x620] sm:$0xff] }
 0x1b1   :  { %v4284_v32 = vpop.eup %4283 }
 0x1b2   :  { %v687_v33 = vadd.f32 1.0, %v4284_v32  ;;  %v4286_v34 = vpop.eup %4285  ;;  %v863_v32 = vld [vmem:[#allocation6 + $0x500] sm:$0xff] }
 0x1b3   :  { %v4288_v35 = vpop.eup %4287  ;;  %v688_v36 = vadd.f32 1.0, %v4286_v34 }
 0x1b4   :  { %4289 = vrcp.f32 %v687_v33  ;;  %v690_v37 = vadd.f32 1.0, %v4288_v35  ;;  %v867_v33 = vld [vmem:[#allocation6 + $0x520] sm:$0xff]  ;;  %v3676_v35 = vpack.c.bf16 %v870_v29, %v866_v28  ;;  %v897_v28 = vld [vmem:[#allocation6 + $0x610] sm:$0xff] }
 0x1b5   :  { %4291 = vrcp.f32 %v688_v36  ;;  %v865_v36 = vld [vmem:[#allocation6 + $0x510] sm:$0xff]  ;;  %v3550_v43 = vpack.c.bf16 %v867_v33, %v863_v32  ;;  %v906_v32 = vld [vmem:[#allocation6 + $0x658] sm:$0xff] }
 0x1b6   :  { %4293 = vrcp.f32 %v690_v37  ;;  %v869_v37 = vld [vmem:[#allocation6 + $0x530] sm:$0xff]  ;;  %v910_v33 = vld [vmem:[#allocation6 + $0x678] sm:$0xff] }
 0x1b7   :  { %v901_v29 = vld [vmem:[#allocation6 + $0x630] sm:$0xff] }
 0x1be   :  { %v4290_v42 = vpop.eup %4289 }
 0x1bf   :  { %v4292_v44 = vpop.eup %4291  ;;  %v699_v54 = vmul.f32 %v4290_v42, %v4236_v20  ;;  %v859_v20 = vld [vmem:[#allocation6 + $0x4e0] sm:$0xff]  ;;  %v4642_v42 = vsub.s32 2, %v4617_v11 }
 0x1c0   :  { %v4294_v48 = vpop.eup %4293  ;;  %v700_v49 = vmul.f32 %v4292_v44, %v4237_v23  ;;  %v3672_v23 = vpack.c.bf16 %v862_v16, %v858_v10  ;;  %v3546_v30 = vpack.c.bf16 %v859_v20, %v855_v19  ;;  %v3678_v44 = vpack.c.bf16 %v869_v37, %v865_v36  ;;  %v889_v10 = vld [vmem:[#allocation6 + $0x5d0] sm:$0xff]  ;;  %v898_v19 = vld [vmem:[#allocation6 + $0x618] sm:$0xff]  ;;  %v903_v37 = vld [vmem:[#allocation6 + $0x640] sm:$0xff] }
 0x1c1   :  { %v702_v63 = vmul.f32 %v4294_v48, %v4239_v26  ;;  %v864_v26 = vld [vmem:[#allocation6 + $0x508] sm:$0xff]  ;;  %v3680_v48 = vpack.c.bf16 %v878_v41, %v874_v40  ;;  %v378_v55 = vrot.slane %v4625_v13, %v4642_v42  ;;  %v893_v16 = vld [vmem:[#allocation6 + $0x5f0] sm:$0xff]  ;;  %v902_v20 = vld [vmem:[#allocation6 + $0x638] sm:$0xff]  ;;  %v3694_v36 = vpack.c.bf16 %v901_v29, %v897_v28 }
 0x1c2   :  { %1045 = vmatprep.mubr.f32.mxu0 %v700_v49  ;;  %1187 = vmatprep.mubr.f32.mxu1 %v700_v49  ;;  %v3548_v34 = vpack.c.bf16 %v868_v27, %v864_v26  ;;  %v873_v49 = vld [vmem:[#allocation6 + $0x550] sm:$0xff]  ;;  %v3692_v27 = vpack.c.bf16 %v902_v20, %v898_v19  ;;  %v3696_v40 = vpack.c.bf16 %v910_v33, %v906_v32  ;;  %v935_v29 = vld [vmem:[#allocation6 + $0x740] sm:$0xff] }
 0x1c3   :  { %1046 = vmatmul.mubr.f32.vlgmr.msra.gmra.mrb[2].mxu0 %v699_v54  ;;  %1188 = vmatmul.mubr.f32.vlgmr.msra.gmra.mrb[2].mxu1 %v699_v54  ;;  %v886_v54 = vld [vmem:[#allocation6 + $0x5b8] sm:$0xff]  ;;  %v905_v41 = vld [vmem:[#allocation6 + $0x650] sm:$0xff] }
 0x1c4   :  { %3535 = vmatpush1.bf16.msra.mxu0 %v3534_v50  ;;  %3663 = vmatpush1.bf16.msra.mxu1 %v3662_v51  ;;  %v877_v50 = vld [vmem:[#allocation6 + $0x570] sm:$0xff]  ;;  %v880_v51 = vld [vmem:[#allocation6 + $0x588] sm:$0xff]  ;;  %v3684_v61 = vpack.c.bf16 %v886_v54, %v882_v53 }
 0x1c5   :  { %1116 = vmatprep.mubr.f32.mxu0 %v702_v63  ;;  %1258 = vmatprep.mubr.f32.mxu1 %v702_v63  ;;  %v3682_v57 = vpack.c.bf16 %v877_v50, %v873_v49  ;;  %v3556_v60 = vpack.c.bf16 %v884_v52, %v880_v51  ;;  %v885_v63 = vld [vmem:[#allocation6 + $0x5b0] sm:$0xff]  ;;  %v911_v50 = vld [vmem:[#allocation6 + $0x680] sm:$0xff] }
 0x1c6   :  { %3537 = vmatprep.subr.bf16.mxu0 %v3536_v58  ;;  %3665 = vmatprep.subr.bf16.mxu1 %v3664_v59  ;;  %v879_v58 = vld [vmem:[#allocation6 + $0x580] sm:$0xff]  ;;  %v913_v54 = vld [vmem:[#allocation6 + $0x690] sm:$0xff] }
 0x1c7   :  { %v883_v59 = vld [vmem:[#allocation6 + $0x5a0] sm:$0xff]  ;;  %v929_v20 = vld [vmem:[#allocation6 + $0x710] sm:$0xff] }
 0x1c8   :  { %3539 = vmatpush1.bf16.msra.mxu0 %v3538_v0  ;;  %3667 = vmatpush1.bf16.msra.mxu1 %v3666_v1  ;;  %v888_v0 = vld [vmem:[#allocation6 + $0x5c8] sm:$0xff]  ;;  %v3558_v13 = vpack.c.bf16 %v883_v59, %v879_v58  ;;  %v915_v51 = vld [vmem:[#allocation6 + $0x6a0] sm:$0xff]  ;;  %v922_v58 = vld [vmem:[#allocation6 + $0x6d8] sm:$0xff] }
 0x1c9   :  { %3541 = vmatprep.subr.bf16.mxu0 %v3540_v4  ;;  %3669 = vmatprep.subr.bf16.mxu1 %v3668_v5  ;;  %v892_v1 = vld [vmem:[#allocation6 + $0x5e8] sm:$0xff]  ;;  %v4647_v4 = vadd.f32 %v4639_v21, %v378_v55  ;;  %v3686_v5 = vpack.c.bf16 %v885_v63, %v881_v62  ;;  %v3562_v21 = vpack.c.bf16 %v891_v7, %v887_v6  ;;  %v917_v55 = vld [vmem:[#allocation6 + $0x6b0] sm:$0xff]  ;;  %v926_v59 = vld [vmem:[#allocation6 + $0x6f8] sm:$0xff] }
 0x1ca   :  { %v3560_v8 = vpack.c.bf16 %v892_v1, %v888_v0  ;;  %v919_v62 = vld [vmem:[#allocation6 + $0x6c0] sm:$0xff]  ;;  %v3704_v1 = vpack.c.bf16 %v926_v59, %v922_v58  ;;  %v930_v6 = vld [vmem:[#allocation6 + $0x718] sm:$0xff]  ;;  %v937_v33 = vld [vmem:[#allocation6 + $0x750] sm:$0xff] }
 0x1cb   :  { %v923_v63 = vld [vmem:[#allocation6 + $0x6e0] sm:$0xff]  ;;  %v934_v7 = vld [vmem:[#allocation6 + $0x738] sm:$0xff] }
 0x1cc   :  { %3543 = vmatpush1.bf16.msra.mxu0 %v3542_v17  ;;  %3671 = vmatpush1.bf16.msra.mxu1 %v3670_v18  ;;  %v896_v17 = vld [vmem:[#allocation6 + $0x608] sm:$0xff]  ;;  %v3708_v19 = vpack.c.bf16 %v934_v7, %v930_v6  ;;  %v955_v58 = vld [vmem:[#allocation6 + $0x7e0] sm:$0xff] }
 0x1cd   :  { %3545 = vmatprep.subr.bf16.mxu0 %v3544_v22  ;;  %3673 = vmatprep.subr.bf16.mxu1 %v3672_v23  ;;  %v900_v18 = vld [vmem:[#allocation6 + $0x628] sm:$0xff]  ;;  %v3194_v22 = vmul.f32 -1.702, %v4647_v4  ;;  %v3690_v23 = vpack.c.bf16 %v893_v16, %v889_v10  ;;  %v927_v10 = vld [vmem:[#allocation6 + $0x700] sm:$0xff] }
 0x1ce   :  { %v3564_v26 = vpack.c.bf16 %v900_v18, %v896_v17  ;;  %v931_v16 = vld [vmem:[#allocation6 + $0x720] sm:$0xff] }
 0x1cf   :  { %v1265_v7 = vld [vmem:[#allocation8] sm:$0xff] }
 0x1d0   :  { %3547 = vmatpush1.bf16.msra.mxu0 %v3546_v30  ;;  %3675 = vmatpush1.bf16.msra.mxu1 %v3674_v31  ;;  %v904_v30 = vld [vmem:[#allocation6 + $0x648] sm:$0xff] }
 0x1d1   :  { %3549 = vmatprep.subr.bf16.mxu0 %v3548_v34  ;;  %3677 = vmatprep.subr.bf16.mxu1 %v3676_v35  ;;  %v908_v31 = vld [vmem:[#allocation6 + $0x668] sm:$0xff]  ;;  %v683_v34 = vmul.f32 1.442695, %v3194_v22  ;;  %v3566_v35 = vpack.c.bf16 %v899_v25, %v895_v24  ;;  %v933_v22 = vld [vmem:[#allocation6 + $0x730] sm:$0xff]  ;;  %v938_v24 = vld [vmem:[#allocation6 + $0x758] sm:$0xff] }
 0x1d2   :  { %v3568_v39 = vpack.c.bf16 %v908_v31, %v904_v30  ;;  %v942_v25 = vld [vmem:[#allocation6 + $0x778] sm:$0xff]  ;;  %v3710_v28 = vpack.c.bf16 %v933_v22, %v929_v20  ;;  %v939_v30 = vld [vmem:[#allocation6 + $0x760] sm:$0xff] }
 0x1d3   :  { %4295 = vpow2.f32 %v683_v34  ;;  %v3712_v32 = vpack.c.bf16 %v942_v25, %v938_v24  ;;  %v941_v34 = vld [vmem:[#allocation6 + $0x770] sm:$0xff]  ;;  %v1276_v20 = vld [vmem:[#allocation8 + $0x58] sm:$0xff]  ;;  %v1273_v25 = vld [vmem:[#allocation8 + $0x40] sm:$0xff] }
 0x1d4   :  { %3551 = vmatpush1.bf16.msra.mxu0 %v3550_v43  ;;  %3679 = vmatpush1.bf16.msra.mxu1 %v3678_v44  ;;  %v909_v43 = vld [vmem:[#allocation6 + $0x670] sm:$0xff]  ;;  %v912_v44 = vld [vmem:[#allocation6 + $0x688] sm:$0xff]  ;;  %v1280_v22 = vld [vmem:[#allocation8 + $0x78] sm:$0xff] }
 0x1d5   :  { %3553 = vmatprep.subr.bf16.mxu0 %v3552_v47  ;;  %3681 = vmatprep.subr.bf16.mxu1 %v3680_v48  ;;  %v918_v47 = vld [vmem:[#allocation6 + $0x6b8] sm:$0xff]  ;;  %v3570_v48 = vpack.c.bf16 %v907_v38, %v903_v37  ;;  %v3698_v49 = vpack.c.bf16 %v909_v43, %v905_v41  ;;  %v3572_v52 = vpack.c.bf16 %v916_v45, %v912_v44  ;;  %v943_v44 = vld [vmem:[#allocation6 + $0x780] sm:$0xff] }
 0x1d6   :  { %v3700_v53 = vpack.c.bf16 %v918_v47, %v914_v46  ;;  %v946_v37 = vld [vmem:[#allocation6 + $0x798] sm:$0xff]  ;;  %v3586_v41 = vpack.c.bf16 %v939_v30, %v935_v29  ;;  %v3714_v43 = vpack.c.bf16 %v941_v34, %v937_v33  ;;  %v947_v45 = vld [vmem:[#allocation6 + $0x7a0] sm:$0xff]  ;;  %v3856_v29 = vpack.c.bf16 %v1280_v22, %v1276_v20  ;;  %v1275_v30 = vld [vmem:[#allocation8 + $0x50] sm:$0xff] }
 0x1d7   :  { %v950_v38 = vld [vmem:[#allocation6 + $0x7b8] sm:$0xff]  ;;  %v1286_v33 = vld [vmem:[#allocation8 + $0xa8] sm:$0xff]  ;;  %v1307_v22 = vld [vmem:[#allocation8 + $0x150] sm:$0xff] }
 0x1d8   :  { %3555 = vmatpush1.bf16.msra.mxu0 %v3554_v56  ;;  %3683 = vmatpush1.bf16.msra.mxu1 %v3682_v57  ;;  %v920_v56 = vld [vmem:[#allocation6 + $0x6c8] sm:$0xff]  ;;  %v3716_v47 = vpack.c.bf16 %v950_v38, %v946_v37  ;;  %v1284_v34 = vld [vmem:[#allocation8 + $0x98] sm:$0xff]  ;;  %v1281_v38 = vld [vmem:[#allocation8 + $0x80] sm:$0xff] }
 0x1d9   :  { %3557 = vmatprep.subr.bf16.mxu0 %v3556_v60  ;;  %3685 = vmatprep.subr.bf16.mxu1 %v3684_v61  ;;  %v924_v57 = vld [vmem:[#allocation6 + $0x6e8] sm:$0xff]  ;;  %v3574_v60 = vpack.c.bf16 %v915_v51, %v911_v50  ;;  %v3702_v61 = vpack.c.bf16 %v917_v55, %v913_v54  ;;  %v3590_v55 = vpack.c.bf16 %v947_v45, %v943_v44  ;;  %v1287_v44 = vld [vmem:[#allocation8 + $0xb0] sm:$0xff] }
 0x1da   :  { %v3576_v0 = vpack.c.bf16 %v924_v57, %v920_v56  ;;  %v952_v50 = vld [vmem:[#allocation6 + $0x7c8] sm:$0xff]  ;;  %v951_v57 = vld [vmem:[#allocation6 + $0x7c0] sm:$0xff] }
 0x1db   :  { %v956_v51 = vld [vmem:[#allocation6 + $0x7e8] sm:$0xff] }
 0x1dc   :  { %3559 = vmatpush1.bf16.msra.mxu0 %v3558_v13  ;;  %3687 = vmatpush1.bf16.msra.mxu1 %v3686_v5  ;;  %v928_v13 = vld [vmem:[#allocation6 + $0x708] sm:$0xff]  ;;  %v3592_v59 = vpack.c.bf16 %v956_v51, %v952_v50  ;;  %v1289_v51 = vld [vmem:[#allocation8 + $0xc0] sm:$0xff] }
 0x1dd   :  { %3561 = vmatprep.subr.bf16.mxu0 %v3560_v8  ;;  %3689 = vmatprep.subr.bf16.mxu1 %v3688_v9  ;;  %v932_v5 = vld [vmem:[#allocation6 + $0x728] sm:$0xff]  ;;  %v3578_v8 = vpack.c.bf16 %v923_v63, %v919_v62  ;;  %v3706_v9 = vpack.c.bf16 %v925_v3, %v921_v2  ;;  %v4296_v17 = vpop.eup %4295  ;;  %v957_v62 = vld [vmem:[#allocation6 + $0x7f0] sm:$0xff]  ;;  %v1272_v2 = vld [vmem:[#allocation8 + $0x38] sm:$0xff] }
 0x1de   :  { %v3580_v18 = vpack.c.bf16 %v932_v5, %v928_v13  ;;  %v1266_v63 = vld [vmem:[#allocation8 + $0x8] sm:$0xff]  ;;  %v4656_v13 = vld [vmem:[%s4794_s1] sm:$0xff]  ;;  %v3594_v5 = vpack.c.bf16 %v955_v58, %v951_v57 }
 0x1df   :  { %v1290_v45 = vld [vmem:[#allocation8 + $0xc8] sm:$0xff] }
 0x1e0   :  { %3563 = vmatpush1.bf16.msra.mxu0 %v3562_v21  ;;  %3691 = vmatpush1.bf16.msra.mxu1 %v3690_v23  ;;  %v936_v21 = vld [vmem:[#allocation6 + $0x748] sm:$0xff] }
 0x1e1   :  { %3565 = vmatprep.subr.bf16.mxu0 %v3564_v26  ;;  %3693 = vmatprep.subr.bf16.mxu1 %v3692_v27  ;;  %v940_v23 = vld [vmem:[#allocation6 + $0x768] sm:$0xff]  ;;  %v689_v26 = vadd.f32 1.0, %v4296_v17  ;;  %v3582_v27 = vpack.c.bf16 %v931_v16, %v927_v10  ;;  %v1267_v16 = vld [vmem:[#allocation8 + $0x10] sm:$0xff] }
 0x1e2   :  { %v3584_v31 = vpack.c.bf16 %v940_v23, %v936_v21  ;;  %v1271_v17 = vld [vmem:[#allocation8 + $0x30] sm:$0xff]  ;;  %v1298_v57 = vld [vmem:[#allocation8 + $0x108] sm:$0xff] }
 0x1e3   :  { %4297 = vrcp.f32 %v689_v26  ;;  %v3854_v24 = vpack.c.bf16 %v1271_v17, %v1267_v16  ;;  %v1277_v26 = vld [vmem:[#allocation8 + $0x60] sm:$0xff]  ;;  %v1302_v58 = vld [vmem:[#allocation8 + $0x128] sm:$0xff] }
 0x1e4   :  { %3567 = vmatpush1.bf16.msra.mxu0 %v3566_v35  ;;  %3695 = vmatpush1.bf16.msra.mxu1 %v3694_v36  ;;  %v944_v35 = vld [vmem:[#allocation6 + $0x788] sm:$0xff]  ;;  %v3730_v37 = vpack.c.bf16 %v1277_v26, %v1273_v25  ;;  %v1316_v26 = vld [vmem:[#allocation8 + $0x198] sm:$0xff] }
 0x1e5   :  { %3569 = vmatprep.subr.bf16.mxu0 %v3568_v39  ;;  %3697 = vmatprep.subr.bf16.mxu1 %v3696_v40  ;;  %v948_v36 = vld [vmem:[#allocation6 + $0x7a8] sm:$0xff]  ;;  %v4447_v39 = vmov 1983009808  }
 0x1e6   :  { %v1546_v40 = vunpack.c.l.s4 %v4447_v39  ;;  %v3588_v46 = vpack.c.bf16 %v948_v36, %v944_v35  ;;  %v1288_v35 = vld [vmem:[#allocation8 + $0xb8] sm:$0xff]  ;;  %v1285_v39 = vld [vmem:[#allocation8 + $0xa0] sm:$0xff]  ;;  %v1318_v25 = vld [vmem:[#allocation8 + $0x1a8] sm:$0xff] }
 0x1e8   :  { %3571 = vmatpush1.bf16.msra.mxu0 %v3570_v48  ;;  %3699 = vmatpush1.bf16.msra.mxu1 %v3698_v49  ;;  %v945_v48 = vld [vmem:[#allocation6 + $0x790] sm:$0xff]  ;;  %v1547_v54 = vunpack.c.0.s8 %v1546_v40 }
 0x1e9   :  { %3573 = vmatprep.subr.bf16.mxu0 %v3572_v52  ;;  %3701 = vmatprep.subr.bf16.mxu1 %v3700_v53  ;;  %v949_v49 = vld [vmem:[#allocation6 + $0x7b0] sm:$0xff]  ;;  %v954_v52 = vld [vmem:[#allocation6 + $0x7d8] sm:$0xff] }
 0x1ea   :  { %v958_v53 = vld [vmem:[#allocation6 + $0x7f8] sm:$0xff]  ;;  %v3718_v56 = vpack.c.bf16 %v949_v49, %v945_v48  ;;  %v4651_v3 = vsub.s32 %v1547_v54, %v4617_v11  ;;  %v3734_v49 = vpack.c.bf16 %v1285_v39, %v1281_v38 }
 0x1eb   :  { %v1296_v48 = vld [vmem:[#allocation8 + $0xf8] sm:$0xff] }
 0x1ec   :  { %3575 = vmatpush1.bf16.msra.mxu0 %v3574_v60  ;;  %3703 = vmatpush1.bf16.msra.mxu1 %v3702_v61  ;;  %v3720_v60 = vpack.c.bf16 %v958_v53, %v954_v52  ;;  %v953_v61 = vld [vmem:[#allocation6 + $0x7d0] sm:$0xff]  ;;  %v4660_v21 = vrot.slane %v4656_v13, %v4651_v3  ;;  %v1293_v52 = vld [vmem:[#allocation8 + $0xe0] sm:$0xff]  ;;  %v1324_v38 = vld [vmem:[#allocation8 + $0x1d8] sm:$0xff] }
 0x1ed   :  { %3577 = vmatprep.subr.bf16.mxu0 %v3576_v0  ;;  %3705 = vmatprep.subr.bf16.mxu1 %v3704_v1  ;;  %v1270_v0 = vld [vmem:[#allocation8 + $0x28] sm:$0xff]  ;;  %v1268_v1 = vld [vmem:[#allocation8 + $0x18] sm:$0xff]  ;;  %v3722_v6 = vpack.c.bf16 %v957_v62, %v953_v61  ;;  %v4298_v11 = vpop.eup %4297  ;;  %v3738_v61 = vpack.c.bf16 %v1293_v52, %v1289_v51 }
 0x1ee   :  { %v3852_v10 = vpack.c.bf16 %v1272_v2, %v1268_v1  ;;  %v4665_v36 = vcombine.high %v4660_v21, %v4660_v21  ;;  %v3740_v1 = vpack.c.bf16 %v1302_v58, %v1298_v57  ;;  %v1328_v39 = vld [vmem:[#allocation8 + $0x1f8] sm:$0xff] }
 0x1ef   :  { %v1332_v51 = vld [vmem:[#allocation8 + $0x218] sm:$0xff] }
 0x1f0   :  { %3579 = vmatpush1.bf16.msra.mxu0 %v3578_v8  ;;  %3707 = vmatpush1.bf16.msra.mxu1 %v3706_v9  ;;  %v1269_v8 = vld [vmem:[#allocation8 + $0x20] sm:$0xff]  ;;  %v3724_v9 = vpack.c.bf16 %v1270_v0, %v1266_v63  ;;  %v1336_v52 = vld [vmem:[#allocation8 + $0x238] sm:$0xff] }
 0x1f1   :  { %3581 = vmatprep.subr.bf16.mxu0 %v3580_v18  ;;  %3709 = vmatprep.subr.bf16.mxu1 %v3708_v19  ;;  %v1274_v18 = vld [vmem:[#allocation8 + $0x48] sm:$0xff]  ;;  %v3726_v23 = vpack.c.bf16 %v1269_v8, %v1265_v7  ;;  %v1297_v63 = vld [vmem:[#allocation8 + $0x100] sm:$0xff]  ;;  %v3884_v58 = vpack.c.bf16 %v1336_v52, %v1332_v51  ;;  %v1363_v51 = vld [vmem:[#allocation8 + $0x310] sm:$0xff] }
 0x1f2   :  { %v1278_v19 = vld [vmem:[#allocation8 + $0x68] sm:$0xff]  ;;  %v1301_v0 = vld [vmem:[#allocation8 + $0x120] sm:$0xff]  ;;  %v1367_v52 = vld [vmem:[#allocation8 + $0x330] sm:$0xff] }
 0x1f3   :  { %v1306_v7 = vld [vmem:[#allocation8 + $0x148] sm:$0xff]  ;;  %v3742_v16 = vpack.c.bf16 %v1301_v0, %v1297_v63  ;;  %v1340_v63 = vld [vmem:[#allocation8 + $0x258] sm:$0xff] }
 0x1f4   :  { %3583 = vmatpush1.bf16.msra.mxu0 %v3582_v27  ;;  %3711 = vmatpush1.bf16.msra.mxu1 %v3710_v28  ;;  %v701_v27 = vmul.f32 %v4298_v11, %v4647_v4  ;;  %v3728_v28 = vpack.c.bf16 %v1278_v19, %v1274_v18  ;;  %v1310_v8 = vld [vmem:[#allocation8 + $0x168] sm:$0xff]  ;;  %v1305_v18 = vld [vmem:[#allocation8 + $0x140] sm:$0xff]  ;;  %v1344_v0 = vld [vmem:[#allocation8 + $0x278] sm:$0xff] }
 0x1f5   :  { %3585 = vmatprep.subr.bf16.mxu0 %v3584_v31  ;;  %3713 = vmatprep.subr.bf16.mxu1 %v3712_v32  ;;  %v1279_v31 = vld [vmem:[#allocation8 + $0x70] sm:$0xff]  ;;  %v1282_v32 = vld [vmem:[#allocation8 + $0x88] sm:$0xff]  ;;  %v1309_v11 = vld [vmem:[#allocation8 + $0x160] sm:$0xff]  ;;  %v3744_v19 = vpack.c.bf16 %v1310_v8, %v1306_v7  ;;  %v3888_v8 = vpack.c.bf16 %v1344_v0, %v1340_v63 }
 0x1f6   :  { %v3858_v4 = vpack.c.bf16 %v1279_v31, %v1275_v30  ;;  %v3732_v40 = vpack.c.bf16 %v1286_v33, %v1282_v32  ;;  %v1313_v30 = vld [vmem:[#allocation8 + $0x180] sm:$0xff]  ;;  %v1371_v63 = vld [vmem:[#allocation8 + $0x350] sm:$0xff] }
 0x1f7   :  { %v1317_v31 = vld [vmem:[#allocation8 + $0x1a0] sm:$0xff]  ;;  %v1375_v0 = vld [vmem:[#allocation8 + $0x370] sm:$0xff] }
 0x1f8   :  { %3587 = vmatpush1.bf16.msra.mxu0 %v3586_v41  ;;  %3715 = vmatpush1.bf16.msra.mxu1 %v3714_v43  ;;  %v3860_v41 = vpack.c.bf16 %v1288_v35, %v1284_v34  ;;  %v1283_v43 = vld [vmem:[#allocation8 + $0x90] sm:$0xff] }
 0x1f9   :  { %3589 = vmatprep.subr.bf16.mxu0 %v3588_v46  ;;  %3717 = vmatprep.subr.bf16.mxu1 %v3716_v47  ;;  %v1294_v46 = vld [vmem:[#allocation8 + $0xe8] sm:$0xff]  ;;  %v1292_v47 = vld [vmem:[#allocation8 + $0xd8] sm:$0xff]  ;;  %v3862_v50 = vpack.c.bf16 %v1287_v44, %v1283_v43  ;;  %v1315_v34 = vld [vmem:[#allocation8 + $0x190] sm:$0xff] }
 0x1fa   :  { %v3736_v53 = vpack.c.bf16 %v1294_v46, %v1290_v45  ;;  %v3864_v54 = vpack.c.bf16 %v1296_v48, %v1292_v47  ;;  %v1319_v35 = vld [vmem:[#allocation8 + $0x1b0] sm:$0xff]  ;;  %v1321_v43 = vld [vmem:[#allocation8 + $0x1c0] sm:$0xff]  ;;  %v3880_v46 = vpack.c.bf16 %v1328_v39, %v1324_v38 }
 0x1fb   :  { %v1325_v44 = vld [vmem:[#allocation8 + $0x1e0] sm:$0xff]  ;;  %v1323_v47 = vld [vmem:[#allocation8 + $0x1d0] sm:$0xff] }
 0x1fc   :  { %3591 = vmatpush1.bf16.msra.mxu0 %v3590_v55  ;;  %3719 = vmatpush1.bf16.msra.mxu1 %v3718_v56  ;;  %v1291_v55 = vld [vmem:[#allocation8 + $0xd0] sm:$0xff] }
 0x1fd   :  { %3593 = vmatprep.subr.bf16.mxu0 %v3592_v59  ;;  %3721 = vmatprep.subr.bf16.mxu1 %v3720_v60  ;;  %v1295_v56 = vld [vmem:[#allocation8 + $0xf0] sm:$0xff]  ;;  %v1300_v59 = vld [vmem:[#allocation8 + $0x118] sm:$0xff] }
 0x1fe   :  { %v1304_v60 = vld [vmem:[#allocation8 + $0x138] sm:$0xff]  ;;  %v3866_v62 = vpack.c.bf16 %v1295_v56, %v1291_v55  ;;  %v1327_v48 = vld [vmem:[#allocation8 + $0x1f0] sm:$0xff]  ;;  %v1329_v55 = vld [vmem:[#allocation8 + $0x200] sm:$0xff] }
 0x1ff   :  { %v3868_v2 = vpack.c.bf16 %v1304_v60, %v1300_v59  ;;  %v1333_v56 = vld [vmem:[#allocation8 + $0x220] sm:$0xff]  ;;  %v1331_v59 = vld [vmem:[#allocation8 + $0x210] sm:$0xff] }
 0x200   :  { %3595 = vmatpush1.bf16.msra.mxu0 %v3594_v5  ;;  %3723 = vmatpush1.bf16.msra.mxu1 %v3722_v6  ;;  %v1299_v5 = vld [vmem:[#allocation8 + $0x110] sm:$0xff] }
 0x201   :  { %3725 = vmatprep.subr.bf16.mxu0 %v3724_v9  ;;  %3853 = vmatprep.subr.bf16.mxu1 %v3852_v10  ;;  %v1303_v6 = vld [vmem:[#allocation8 + $0x130] sm:$0xff]  ;;  %v1308_v9 = vld [vmem:[#allocation8 + $0x158] sm:$0xff] }
 0x202   :  { %v1312_v10 = vld [vmem:[#allocation8 + $0x178] sm:$0xff]  ;;  %v3870_v17 = vpack.c.bf16 %v1303_v6, %v1299_v5  ;;  %v1335_v60 = vld [vmem:[#allocation8 + $0x230] sm:$0xff]  ;;  %v1337_v5 = vld [vmem:[#allocation8 + $0x240] sm:$0xff] }
 0x203   :  { %1117 = vmatmul.mubr.f32.vlgmr.msra.gmra.mrb[2].mxu0 %v701_v27  ;;  %1259 = vmatmul.mubr.f32.vlgmr.msra.gmra.mrb[2].mxu1 %v701_v27  ;;  %v3872_v20 = vpack.c.bf16 %v1312_v10, %v1308_v9  ;;  %v1320_v27 = vld [vmem:[#allocation8 + $0x1b8] sm:$0xff]  ;;  %v1341_v6 = vld [vmem:[#allocation8 + $0x260] sm:$0xff]  ;;  %v1339_v9 = vld [vmem:[#allocation8 + $0x250] sm:$0xff] }
 0x204   :  { %3727 = vmatpush1.bf16.msra.mxu0 %v3726_v23  ;;  %3855 = vmatpush1.bf16.msra.mxu1 %v3854_v24  ;;  %v1311_v23 = vld [vmem:[#allocation8 + $0x170] sm:$0xff]  ;;  %v1314_v24 = vld [vmem:[#allocation8 + $0x188] sm:$0xff]  ;;  %v3876_v33 = vpack.c.bf16 %v1320_v27, %v1316_v26 }
 0x205   :  { %3729 = vmatprep.subr.bf16.mxu0 %v3728_v28  ;;  %3857 = vmatprep.subr.bf16.mxu1 %v3856_v29  ;;  %v3746_v28 = vpack.c.bf16 %v1309_v11, %v1305_v18  ;;  %v3874_v29 = vpack.c.bf16 %v1311_v23, %v1307_v22  ;;  %v3748_v32 = vpack.c.bf16 %v1318_v25, %v1314_v24  ;;  %v1343_v10 = vld [vmem:[#allocation8 + $0x270] sm:$0xff]  ;;  %v1348_v18 = vld [vmem:[#allocation8 + $0x298] sm:$0xff]  ;;  %v1345_v22 = vld [vmem:[#allocation8 + $0x280] sm:$0xff] }
 0x206   :  { %1629 = vmatprep.mubr.f32.mxu0 %v4665_v36  ;;  %1771 = vmatprep.mubr.f32.mxu1 %v4665_v36  ;;  %v1352_v11 = vld [vmem:[#allocation8 + $0x2b8] sm:$0xff]  ;;  %v1349_v23 = vld [vmem:[#allocation8 + $0x2a0] sm:$0xff]  ;;  %v1347_v26 = vld [vmem:[#allocation8 + $0x290] sm:$0xff] }
 0x207   :  { %v3892_v25 = vpack.c.bf16 %v1352_v11, %v1348_v18  ;;  %v1351_v27 = vld [vmem:[#allocation8 + $0x2b0] sm:$0xff] }
 0x208   :  { %3731 = vmatpush1.bf16.msra.mxu0 %v3730_v37  ;;  %3859 = vmatpush1.bf16.msra.mxu1 %v3858_v4  ;;  %v1322_v37 = vld [vmem:[#allocation8 + $0x1c8] sm:$0xff]  ;;  %v1355_v38 = vld [vmem:[#allocation8 + $0x2d0] sm:$0xff] }
 0x209   :  { %3733 = vmatprep.subr.bf16.mxu0 %v3732_v40  ;;  %3861 = vmatprep.subr.bf16.mxu1 %v3860_v41  ;;  %v1326_v4 = vld [vmem:[#allocation8 + $0x1e8] sm:$0xff]  ;;  %v3750_v40 = vpack.c.bf16 %v1317_v31, %v1313_v30  ;;  %v3878_v41 = vpack.c.bf16 %v1319_v35, %v1315_v34  ;;  %v1356_v30 = vld [vmem:[#allocation8 + $0x2d8] sm:$0xff]  ;;  %v1353_v34 = vld [vmem:[#allocation8 + $0x2c0] sm:$0xff] }
 0x20a   :  { %v3752_v45 = vpack.c.bf16 %v1326_v4, %v1322_v37  ;;  %v1360_v31 = vld [vmem:[#allocation8 + $0x2f8] sm:$0xff]  ;;  %v1357_v35 = vld [vmem:[#allocation8 + $0x2e0] sm:$0xff]  ;;  %v1359_v39 = vld [vmem:[#allocation8 + $0x2f0] sm:$0xff] }
 0x20b   :  { %v3896_v4 = vpack.c.bf16 %v1360_v31, %v1356_v30  ;;  %v1379_v18 = vld [vmem:[#allocation8 + $0x390] sm:$0xff] }
 0x20c   :  { %3735 = vmatpush1.bf16.msra.mxu0 %v3734_v49  ;;  %3863 = vmatpush1.bf16.msra.mxu1 %v3862_v50  ;;  %v1330_v49 = vld [vmem:[#allocation8 + $0x208] sm:$0xff]  ;;  %v1383_v11 = vld [vmem:[#allocation8 + $0x3b0] sm:$0xff] }
 0x20d   :  { %3737 = vmatprep.subr.bf16.mxu0 %v3736_v53  ;;  %3865 = vmatprep.subr.bf16.mxu1 %v3864_v54  ;;  %v1334_v50 = vld [vmem:[#allocation8 + $0x228] sm:$0xff]  ;;  %v3754_v53 = vpack.c.bf16 %v1325_v44, %v1321_v43  ;;  %v3882_v54 = vpack.c.bf16 %v1327_v48, %v1323_v47  ;;  %v1364_v43 = vld [vmem:[#allocation8 + $0x318] sm:$0xff]  ;;  %v1361_v47 = vld [vmem:[#allocation8 + $0x300] sm:$0xff] }
 0x20e   :  { %v3756_v57 = vpack.c.bf16 %v1334_v50, %v1330_v49  ;;  %v1368_v44 = vld [vmem:[#allocation8 + $0x338] sm:$0xff]  ;;  %v1365_v48 = vld [vmem:[#allocation8 + $0x320] sm:$0xff]  ;;  %v1387_v30 = vld [vmem:[#allocation8 + $0x3d0] sm:$0xff] }
 0x20f   :  { %v3900_v50 = vpack.c.bf16 %v1368_v44, %v1364_v43  ;;  %v1391_v31 = vld [vmem:[#allocation8 + $0x3f0] sm:$0xff] }
 0x210   :  { %3739 = vmatpush1.bf16.msra.mxu0 %v3738_v61  ;;  %3867 = vmatpush1.bf16.msra.mxu1 %v3866_v62  ;;  %v1338_v61 = vld [vmem:[#allocation8 + $0x248] sm:$0xff]  ;;  %v1395_v44 = vld [vmem:[#allocation8 + $0x410] sm:$0xff] }
 0x211   :  { %3741 = vmatprep.subr.bf16.mxu0 %v3740_v1  ;;  %3869 = vmatprep.subr.bf16.mxu1 %v3868_v2  ;;  %v1342_v62 = vld [vmem:[#allocation8 + $0x268] sm:$0xff]  ;;  %v3758_v1 = vpack.c.bf16 %v1333_v56, %v1329_v55  ;;  %v3886_v2 = vpack.c.bf16 %v1335_v60, %v1331_v59  ;;  %v1372_v55 = vld [vmem:[#allocation8 + $0x358] sm:$0xff]  ;;  %v1369_v59 = vld [vmem:[#allocation8 + $0x340] sm:$0xff] }
 0x212   :  { %v3760_v7 = vpack.c.bf16 %v1342_v62, %v1338_v61  ;;  %v1376_v56 = vld [vmem:[#allocation8 + $0x378] sm:$0xff]  ;;  %v1373_v60 = vld [vmem:[#allocation8 + $0x360] sm:$0xff] }
 0x213   :  { %v3904_v62 = vpack.c.bf16 %v1376_v56, %v1372_v55  ;;  %v1403_v56 = vld [vmem:[#allocation8 + $0x450] sm:$0xff] }
 0x214   :  { %3743 = vmatpush1.bf16.msra.mxu0 %v3742_v16  ;;  %3871 = vmatpush1.bf16.msra.mxu1 %v3870_v17  ;;  %v1346_v16 = vld [vmem:[#allocation8 + $0x288] sm:$0xff] }
 0x215   :  { %3745 = vmatprep.subr.bf16.mxu0 %v3744_v19  ;;  %3873 = vmatprep.subr.bf16.mxu1 %v3872_v20  ;;  %v1350_v17 = vld [vmem:[#allocation8 + $0x2a8] sm:$0xff]  ;;  %v3762_v19 = vpack.c.bf16 %v1341_v6, %v1337_v5  ;;  %v3890_v20 = vpack.c.bf16 %v1343_v10, %v1339_v9  ;;  %v1380_v5 = vld [vmem:[#allocation8 + $0x398] sm:$0xff]  ;;  %v1377_v9 = vld [vmem:[#allocation8 + $0x380] sm:$0xff] }
 0x216   :  { %v3764_v24 = vpack.c.bf16 %v1350_v17, %v1346_v16  ;;  %v1384_v6 = vld [vmem:[#allocation8 + $0x3b8] sm:$0xff]  ;;  %v1381_v10 = vld [vmem:[#allocation8 + $0x3a0] sm:$0xff] }
 0x217   :  { %v3908_v17 = vpack.c.bf16 %v1384_v6, %v1380_v5 }
 0x218   :  { %3747 = vmatpush1.bf16.msra.mxu0 %v3746_v28  ;;  %3875 = vmatpush1.bf16.msra.mxu1 %v3874_v29  ;;  %v1354_v28 = vld [vmem:[#allocation8 + $0x2c8] sm:$0xff] }
 0x219   :  { %3749 = vmatprep.subr.bf16.mxu0 %v3748_v32  ;;  %3877 = vmatprep.subr.bf16.mxu1 %v3876_v33  ;;  %v1358_v29 = vld [vmem:[#allocation8 + $0x2e8] sm:$0xff]  ;;  %v3766_v32 = vpack.c.bf16 %v1349_v23, %v1345_v22  ;;  %v3894_v33 = vpack.c.bf16 %v1351_v27, %v1347_v26  ;;  %v1388_v22 = vld [vmem:[#allocation8 + $0x3d8] sm:$0xff]  ;;  %v1385_v26 = vld [vmem:[#allocation8 + $0x3c0] sm:$0xff] }
 0x21a   :  { %v3768_v37 = vpack.c.bf16 %v1358_v29, %v1354_v28  ;;  %v1392_v23 = vld [vmem:[#allocation8 + $0x3f8] sm:$0xff]  ;;  %v1389_v27 = vld [vmem:[#allocation8 + $0x3e0] sm:$0xff] }
 0x21b   :  { %v3912_v29 = vpack.c.bf16 %v1392_v23, %v1388_v22 }
 0x21c   :  { %3751 = vmatpush1.bf16.msra.mxu0 %v3750_v40  ;;  %3879 = vmatpush1.bf16.msra.mxu1 %v3878_v41  ;;  %v1362_v40 = vld [vmem:[#allocation8 + $0x308] sm:$0xff] }
 0x21d   :  { %3753 = vmatprep.subr.bf16.mxu0 %v3752_v45  ;;  %3881 = vmatprep.subr.bf16.mxu1 %v3880_v46  ;;  %v1366_v41 = vld [vmem:[#allocation8 + $0x328] sm:$0xff]  ;;  %v3770_v45 = vpack.c.bf16 %v1357_v35, %v1353_v34  ;;  %v3898_v46 = vpack.c.bf16 %v1359_v39, %v1355_v38  ;;  %v1396_v34 = vld [vmem:[#allocation8 + $0x418] sm:$0xff]  ;;  %v3914_v38 = vpack.c.bf16 %v1391_v31, %v1387_v30  ;;  %v1393_v39 = vld [vmem:[#allocation8 + $0x400] sm:$0xff] }
 0x21e   :  { %v3772_v49 = vpack.c.bf16 %v1366_v41, %v1362_v40  ;;  %v1400_v35 = vld [vmem:[#allocation8 + $0x438] sm:$0xff]  ;;  %v1397_v40 = vld [vmem:[#allocation8 + $0x420] sm:$0xff] }
 0x21f   :  { %v3916_v43 = vpack.c.bf16 %v1400_v35, %v1396_v34 }
 0x220   :  { %3755 = vmatpush1.bf16.msra.mxu0 %v3754_v53  ;;  %3883 = vmatpush1.bf16.msra.mxu1 %v3882_v54  ;;  %v1370_v53 = vld [vmem:[#allocation8 + $0x348] sm:$0xff] }
 0x221   :  { %3757 = vmatprep.subr.bf16.mxu0 %v3756_v57  ;;  %3885 = vmatprep.subr.bf16.mxu1 %v3884_v58  ;;  %v1374_v54 = vld [vmem:[#allocation8 + $0x368] sm:$0xff]  ;;  %v3774_v57 = vpack.c.bf16 %v1365_v48, %v1361_v47  ;;  %v3902_v58 = vpack.c.bf16 %v1367_v52, %v1363_v51  ;;  %v1404_v48 = vld [vmem:[#allocation8 + $0x458] sm:$0xff]  ;;  %v1401_v52 = vld [vmem:[#allocation8 + $0x440] sm:$0xff] }
 0x222   :  { %v3776_v61 = vpack.c.bf16 %v1374_v54, %v1370_v53  ;;  %v1406_v47 = vld [vmem:[#allocation8 + $0x468] sm:$0xff]  ;;  %v1405_v53 = vld [vmem:[#allocation8 + $0x460] sm:$0xff] }
 0x224   :  { %3759 = vmatpush1.bf16.msra.mxu0 %v3758_v1  ;;  %3887 = vmatpush1.bf16.msra.mxu1 %v3886_v2  ;;  %v1378_v1 = vld [vmem:[#allocation8 + $0x388] sm:$0xff] }
 0x225   :  { %3761 = vmatprep.subr.bf16.mxu0 %v3760_v7  ;;  %3889 = vmatprep.subr.bf16.mxu1 %v3888_v8  ;;  %v1382_v2 = vld [vmem:[#allocation8 + $0x3a8] sm:$0xff]  ;;  %v3778_v7 = vpack.c.bf16 %v1373_v60, %v1369_v59  ;;  %v3906_v8 = vpack.c.bf16 %v1375_v0, %v1371_v63  ;;  %v1412_v60 = vld [vmem:[#allocation8 + $0x498] sm:$0xff]  ;;  %v3794_v63 = vpack.c.bf16 %v1405_v53, %v1401_v52 }
 0x226   :  { %v3780_v16 = vpack.c.bf16 %v1382_v2, %v1378_v1  ;;  %v1414_v59 = vld [vmem:[#allocation8 + $0x4a8] sm:$0xff]  ;;  %v1409_v1 = vld [vmem:[#allocation8 + $0x480] sm:$0xff]  ;;  %v1444_v53 = vld [vmem:[#allocation8 + $0x598] sm:$0xff] }
 0x227   :  { %v1413_v2 = vld [vmem:[#allocation8 + $0x4a0] sm:$0xff]  ;;  %v1446_v52 = vld [vmem:[#allocation8 + $0x5a8] sm:$0xff] }
 0x228   :  { %3763 = vmatpush1.bf16.msra.mxu0 %v3762_v19  ;;  %3891 = vmatpush1.bf16.msra.mxu1 %v3890_v20  ;;  %v1386_v19 = vld [vmem:[#allocation8 + $0x3c8] sm:$0xff] }
 0x229   :  { %3765 = vmatprep.subr.bf16.mxu0 %v3764_v24  ;;  %3893 = vmatprep.subr.bf16.mxu1 %v3892_v25  ;;  %v1390_v20 = vld [vmem:[#allocation8 + $0x3e8] sm:$0xff]  ;;  %v3782_v24 = vpack.c.bf16 %v1381_v10, %v1377_v9  ;;  %v3910_v25 = vpack.c.bf16 %v1383_v11, %v1379_v18  ;;  %v3798_v18 = vpack.c.bf16 %v1413_v2, %v1409_v1  ;;  %v1452_v2 = vld [vmem:[#allocation8 + $0x5d8] sm:$0xff] }
 0x22a   :  { %v3784_v28 = vpack.c.bf16 %v1390_v20, %v1386_v19  ;;  %v1418_v9 = vld [vmem:[#allocation8 + $0x4c8] sm:$0xff]  ;;  %v1417_v19 = vld [vmem:[#allocation8 + $0x4c0] sm:$0xff] }
 0x22b   :  { %v1422_v10 = vld [vmem:[#allocation8 + $0x4e8] sm:$0xff]  ;;  %v1421_v20 = vld [vmem:[#allocation8 + $0x4e0] sm:$0xff] }
 0x22c   :  { %3767 = vmatpush1.bf16.msra.mxu0 %v3766_v32  ;;  %3895 = vmatpush1.bf16.msra.mxu1 %v3894_v33  ;;  %v1394_v32 = vld [vmem:[#allocation8 + $0x408] sm:$0xff]  ;;  %v3800_v22 = vpack.c.bf16 %v1422_v10, %v1418_v9  ;;  %v3802_v30 = vpack.c.bf16 %v1421_v20, %v1417_v19  ;;  %v1453_v9 = vld [vmem:[#allocation8 + $0x5e0] sm:$0xff]  ;;  %v1460_v20 = vld [vmem:[#allocation8 + $0x618] sm:$0xff] }
 0x22d   :  { %3769 = vmatprep.subr.bf16.mxu0 %v3768_v37  ;;  %3897 = vmatprep.subr.bf16.mxu1 %v3896_v4  ;;  %v1398_v33 = vld [vmem:[#allocation8 + $0x428] sm:$0xff]  ;;  %v1544_v37 = vcombine.high %v4656_v13, %v4656_v13  ;;  %v3786_v4 = vpack.c.bf16 %v1389_v27, %v1385_v26  ;;  %v3790_v13 = vpack.c.bf16 %v1397_v40, %v1393_v39  ;;  %v1436_v40 = vld [vmem:[#allocation8 + $0x558] sm:$0xff] }
 0x22e   :  { %v3788_v41 = vpack.c.bf16 %v1398_v33, %v1394_v32  ;;  %v1426_v26 = vld [vmem:[#allocation8 + $0x508] sm:$0xff]  ;;  %v1425_v32 = vld [vmem:[#allocation8 + $0x500] sm:$0xff] }
 0x22f   :  { %v1430_v27 = vld [vmem:[#allocation8 + $0x528] sm:$0xff]  ;;  %v1429_v33 = vld [vmem:[#allocation8 + $0x520] sm:$0xff] }
 0x230   :  { %3771 = vmatpush1.bf16.msra.mxu0 %v3770_v45  ;;  %3899 = vmatpush1.bf16.msra.mxu1 %v3898_v46  ;;  %v1399_v45 = vld [vmem:[#allocation8 + $0x430] sm:$0xff]  ;;  %v1402_v46 = vld [vmem:[#allocation8 + $0x448] sm:$0xff]  ;;  %v3804_v34 = vpack.c.bf16 %v1430_v27, %v1426_v26  ;;  %v1461_v26 = vld [vmem:[#allocation8 + $0x620] sm:$0xff] }
 0x231   :  { %3773 = vmatprep.subr.bf16.mxu0 %v3772_v49  ;;  %3901 = vmatprep.subr.bf16.mxu1 %v3900_v50  ;;  %v1408_v49 = vld [vmem:[#allocation8 + $0x478] sm:$0xff]  ;;  %v4672_v50 = vrot.slane %v1544_v37, %v4651_v3  ;;  %v3918_v51 = vpack.c.bf16 %v1399_v45, %v1395_v44  ;;  %v3792_v54 = vpack.c.bf16 %v1406_v47, %v1402_v46  ;;  %v1427_v37 = vld [vmem:[#allocation8 + $0x510] sm:$0xff]  ;;  %v1438_v39 = vld [vmem:[#allocation8 + $0x568] sm:$0xff] }
 0x232   :  { %v3920_v55 = vpack.c.bf16 %v1408_v49, %v1404_v48  ;;  %v1433_v45 = vld [vmem:[#allocation8 + $0x540] sm:$0xff]  ;;  %v1435_v49 = vld [vmem:[#allocation8 + $0x550] sm:$0xff]  ;;  %v1454_v1 = vld [vmem:[#allocation8 + $0x5e8] sm:$0xff] }
 0x233   :  { %v1437_v46 = vld [vmem:[#allocation8 + $0x560] sm:$0xff]  ;;  %v1462_v19 = vld [vmem:[#allocation8 + $0x628] sm:$0xff] }
 0x234   :  { %3775 = vmatpush1.bf16.msra.mxu0 %v3774_v57  ;;  %3903 = vmatpush1.bf16.msra.mxu1 %v3902_v58  ;;  %v1407_v57 = vld [vmem:[#allocation8 + $0x470] sm:$0xff]  ;;  %v1410_v58 = vld [vmem:[#allocation8 + $0x488] sm:$0xff] }
 0x235   :  { %3777 = vmatprep.subr.bf16.mxu0 %v3776_v61  ;;  %3905 = vmatprep.subr.bf16.mxu1 %v3904_v62  ;;  %v1416_v61 = vld [vmem:[#allocation8 + $0x4b8] sm:$0xff]  ;;  %v4676_v62 = vcombine.high %v4672_v50, %v4672_v50  ;;  %v3922_v0 = vpack.c.bf16 %v1407_v57, %v1403_v56  ;;  %v3796_v5 = vpack.c.bf16 %v1414_v59, %v1410_v58  ;;  %v1441_v57 = vld [vmem:[#allocation8 + $0x580] sm:$0xff] }
 0x236   :  { %v3924_v6 = vpack.c.bf16 %v1416_v61, %v1412_v60  ;;  %v1445_v58 = vld [vmem:[#allocation8 + $0x5a0] sm:$0xff]  ;;  %v1443_v61 = vld [vmem:[#allocation8 + $0x590] sm:$0xff] }
 0x238   :  { %3779 = vmatpush1.bf16.msra.mxu0 %v3778_v7  ;;  %3907 = vmatpush1.bf16.msra.mxu1 %v3906_v8  ;;  %v1411_v7 = vld [vmem:[#allocation8 + $0x490] sm:$0xff] }
 0x239   :  { %3781 = vmatprep.subr.bf16.mxu0 %v3780_v16  ;;  %3909 = vmatprep.subr.bf16.mxu1 %v3908_v17  ;;  %v1415_v8 = vld [vmem:[#allocation8 + $0x4b0] sm:$0xff]  ;;  %v1420_v16 = vld [vmem:[#allocation8 + $0x4d8] sm:$0xff] }
 0x23a   :  { %v1424_v17 = vld [vmem:[#allocation8 + $0x4f8] sm:$0xff]  ;;  %v3926_v11 = vpack.c.bf16 %v1415_v8, %v1411_v7  ;;  %v1449_v8 = vld [vmem:[#allocation8 + $0x5c0] sm:$0xff] }
 0x23b   :  { %v3928_v23 = vpack.c.bf16 %v1424_v17, %v1420_v16  ;;  %v1451_v17 = vld [vmem:[#allocation8 + $0x5d0] sm:$0xff] }
 0x23c   :  { %3783 = vmatpush1.bf16.msra.mxu0 %v3782_v24  ;;  %3911 = vmatpush1.bf16.msra.mxu1 %v3910_v25  ;;  %v1419_v24 = vld [vmem:[#allocation8 + $0x4d0] sm:$0xff] }
 0x23d   :  { %3785 = vmatprep.subr.bf16.mxu0 %v3784_v28  ;;  %3913 = vmatprep.subr.bf16.mxu1 %v3912_v29  ;;  %v1423_v25 = vld [vmem:[#allocation8 + $0x4f0] sm:$0xff]  ;;  %v1428_v28 = vld [vmem:[#allocation8 + $0x518] sm:$0xff] }
 0x23e   :  { %v1432_v29 = vld [vmem:[#allocation8 + $0x538] sm:$0xff]  ;;  %v3930_v31 = vpack.c.bf16 %v1423_v25, %v1419_v24  ;;  %v1457_v25 = vld [vmem:[#allocation8 + $0x600] sm:$0xff] }
 0x23f   :  { %v3932_v35 = vpack.c.bf16 %v1432_v29, %v1428_v28  ;;  %v1459_v29 = vld [vmem:[#allocation8 + $0x610] sm:$0xff] }
 0x240   :  { %3787 = vmatpush1.bf16.msra.mxu0 %v3786_v4  ;;  %3915 = vmatpush1.bf16.msra.mxu1 %v3914_v38  ;;  %v1431_v4 = vld [vmem:[#allocation8 + $0x530] sm:$0xff]  ;;  %v1434_v38 = vld [vmem:[#allocation8 + $0x548] sm:$0xff] }
 0x241   :  { %3789 = vmatprep.subr.bf16.mxu0 %v3788_v41  ;;  %3917 = vmatprep.subr.bf16.mxu1 %v3916_v43  ;;  %v1440_v41 = vld [vmem:[#allocation8 + $0x578] sm:$0xff]  ;;  %v3806_v43 = vpack.c.bf16 %v1429_v33, %v1425_v32  ;;  %v3934_v44 = vpack.c.bf16 %v1431_v4, %v1427_v37  ;;  %v3808_v47 = vpack.c.bf16 %v1438_v39, %v1434_v38  ;;  %v1470_v32 = vld [vmem:[#allocation8 + $0x668] sm:$0xff]  ;;  %v1465_v4 = vld [vmem:[#allocation8 + $0x640] sm:$0xff] }
 0x242   :  { %v3936_v48 = vpack.c.bf16 %v1440_v41, %v1436_v40  ;;  %v1468_v33 = vld [vmem:[#allocation8 + $0x658] sm:$0xff]  ;;  %v1469_v38 = vld [vmem:[#allocation8 + $0x660] sm:$0xff]  ;;  %v1467_v41 = vld [vmem:[#allocation8 + $0x650] sm:$0xff] }
 0x243   :  { %1630 = vmatmul.mubr.f32.vlgmr.msra.gmra.mrb[4].mxu0 %v4660_v21  ;;  %1772 = vmatmul.mubr.f32.vlgmr.msra.gmra.mrb[4].mxu1 %v4660_v21 }
 0x244   :  { %3791 = vmatpush1.bf16.msra.mxu0 %v3790_v13  ;;  %3919 = vmatpush1.bf16.msra.mxu1 %v3918_v51  ;;  %v1439_v13 = vld [vmem:[#allocation8 + $0x570] sm:$0xff]  ;;  %v1442_v51 = vld [vmem:[#allocation8 + $0x588] sm:$0xff] }
 0x245   :  { %3793 = vmatprep.subr.bf16.mxu0 %v3792_v54  ;;  %3921 = vmatprep.subr.bf16.mxu1 %v3920_v55  ;;  %v1448_v54 = vld [vmem:[#allocation8 + $0x5b8] sm:$0xff]  ;;  %v3810_v55 = vpack.c.bf16 %v1437_v46, %v1433_v45  ;;  %v3938_v56 = vpack.c.bf16 %v1439_v13, %v1435_v49  ;;  %v3812_v59 = vpack.c.bf16 %v1446_v52, %v1442_v51  ;;  %v1478_v45 = vld [vmem:[#allocation8 + $0x6a8] sm:$0xff]  ;;  %v1473_v13 = vld [vmem:[#allocation8 + $0x680] sm:$0xff] }
 0x246   :  { %1700 = vmatprep.mubr.f32.mxu0 %v4676_v62  ;;  %1842 = vmatprep.mubr.f32.mxu1 %v4676_v62  ;;  %v3940_v60 = vpack.c.bf16 %v1448_v54, %v1444_v53  ;;  %v1476_v46 = vld [vmem:[#allocation8 + $0x698] sm:$0xff]  ;;  %v1477_v51 = vld [vmem:[#allocation8 + $0x6a0] sm:$0xff]  ;;  %v1475_v54 = vld [vmem:[#allocation8 + $0x690] sm:$0xff] }
 0x248   :  { %3795 = vmatpush1.bf16.msra.mxu0 %v3794_v63  ;;  %3923 = vmatpush1.bf16.msra.mxu1 %v3922_v0  ;;  %v1447_v63 = vld [vmem:[#allocation8 + $0x5b0] sm:$0xff]  ;;  %v1450_v0 = vld [vmem:[#allocation8 + $0x5c8] sm:$0xff] }
 0x249   :  { %3797 = vmatprep.subr.bf16.mxu0 %v3796_v5  ;;  %3925 = vmatprep.subr.bf16.mxu1 %v3924_v6  ;;  %v1456_v5 = vld [vmem:[#allocation8 + $0x5f8] sm:$0xff]  ;;  %v3814_v6 = vpack.c.bf16 %v1445_v58, %v1441_v57  ;;  %v3942_v7 = vpack.c.bf16 %v1447_v63, %v1443_v61  ;;  %v3816_v10 = vpack.c.bf16 %v1454_v1, %v1450_v0  ;;  %v1486_v57 = vld [vmem:[#allocation8 + $0x6e8] sm:$0xff]  ;;  %v1481_v63 = vld [vmem:[#allocation8 + $0x6c0] sm:$0xff] }
 0x24a   :  { %v3944_v16 = vpack.c.bf16 %v1456_v5, %v1452_v2  ;;  %v1484_v58 = vld [vmem:[#allocation8 + $0x6d8] sm:$0xff]  ;;  %v1485_v0 = vld [vmem:[#allocation8 + $0x6e0] sm:$0xff]  ;;  %v1483_v5 = vld [vmem:[#allocation8 + $0x6d0] sm:$0xff] }
 0x24c   :  { %3799 = vmatpush1.bf16.msra.mxu0 %v3798_v18  ;;  %3927 = vmatpush1.bf16.msra.mxu1 %v3926_v11  ;;  %v1455_v18 = vld [vmem:[#allocation8 + $0x5f0] sm:$0xff]  ;;  %v1458_v11 = vld [vmem:[#allocation8 + $0x608] sm:$0xff] }
 0x24d   :  { %3801 = vmatprep.subr.bf16.mxu0 %v3800_v22  ;;  %3929 = vmatprep.subr.bf16.mxu1 %v3928_v23  ;;  %v1464_v22 = vld [vmem:[#allocation8 + $0x638] sm:$0xff]  ;;  %v3818_v23 = vpack.c.bf16 %v1453_v9, %v1449_v8  ;;  %v3946_v24 = vpack.c.bf16 %v1455_v18, %v1451_v17  ;;  %v3820_v27 = vpack.c.bf16 %v1462_v19, %v1458_v11  ;;  %v1494_v8 = vld [vmem:[#allocation8 + $0x728] sm:$0xff]  ;;  %v1489_v18 = vld [vmem:[#allocation8 + $0x700] sm:$0xff] }
 0x24e   :  { %v3948_v28 = vpack.c.bf16 %v1464_v22, %v1460_v20  ;;  %v1492_v9 = vld [vmem:[#allocation8 + $0x718] sm:$0xff]  ;;  %v1493_v11 = vld [vmem:[#allocation8 + $0x720] sm:$0xff]  ;;  %v1491_v22 = vld [vmem:[#allocation8 + $0x710] sm:$0xff] }
 0x250   :  { %3803 = vmatpush1.bf16.msra.mxu0 %v3802_v30  ;;  %3931 = vmatpush1.bf16.msra.mxu1 %v3930_v31  ;;  %v1463_v30 = vld [vmem:[#allocation8 + $0x630] sm:$0xff]  ;;  %v1466_v31 = vld [vmem:[#allocation8 + $0x648] sm:$0xff] }
 0x251   :  { %3805 = vmatprep.subr.bf16.mxu0 %v3804_v34  ;;  %3933 = vmatprep.subr.bf16.mxu1 %v3932_v35  ;;  %v1472_v34 = vld [vmem:[#allocation8 + $0x678] sm:$0xff]  ;;  %v3822_v35 = vpack.c.bf16 %v1461_v26, %v1457_v25  ;;  %v3950_v37 = vpack.c.bf16 %v1463_v30, %v1459_v29  ;;  %v3824_v39 = vpack.c.bf16 %v1470_v32, %v1466_v31  ;;  %v1502_v25 = vld [vmem:[#allocation8 + $0x768] sm:$0xff]  ;;  %v1497_v30 = vld [vmem:[#allocation8 + $0x740] sm:$0xff] }
 0x252   :  { %v3952_v40 = vpack.c.bf16 %v1472_v34, %v1468_v33  ;;  %v1500_v26 = vld [vmem:[#allocation8 + $0x758] sm:$0xff]  ;;  %v1501_v31 = vld [vmem:[#allocation8 + $0x760] sm:$0xff]  ;;  %v1499_v34 = vld [vmem:[#allocation8 + $0x750] sm:$0xff] }
 0x254   :  { %3807 = vmatpush1.bf16.msra.mxu0 %v3806_v43  ;;  %3935 = vmatpush1.bf16.msra.mxu1 %v3934_v44  ;;  %v1471_v43 = vld [vmem:[#allocation8 + $0x670] sm:$0xff]  ;;  %v1474_v44 = vld [vmem:[#allocation8 + $0x688] sm:$0xff] }
 0x255   :  { %3809 = vmatprep.subr.bf16.mxu0 %v3808_v47  ;;  %3937 = vmatprep.subr.bf16.mxu1 %v3936_v48  ;;  %v1480_v47 = vld [vmem:[#allocation8 + $0x6b8] sm:$0xff]  ;;  %v3826_v48 = vpack.c.bf16 %v1469_v38, %v1465_v4  ;;  %v3954_v49 = vpack.c.bf16 %v1471_v43, %v1467_v41  ;;  %v3828_v52 = vpack.c.bf16 %v1478_v45, %v1474_v44  ;;  %v1510_v4 = vld [vmem:[#allocation8 + $0x7a8] sm:$0xff]  ;;  %v1505_v43 = vld [vmem:[#allocation8 + $0x780] sm:$0xff] }
 0x256   :  { %v3956_v53 = vpack.c.bf16 %v1480_v47, %v1476_v46  ;;  %v1508_v38 = vld [vmem:[#allocation8 + $0x798] sm:$0xff]  ;;  %v1509_v44 = vld [vmem:[#allocation8 + $0x7a0] sm:$0xff]  ;;  %v1507_v47 = vld [vmem:[#allocation8 + $0x790] sm:$0xff] }
 0x258   :  { %3811 = vmatpush1.bf16.msra.mxu0 %v3810_v55  ;;  %3939 = vmatpush1.bf16.msra.mxu1 %v3938_v56  ;;  %v1479_v55 = vld [vmem:[#allocation8 + $0x6b0] sm:$0xff]  ;;  %v1482_v56 = vld [vmem:[#allocation8 + $0x6c8] sm:$0xff] }
 0x259   :  { %3813 = vmatprep.subr.bf16.mxu0 %v3812_v59  ;;  %3941 = vmatprep.subr.bf16.mxu1 %v3940_v60  ;;  %v1488_v59 = vld [vmem:[#allocation8 + $0x6f8] sm:$0xff]  ;;  %v3830_v60 = vpack.c.bf16 %v1477_v51, %v1473_v13  ;;  %v3958_v61 = vpack.c.bf16 %v1479_v55, %v1475_v54  ;;  %v3832_v1 = vpack.c.bf16 %v1486_v57, %v1482_v56  ;;  %v1518_v13 = vld [vmem:[#allocation8 + $0x7e8] sm:$0xff]  ;;  %v1513_v55 = vld [vmem:[#allocation8 + $0x7c0] sm:$0xff] }
 0x25a   :  { %v3960_v2 = vpack.c.bf16 %v1488_v59, %v1484_v58  ;;  %v1516_v51 = vld [vmem:[#allocation8 + $0x7d8] sm:$0xff]  ;;  %v1517_v56 = vld [vmem:[#allocation8 + $0x7e0] sm:$0xff]  ;;  %v1515_v59 = vld [vmem:[#allocation8 + $0x7d0] sm:$0xff] }
 0x25c   :  { %3815 = vmatpush1.bf16.msra.mxu0 %v3814_v6  ;;  %3943 = vmatpush1.bf16.msra.mxu1 %v3942_v7  ;;  %v1487_v6 = vld [vmem:[#allocation8 + $0x6f0] sm:$0xff]  ;;  %v1490_v7 = vld [vmem:[#allocation8 + $0x708] sm:$0xff] }
 0x25d   :  { %3817 = vmatprep.subr.bf16.mxu0 %v3816_v10  ;;  %3945 = vmatprep.subr.bf16.mxu1 %v3944_v16  ;;  %v1496_v10 = vld [vmem:[#allocation8 + $0x738] sm:$0xff]  ;;  %v3834_v16 = vpack.c.bf16 %v1485_v0, %v1481_v63  ;;  %v3962_v17 = vpack.c.bf16 %v1487_v6, %v1483_v5  ;;  %v3836_v19 = vpack.c.bf16 %v1494_v8, %v1490_v7  ;;  %v1886_v63 = vld [vmem:[#allocation9 + $0x28] sm:$0xff]  ;;  %v1881_v6 = vld [vmem:[#allocation9] sm:$0xff] }
 0x25e   :  { %v3964_v20 = vpack.c.bf16 %v1496_v10, %v1492_v9  ;;  %v1884_v0 = vld [vmem:[#allocation9 + $0x18] sm:$0xff]  ;;  %v1885_v7 = vld [vmem:[#allocation9 + $0x20] sm:$0xff]  ;;  %v1883_v10 = vld [vmem:[#allocation9 + $0x10] sm:$0xff] }
 0x260   :  { %3819 = vmatpush1.bf16.msra.mxu0 %v3818_v23  ;;  %3947 = vmatpush1.bf16.msra.mxu1 %v3946_v24  ;;  %v1495_v23 = vld [vmem:[#allocation8 + $0x730] sm:$0xff]  ;;  %v1498_v24 = vld [vmem:[#allocation8 + $0x748] sm:$0xff] }
 0x261   :  { %3821 = vmatprep.subr.bf16.mxu0 %v3820_v27  ;;  %3949 = vmatprep.subr.bf16.mxu1 %v3948_v28  ;;  %v1504_v27 = vld [vmem:[#allocation8 + $0x778] sm:$0xff]  ;;  %v3838_v28 = vpack.c.bf16 %v1493_v11, %v1489_v18  ;;  %v3966_v29 = vpack.c.bf16 %v1495_v23, %v1491_v22  ;;  %v3840_v32 = vpack.c.bf16 %v1502_v25, %v1498_v24  ;;  %v1894_v18 = vld [vmem:[#allocation9 + $0x68] sm:$0xff]  ;;  %v1889_v23 = vld [vmem:[#allocation9 + $0x40] sm:$0xff] }
 0x262   :  { %v3968_v33 = vpack.c.bf16 %v1504_v27, %v1500_v26  ;;  %v1892_v11 = vld [vmem:[#allocation9 + $0x58] sm:$0xff]  ;;  %v1893_v24 = vld [vmem:[#allocation9 + $0x60] sm:$0xff]  ;;  %v1891_v27 = vld [vmem:[#allocation9 + $0x50] sm:$0xff] }
 0x264   :  { %3823 = vmatpush1.bf16.msra.mxu0 %v3822_v35  ;;  %3951 = vmatpush1.bf16.msra.mxu1 %v3950_v37  ;;  %v1503_v35 = vld [vmem:[#allocation8 + $0x770] sm:$0xff]  ;;  %v1506_v37 = vld [vmem:[#allocation8 + $0x788] sm:$0xff] }
 0x265   :  { %3825 = vmatprep.subr.bf16.mxu0 %v3824_v39  ;;  %3953 = vmatprep.subr.bf16.mxu1 %v3952_v40  ;;  %v1512_v39 = vld [vmem:[#allocation8 + $0x7b8] sm:$0xff]  ;;  %v3842_v40 = vpack.c.bf16 %v1501_v31, %v1497_v30  ;;  %v3970_v41 = vpack.c.bf16 %v1503_v35, %v1499_v34  ;;  %v3844_v45 = vpack.c.bf16 %v1510_v4, %v1506_v37  ;;  %v1902_v30 = vld [vmem:[#allocation9 + $0xa8] sm:$0xff]  ;;  %v1897_v35 = vld [vmem:[#allocation9 + $0x80] sm:$0xff] }
 0x266   :  { %v3972_v46 = vpack.c.bf16 %v1512_v39, %v1508_v38  ;;  %v1900_v31 = vld [vmem:[#allocation9 + $0x98] sm:$0xff]  ;;  %v1901_v37 = vld [vmem:[#allocation9 + $0xa0] sm:$0xff]  ;;  %v1899_v39 = vld [vmem:[#allocation9 + $0x90] sm:$0xff] }
 0x268   :  { %3827 = vmatpush1.bf16.msra.mxu0 %v3826_v48  ;;  %3955 = vmatpush1.bf16.msra.mxu1 %v3954_v49  ;;  %v1511_v48 = vld [vmem:[#allocation8 + $0x7b0] sm:$0xff]  ;;  %v1514_v49 = vld [vmem:[#allocation8 + $0x7c8] sm:$0xff] }
 0x269   :  { %3829 = vmatprep.subr.bf16.mxu0 %v3828_v52  ;;  %3957 = vmatprep.subr.bf16.mxu1 %v3956_v53  ;;  %v1520_v52 = vld [vmem:[#allocation8 + $0x7f8] sm:$0xff]  ;;  %v3846_v53 = vpack.c.bf16 %v1509_v44, %v1505_v43  ;;  %v3974_v54 = vpack.c.bf16 %v1511_v48, %v1507_v47  ;;  %v3848_v57 = vpack.c.bf16 %v1518_v13, %v1514_v49  ;;  %v1910_v43 = vld [vmem:[#allocation9 + $0xe8] sm:$0xff]  ;;  %v1905_v48 = vld [vmem:[#allocation9 + $0xc0] sm:$0xff] }
 0x26a   :  { %v3976_v58 = vpack.c.bf16 %v1520_v52, %v1516_v51  ;;  %v1908_v44 = vld [vmem:[#allocation9 + $0xd8] sm:$0xff]  ;;  %v1909_v49 = vld [vmem:[#allocation9 + $0xe0] sm:$0xff]  ;;  %v1907_v52 = vld [vmem:[#allocation9 + $0xd0] sm:$0xff] }
 0x26c   :  { %3831 = vmatpush1.bf16.msra.mxu0 %v3830_v60  ;;  %3959 = vmatpush1.bf16.msra.mxu1 %v3958_v61  ;;  %v1519_v60 = vld [vmem:[#allocation8 + $0x7f0] sm:$0xff]  ;;  %v1882_v61 = vld [vmem:[#allocation9 + $0x8] sm:$0xff] }
 0x26d   :  { %3833 = vmatprep.subr.bf16.mxu0 %v3832_v1  ;;  %3961 = vmatprep.subr.bf16.mxu1 %v3960_v2  ;;  %v1888_v1 = vld [vmem:[#allocation9 + $0x38] sm:$0xff]  ;;  %v3850_v2 = vpack.c.bf16 %v1517_v56, %v1513_v55  ;;  %v3978_v5 = vpack.c.bf16 %v1519_v60, %v1515_v59  ;;  %v3980_v8 = vpack.c.bf16 %v1886_v63, %v1882_v61  ;;  %v1918_v55 = vld [vmem:[#allocation9 + $0x128] sm:$0xff]  ;;  %v1913_v60 = vld [vmem:[#allocation9 + $0x100] sm:$0xff] }
 0x26e   :  { %v4108_v9 = vpack.c.bf16 %v1888_v1, %v1884_v0  ;;  %v1916_v56 = vld [vmem:[#allocation9 + $0x118] sm:$0xff]  ;;  %v1917_v61 = vld [vmem:[#allocation9 + $0x120] sm:$0xff]  ;;  %v1915_v1 = vld [vmem:[#allocation9 + $0x110] sm:$0xff] }
 0x270   :  { %3835 = vmatpush1.bf16.msra.mxu0 %v3834_v16  ;;  %3963 = vmatpush1.bf16.msra.mxu1 %v3962_v17  ;;  %v1887_v16 = vld [vmem:[#allocation9 + $0x30] sm:$0xff]  ;;  %v1890_v17 = vld [vmem:[#allocation9 + $0x48] sm:$0xff] }
 0x271   :  { %3837 = vmatprep.subr.bf16.mxu0 %v3836_v19  ;;  %3965 = vmatprep.subr.bf16.mxu1 %v3964_v20  ;;  %v1896_v19 = vld [vmem:[#allocation9 + $0x78] sm:$0xff]  ;;  %v3982_v20 = vpack.c.bf16 %v1885_v7, %v1881_v6  ;;  %v4110_v22 = vpack.c.bf16 %v1887_v16, %v1883_v10  ;;  %v3984_v25 = vpack.c.bf16 %v1894_v18, %v1890_v17  ;;  %v1926_v6 = vld [vmem:[#allocation9 + $0x168] sm:$0xff]  ;;  %v1921_v16 = vld [vmem:[#allocation9 + $0x140] sm:$0xff] }
 0x272   :  { %v4112_v26 = vpack.c.bf16 %v1896_v19, %v1892_v11  ;;  %v1924_v7 = vld [vmem:[#allocation9 + $0x158] sm:$0xff]  ;;  %v1925_v17 = vld [vmem:[#allocation9 + $0x160] sm:$0xff]  ;;  %v1923_v19 = vld [vmem:[#allocation9 + $0x150] sm:$0xff] }
 0x274   :  { %3839 = vmatpush1.bf16.msra.mxu0 %v3838_v28  ;;  %3967 = vmatpush1.bf16.msra.mxu1 %v3966_v29  ;;  %v1895_v28 = vld [vmem:[#allocation9 + $0x70] sm:$0xff]  ;;  %v1898_v29 = vld [vmem:[#allocation9 + $0x88] sm:$0xff] }
 0x275   :  { %3841 = vmatprep.subr.bf16.mxu0 %v3840_v32  ;;  %3969 = vmatprep.subr.bf16.mxu1 %v3968_v33  ;;  %v1904_v32 = vld [vmem:[#allocation9 + $0xb8] sm:$0xff]  ;;  %v3986_v33 = vpack.c.bf16 %v1893_v24, %v1889_v23  ;;  %v4114_v34 = vpack.c.bf16 %v1895_v28, %v1891_v27  ;;  %v3988_v4 = vpack.c.bf16 %v1902_v30, %v1898_v29  ;;  %v1934_v23 = vld [vmem:[#allocation9 + $0x1a8] sm:$0xff]  ;;  %v1929_v28 = vld [vmem:[#allocation9 + $0x180] sm:$0xff] }
 0x276   :  { %v4116_v38 = vpack.c.bf16 %v1904_v32, %v1900_v31  ;;  %v1932_v24 = vld [vmem:[#allocation9 + $0x198] sm:$0xff]  ;;  %v1933_v29 = vld [vmem:[#allocation9 + $0x1a0] sm:$0xff]  ;;  %v1931_v32 = vld [vmem:[#allocation9 + $0x190] sm:$0xff] }
 0x278   :  { %3843 = vmatpush1.bf16.msra.mxu0 %v3842_v40  ;;  %3971 = vmatpush1.bf16.msra.mxu1 %v3970_v41  ;;  %v1903_v40 = vld [vmem:[#allocation9 + $0xb0] sm:$0xff]  ;;  %v1906_v41 = vld [vmem:[#allocation9 + $0xc8] sm:$0xff] }
 0x279   :  { %3845 = vmatprep.subr.bf16.mxu0 %v3844_v45  ;;  %3973 = vmatprep.subr.bf16.mxu1 %v3972_v46  ;;  %v1912_v45 = vld [vmem:[#allocation9 + $0xf8] sm:$0xff]  ;;  %v3990_v46 = vpack.c.bf16 %v1901_v37, %v1897_v35  ;;  %v4118_v47 = vpack.c.bf16 %v1903_v40, %v1899_v39  ;;  %v3992_v13 = vpack.c.bf16 %v1910_v43, %v1906_v41  ;;  %v1942_v35 = vld [vmem:[#allocation9 + $0x1e8] sm:$0xff]  ;;  %v1937_v40 = vld [vmem:[#allocation9 + $0x1c0] sm:$0xff] }
 0x27a   :  { %v4120_v51 = vpack.c.bf16 %v1912_v45, %v1908_v44  ;;  %v1940_v37 = vld [vmem:[#allocation9 + $0x1d8] sm:$0xff]  ;;  %v1941_v44 = vld [vmem:[#allocation9 + $0x1e0] sm:$0xff]  ;;  %v1939_v45 = vld [vmem:[#allocation9 + $0x1d0] sm:$0xff] }
 0x27c   :  { %3847 = vmatpush1.bf16.msra.mxu0 %v3846_v53  ;;  %3975 = vmatpush1.bf16.msra.mxu1 %v3974_v54  ;;  %v1911_v53 = vld [vmem:[#allocation9 + $0xf0] sm:$0xff]  ;;  %v1914_v54 = vld [vmem:[#allocation9 + $0x108] sm:$0xff] }
 0x27d   :  { %3849 = vmatprep.subr.bf16.mxu0 %v3848_v57  ;;  %3977 = vmatprep.subr.bf16.mxu1 %v3976_v58  ;;  %v1920_v57 = vld [vmem:[#allocation9 + $0x138] sm:$0xff]  ;;  %v3994_v58 = vpack.c.bf16 %v1909_v49, %v1905_v48  ;;  %v4122_v59 = vpack.c.bf16 %v1911_v53, %v1907_v52  ;;  %v3996_v63 = vpack.c.bf16 %v1918_v55, %v1914_v54  ;;  %v1946_v53 = vld [vmem:[#allocation9 + $0x208] sm:$0xff] }
 0x27e   :  { %v4124_v0 = vpack.c.bf16 %v1920_v57, %v1916_v56  ;;  %v1950_v54 = vld [vmem:[#allocation9 + $0x228] sm:$0xff]  ;;  %v1948_v55 = vld [vmem:[#allocation9 + $0x218] sm:$0xff] }
 0x27f   :  { %v4012_v56 = vpack.c.bf16 %v1950_v54, %v1946_v53  ;;  %v1952_v57 = vld [vmem:[#allocation9 + $0x238] sm:$0xff] }
 0x280   :  { %3851 = vmatpush1.bf16.msra.mxu0 %v3850_v2  ;;  %3979 = vmatpush1.bf16.msra.mxu1 %v3978_v5  ;;  %v1919_v2 = vld [vmem:[#allocation9 + $0x130] sm:$0xff]  ;;  %v1922_v5 = vld [vmem:[#allocation9 + $0x148] sm:$0xff]  ;;  %v1984_v54 = vld [vmem:[#allocation9 + $0x338] sm:$0xff] }
 0x281   :  { %3981 = vmatprep.subr.bf16.mxu0 %v3980_v8  ;;  %4109 = vmatprep.subr.bf16.mxu1 %v4108_v9  ;;  %v1928_v8 = vld [vmem:[#allocation9 + $0x178] sm:$0xff]  ;;  %v3998_v9 = vpack.c.bf16 %v1917_v61, %v1913_v60  ;;  %v4126_v10 = vpack.c.bf16 %v1919_v2, %v1915_v1  ;;  %v4000_v18 = vpack.c.bf16 %v1926_v6, %v1922_v5  ;;  %v1954_v2 = vld [vmem:[#allocation9 + $0x248] sm:$0xff] }
 0x282   :  { %v4128_v11 = vpack.c.bf16 %v1928_v8, %v1924_v7  ;;  %v4140_v60 = vpack.c.bf16 %v1952_v57, %v1948_v55  ;;  %v1958_v5 = vld [vmem:[#allocation9 + $0x268] sm:$0xff]  ;;  %v1956_v6 = vld [vmem:[#allocation9 + $0x258] sm:$0xff]  ;;  %v1977_v55 = vld [vmem:[#allocation9 + $0x300] sm:$0xff] }
 0x283   :  { %1701 = vmatmul.mubr.f32.vlgmr.msra.gmra.mrb[4].mxu0 %v4672_v50  ;;  %1843 = vmatmul.mubr.f32.vlgmr.msra.gmra.mrb[4].mxu1 %v4672_v50  ;;  %v4016_v7 = vpack.c.bf16 %v1958_v5, %v1954_v2  ;;  %v1960_v8 = vld [vmem:[#allocation9 + $0x278] sm:$0xff] }
 0x284   :  { %3983 = vmatpush1.bf16.msra.mxu0 %v3982_v20  ;;  %4111 = vmatpush1.bf16.msra.mxu1 %v4110_v22  ;;  %v1927_v20 = vld [vmem:[#allocation9 + $0x170] sm:$0xff]  ;;  %v1930_v22 = vld [vmem:[#allocation9 + $0x188] sm:$0xff]  ;;  %v1992_v5 = vld [vmem:[#allocation9 + $0x378] sm:$0xff] }
 0x285   :  { %3985 = vmatprep.subr.bf16.mxu0 %v3984_v25  ;;  %4113 = vmatprep.subr.bf16.mxu1 %v4112_v26  ;;  %v1936_v25 = vld [vmem:[#allocation9 + $0x1b8] sm:$0xff]  ;;  %v4002_v26 = vpack.c.bf16 %v1925_v17, %v1921_v16  ;;  %v4130_v27 = vpack.c.bf16 %v1927_v20, %v1923_v19  ;;  %v4004_v30 = vpack.c.bf16 %v1934_v23, %v1930_v22  ;;  %v1962_v20 = vld [vmem:[#allocation9 + $0x288] sm:$0xff] }
 0x286   :  { %v4132_v31 = vpack.c.bf16 %v1936_v25, %v1932_v24  ;;  %v4144_v16 = vpack.c.bf16 %v1960_v8, %v1956_v6  ;;  %v1966_v22 = vld [vmem:[#allocation9 + $0x2a8] sm:$0xff]  ;;  %v1964_v23 = vld [vmem:[#allocation9 + $0x298] sm:$0xff]  ;;  %v1985_v6 = vld [vmem:[#allocation9 + $0x340] sm:$0xff] }
 0x287   :  { %v4020_v24 = vpack.c.bf16 %v1966_v22, %v1962_v20  ;;  %v1968_v25 = vld [vmem:[#allocation9 + $0x2b8] sm:$0xff] }
 0x288   :  { %3987 = vmatpush1.bf16.msra.mxu0 %v3986_v33  ;;  %4115 = vmatpush1.bf16.msra.mxu1 %v4114_v34  ;;  %v1935_v33 = vld [vmem:[#allocation9 + $0x1b0] sm:$0xff]  ;;  %v1938_v34 = vld [vmem:[#allocation9 + $0x1c8] sm:$0xff]  ;;  %v2000_v22 = vld [vmem:[#allocation9 + $0x3b8] sm:$0xff] }
 0x289   :  { %3989 = vmatprep.subr.bf16.mxu0 %v3988_v4  ;;  %4117 = vmatprep.subr.bf16.mxu1 %v4116_v38  ;;  %v1944_v4 = vld [vmem:[#allocation9 + $0x1f8] sm:$0xff]  ;;  %v4006_v38 = vpack.c.bf16 %v1933_v29, %v1929_v28  ;;  %v4134_v39 = vpack.c.bf16 %v1935_v33, %v1931_v32  ;;  %v4008_v41 = vpack.c.bf16 %v1942_v35, %v1938_v34  ;;  %v1970_v33 = vld [vmem:[#allocation9 + $0x2c8] sm:$0xff] }
 0x28a   :  { %v4136_v43 = vpack.c.bf16 %v1944_v4, %v1940_v37  ;;  %v4148_v28 = vpack.c.bf16 %v1968_v25, %v1964_v23  ;;  %v1974_v34 = vld [vmem:[#allocation9 + $0x2e8] sm:$0xff]  ;;  %v1972_v35 = vld [vmem:[#allocation9 + $0x2d8] sm:$0xff]  ;;  %v1993_v23 = vld [vmem:[#allocation9 + $0x380] sm:$0xff] }
 0x28b   :  { %v4024_v37 = vpack.c.bf16 %v1974_v34, %v1970_v33  ;;  %v1976_v4 = vld [vmem:[#allocation9 + $0x2f8] sm:$0xff] }
 0x28c   :  { %3991 = vmatpush1.bf16.msra.mxu0 %v3990_v46  ;;  %4119 = vmatpush1.bf16.msra.mxu1 %v4118_v47  ;;  %v1943_v46 = vld [vmem:[#allocation9 + $0x1f0] sm:$0xff]  ;;  %v4010_v47 = vpack.c.bf16 %v1941_v44, %v1937_v40  ;;  %v4152_v40 = vpack.c.bf16 %v1976_v4, %v1972_v35  ;;  %v2008_v34 = vld [vmem:[#allocation9 + $0x3f8] sm:$0xff]  ;;  %v2001_v35 = vld [vmem:[#allocation9 + $0x3c0] sm:$0xff] }
 0x28d   :  { %3993 = vmatprep.subr.bf16.mxu0 %v3992_v13  ;;  %4121 = vmatprep.subr.bf16.mxu1 %v4120_v51  ;;  %v4138_v48 = vpack.c.bf16 %v1943_v46, %v1939_v45  ;;  %v1975_v44 = vld [vmem:[#allocation9 + $0x2f0] sm:$0xff]  ;;  %v1978_v46 = vld [vmem:[#allocation9 + $0x308] sm:$0xff] }
 0x290   :  { %3995 = vmatpush1.bf16.msra.mxu0 %v3994_v58  ;;  %4123 = vmatpush1.bf16.msra.mxu1 %v4122_v59  ;;  %v1945_v58 = vld [vmem:[#allocation9 + $0x200] sm:$0xff] }
 0x291   :  { %3997 = vmatprep.subr.bf16.mxu0 %v3996_v63  ;;  %4125 = vmatprep.subr.bf16.mxu1 %v4124_v0  ;;  %v1949_v59 = vld [vmem:[#allocation9 + $0x220] sm:$0xff]  ;;  %v1947_v63 = vld [vmem:[#allocation9 + $0x210] sm:$0xff] }
 0x292   :  { %v4014_v61 = vpack.c.bf16 %v1949_v59, %v1945_v58  ;;  %v1951_v0 = vld [vmem:[#allocation9 + $0x230] sm:$0xff] }
 0x293   :  { %v4142_v1 = vpack.c.bf16 %v1951_v0, %v1947_v63  ;;  %v1979_v59 = vld [vmem:[#allocation9 + $0x310] sm:$0xff]  ;;  %v1986_v63 = vld [vmem:[#allocation9 + $0x348] sm:$0xff] }
 0x294   :  { %3999 = vmatpush1.bf16.msra.mxu0 %v3998_v9  ;;  %4127 = vmatpush1.bf16.msra.mxu1 %v4126_v10  ;;  %v1953_v9 = vld [vmem:[#allocation9 + $0x240] sm:$0xff]  ;;  %v1990_v0 = vld [vmem:[#allocation9 + $0x368] sm:$0xff] }
 0x295   :  { %4001 = vmatprep.subr.bf16.mxu0 %v4000_v18  ;;  %4129 = vmatprep.subr.bf16.mxu1 %v4128_v11  ;;  %v1957_v10 = vld [vmem:[#allocation9 + $0x260] sm:$0xff]  ;;  %v1955_v18 = vld [vmem:[#allocation9 + $0x250] sm:$0xff]  ;;  %v4032_v2 = vpack.c.bf16 %v1990_v0, %v1986_v63 }
 0x296   :  { %v4018_v17 = vpack.c.bf16 %v1957_v10, %v1953_v9  ;;  %v1959_v11 = vld [vmem:[#allocation9 + $0x270] sm:$0xff] }
 0x297   :  { %v4146_v19 = vpack.c.bf16 %v1959_v11, %v1955_v18  ;;  %v1987_v10 = vld [vmem:[#allocation9 + $0x350] sm:$0xff]  ;;  %v1994_v18 = vld [vmem:[#allocation9 + $0x388] sm:$0xff] }
 0x298   :  { %4003 = vmatpush1.bf16.msra.mxu0 %v4002_v26  ;;  %4131 = vmatpush1.bf16.msra.mxu1 %v4130_v27  ;;  %v1961_v26 = vld [vmem:[#allocation9 + $0x280] sm:$0xff]  ;;  %v1998_v11 = vld [vmem:[#allocation9 + $0x3a8] sm:$0xff] }
 0x299   :  { %4005 = vmatprep.subr.bf16.mxu0 %v4004_v30  ;;  %4133 = vmatprep.subr.bf16.mxu1 %v4132_v31  ;;  %v1965_v27 = vld [vmem:[#allocation9 + $0x2a0] sm:$0xff]  ;;  %v1963_v30 = vld [vmem:[#allocation9 + $0x290] sm:$0xff]  ;;  %v4036_v20 = vpack.c.bf16 %v1998_v11, %v1994_v18 }
 0x29a   :  { %v4022_v29 = vpack.c.bf16 %v1965_v27, %v1961_v26  ;;  %v1967_v31 = vld [vmem:[#allocation9 + $0x2b0] sm:$0xff] }
 0x29b   :  { %v4150_v32 = vpack.c.bf16 %v1967_v31, %v1963_v30  ;;  %v1995_v27 = vld [vmem:[#allocation9 + $0x390] sm:$0xff]  ;;  %v2002_v30 = vld [vmem:[#allocation9 + $0x3c8] sm:$0xff] }
 0x29c   :  { %4007 = vmatpush1.bf16.msra.mxu0 %v4006_v38  ;;  %4135 = vmatpush1.bf16.msra.mxu1 %v4134_v39  ;;  %v1969_v38 = vld [vmem:[#allocation9 + $0x2c0] sm:$0xff]  ;;  %v2006_v31 = vld [vmem:[#allocation9 + $0x3e8] sm:$0xff] }
 0x29d   :  { %4009 = vmatprep.subr.bf16.mxu0 %v4008_v41  ;;  %4137 = vmatprep.subr.bf16.mxu1 %v4136_v43  ;;  %v1973_v39 = vld [vmem:[#allocation9 + $0x2e0] sm:$0xff]  ;;  %v1971_v43 = vld [vmem:[#allocation9 + $0x2d0] sm:$0xff]  ;;  %v4040_v33 = vpack.c.bf16 %v2006_v31, %v2002_v30 }
 0x29e   :  { %v4026_v41 = vpack.c.bf16 %v1973_v39, %v1969_v38  ;;  %v4154_v45 = vpack.c.bf16 %v1975_v44, %v1971_v43  ;;  %v2003_v39 = vld [vmem:[#allocation9 + $0x3d0] sm:$0xff]  ;;  %v2010_v43 = vld [vmem:[#allocation9 + $0x408] sm:$0xff] }
 0x29f   :  { %v2014_v44 = vld [vmem:[#allocation9 + $0x428] sm:$0xff] }
 0x2a0   :  { %4011 = vmatpush1.bf16.msra.mxu0 %v4010_v47  ;;  %4139 = vmatpush1.bf16.msra.mxu1 %v4138_v48  ;;  %v1982_v47 = vld [vmem:[#allocation9 + $0x328] sm:$0xff]  ;;  %v1980_v48 = vld [vmem:[#allocation9 + $0x318] sm:$0xff] }
 0x2a1   :  { %4013 = vmatprep.subr.bf16.mxu0 %v4012_v56  ;;  %4141 = vmatprep.subr.bf16.mxu1 %v4140_v60  ;;  %v4028_v53 = vpack.c.bf16 %v1982_v47, %v1978_v46  ;;  %v1981_v56 = vld [vmem:[#allocation9 + $0x320] sm:$0xff]  ;;  %v4156_v57 = vpack.c.bf16 %v1984_v54, %v1980_v48  ;;  %v1983_v60 = vld [vmem:[#allocation9 + $0x330] sm:$0xff]  ;;  %v4044_v46 = vpack.c.bf16 %v2014_v44, %v2010_v43  ;;  %v2016_v47 = vld [vmem:[#allocation9 + $0x438] sm:$0xff] }
 0x2a2   :  { %v4030_v58 = vpack.c.bf16 %v1981_v56, %v1977_v55  ;;  %v2030_v43 = vld [vmem:[#allocation9 + $0x4a8] sm:$0xff]  ;;  %v2028_v44 = vld [vmem:[#allocation9 + $0x498] sm:$0xff] }
 0x2a4   :  { %4015 = vmatpush1.bf16.msra.mxu0 %v4014_v61  ;;  %4143 = vmatpush1.bf16.msra.mxu1 %v4142_v1  ;;  %v4158_v61 = vpack.c.bf16 %v1983_v60, %v1979_v59  ;;  %v1988_v1 = vld [vmem:[#allocation9 + $0x358] sm:$0xff] }
 0x2a5   :  { %4017 = vmatprep.subr.bf16.mxu0 %v4016_v7  ;;  %4145 = vmatprep.subr.bf16.mxu1 %v4144_v16  ;;  %v1989_v7 = vld [vmem:[#allocation9 + $0x360] sm:$0xff]  ;;  %v4160_v8 = vpack.c.bf16 %v1992_v5, %v1988_v1  ;;  %v1991_v16 = vld [vmem:[#allocation9 + $0x370] sm:$0xff] }
 0x2a6   :  { %v4034_v9 = vpack.c.bf16 %v1989_v7, %v1985_v6 }
 0x2a8   :  { %4019 = vmatpush1.bf16.msra.mxu0 %v4018_v17  ;;  %4147 = vmatpush1.bf16.msra.mxu1 %v4146_v19  ;;  %v4162_v17 = vpack.c.bf16 %v1991_v16, %v1987_v10  ;;  %v1996_v19 = vld [vmem:[#allocation9 + $0x398] sm:$0xff] }
 0x2a9   :  { %4021 = vmatprep.subr.bf16.mxu0 %v4020_v24  ;;  %4149 = vmatprep.subr.bf16.mxu1 %v4148_v28  ;;  %v1997_v24 = vld [vmem:[#allocation9 + $0x3a0] sm:$0xff]  ;;  %v4164_v25 = vpack.c.bf16 %v2000_v22, %v1996_v19  ;;  %v1999_v28 = vld [vmem:[#allocation9 + $0x3b0] sm:$0xff] }
 0x2aa   :  { %v4038_v26 = vpack.c.bf16 %v1997_v24, %v1993_v23  ;;  %v2009_v19 = vld [vmem:[#allocation9 + $0x400] sm:$0xff]  ;;  %v2011_v22 = vld [vmem:[#allocation9 + $0x410] sm:$0xff] }
 0x2ab   :  { %v2015_v23 = vld [vmem:[#allocation9 + $0x430] sm:$0xff] }
 0x2ac   :  { %4023 = vmatpush1.bf16.msra.mxu0 %v4022_v29  ;;  %4151 = vmatpush1.bf16.msra.mxu1 %v4150_v32  ;;  %v4166_v29 = vpack.c.bf16 %v1999_v28, %v1995_v27  ;;  %v2004_v32 = vld [vmem:[#allocation9 + $0x3d8] sm:$0xff]  ;;  %v2022_v27 = vld [vmem:[#allocation9 + $0x468] sm:$0xff] }
 0x2ad   :  { %4025 = vmatprep.subr.bf16.mxu0 %v4024_v37  ;;  %4153 = vmatprep.subr.bf16.mxu1 %v4152_v40  ;;  %v2005_v37 = vld [vmem:[#allocation9 + $0x3e0] sm:$0xff]  ;;  %v4168_v4 = vpack.c.bf16 %v2008_v34, %v2004_v32  ;;  %v2007_v40 = vld [vmem:[#allocation9 + $0x3f0] sm:$0xff]  ;;  %v2020_v28 = vld [vmem:[#allocation9 + $0x458] sm:$0xff] }
 0x2ae   :  { %v4042_v38 = vpack.c.bf16 %v2005_v37, %v2001_v35  ;;  %v2017_v34 = vld [vmem:[#allocation9 + $0x440] sm:$0xff] }
 0x2af   :  { %v2021_v35 = vld [vmem:[#allocation9 + $0x460] sm:$0xff] }
 0x2b0   :  { %4027 = vmatpush1.bf16.msra.mxu0 %v4026_v41  ;;  %4155 = vmatpush1.bf16.msra.mxu1 %v4154_v45  ;;  %v4170_v41 = vpack.c.bf16 %v2007_v40, %v2003_v39  ;;  %v2012_v45 = vld [vmem:[#allocation9 + $0x418] sm:$0xff]  ;;  %v2026_v39 = vld [vmem:[#allocation9 + $0x488] sm:$0xff] }
 0x2b1   :  { %4029 = vmatprep.subr.bf16.mxu0 %v4028_v53  ;;  %4157 = vmatprep.subr.bf16.mxu1 %v4156_v57  ;;  %v4172_v48 = vpack.c.bf16 %v2016_v47, %v2012_v45  ;;  %v4695_v53 = vld [vmem:[%s4800_s7] sm:$0xf]  ;;  %v2032_v45 = vld [vmem:[#allocation9 + $0x4b8] sm:$0xff]  ;;  %v4050_v47 = vpack.c.bf16 %v2021_v35, %v2017_v34 }
 0x2b2   :  { %v1526_v54 = vrot.slane %v4695_v53, %v4620_v12  ;;  %v1530_v55 = vrot.slane %v4695_v53, %v4628_v14  ;;  %v1538_v56 = vrot.slane %v4695_v53, %v4631_v15  ;;  %v2049_v35 = vld [vmem:[#allocation9 + $0x540] sm:$0xff] }
 0x2b4   :  { %4031 = vmatpush1.bf16.msra.mxu0 %v4030_v58  ;;  %4159 = vmatpush1.bf16.msra.mxu1 %v4158_v61 }
 0x2b5   :  { %4033 = vmatprep.subr.bf16.mxu0 %v4032_v2  ;;  %4161 = vmatprep.subr.bf16.mxu1 %v4160_v8 }
 0x2b8   :  { %4035 = vmatpush1.bf16.msra.mxu0 %v4034_v9  ;;  %4163 = vmatpush1.bf16.msra.mxu1 %v4162_v17 }
 0x2b9   :  { %4037 = vmatprep.subr.bf16.mxu0 %v4036_v20  ;;  %4165 = vmatprep.subr.bf16.mxu1 %v4164_v25  ;;  %v2013_v20 = vld [vmem:[#allocation9 + $0x420] sm:$0xff]  ;;  %v2018_v25 = vld [vmem:[#allocation9 + $0x448] sm:$0xff] }
 0x2ba   :  { %v4046_v32 = vpack.c.bf16 %v2013_v20, %v2009_v19  ;;  %v4048_v40 = vpack.c.bf16 %v2022_v27, %v2018_v25  ;;  %v2048_v19 = vld [vmem:[#allocation9 + $0x538] sm:$0xff]  ;;  %v2043_v27 = vld [vmem:[#allocation9 + $0x510] sm:$0xff] }
 0x2bc   :  { %4039 = vmatpush1.bf16.msra.mxu0 %v4038_v26  ;;  %4167 = vmatpush1.bf16.msra.mxu1 %v4166_v29  ;;  %v2024_v29 = vld [vmem:[#allocation9 + $0x478] sm:$0xff] }
 0x2bd   :  { %4041 = vmatprep.subr.bf16.mxu0 %v4040_v33  ;;  %4169 = vmatprep.subr.bf16.mxu1 %v4168_v4  ;;  %v4174_v33 = vpack.c.bf16 %v2015_v23, %v2011_v22  ;;  %v2019_v4 = vld [vmem:[#allocation9 + $0x450] sm:$0xff]  ;;  %v2041_v23 = vld [vmem:[#allocation9 + $0x500] sm:$0xff] }
 0x2c0   :  { %4043 = vmatpush1.bf16.msra.mxu0 %v4042_v38  ;;  %4171 = vmatpush1.bf16.msra.mxu1 %v4170_v41  ;;  %v2023_v38 = vld [vmem:[#allocation9 + $0x470] sm:$0xff]  ;;  %v4176_v41 = vpack.c.bf16 %v2024_v29, %v2020_v28  ;;  %v2050_v29 = vld [vmem:[#allocation9 + $0x548] sm:$0xff] }
 0x2c1   :  { %4045 = vmatprep.subr.bf16.mxu0 %v4044_v46  ;;  %4173 = vmatprep.subr.bf16.mxu1 %v4172_v48  ;;  %v4178_v48 = vpack.c.bf16 %v2023_v38, %v2019_v4  ;;  %v2047_v28 = vld [vmem:[#allocation9 + $0x530] sm:$0xff] }
 0x2c2   :  { %v4190_v34 = vpack.c.bf16 %v2047_v28, %v2043_v27  ;;  %v2075_v27 = vld [vmem:[#allocation9 + $0x610] sm:$0xff] }
 0x2c3   :  { %v2079_v28 = vld [vmem:[#allocation9 + $0x630] sm:$0xff] }
 0x2d6   :  { %v4684_v49 = vpop.f32.mrb[2].mxu0  ;;  %v4686_v13 = vpop.f32.mrb[2].mxu1 }
 0x2d7   :  { %v4688_v51 = vpop.f32.mrb[3].mxu0  ;;  %v4690_v52 = vpop.f32.mrb[3].mxu1 }
 0x356   :  { %v1702_v57 = vpop.f32.mrb[4].mxu0  ;;  %v4703_v58 = vpop.f32.mrb[4].mxu1 }
 0x357   :  { %v4244_v59 = vadd.f32 %v1702_v57, %v1526_v54  ;;  %v1704_v60 = vpop.f32.mrb[5].mxu0  ;;  %v1846_v61 = vpop.f32.mrb[5].mxu1  ;;  %v2025_v54 = vld [vmem:[#allocation9 + $0x480] sm:$0xff]  ;;  %v4180_v57 = vpack.c.bf16 %v2032_v45, %v2028_v44  ;;  %v2060_v44 = vld [vmem:[#allocation9 + $0x598] sm:$0xff] }
 0x358   :  { %v4245_v63 = vadd.f32 %v1704_v60, %v1530_v55  ;;  %v4247_v0 = vadd.f32 %v1846_v61, %v1538_v56  ;;  %v2029_v55 = vld [vmem:[#allocation9 + $0x4a0] sm:$0xff]  ;;  %v4052_v56 = vpack.c.bf16 %v2030_v43, %v2026_v39  ;;  %v2031_v60 = vld [vmem:[#allocation9 + $0x4b0] sm:$0xff]  ;;  %v2034_v61 = vld [vmem:[#allocation9 + $0x4c8] sm:$0xff] }
 0x359   :  { %v3196_v1 = vmul.f32 -1.702, %v4244_v59  ;;  %v2051_v39 = vld [vmem:[#allocation9 + $0x550] sm:$0xff]  ;;  %v2062_v43 = vld [vmem:[#allocation9 + $0x5a8] sm:$0xff]  ;;  %v2064_v45 = vld [vmem:[#allocation9 + $0x5b8] sm:$0xff] }
 0x35a   :  { %v3197_v2 = vmul.f32 -1.702, %v4245_v63  ;;  %v3199_v5 = vmul.f32 -1.702, %v4247_v0 }
 0x35b   :  { %v1857_v6 = vmul.f32 1.442695, %v3196_v1  ;;  %v2036_v1 = vld [vmem:[#allocation9 + $0x4d8] sm:$0xff] }
 0x35c   :  { %v1859_v7 = vmul.f32 1.442695, %v3197_v2  ;;  %v1863_v8 = vmul.f32 1.442695, %v3199_v5  ;;  %v4054_v2 = vpack.c.bf16 %v2029_v55, %v2025_v54  ;;  %v2057_v54 = vld [vmem:[#allocation9 + $0x580] sm:$0xff] }
 0x35d   :  { %4299 = vpow2.f32 %v1857_v6  ;;  %v2033_v6 = vld [vmem:[#allocation9 + $0x4c0] sm:$0xff] }
 0x35e   :  { %4301 = vpow2.f32 %v1859_v7  ;;  %v2037_v7 = vld [vmem:[#allocation9 + $0x4e0] sm:$0xff] }
 0x35f   :  { %4303 = vpow2.f32 %v1863_v8  ;;  %v4058_v20 = vpack.c.bf16 %v2037_v7, %v2033_v6  ;;  %v2061_v55 = vld [vmem:[#allocation9 + $0x5a0] sm:$0xff] }
 0x360   :  { %v2065_v6 = vld [vmem:[#allocation9 + $0x5c0] sm:$0xff] }
 0x361   :  { %v2069_v7 = vld [vmem:[#allocation9 + $0x5e0] sm:$0xff] }
 0x367   :  { %v4300_v9 = vpop.eup %4299 }
 0x368   :  { %v1865_v10 = vadd.f32 1.0, %v4300_v9  ;;  %v4302_v16 = vpop.eup %4301 }
 0x369   :  { %v4304_v17 = vpop.eup %4303  ;;  %v1866_v18 = vadd.f32 1.0, %v4302_v16  ;;  %v2039_v16 = vld [vmem:[#allocation9 + $0x4f0] sm:$0xff] }
 0x36a   :  { %4305 = vrcp.f32 %v1865_v10  ;;  %v1868_v11 = vadd.f32 1.0, %v4304_v17  ;;  %v2035_v10 = vld [vmem:[#allocation9 + $0x4d0] sm:$0xff]  ;;  %v2042_v17 = vld [vmem:[#allocation9 + $0x508] sm:$0xff] }
 0x36b   :  { %4307 = vrcp.f32 %v1866_v18  ;;  %v2046_v18 = vld [vmem:[#allocation9 + $0x528] sm:$0xff]  ;;  %v4186_v22 = vpack.c.bf16 %v2039_v16, %v2035_v10  ;;  %v2067_v10 = vld [vmem:[#allocation9 + $0x5d0] sm:$0xff] }
 0x36c   :  { %4309 = vrcp.f32 %v1868_v11  ;;  %v2044_v11 = vld [vmem:[#allocation9 + $0x518] sm:$0xff]  ;;  %v4060_v25 = vpack.c.bf16 %v2046_v18, %v2042_v17  ;;  %v2071_v16 = vld [vmem:[#allocation9 + $0x5f0] sm:$0xff]  ;;  %v2074_v17 = vld [vmem:[#allocation9 + $0x608] sm:$0xff] }
 0x36d   :  { %v2078_v18 = vld [vmem:[#allocation9 + $0x628] sm:$0xff] }
 0x374   :  { %v4306_v24 = vpop.eup %4305 }
 0x375   :  { %v4308_v26 = vpop.eup %4307  ;;  %v1877_v37 = vmul.f32 %v4306_v24, %v4244_v59  ;;  %v2027_v59 = vld [vmem:[#allocation9 + $0x490] sm:$0xff]  ;;  %v2045_v24 = vld [vmem:[#allocation9 + $0x520] sm:$0xff] }
 0x376   :  { %v4310_v30 = vpop.eup %4309  ;;  %v1878_v31 = vmul.f32 %v4308_v26, %v4245_v63  ;;  %v2038_v63 = vld [vmem:[#allocation9 + $0x4e8] sm:$0xff]  ;;  %v4182_v5 = vpack.c.bf16 %v2031_v60, %v2027_v59  ;;  %v4188_v26 = vpack.c.bf16 %v2048_v19, %v2044_v11  ;;  %v2059_v59 = vld [vmem:[#allocation9 + $0x590] sm:$0xff]  ;;  %v2076_v11 = vld [vmem:[#allocation9 + $0x618] sm:$0xff] }
 0x377   :  { %v1880_v46 = vmul.f32 %v4310_v30, %v4247_v0  ;;  %v2040_v0 = vld [vmem:[#allocation9 + $0x4f8] sm:$0xff]  ;;  %v4056_v8 = vpack.c.bf16 %v2038_v63, %v2034_v61  ;;  %v2054_v30 = vld [vmem:[#allocation9 + $0x568] sm:$0xff]  ;;  %v2063_v60 = vld [vmem:[#allocation9 + $0x5b0] sm:$0xff] }
 0x378   :  { %2223 = vmatprep.mubr.f32.mxu0 %v1878_v31  ;;  %2365 = vmatprep.mubr.f32.mxu1 %v1878_v31  ;;  %v4184_v9 = vpack.c.bf16 %v2040_v0, %v2036_v1  ;;  %v2052_v31 = vld [vmem:[#allocation9 + $0x558] sm:$0xff]  ;;  %v4064_v4 = vpack.c.bf16 %v2054_v30, %v2050_v29  ;;  %v2066_v61 = vld [vmem:[#allocation9 + $0x5c8] sm:$0xff] }
 0x379   :  { %2224 = vmatmul.mubr.f32.vlgmr.msra.gmra.mrb[6].mxu0 %v1877_v37  ;;  %2366 = vmatmul.mubr.f32.vlgmr.msra.gmra.mrb[6].mxu1 %v1877_v37  ;;  %v2053_v37 = vld [vmem:[#allocation9 + $0x560] sm:$0xff]  ;;  %v2070_v63 = vld [vmem:[#allocation9 + $0x5e8] sm:$0xff]  ;;  %v2068_v1 = vld [vmem:[#allocation9 + $0x5d8] sm:$0xff] }
 0x37a   :  { %4047 = vmatpush1.bf16.msra.mxu0 %v4046_v32  ;;  %4175 = vmatpush1.bf16.msra.mxu1 %v4174_v33  ;;  %v2056_v32 = vld [vmem:[#allocation9 + $0x578] sm:$0xff]  ;;  %v4062_v33 = vpack.c.bf16 %v2045_v24, %v2041_v23  ;;  %v2073_v23 = vld [vmem:[#allocation9 + $0x600] sm:$0xff]  ;;  %v2082_v29 = vld [vmem:[#allocation9 + $0x648] sm:$0xff] }
 0x37b   :  { %2294 = vmatprep.mubr.f32.mxu0 %v1880_v46  ;;  %2436 = vmatprep.mubr.f32.mxu1 %v1880_v46  ;;  %v4192_v38 = vpack.c.bf16 %v2056_v32, %v2052_v31  ;;  %v1534_v46 = vrot.slane %v4695_v53, %v4642_v42  ;;  %v2072_v0 = vld [vmem:[#allocation9 + $0x5f8] sm:$0xff]  ;;  %v4070_v53 = vpack.c.bf16 %v2061_v55, %v2057_v54  ;;  %v2077_v24 = vld [vmem:[#allocation9 + $0x620] sm:$0xff]  ;;  %v2086_v30 = vld [vmem:[#allocation9 + $0x668] sm:$0xff] }
 0x37c   :  { %4049 = vmatprep.subr.bf16.mxu0 %v4048_v40  ;;  %4177 = vmatprep.subr.bf16.mxu1 %v4176_v41  ;;  %v2055_v40 = vld [vmem:[#allocation9 + $0x570] sm:$0xff]  ;;  %v2058_v41 = vld [vmem:[#allocation9 + $0x588] sm:$0xff]  ;;  %v2080_v19 = vld [vmem:[#allocation9 + $0x638] sm:$0xff] }
 0x37d   :  { %v2084_v31 = vld [vmem:[#allocation9 + $0x658] sm:$0xff]  ;;  %v2089_v54 = vld [vmem:[#allocation9 + $0x680] sm:$0xff] }
 0x37e   :  { %4051 = vmatpush1.bf16.msra.mxu0 %v4050_v47  ;;  %4179 = vmatpush1.bf16.msra.mxu1 %v4178_v48  ;;  %v4066_v47 = vpack.c.bf16 %v2053_v37, %v2049_v35  ;;  %v4194_v48 = vpack.c.bf16 %v2055_v40, %v2051_v39  ;;  %v2088_v32 = vld [vmem:[#allocation9 + $0x678] sm:$0xff]  ;;  %v4206_v35 = vpack.c.bf16 %v2079_v28, %v2075_v27  ;;  %v2081_v37 = vld [vmem:[#allocation9 + $0x640] sm:$0xff]  ;;  %v2083_v40 = vld [vmem:[#allocation9 + $0x650] sm:$0xff] }
 0x37f   :  { %4053 = vmatprep.subr.bf16.mxu0 %v4052_v56  ;;  %4181 = vmatprep.subr.bf16.mxu1 %v4180_v57  ;;  %v4068_v56 = vpack.c.bf16 %v2062_v43, %v2058_v41  ;;  %v4196_v57 = vpack.c.bf16 %v2064_v45, %v2060_v44  ;;  %v4208_v39 = vpack.c.bf16 %v2088_v32, %v2084_v31  ;;  %v2087_v41 = vld [vmem:[#allocation9 + $0x670] sm:$0xff]  ;;  %v2090_v43 = vld [vmem:[#allocation9 + $0x688] sm:$0xff]  ;;  %v2092_v45 = vld [vmem:[#allocation9 + $0x698] sm:$0xff] }
 0x380   :  { %v2094_v44 = vld [vmem:[#allocation9 + $0x6a8] sm:$0xff]  ;;  %v2093_v55 = vld [vmem:[#allocation9 + $0x6a0] sm:$0xff]  ;;  %v2107_v27 = vld [vmem:[#allocation9 + $0x710] sm:$0xff] }
 0x381   :  { %v2111_v28 = vld [vmem:[#allocation9 + $0x730] sm:$0xff]  ;;  %v2116_v31 = vld [vmem:[#allocation9 + $0x758] sm:$0xff] }
 0x382   :  { %4055 = vmatpush1.bf16.msra.mxu0 %v4054_v2  ;;  %4183 = vmatpush1.bf16.msra.mxu1 %v4182_v5  ;;  %v4708_v2 = vadd.f32 %v4703_v58, %v1534_v46  ;;  %v4198_v5 = vpack.c.bf16 %v2063_v60, %v2059_v59  ;;  %v4074_v58 = vpack.c.bf16 %v2069_v7, %v2065_v6  ;;  %v2096_v46 = vld [vmem:[#allocation9 + $0x6b8] sm:$0xff]  ;;  %v2091_v59 = vld [vmem:[#allocation9 + $0x690] sm:$0xff]  ;;  %v2097_v6 = vld [vmem:[#allocation9 + $0x6c0] sm:$0xff] }
 0x383   :  { %4057 = vmatprep.subr.bf16.mxu0 %v4056_v8  ;;  %4185 = vmatprep.subr.bf16.mxu1 %v4184_v9  ;;  %v4072_v8 = vpack.c.bf16 %v2070_v63, %v2066_v61  ;;  %v4200_v9 = vpack.c.bf16 %v2072_v0, %v2068_v1  ;;  %v2095_v60 = vld [vmem:[#allocation9 + $0x6b0] sm:$0xff]  ;;  %v2098_v61 = vld [vmem:[#allocation9 + $0x6c8] sm:$0xff]  ;;  %v2100_v1 = vld [vmem:[#allocation9 + $0x6d8] sm:$0xff] }
 0x384   :  { %v2102_v63 = vld [vmem:[#allocation9 + $0x6e8] sm:$0xff]  ;;  %v2104_v0 = vld [vmem:[#allocation9 + $0x6f8] sm:$0xff]  ;;  %v2101_v7 = vld [vmem:[#allocation9 + $0x6e0] sm:$0xff] }
 0x385   :  { %v2120_v32 = vld [vmem:[#allocation9 + $0x778] sm:$0xff] }
 0x386   :  { %4059 = vmatpush1.bf16.msra.mxu0 %v4058_v20  ;;  %4187 = vmatpush1.bf16.msra.mxu1 %v4186_v22  ;;  %v3198_v20 = vmul.f32 -1.702, %v4708_v2  ;;  %v4202_v22 = vpack.c.bf16 %v2071_v16, %v2067_v10  ;;  %v2099_v10 = vld [vmem:[#allocation9 + $0x6d0] sm:$0xff] }
 0x387   :  { %4061 = vmatprep.subr.bf16.mxu0 %v4060_v25  ;;  %4189 = vmatprep.subr.bf16.mxu1 %v4188_v26  ;;  %v4076_v25 = vpack.c.bf16 %v2078_v18, %v2074_v17  ;;  %v4204_v26 = vpack.c.bf16 %v2080_v19, %v2076_v11  ;;  %v2103_v16 = vld [vmem:[#allocation9 + $0x6f0] sm:$0xff]  ;;  %v2106_v17 = vld [vmem:[#allocation9 + $0x708] sm:$0xff]  ;;  %v2108_v11 = vld [vmem:[#allocation9 + $0x718] sm:$0xff] }
 0x388   :  { %v2110_v18 = vld [vmem:[#allocation9 + $0x728] sm:$0xff]  ;;  %v2112_v19 = vld [vmem:[#allocation9 + $0x738] sm:$0xff] }
 0x38a   :  { %4063 = vmatpush1.bf16.msra.mxu0 %v4062_v33  ;;  %4191 = vmatpush1.bf16.msra.mxu1 %v4190_v34  ;;  %v1861_v33 = vmul.f32 1.442695, %v3198_v20  ;;  %v4078_v34 = vpack.c.bf16 %v2077_v24, %v2073_v23  ;;  %v4090_v20 = vpack.c.bf16 %v2101_v7, %v2097_v6  ;;  %v2109_v23 = vld [vmem:[#allocation9 + $0x720] sm:$0xff] }
 0x38b   :  { %4065 = vmatprep.subr.bf16.mxu0 %v4064_v4  ;;  %4193 = vmatprep.subr.bf16.mxu1 %v4192_v38  ;;  %v2085_v4 = vld [vmem:[#allocation9 + $0x660] sm:$0xff]  ;;  %v4080_v38 = vpack.c.bf16 %v2086_v30, %v2082_v29  ;;  %v2114_v29 = vld [vmem:[#allocation9 + $0x748] sm:$0xff] }
 0x38c   :  { %4311 = vpow2.f32 %v1861_v33  ;;  %v2118_v30 = vld [vmem:[#allocation9 + $0x768] sm:$0xff]  ;;  %v2129_v7 = vld [vmem:[#allocation9 + $0x7c0] sm:$0xff] }
 0x38e   :  { %4067 = vmatpush1.bf16.msra.mxu0 %v4066_v47  ;;  %4195 = vmatpush1.bf16.msra.mxu1 %v4194_v48  ;;  %v4082_v47 = vpack.c.bf16 %v2085_v4, %v2081_v37  ;;  %v4210_v48 = vpack.c.bf16 %v2087_v41, %v2083_v40  ;;  %v2113_v37 = vld [vmem:[#allocation9 + $0x740] sm:$0xff]  ;;  %v2115_v40 = vld [vmem:[#allocation9 + $0x750] sm:$0xff] }
 0x38f   :  { %4069 = vmatprep.subr.bf16.mxu0 %v4068_v56  ;;  %4197 = vmatprep.subr.bf16.mxu1 %v4196_v57  ;;  %v4084_v56 = vpack.c.bf16 %v2094_v44, %v2090_v43  ;;  %v4212_v57 = vpack.c.bf16 %v2096_v46, %v2092_v45  ;;  %v2117_v4 = vld [vmem:[#allocation9 + $0x760] sm:$0xff]  ;;  %v2119_v41 = vld [vmem:[#allocation9 + $0x770] sm:$0xff]  ;;  %v2122_v43 = vld [vmem:[#allocation9 + $0x788] sm:$0xff] }
 0x390   :  { %v2126_v44 = vld [vmem:[#allocation9 + $0x7a8] sm:$0xff]  ;;  %v2124_v45 = vld [vmem:[#allocation9 + $0x798] sm:$0xff] }
 0x391   :  { %v2128_v46 = vld [vmem:[#allocation9 + $0x7b8] sm:$0xff] }
 0x392   :  { %4071 = vmatpush1.bf16.msra.mxu0 %v4070_v53  ;;  %4199 = vmatpush1.bf16.msra.mxu1 %v4198_v5  ;;  %v4086_v53 = vpack.c.bf16 %v2093_v55, %v2089_v54  ;;  %v4214_v5 = vpack.c.bf16 %v2095_v60, %v2091_v59  ;;  %v2121_v54 = vld [vmem:[#allocation9 + $0x780] sm:$0xff]  ;;  %v2123_v59 = vld [vmem:[#allocation9 + $0x790] sm:$0xff] }
 0x393   :  { %4073 = vmatprep.subr.bf16.mxu0 %v4072_v8  ;;  %4201 = vmatprep.subr.bf16.mxu1 %v4200_v9  ;;  %v4088_v8 = vpack.c.bf16 %v2102_v63, %v2098_v61  ;;  %v4216_v9 = vpack.c.bf16 %v2104_v0, %v2100_v1  ;;  %v2125_v55 = vld [vmem:[#allocation9 + $0x7a0] sm:$0xff]  ;;  %v2127_v60 = vld [vmem:[#allocation9 + $0x7b0] sm:$0xff]  ;;  %v2130_v61 = vld [vmem:[#allocation9 + $0x7c8] sm:$0xff] }
 0x394   :  { %v2134_v63 = vld [vmem:[#allocation9 + $0x7e8] sm:$0xff]  ;;  %v2132_v1 = vld [vmem:[#allocation9 + $0x7d8] sm:$0xff]  ;;  %v4230_v6 = vpack.c.bf16 %v2127_v60, %v2123_v59 }
 0x395   :  { %v2136_v0 = vld [vmem:[#allocation9 + $0x7f8] sm:$0xff] }
 0x396   :  { %4075 = vmatpush1.bf16.msra.mxu0 %v4074_v58  ;;  %4203 = vmatpush1.bf16.msra.mxu1 %v4202_v22  ;;  %v4218_v58 = vpack.c.bf16 %v2103_v16, %v2099_v10  ;;  %v2105_v22 = vld [vmem:[#allocation9 + $0x700] sm:$0xff]  ;;  %v4312_v24 = vpop.eup %4311  ;;  %v2131_v16 = vld [vmem:[#allocation9 + $0x7d0] sm:$0xff] }
 0x397   :  { %4077 = vmatprep.subr.bf16.mxu0 %v4076_v25  ;;  %4205 = vmatprep.subr.bf16.mxu1 %v4204_v26  ;;  %v4092_v25 = vpack.c.bf16 %v2110_v18, %v2106_v17  ;;  %v4220_v26 = vpack.c.bf16 %v2112_v19, %v2108_v11  ;;  %v1867_v33 = vadd.f32 1.0, %v4312_v24  ;;  %v2133_v10 = vld [vmem:[#allocation9 + $0x7e0] sm:$0xff]  ;;  %v2135_v17 = vld [vmem:[#allocation9 + $0x7f0] sm:$0xff] }
 0x398   :  { %v4106_v11 = vpack.c.bf16 %v2133_v10, %v2129_v7  ;;  %v4234_v19 = vpack.c.bf16 %v2135_v17, %v2131_v16  ;;  %v2606_v24 = vld [vmem:[%s4803_s10] sm:$0xff] }
 0x399   :  { %4313 = vrcp.f32 %v1867_v33  ;;  %v4321_v17 = vld [vmem:[%s4793_s0] sm:$0xff] }
 0x39a   :  { %4079 = vmatpush1.bf16.msra.mxu0 %v4078_v34  ;;  %4207 = vmatpush1.bf16.msra.mxu1 %v4206_v35  ;;  %v4094_v34 = vpack.c.bf16 %v2109_v23, %v2105_v22  ;;  %v4222_v35 = vpack.c.bf16 %v2111_v28, %v2107_v27  ;;  %v4448_v23 = vmov 0.0   ;;  %v2137_v27 = vld [vmem:[%s4802_s9] sm:$0xf] }
 0x39b   :  { %4081 = vmatprep.subr.bf16.mxu0 %v4080_v38  ;;  %4209 = vmatprep.subr.bf16.mxu1 %v4208_v39  ;;  %v4096_v38 = vpack.c.bf16 %v2118_v30, %v2114_v29  ;;  %v4224_v39 = vpack.c.bf16 %v2120_v32, %v2116_v31  ;;  %v2142_v28 = vrot.slane %v2137_v27, %v4620_v12 }
 0x39c   :  { %v2150_v29 = vrot.slane %v2137_v27, %v4642_v42  ;;  %v2146_v30 = vrot.slane %v2137_v27, %v4628_v14  ;;  %v2154_v31 = vrot.slane %v2137_v27, %v4631_v15 }
 0x39e   :  { %4083 = vmatpush1.bf16.msra.mxu0 %v4082_v47  ;;  %4211 = vmatpush1.bf16.msra.mxu1 %v4210_v48  ;;  %v4098_v47 = vpack.c.bf16 %v2117_v4, %v2113_v37  ;;  %v4226_v48 = vpack.c.bf16 %v2119_v41, %v2115_v40 }
 0x39f   :  { %4085 = vmatprep.subr.bf16.mxu0 %v4084_v56  ;;  %4213 = vmatprep.subr.bf16.mxu1 %v4212_v57  ;;  %v4100_v56 = vpack.c.bf16 %v2126_v44, %v2122_v43  ;;  %v4228_v57 = vpack.c.bf16 %v2128_v46, %v2124_v45  ;;  %v4320_v44 = vld [vmem:[%s4793_s0 + $0x8] sm:$0xff] }
 0x3a2   :  { %4087 = vmatpush1.bf16.msra.mxu0 %v4086_v53  ;;  %4215 = vmatpush1.bf16.msra.mxu1 %v4214_v5  ;;  %v959_v53 = vld [vmem:[%s4798_s5] sm:$0xf]  ;;  %v4102_v5 = vpack.c.bf16 %v2125_v55, %v2121_v54 }
 0x3a3   :  { %4089 = vmatprep.subr.bf16.mxu0 %v4088_v8  ;;  %4217 = vmatprep.subr.bf16.mxu1 %v4216_v9  ;;  %v4104_v8 = vpack.c.bf16 %v2134_v63, %v2130_v61  ;;  %v4232_v9 = vpack.c.bf16 %v2136_v0, %v2132_v1  ;;  %v968_v18 = vrot.slane %v959_v53, %v4628_v14 }
 0x3a4   :  { %v972_v32 = vrot.slane %v959_v53, %v4642_v42 }
 0x3a6   :  { %4091 = vmatpush1.bf16.msra.mxu0 %v4090_v20  ;;  %4219 = vmatpush1.bf16.msra.mxu1 %v4218_v58  ;;  %v4314_v20 = vpop.eup %4313  ;;  %v4241_v58 = vadd.f32 %v4688_v51, %v968_v18  ;;  %v2872_v18 = vld [vmem:[%s4804_s11] sm:$0x3] }
 0x3a7   :  { %4093 = vmatprep.subr.bf16.mxu0 %v4092_v25  ;;  %4221 = vmatprep.subr.bf16.mxu1 %v4220_v26  ;;  %v1879_v22 = vmul.f32 %v4314_v20, %v4708_v2  ;;  %v964_v25 = vrot.slane %v959_v53, %v4620_v12  ;;  %v976_v26 = vrot.slane %v959_v53, %v4631_v15 }
 0x3a9   :  { %v4240_v51 = vadd.f32 %v4684_v49, %v964_v25  ;;  %v4243_v2 = vadd.f32 %v4690_v52, %v976_v26 }
 0x3aa   :  { %4095 = vmatpush1.bf16.msra.mxu0 %v4094_v34  ;;  %4223 = vmatpush1.bf16.msra.mxu1 %v4222_v35 }
 0x3ab   :  { %4097 = vmatprep.subr.bf16.mxu0 %v4096_v38  ;;  %4225 = vmatprep.subr.bf16.mxu1 %v4224_v39  ;;  %v4242_v39 = vadd.f32 %v4686_v13, %v972_v32  ;;  %v4319_v13 = vld [vmem:[%s4793_s0 + $0x18] sm:$0xff] }
 0x3ae   :  { %4099 = vmatpush1.bf16.msra.mxu0 %v4098_v47  ;;  %4227 = vmatpush1.bf16.msra.mxu1 %v4226_v48 }
 0x3af   :  { %4101 = vmatprep.subr.bf16.mxu0 %v4100_v56  ;;  %4229 = vmatprep.subr.bf16.mxu1 %v4228_v57 }
 0x3b2   :  { %4103 = vmatpush1.bf16.msra.mxu0 %v4102_v5  ;;  %4231 = vmatpush1.bf16.msra.mxu1 %v4230_v6 }
 0x3b3   :  { %4105 = vmatprep.subr.bf16.mxu0 %v4104_v8  ;;  %4233 = vmatprep.subr.bf16.mxu1 %v4232_v9  ;;  %v2702_v9 = vld [vmem:[%s4804_s11] sm:$0x3] }
 0x3b6   :  { %4107 = vmatpush1.bf16.msra.mxu0 %v4106_v11  ;;  %4235 = vmatpush1.bf16.msra.mxu1 %v4234_v19  ;;  %v4322_v11 = vld [vmem:[%s4793_s0 + $0x10] sm:$0xff] }
 0x3b7   :  { %2466 = vmatprep.subr.mxu0 %v4241_v58  ;;  %3207 = vmatprep.subr.mxu1 %v4448_v23 }
 0x3b9   :  { %2295 = vmatmul.mubr.f32.vlgmr.msra.gmra.mrb[6].mxu0 %v1879_v22  ;;  %2437 = vmatmul.mubr.f32.vlgmr.msra.gmra.mrb[6].mxu1 %v1879_v22 }
 0x3ba   :  { %3208 = vmatpush3.msra.mxu1 %v2606_v24  ;;  %3209 = vmatprep.mubr.msk.f32.mxu1 %vm4449_vm0, %v4448_v23 }
 0x3bb   :  { %2707 = vmatprep.subr.mxu1 %v4241_v58 }
 0x3bf   :  { %2467 = vmatpush1.xpose.msra.mxu0 %v4240_v51 }
 0x3c0   :  { %2536 = vmatprep.subr.mxu0 %v4243_v2 }
 0x48c   :  { %v2296_v33 = vpop.f32.mrb[6].mxu0  ;;  %v2438_v49 = vpop.f32.mrb[6].mxu1 }
 0x48d   :  { %v4248_v34 = vadd.f32 %v2296_v33, %v2142_v28  ;;  %v4250_v52 = vadd.f32 %v2438_v49, %v2150_v29  ;;  %v2298_v35 = vpop.f32.mrb[7].mxu0  ;;  %v2440_v37 = vpop.f32.mrb[7].mxu1 }
 0x48e   :  { %v4249_v4 = vadd.f32 %v2298_v35, %v2146_v30  ;;  %v4251_v38 = vadd.f32 %v2440_v37, %v2154_v31 }
 0x490   :  { %v2447_v40 = vcombine.low %v4248_v34, %v4249_v4  ;;  %v2448_v12 = vcombine.low %v4250_v52, %v4251_v38  ;;  %2530 = vmatprep.mubr.f32.mxu0 %v4249_v4 }
 0x491   :  { %2531 = vmatmul.mubr.f32.vlgmr.msra.gmra.mrb[8].mxu0 %v4248_v34 }
 0x492   :  { %v2455_v14 = vrot.slane %v2447_v40, %v4651_v3  ;;  %v2462_v15 = vrot.slane %v2448_v12, %v4651_v3  ;;  %2537 = vmatpush1.xpose.msra.mxu0 %v4242_v39  ;;  %2600 = vmatprep.mubr.f32.mxu0 %v4251_v38 }
 0x493   :  { %2778 = vmatprep.subr.mxu0 %v4243_v2 }
 0x494   :  { %v2463_v42 = vcombine.low %v2455_v14, %v2462_v15 }
 0x496   :  { %2465 = vst [vmem:[%s4807_s14] sm:$0xff] %v2463_v42 }
 0x499   :  { %2601 = vmatmul.mubr.f32.vlgmr.msra.gmra.mrb[8].mxu0 %v4250_v52 }
 0x49a   :  { %2779 = vmatpush1.msra.mxu0 %v4242_v39  ;;  %2842 = vmatprep.mubr.f32.mxu0 %v4448_v23 }
 0x49b   :  { %2947 = vmatprep.subr.mxu0 %v4319_v13 }
 0x56c   :  { %v2602_v41 = vpop.f32.mrb[8].mxu0 }
 0x56d   :  { %v2604_v43 = vpop.f32.mrb[9].mxu0  ;;  %3210 = vmatmul.mubr.msk.f32.vlgmr.msra.gmra.mrb[8].mxu1 %vm2607_vm1, %v2602_v41 }
 0x56e   :  { %2708 = vmatpush1.msra.mxu1 %v4240_v51  ;;  %2771 = vmatprep.mubr.f32.mxu1 %v4448_v23 }
 0x56f   :  { %2876 = vmatprep.subr.mxu1 %v4320_v44 }
 0x640   :  { %v2677_v45 = vpop.f32.mrb[8].mxu1 }
 0x641   :  { %v2682_v46 = vsel %vm2681_vm2, %v2677_v45, 0.0  ;;  %v3211_v47 = vpop.f32.mrb[9].mxu1 }
 0x642   :  { %v2683_v48 = vrot.slane %v2682_v46, 4 }
 0x644   :  { %v2684_v54 = vadd.f32 %v2683_v48, %v2682_v46 }
 0x646   :  { %v2685_v55 = vrot.slane %v2684_v54, 2 }
 0x648   :  { %v2686_v56 = vadd.f32 %v2685_v55, %v2684_v54 }
 0x64a   :  { %v2687_v57 = vrot.slane %v2686_v56, 1 }
 0x64c   :  { %v2688_v59 = vadd.f32 %v2687_v57, %v2686_v56 }
 0x64e   :  { %v2689_v60 = vmul.f32 0.5, %v2688_v59 }
 0x650   :  { %v2690_v61 = vsel %vm2607_vm1, %v2689_v60, -inf }
 0x651   :  { %2691 = vmax.xlane.f32.xlu0 %v2690_v61 }
 0x6de   :  { %v2692_v63 = vpop.xlane.xlu0 %2691 }
 0x6df   :  { %v2693_v1 = vsub.f32 %v2689_v60, %v2692_v63 }
 0x6e1   :  { %v2694_v0 = vmul.f32 1.442695, %v2693_v1 }
 0x6e3   :  { %4315 = vpow2.f32 %v2694_v0 }
 0x6ed   :  { %v4316_v53 = vpop.eup %4315 }
 0x6ee   :  { %v2696_v5 = vsel %vm2607_vm1, %v4316_v53, 0.0 }
 0x6ef   :  { %2697 = vadd.xlane.f32.xlu0 %v2696_v5 }
 0x77c   :  { %v2698_v6 = vpop.xlane.xlu0 %2697 }
 0x77d   :  { %4317 = vrcp.f32 %v2698_v6 }
 0x787   :  { %v4318_v7 = vpop.eup %4317 }
 0x788   :  { %v2700_v8 = vmul.f32 %v4318_v7, %v4316_v53 }
 0x78a   :  { %v2701_v10 = vmul.f32 2.0, %v2700_v8 }
 0x78c   :  { %v2703_v16 = vmul.f32 %v2702_v9, %v2701_v10 }
 0x78e   :  { %3201 = vmatmul.mubr.msk.f32.vlgmr.msra.gmra.mrb[10].mxu1 %vm2607_vm1, %v2703_v16  ;;  %3202 = vmatmul.mubr.msk.f32.vlgmr.msra.gmra.mrb[10].mxu0 %vm2607_vm1, %v2703_v16 }
 0x78f   :  { %2877 = vmatpush1.msra.mxu1 %v4321_v17  ;;  %2940 = vmatprep.mubr.f32.mxu1 %v4448_v23 }
 0x790   :  { %2948 = vmatpush1.msra.mxu0 %v4322_v11  ;;  %3011 = vmatprep.mubr.f32.mxu0 %v4448_v23 }
 0x791   :  { %3023 = vmatprep.subr.mxu1 %v4665_v36 }
 0x792   :  { %3203 = vmatmul.mubr.msk.f32.vlgmr.msra.gmra.mrb[12].mxu1 %vm2607_vm1, %v2872_v18  ;;  %3204 = vmatmul.mubr.msk.f32.vlgmr.msra.gmra.mrb[12].mxu0 %vm2607_vm1, %v2872_v18 }
 0x796   :  { %3024 = vmatpush1.xpose.msra.mxu1 %v4660_v21 }
 0x797   :  { %3093 = vmatprep.subr.mxu1 %v4676_v62 }
 0x861   :  { %v2773_v19 = vpop.f32.mrb[10].mxu1  ;;  %v2844_v20 = vpop.f32.mrb[10].mxu0 }
 0x862   :  { %v2775_v58 = vpop.f32.mrb[11].mxu1  ;;  %v2846_v22 = vpop.f32.mrb[11].mxu0 }
 0x863   :  { %v2853_v24 = vcombine.low %v2773_v19, %v2775_v58  ;;  %v2854_v25 = vcombine.low %v2844_v20, %v2846_v22 }
 0x865   :  { %v2861_v26 = vrot.slane %v2853_v24, %v4651_v3  ;;  %v2868_v23 = vrot.slane %v2854_v25, %v4651_v3  ;;  %v2942_v51 = vpop.f32.mrb[12].mxu1  ;;  %v3013_v36 = vpop.f32.mrb[12].mxu0  ;;  %v3163_v3 = vstv %s4805_s12 }
 0x866   :  { %v2944_v2 = vpop.f32.mrb[13].mxu1  ;;  %v3015_v27 = vpop.f32.mrb[13].mxu0  ;;  %v3018_v21 = vmul.f32 0.25, %v2942_v51  ;;  %v3020_v62 = vmul.f32 0.25, %v3013_v36 }
 0x867   :  { %v2869_v28 = vcombine.low %v2861_v26, %v2868_v23  ;;  %v3019_v29 = vmul.f32 0.25, %v2944_v2  ;;  %v3021_v30 = vmul.f32 0.25, %v3015_v27 }
 0x869   :  { %2871 = vst [vmem:[%s4806_s13] sm:$0xff] %v2869_v28  ;;  %3087 = vmatprep.mubr.f32.mxu1 %v3019_v29  ;;  %s4411_s13 = scalar_lea.vmem %s3178_s29, 32 }
 0x86a   :  { %3088 = vmatmul.mubr.f32.vlgmr.msra.gmra.mrb[14].mxu1 %v3018_v21  ;;  %p4412_p4 = scmp.ne.s32.totalorder %s3178_s29, %s4411_s13  ;;  %p4417_p6 = scmp.lt.s32.totalorder %s4411_s13, %s4411_s13 }
 0x86b   :  { %3094 = vmatpush1.xpose.msra.mxu1 %v4672_v50  ;;  %3157 = vmatprep.mubr.f32.mxu1 %v3021_v30 }
 0x86c   :  { %p4418_p7 = por %p4417_p6, %p4416_p5 }
 0x86e   :  { %p4419_p8 = pnand %p4418_p7, %p4412_p4 }
 0x872   :  { %3158 = vmatmul.mubr.f32.vlgmr.msra.gmra.mrb[14].mxu1 %v3020_v62 }
 0x945   :  { %v3159_v31 = vpop.f32.mrb[14].mxu1 }
 0x946   :  { %v3164_v32 = vmul.f32 %v3163_v3, %v3159_v31  ;;  %v3161_v33 = vpop.f32.mrb[15].mxu1 }
 0x948   :  { %3166 = vst.msk [vmem:[#allocation11] sm:$0x3] %vm3165_vm3, %v3164_v32 }
 0x949   :  { %4422 = shalt.err (!%p4419_p8)
}
 0x94a   :  { %s4423_s7 = scalar_lea.hbm %s4808_s15, 32 }
 0x94b   :  { %p4424_p9 = scmp.ne.s32.totalorder %s4808_s15, %s4423_s7  ;;  %p4427_p10 = scmp.lt.u32.totalorder %s4423_s7, %s4808_s15 }
 0x94d   :  { %p4429_p11 = pnand %p4427_p10, %p4424_p9 }
 0x94f   :  { %4432 = shalt.err (!%p4429_p11)
}
 0x950   :  { %3180 = dma.vmem_to_hbm [thread:$0]  %s3178_s29, 32, %s4808_s15, [#allocation5]  }
 0x951   :  { %4439 = dma.done.wait [#allocation5], 32  }
 0x952   :  { %4440 = vsyncadd [#allocation5], 4294967264 }
 0x953   :  { %3188 = vsyncpa [#allocation4], 1 }
 0x954   :  { %3189 = vsyncpa [#allocation7], 1 }
 0x955   :  { %3190 = vsyncpa [#allocation10], 1 }
 0x956   :  { %3191 = vsyncpa [#allocation5], 1 }

// kernel: conceptualizing_alignment3_forward.5
= control target key start
LH: loop header
LB: loop body
LE: loop exit
PB: predicated region body
PF: predicated region fallthrough
CT: control target
= control target key end

     0   :  { %s9409_s6 = smov 1   ;;  %s9410_s10 = smov 2   ;;  %s10850_s0 = inlined_call_operand.smem [shape: u32[52], index: -1, kind: input, shape index: {}] }
   0x1   :  { %s9491_s5 = sld [smem:[%s10850_s0]]   ;;  %s9411_s14 = smov 3  }
   0x2   :  { %s9496_s9 = sld [smem:[%s10850_s0 + %s9409_s6]]   ;;  %s9412_s18 = smov 4  }
   0x3   :  { %s9501_s13 = sld [smem:[%s10850_s0 + %s9410_s10]]   ;;  %s9413_s22 = smov 5  }
   0x4   :  { %s9506_s17 = sld [smem:[%s10850_s0 + %s9411_s14]]   ;;  %s9414_s26 = smov 6  }
   0x5   :  { %s9511_s21 = sld [smem:[%s10850_s0 + %s9412_s18]]   ;;  %s9415_s30 = smov 7  }
   0x6   :  { %s9516_s25 = sld [smem:[%s10850_s0 + %s9413_s22]]   ;;  %s9416_s4 = smov 8  }
   0x7   :  { %s9521_s29 = sld [smem:[%s10850_s0 + %s9414_s26]]   ;;  %s9417_s10 = smov 9  }
   0x8   :  { %10863 = sst [smem:[#allocation16_spill]] %s9496_s9  ;;  %s9418_s15 = smov 10  }
   0x9   :  { %s9526_s3 = sld [smem:[%s10850_s0 + %s9415_s30]]   ;;  %s9419_s20 = smov 11  }
   0xa   :  { %10864 = sst [smem:[#allocation17_spill]] %s9506_s17  ;;  %s9420_s26 = smov 12  }
   0xb   :  { %10865 = sst [smem:[#allocation18_spill]] %s9511_s21  ;;  %s9421_s1 = smov 13  }
   0xc   :  { %10866 = sst [smem:[#allocation19_spill]] %s9516_s25  ;;  %s9422_s7 = smov 14  }
   0xd   :  { %10867 = sst [smem:[#allocation20_spill]] %s9521_s29  ;;  %s9424_s22 = smov 16  }
   0xe   :  { %s9531_s8 = sld [smem:[%s10850_s0 + %s9416_s4]]   ;;  %s9425_s28 = smov 17  }
   0xf   :  { %10868 = sst [smem:[#allocation21_spill]] %s9526_s3 }
  0x10   :  { %s9536_s14 = sld [smem:[%s10850_s0 + %s9417_s10]]  }
  0x11   :  { %s9541_s19 = sld [smem:[%s10850_s0 + %s9418_s15]]   ;;  %s9423_s15 = smov 15  }
  0x12   :  { %s9546_s24 = sld [smem:[%s10850_s0 + %s9419_s20]]  }
  0x13   :  { %s9551_s30 = sld [smem:[%s10850_s0 + %s9420_s26]]  }
  0x14   :  { %s9556_s6 = sld [smem:[%s10850_s0 + %s9421_s1]]  }
  0x15   :  { %s9561_s12 = sld [smem:[%s10850_s0 + %s9422_s7]]   ;;  %s9426_s7 = smov 18  }
  0x16   :  { %s9566_s20 = sld [smem:[%s10850_s0 + %s9423_s15]]   ;;  %s9427_s15 = smov 19  }
  0x17   :  { %s9571_s27 = sld [smem:[%s10850_s0 + %s9424_s22]]   ;;  %s9428_s22 = smov 20  }
  0x18   :  { %s9576_s4 = sld [smem:[%s10850_s0 + %s9425_s28]]   ;;  %s9429_s28 = smov 21  }
  0x19   :  { %s9581_s3 = sld [smem:[%s10850_s0 + %s9426_s7]]   ;;  %s9430_s7 = smov 22  }
  0x1a   :  { %s9586_s25 = sld [smem:[%s10850_s0 + %s9427_s15]]   ;;  %s9431_s15 = smov 23  }
  0x1b   :  { %s9591_s29 = sld [smem:[%s10850_s0 + %s9428_s22]]   ;;  %s9432_s22 = smov 24  }
  0x1c   :  { %s9596_s21 = sld [smem:[%s10850_s0 + %s9429_s28]]   ;;  %s9433_s28 = smov 25  }
  0x1d   :  { %10869 = sst [smem:[#allocation22_spill]] %s9571_s27 }
  0x1e   :  { %10870 = sst [smem:[#allocation23_spill]] %s9576_s4 }
  0x1f   :  { %10871 = sst [smem:[#allocation24_spill]] %s9581_s3 }
  0x20   :  { %10872 = sst [smem:[#allocation25_spill]] %s9586_s25 }
  0x21   :  { %10873 = sst [smem:[#allocation26_spill]] %s9591_s29 }
  0x22   :  { %s9601_s17 = sld [smem:[%s10850_s0 + %s9430_s7]]   ;;  %s9434_s7 = smov 26  }
  0x23   :  { %s9606_s25 = sld [smem:[%s10850_s0 + %s9431_s15]]   ;;  %s9435_s15 = smov 27  }
  0x24   :  { %s9611_s29 = sld [smem:[%s10850_s0 + %s9432_s22]]   ;;  %s9436_s22 = smov 28  }
  0x25   :  { %s9616_s27 = sld [smem:[%s10850_s0 + %s9433_s28]]   ;;  %s9437_s28 = smov 29  }
  0x26   :  { %s9621_s9 = sld [smem:[%s10850_s0 + %s9434_s7]]   ;;  %s9438_s7 = smov 30  }
  0x28   :  { %10874 = sst [smem:[#allocation27_spill]] %s9601_s17 }
  0x29   :  { %10875 = sst [smem:[#allocation28_spill]] %s9606_s25 }
  0x2a   :  { %10876 = sst [smem:[#allocation29_spill]] %s9611_s29 }
  0x2b   :  { %10877 = sst [smem:[#allocation30_spill]] %s9616_s27 }
  0x2c   :  { %10878 = sst [smem:[#allocation31_spill]] %s9621_s9 }
  0x2d   :  { %s9626_s17 = sld [smem:[%s10850_s0 + %s9435_s15]]   ;;  %s9439_s15 = smov 31  }
  0x2e   :  { %s9631_s29 = sld [smem:[%s10850_s0 + %s9436_s22]]   ;;  %s9440_s22 = smov 32  }
  0x2f   :  { %s9636_s27 = sld [smem:[%s10850_s0 + %s9437_s28]]   ;;  %s9441_s28 = smov 33  }
  0x30   :  { %s9641_s9 = sld [smem:[%s10850_s0 + %s9438_s7]]   ;;  %s9442_s7 = smov 34  }
  0x33   :  { %10879 = sst [smem:[#allocation32_spill]] %s9626_s17 }
  0x34   :  { %10880 = sst [smem:[#allocation33_spill]] %s9631_s29 }
  0x35   :  { %10881 = sst [smem:[#allocation34_spill]] %s9636_s27 }
  0x36   :  { %10882 = sst [smem:[#allocation35_spill]] %s9641_s9 }
  0x37   :  { %s9646_s17 = sld [smem:[%s10850_s0 + %s9439_s15]]   ;;  %s9443_s15 = smov 35  }
  0x38   :  { %s9651_s29 = sld [smem:[%s10850_s0 + %s9440_s22]]   ;;  %s9444_s22 = smov 36  }
  0x39   :  { %s9656_s27 = sld [smem:[%s10850_s0 + %s9441_s28]]   ;;  %s9445_s28 = smov 37  }
  0x3a   :  { %s9661_s9 = sld [smem:[%s10850_s0 + %s9442_s7]]   ;;  %s9446_s7 = smov 38  }
  0x3d   :  { %10883 = sst [smem:[#allocation36_spill]] %s9646_s17 }
  0x3e   :  { %10884 = sst [smem:[#allocation37_spill]] %s9651_s29 }
  0x3f   :  { %10885 = sst [smem:[#allocation38_spill]] %s9656_s27 }
  0x40   :  { %10886 = sst [smem:[#allocation39_spill]] %s9661_s9 }
  0x41   :  { %s9666_s17 = sld [smem:[%s10850_s0 + %s9443_s15]]   ;;  %s9447_s15 = smov 39  }
  0x42   :  { %s9671_s29 = sld [smem:[%s10850_s0 + %s9444_s22]]   ;;  %s9448_s22 = smov 40  }
  0x43   :  { %s9676_s27 = sld [smem:[%s10850_s0 + %s9445_s28]]   ;;  %s9449_s28 = smov 41  }
  0x44   :  { %s9681_s9 = sld [smem:[%s10850_s0 + %s9446_s7]]   ;;  %s9450_s7 = smov 42  }
  0x47   :  { %10887 = sst [smem:[#allocation40_spill]] %s9666_s17 }
  0x48   :  { %10888 = sst [smem:[#allocation41_spill]] %s9671_s29 }
  0x49   :  { %10889 = sst [smem:[#allocation42_spill]] %s9676_s27 }
  0x4a   :  { %10890 = sst [smem:[#allocation43_spill]] %s9681_s9 }
  0x4b   :  { %s9686_s17 = sld [smem:[%s10850_s0 + %s9447_s15]]   ;;  %s9451_s15 = smov 43  }
  0x4c   :  { %s9691_s29 = sld [smem:[%s10850_s0 + %s9448_s22]]   ;;  %s9452_s22 = smov 44  }
  0x4d   :  { %s9696_s27 = sld [smem:[%s10850_s0 + %s9449_s28]]   ;;  %s9453_s28 = smov 45  }
  0x4e   :  { %s9701_s9 = sld [smem:[%s10850_s0 + %s9450_s7]]   ;;  %s9454_s7 = smov 46  }
  0x4f   :  { %s9711_s25 = sld [smem:[%s10850_s0 + %s9452_s22]]   ;;  %s9456_s22 = smov 48  }
  0x50   :  { %s9716_s3 = sld [smem:[%s10850_s0 + %s9453_s28]]   ;;  %s9457_s28 = smov 49  }
  0x51   :  { %10891 = sst [smem:[#allocation44_spill]] %s9686_s17 }
  0x52   :  { %s9706_s17 = sld [smem:[%s10850_s0 + %s9451_s15]]   ;;  %s9455_s15 = smov 47  }
  0x53   :  { %s9736_s4 = sld [smem:[%s10850_s0 + %s9457_s28]]  }
  0x54   :  { %10892 = sst [smem:[#allocation45_spill]] %s9701_s9 }
  0x55   :  { %10894 = sst [smem:[#allocation47_spill]] %s9711_s25 }
  0x56   :  { %s9721_s9 = sld [smem:[%s10850_s0 + %s9454_s7]]   ;;  %s9458_s7 = smov 50  }
  0x57   :  { %s9731_s25 = sld [smem:[%s10850_s0 + %s9456_s22]]  }
  0x58   :  { %10893 = sst [smem:[#allocation46_spill]] %s9706_s17 }
  0x59   :  { %s9726_s17 = sld [smem:[%s10850_s0 + %s9455_s15]]   ;;  %s9459_s15 = smov 51  }
  0x5c   :  { %10895 = sst [smem:[#allocation48_spill]] %s9721_s9 }
  0x5d   :  { %s9741_s9 = sld [smem:[%s10850_s0 + %s9458_s7]]  }
  0x5f   :  { %10896 = sst [smem:[#allocation49_spill]] %s9726_s17 }
  0x60   :  { %s9746_s17 = sld [smem:[%s10850_s0 + %s9459_s15]]  }
  0x61   :  { %109 = vsyncpa [#allocation4], 0 }
  0x62   :  { %110 = vsyncpa [#allocation7], 0 }
  0x63   :  { %111 = vsyncpa [#allocation10], 0 }
  0x64   :  { %112 = vsyncpa [#allocation5], 0  ;;  %s9460_s22 = smov [#allocation6]   ;;  %s9461_s26 = smov [#allocation3]  }
  0x65   :  { %s209_s23 = sshll.u32 %s9460_s22, 4  ;;  %s199_s28 = sshll.u32 %s9461_s26, 4  ;;  %s210_s23 = int_to_ptr.vmem [resolvable:$true] %s209_s23  ;;  %s200_s28 = int_to_ptr.vmem [resolvable:$true] %s199_s28 }
  0x66   :  { %s9291_s1 = scalar_lea.hbm %s9696_s27, 16 }
  0x67   :  { %p9292_p0 = scmp.ne.s32.totalorder %s9696_s27, %s9291_s1  ;;  %p9295_p1 = scmp.lt.u32.totalorder %s9291_s1, %s9696_s27 }
  0x69   :  { %p9297_p2 = pnand %p9295_p1, %p9292_p0 }
  0x6b   :  { %9300 = shalt.err (!%p9297_p2)
}
  0x6c   :  { %s9301_s0 = scalar_lea.vmem %s210_s23, 16  ;;  %s9305_s2 = scalar_lea.vmem %s210_s23, 32 }
  0x6d   :  { %p9302_p3 = scmp.ne.s32.totalorder %s210_s23, %s9301_s0  ;;  %p9306_p4 = scmp.lt.s32.totalorder %s210_s23, %s210_s23 }
  0x6e   :  { %p9307_p5 = scmp.lt.s32.totalorder %s9305_s2, %s9301_s0 }
  0x70   :  { %p9308_p6 = por %p9307_p5, %p9306_p4 }
  0x72   :  { %p9309_p7 = pnand %p9308_p6, %p9302_p3 }
  0x74   :  { %9312 = shalt.err (!%p9309_p7)
}
  0x75   :  { %212 = dma.hbm_to_vmem [thread:$0]  %s9696_s27, 16, %s210_s23, [#allocation7]  }
  0x76   :  { %s9313_s7 = scalar_lea.hbm %s9691_s29, 16 }
  0x77   :  { %p9314_p8 = scmp.ne.s32.totalorder %s9691_s29, %s9313_s7  ;;  %p9317_p9 = scmp.lt.u32.totalorder %s9313_s7, %s9691_s29 }
  0x79   :  { %p9319_p10 = pnand %p9317_p9, %p9314_p8 }
  0x7b   :  { %9322 = shalt.err (!%p9319_p10)
}
  0x7c   :  { %s9323_s10 = scalar_lea.vmem %s200_s28, 16  ;;  %s9327_s11 = scalar_lea.vmem %s200_s28, 32 }
  0x7d   :  { %p9324_p11 = scmp.ne.s32.totalorder %s200_s28, %s9323_s10  ;;  %p9328_p12 = scmp.lt.s32.totalorder %s200_s28, %s200_s28 }
  0x7e   :  { %p9329_p13 = scmp.lt.s32.totalorder %s9327_s11, %s9323_s10 }
  0x80   :  { %p9330_p0 = por %p9329_p13, %p9328_p12 }
  0x82   :  { %p9331_p1 = pnand %p9330_p0, %p9324_p11 }
  0x84   :  { %9334 = shalt.err (!%p9331_p1)
}
  0x85   :  { %202 = dma.hbm_to_vmem [thread:$0]  %s9691_s29, 16, %s200_s28, [#allocation4]  }
  0x86   :  { %s9462_s15 = smov [#allocation8]   ;;  %s9463_s16 = smov [#allocation9]  }
  0x87   :  { %s225_s27 = sshll.u32 %s9462_s15, 4  ;;  %s241_s18 = sshll.u32 %s9463_s16, 4  ;;  %s226_s27 = int_to_ptr.vmem [resolvable:$true] %s225_s27  ;;  %s242_s18 = int_to_ptr.vmem [resolvable:$true] %s241_s18 }
  0x88   :  { %s9335_s22 = scalar_lea.hbm %s9716_s3, 16 }
  0x89   :  { %p9336_p2 = scmp.ne.s32.totalorder %s9716_s3, %s9335_s22  ;;  %p9339_p3 = scmp.lt.u32.totalorder %s9335_s22, %s9716_s3 }
  0x8b   :  { %p9341_p4 = pnand %p9339_p3, %p9336_p2 }
  0x8d   :  { %9344 = shalt.err (!%p9341_p4)
}
  0x8e   :  { %s9345_s23 = scalar_lea.vmem %s226_s27, 16  ;;  %s9349_s26 = scalar_lea.vmem %s226_s27, 32 }
  0x8f   :  { %p9346_p5 = scmp.ne.s32.totalorder %s226_s27, %s9345_s23  ;;  %p9350_p6 = scmp.lt.s32.totalorder %s226_s27, %s226_s27 }
  0x90   :  { %p9351_p7 = scmp.lt.s32.totalorder %s9349_s26, %s9345_s23 }
  0x92   :  { %p9352_p8 = por %p9351_p7, %p9350_p6 }
  0x94   :  { %p9353_p9 = pnand %p9352_p8, %p9346_p5 }
  0x96   :  { %9356 = shalt.err (!%p9353_p9)
}
  0x97   :  { %228 = dma.hbm_to_vmem [thread:$0]  %s9716_s3, 16, %s226_s27, [#allocation7]  }
  0x98   :  { %s9357_s29 = scalar_lea.hbm %s9736_s4, 16 }
  0x99   :  { %p9358_p10 = scmp.ne.s32.totalorder %s9736_s4, %s9357_s29  ;;  %p9361_p11 = scmp.lt.u32.totalorder %s9357_s29, %s9736_s4 }
  0x9b   :  { %p9363_p12 = pnand %p9361_p11, %p9358_p10 }
  0x9d   :  { %9366 = shalt.err (!%p9363_p12)
}
  0x9e   :  { %s9367_s28 = scalar_lea.vmem %s242_s18, 16  ;;  %s9371_s1 = scalar_lea.vmem %s242_s18, 32 }
  0x9f   :  { %p9368_p13 = scmp.ne.s32.totalorder %s242_s18, %s9367_s28  ;;  %p9372_p0 = scmp.lt.s32.totalorder %s242_s18, %s242_s18 }
  0xa0   :  { %p9373_p1 = scmp.lt.s32.totalorder %s9371_s1, %s9367_s28 }
  0xa2   :  { %p9374_p2 = por %p9373_p1, %p9372_p0 }
  0xa4   :  { %p9375_p3 = pnand %p9374_p2, %p9368_p13 }
  0xa6   :  { %9378 = shalt.err (!%p9375_p3)
}
  0xa7   :  { %244 = dma.hbm_to_vmem [thread:$0]  %s9736_s4, 16, %s242_s18, [#allocation10]  }
  0xa8   :  { %9401 = dma.done.wait [#allocation4], 16  }
  0xa9   :  { %9402 = vsyncadd [#allocation4], 4294967280 }
  0xaa   :  { %9403 = dma.done.wait [#allocation7], 32  }
  0xab   :  { %9404 = vsyncadd [#allocation7], 4294967264 }
  0xac   :  { %9405 = dma.done.wait [#allocation10], 16  }
  0xad   :  { %9406 = vsyncadd [#allocation10], 4294967280  ;;  %v263_v0 = vld [vmem:[%s9531_s8] sm:$0xff]  ;;  %v264_v1 = vld [vmem:[%s9531_s8 + $0x8] sm:$0xff]  ;;  %vm278_vm0 = vcmask 523264   ;;  %vm588_vm3 = vcmask 64512  }
  0xae   :  { %v265_v2 = vld [vmem:[%s9531_s8 + $0x10] sm:$0xff]  ;;  %v8367_v3 = vpack.c.bf16 %v264_v1, %v263_v0  ;;  %v266_v4 = vld [vmem:[%s9531_s8 + $0x18] sm:$0xff]  ;;  %v267_v6 = vld [vmem:[%s9531_s8 + $0x20] sm:$0xff]  ;;  %s9465_s3 = smov 64   ;;  %vm676_vm5 = vcmask 130048   ;;  %s9472_s4 = smov 40  }
  0xaf   :  { %v8371_v5 = vpack.c.bf16 %v266_v4, %v265_v2  ;;  %v268_v7 = vld [vmem:[%s9531_s8 + $0x28] sm:$0xff]  ;;  %v259_v8 = vld [vmem:[%s9491_s5] sm:$0xff]  ;;  %v269_v10 = vld [vmem:[%s9531_s8 + $0x30] sm:$0xff]  ;;  %s9473_s0 = smov 32   ;;  %s9474_s2 = smov 88  }
  0xb0   :  { %8368 = vmatprep.subr.bf16.mxu0 %v8367_v3  ;;  %8008 = vmatprep.mubr.msk.f32.mxu0 %vm278_vm0, %v259_v8  ;;  %v8375_v9 = vpack.c.bf16 %v268_v7, %v267_v6  ;;  %v270_v11 = vld [vmem:[%s9531_s8 + $0x38] sm:$0xff]  ;;  %v260_v13 = vld [vmem:[%s9491_s5 + $0x8] sm:$0xff]  ;;  %v7458_v14 = vld [vmem:[%s9536_s14] ss:$0 sm:$0xff]  ;;  %s9466_s8 = smov 120   ;;  %s9467_s14 = smov 48  }
  0xb1   :  { %8370 = vmatpush3.bf16.msra.mxu0 %v8367_v3  ;;  %v8379_v12 = vpack.c.bf16 %v270_v11, %v269_v10  ;;  %vm9827_vm4 = vmpackc.low %vm588_vm3, %vm588_vm3  ;;  %s9475_s7 = smov 24   ;;  %s9476_s10 = smov 80  }
  0xb2   :  { %8372 = vmatprep.subr.bf16.mxu0 %v8371_v5  ;;  %s9478_s11 = smov 72   ;;  %s9479_s15 = smov 8  }
  0xb3   :  { %s10902_s27 = sld [smem:[#allocation27_spill]]  ;;  %s10904_s16 = sld [smem:[#allocation16_spill]] }
  0xb4   :  { %s10905_s18 = sld [smem:[#allocation29_spill]]  ;;  %s10906_s22 = sld [smem:[#allocation35_spill]] }
  0xb5   :  { %8374 = vmatpush3.bf16.msra.mxu0 %v8371_v5  ;;  %s10907_s23 = sld [smem:[#allocation22_spill]]  ;;  %s10910_s28 = sld [smem:[#allocation36_spill]] }
  0xb6   :  { %8376 = vmatprep.subr.bf16.mxu0 %v8375_v9  ;;  %s10908_s26 = sld [smem:[#allocation38_spill]]  ;;  %s10911_s1 = sld [smem:[#allocation37_spill]] }
  0xb7   :  { %s10909_s29 = sld [smem:[#allocation30_spill]] }
  0xb9   :  { %8378 = vmatpush3.bf16.msra.mxu0 %v8375_v9 }
  0xba   :  { %8380 = vmatprep.subr.bf16.mxu0 %v8379_v12 }
  0xbd   :  { %8382 = vmatpush3.bf16.msra.mxu0 %v8379_v12 }
  0xc0   :  { %8009 = vmatmul.mubr.msk.f32.vlgmr.msra.gmra.mrb[0].mxu0 %vm278_vm0, %v260_v13 }
 0x193   :  { %v8010_v15 = vpop.f32.mrb[0].mxu0 }
 0x194   :  { %v357_v16 = vadd.f32 %v8010_v15, %v7458_v14  ;;  %v351_v17 = vpop.f32.mrb[1].mxu0 }
 0x195   :  { %v352_v18 = vadd.f32 %v7458_v14, %v351_v17  ;;  %v460_v17 = vld [vmem:[%s9551_s30 + $0x8] sm:$0xff] }
 0x196   :  { %v363_v19 = vmul.f32 0.70710677, %v357_v16  ;;  %v361_v2 = vmul.f32 0.5, %v357_v16 }
 0x197   :  { %v362_v20 = vmul.f32 0.70710677, %v352_v18  ;;  %v360_v63 = vmul.f32 0.5, %v352_v18  ;;  %v462_v18 = vld [vmem:[%s9551_s30 + $0x18] sm:$0xff] }
 0x198   :  { %v365_v21 = vand.u32 2147483647, %v363_v19  ;;  %vm405_vm1 = vcmp.ge.f32.partialorder %v363_v19, 0.0  ;;  %v8383_v19 = vpack.c.bf16 %v462_v18, %v460_v17 }
 0x199   :  { %v364_v22 = vand.u32 2147483647, %v362_v20  ;;  %vm404_vm2 = vcmp.ge.f32.partialorder %v362_v20, 0.0  ;;  %v459_v20 = vld [vmem:[%s9551_s30] sm:$0xff] }
 0x19a   :  { %v367_v23 = vmul.f32 0.3275911, %v365_v21  ;;  %v393_v27 = vsub.f32 0.0, %v365_v21  ;;  %8384 = vmatprep.subr.bf16.mxu1 %v8383_v19 }
 0x19b   :  { %v366_v24 = vmul.f32 0.3275911, %v364_v22  ;;  %v392_v28 = vsub.f32 0.0, %v364_v22 }
 0x19c   :  { %v369_v25 = vadd.f32 1.0, %v367_v23  ;;  %v395_v30 = vmul.f32 %v393_v27, %v365_v21  ;;  %v461_v21 = vld [vmem:[%s9551_s30 + $0x10] sm:$0xff]  ;;  %v464_v23 = vld [vmem:[%s9551_s30 + $0x28] sm:$0xff] }
 0x19d   :  { %v368_v26 = vadd.f32 1.0, %v366_v24  ;;  %v394_v32 = vmul.f32 %v392_v28, %v364_v22  ;;  %v8385_v22 = vpack.c.bf16 %v461_v21, %v459_v20  ;;  %v466_v24 = vld [vmem:[%s9551_s30 + $0x38] sm:$0xff]  ;;  %v465_v27 = vld [vmem:[%s9551_s30 + $0x30] sm:$0xff] }
 0x19e   :  { %9051 = vrcp.f32 %v369_v25  ;;  %v398_v36 = vmul.f32 1.442695, %v395_v30  ;;  %v8387_v25 = vpack.c.bf16 %v466_v24, %v464_v23  ;;  %v470_v30 = vld [vmem:[%s9551_s30 + $0x58] sm:$0xff] }
 0x19f   :  { %9053 = vrcp.f32 %v368_v26  ;;  %v396_v38 = vmul.f32 1.442695, %v394_v32  ;;  %8386 = vmatpush1.bf16.msra.mxu1 %v8385_v22  ;;  %v463_v26 = vld [vmem:[%s9551_s30 + $0x20] sm:$0xff] }
 0x1a0   :  { %9055 = vpow2.f32 %v398_v36  ;;  %v8389_v28 = vpack.c.bf16 %v465_v27, %v463_v26  ;;  %8388 = vmatprep.subr.bf16.mxu1 %v8387_v25  ;;  %v9464_v36 = vmov 0.0  }
 0x1a1   :  { %9057 = vpow2.f32 %v396_v38  ;;  %545 = vmatprep.mubr.f32.mxu1 %v9464_v36 }
 0x1a3   :  { %8390 = vmatpush1.bf16.msra.mxu1 %v8389_v28 }
 0x1a8   :  { %v9052_v29 = vpop.eup %9051 }
 0x1a9   :  { %v9054_v31 = vpop.eup %9053  ;;  %v375_v33 = vmul.f32 1.0614054, %v9052_v29 }
 0x1aa   :  { %v374_v34 = vmul.f32 1.0614054, %v9054_v31  ;;  %v9056_v52 = vpop.eup %9055 }
 0x1ab   :  { %v377_v35 = vadd.f32 -1.4531521, %v375_v33  ;;  %v9058_v54 = vpop.eup %9057  ;;  %v469_v33 = vld [vmem:[%s9551_s30 + $0x50] sm:$0xff] }
 0x1ac   :  { %v376_v37 = vadd.f32 -1.4531521, %v374_v34  ;;  %v472_v34 = vld [vmem:[%s9551_s30 + $0x68] sm:$0xff] }
 0x1ad   :  { %v379_v39 = vmul.f32 %v9052_v29, %v377_v35  ;;  %v474_v35 = vld [vmem:[%s9551_s30 + $0x78] sm:$0xff] }
 0x1ae   :  { %v378_v40 = vmul.f32 %v9054_v31, %v376_v37  ;;  %v8395_v38 = vpack.c.bf16 %v474_v35, %v472_v34 }
 0x1af   :  { %v381_v41 = vadd.f32 1.4214138, %v379_v39  ;;  %v471_v39 = vld [vmem:[%s9551_s30 + $0x60] sm:$0xff] }
 0x1b0   :  { %v380_v42 = vadd.f32 1.4214138, %v378_v40  ;;  %v473_v40 = vld [vmem:[%s9551_s30 + $0x70] sm:$0xff] }
 0x1b1   :  { %v383_v43 = vmul.f32 %v9052_v29, %v381_v41  ;;  %v8397_v41 = vpack.c.bf16 %v473_v40, %v471_v39 }
 0x1b2   :  { %v382_v44 = vmul.f32 %v9054_v31, %v380_v42 }
 0x1b3   :  { %v385_v45 = vadd.f32 -0.28449672, %v383_v43 }
 0x1b4   :  { %v384_v46 = vadd.f32 -0.28449672, %v382_v44 }
 0x1b5   :  { %v387_v47 = vmul.f32 %v9052_v29, %v385_v45 }
 0x1b6   :  { %v386_v48 = vmul.f32 %v9054_v31, %v384_v46 }
 0x1b7   :  { %v389_v49 = vadd.f32 0.2548296, %v387_v47 }
 0x1b8   :  { %v388_v50 = vadd.f32 0.2548296, %v386_v48 }
 0x1b9   :  { %v391_v51 = vmul.f32 %v9052_v29, %v389_v49  ;;  %v468_v29 = vld [vmem:[%s9551_s30 + $0x48] sm:$0xff]  ;;  %v7461_v49 = vld [vmem:[%s9541_s19] ss:$0 sm:$0xff]  ;;  %s9468_s19 = smov 112  }
 0x1ba   :  { %v390_v53 = vmul.f32 %v9054_v31, %v388_v50  ;;  %v467_v31 = vld [vmem:[%s9551_s30 + $0x40] sm:$0xff]  ;;  %v8391_v32 = vpack.c.bf16 %v470_v30, %v468_v29  ;;  %s9471_s30 = smov 96  }
 0x1bb   :  { %v401_v55 = vmul.f32 %v9056_v52, %v391_v51  ;;  %v8393_v37 = vpack.c.bf16 %v469_v33, %v467_v31  ;;  %v7462_v51 = vld [vmem:[%s9546_s24] ss:$0 sm:$0xff]  ;;  %s9470_s24 = smov 104  }
 0x1bc   :  { %v400_v56 = vmul.f32 %v9058_v54, %v390_v53  ;;  %8392 = vmatprep.subr.bf16.mxu1 %v8391_v32 }
 0x1bd   :  { %v403_v57 = vsub.f32 1.0, %v401_v55  ;;  %8394 = vmatpush1.bf16.msra.mxu1 %v8393_v37 }
 0x1be   :  { %v402_v58 = vsub.f32 1.0, %v400_v56  ;;  %8396 = vmatprep.subr.bf16.mxu1 %v8395_v38 }
 0x1bf   :  { %v407_v59 = vsub.f32 0.0, %v403_v57 }
 0x1c0   :  { %v406_v60 = vsub.f32 0.0, %v402_v58 }
 0x1c1   :  { %v409_v61 = vsel %vm405_vm1, %v403_v57, %v407_v59  ;;  %8398 = vmatpush1.bf16.msra.mxu1 %v8397_v41 }
 0x1c2   :  { %v408_v62 = vsel %vm404_vm2, %v402_v58, %v406_v60  ;;  %v411_v1 = vadd.f32 1.0, %v409_v61 }
 0x1c3   :  { %v410_v0 = vadd.f32 1.0, %v408_v62 }
 0x1c4   :  { %v413_v5 = vmul.f32 %v411_v1, %v361_v2 }
 0x1c5   :  { %v412_v3 = vmul.f32 %v410_v0, %v360_v63 }
 0x1c6   :  { %v419_v6 = vsel %vm278_vm0, %v413_v5, 0.0 }
 0x1c7   :  { %v416_v4 = vsel %vm278_vm0, %v412_v3, 0.0 }
 0x1c8   :  { %417 = vadd.xlane.f32.xlu0 %v416_v4 }
 0x1cc   :  { %420 = vadd.xlane.f32.xlu0 %v419_v6 }
 0x255   :  { %v418_v7 = vpop.xlane.xlu0 %417 }
 0x256   :  { %v423_v8 = vmul.f32 0.015625, %v418_v7 }
 0x258   :  { %v425_v9 = vsub.f32 %v412_v3, %v423_v8  ;;  %v9838_v8 = vld [vmem:[%s9501_s13] sm:$0xff] }
 0x259   :  { %v421_v10 = vpop.xlane.xlu0 %420 }
 0x25a   :  { %v424_v11 = vmul.f32 0.015625, %v421_v10  ;;  %v427_v12 = vmul.f32 %v425_v9, %v425_v9 }
 0x25c   :  { %v426_v13 = vsub.f32 %v413_v5, %v424_v11  ;;  %v429_v14 = vsel %vm278_vm0, %v427_v12, 0.0  ;;  %v9841_v11 = vld [vmem:[%s9501_s13 + $0x8] sm:$0xff]  ;;  %s9469_s13 = smov 56  }
 0x25d   :  { %430 = vadd.xlane.f32.xlu1 %v429_v14 }
 0x25e   :  { %v428_v15 = vmul.f32 %v426_v13, %v426_v13 }
 0x260   :  { %v432_v16 = vsel %vm278_vm0, %v428_v15, 0.0 }
 0x261   :  { %433 = vadd.xlane.f32.xlu1 %v432_v16 }
 0x2ea   :  { %v431_v42 = vpop.xlane.xlu1 %430 }
 0x2eb   :  { %v435_v43 = vmul.f32 0.015625, %v431_v42 }
 0x2ed   :  { %v437_v44 = vadd.f32 1e-05, %v435_v43 }
 0x2ee   :  { %v434_v45 = vpop.xlane.xlu1 %433 }
 0x2ef   :  { %9059 = vrsqrt.f32 %v437_v44  ;;  %v436_v46 = vmul.f32 0.015625, %v434_v45  ;;  %v574_v45 = vld [vmem:[%s9556_s6] sm:$0xff] }
 0x2f0   :  { %8025 = vmatprep.subr.mxu0 %v574_v45 }
 0x2f1   :  { %v438_v47 = vadd.f32 1e-05, %v436_v46  ;;  %8026 = vmatpush3.msra.mxu0 %v574_v45 }
 0x2f3   :  { %9061 = vrsqrt.f32 %v438_v47 }
 0x2f9   :  { %v9060_v48 = vpop.eup %9059 }
 0x2fa   :  { %v441_v50 = vmul.f32 %v9060_v48, %v425_v9 }
 0x2fc   :  { %v449_v52 = vmul.f32 %v7461_v49, %v441_v50 }
 0x2fd   :  { %v9062_v53 = vpop.eup %9061 }
 0x2fe   :  { %v457_v54 = vadd.f32 %v7462_v51, %v449_v52  ;;  %v442_v55 = vmul.f32 %v9062_v53, %v426_v13 }
 0x300   :  { %7463 = vmatmul.mubr.msk.f32.vlgmr.msra.gmra.mrb[0].mxu1 %vm278_vm0, %v457_v54  ;;  %v450_v56 = vmul.f32 %v7461_v49, %v442_v55 }
 0x301   :  { %551 = vmatprep.mubr.f32.mxu1 %v9464_v36 }
 0x302   :  { %v458_v57 = vadd.f32 %v7462_v51, %v450_v56 }
 0x304   :  { %7464 = vmatmul.mubr.msk.f32.gmra.mrb[2].mxu1 %vm278_vm0, %v458_v57 }
 0x3d3   :  { %v9803_v58 = vpop.f32.mrb[0].mxu1 }
 0x3d4   :  { %v549_v59 = vpop.f32.mrb[1].mxu1  ;;  %8015 = vmatprep.mubr.msk.f32.mxu1 %vm588_vm3, %v9803_v58 }
 0x3d7   :  { %v9807_v60 = vpop.f32.mrb[2].mxu1 }
 0x3d8   :  { %v555_v61 = vpop.f32.mrb[3].mxu1  ;;  %v9811_v62 = vpack.i.bf16 %v9807_v60, %v9803_v58 }
 0x3d9   :  { %v8405_v63 = vpack.c.bf16 %v555_v61, %v549_v59  ;;  %v9813_v0 = vpack.i.bf16 %v555_v61, %v549_v59 }
 0x3da   :  { %8902 = vrot.lane.b32.xlu0 %v9811_v62, %s9465_s3 }
 0x3de   :  { %863 = vrot.lane.b32.xlu0 %v9803_v58, %s9466_s8 }
 0x3e2   :  { %865 = vrot.lane.b32.xlu0 %v9807_v60, %s9466_s8 }
 0x3e6   :  { %8912 = vrot.lane.b32.xlu0 %v9811_v62, %s9467_s14 }
 0x3ea   :  { %1154 = vrot.lane.b32.xlu0 %v9807_v60, %s9468_s19 }
 0x44c   :  { %v8903_v1 = vpop.permute.xlu0 %8902 }
 0x44d   :  { %v8905_v2 = vunpack.i.h.bf16 %v8903_v1  ;;  %v8904_v3 = vunpack.i.l.bf16 %v8903_v1 }
 0x44f   :  { %v8399_v5 = vpack.c.bf16 %v8905_v2, %v8904_v3 }
 0x450   :  { %v864_v26 = vpop.permute.xlu0 %863 }
 0x451   :  { %8401 = vmatprep.subr.msk.bf16.mxu1 %vm9827_vm4, %v8399_v5 }
 0x452   :  { %8404 = vmatpush3.bf16.xpose.msk.msra.mxu1 %vm9827_vm4, %v8399_v5 }
 0x453   :  { %8406 = vmatprep.subr.bf16.mxu1 %v8405_v63 }
 0x454   :  { %v866_v29 = vpop.permute.xlu0 %865 }
 0x458   :  { %v8913_v34 = vpop.permute.xlu0 %8912 }
 0x459   :  { %8016 = vmatmul.mubr.msk.f32.vlgmr.msra.gmra.mrb[4].mxu1 %vm588_vm3, %v9807_v60  ;;  %v8915_v38 = vunpack.i.h.bf16 %v8913_v34  ;;  %v8914_v39 = vunpack.i.l.bf16 %v8913_v34 }
 0x45a   :  { %8408 = vmatpush3.bf16.msra.mxu1 %v8405_v63 }
 0x45b   :  { %v8419_v42 = vpack.c.bf16 %v8915_v38, %v8914_v39 }
 0x45c   :  { %v1155_v44 = vpop.permute.xlu0 %1154 }
 0x52c   :  { %v8017_v6 = vpop.f32.mrb[4].mxu1 }
 0x52d   :  { %v663_v7 = vpop.f32.mrb[5].mxu1  ;;  %v673_v9 = vmul.f32 0.35355338, %v8017_v6 }
 0x52e   :  { %v672_v10 = vmul.f32 0.35355338, %v663_v7 }
 0x52f   :  { %v675_v14 = vadd.f32 %v673_v9, %v9841_v11 }
 0x530   :  { %v674_v12 = vadd.f32 %v672_v10, %v9838_v8 }
 0x531   :  { %v680_v15 = vsel %vm676_vm5, %v675_v14, -inf }
 0x532   :  { %v677_v13 = vsel %vm676_vm5, %v674_v12, -inf }
 0x533   :  { %678 = vmax.xlane.f32.xlu1 %v677_v13 }
 0x537   :  { %681 = vmax.xlane.f32.xlu1 %v680_v15 }
 0x5c0   :  { %v679_v16 = vpop.xlane.xlu1 %678 }
 0x5c1   :  { %v683_v17 = vsub.f32 %v674_v12, %v679_v16 }
 0x5c3   :  { %v685_v20 = vmul.f32 1.442695, %v683_v17 }
 0x5c4   :  { %v682_v18 = vpop.xlane.xlu1 %681 }
 0x5c5   :  { %v684_v19 = vsub.f32 %v675_v14, %v682_v18 }
 0x5c7   :  { %v687_v21 = vmul.f32 1.442695, %v684_v19  ;;  %v575_v19 = vld [vmem:[%s9556_s6 + $0x8] sm:$0xff] }
 0x5c9   :  { %9063 = vpow2.f32 %v687_v21 }
 0x5ca   :  { %9065 = vpow2.f32 %v685_v20 }
 0x5d3   :  { %v9064_v22 = vpop.eup %9063 }
 0x5d4   :  { %v692_v23 = vsel %vm676_vm5, %v9064_v22, 0.0  ;;  %v9066_v24 = vpop.eup %9065 }
 0x5d5   :  { %693 = vadd.xlane.f32.xlu1 %v692_v23  ;;  %v689_v25 = vsel %vm676_vm5, %v9066_v24, 0.0 }
 0x5d9   :  { %690 = vadd.xlane.f32.xlu1 %v689_v25 }
 0x5ea   :  { %8907 = vrot.lane.b32.xlu1 %v9811_v62, %s9469_s13 }
 0x5ee   :  { %1152 = vrot.lane.b32.xlu1 %v9803_v58, %s9468_s19 }
 0x662   :  { %v694_v27 = vpop.xlane.xlu1 %693 }
 0x663   :  { %9067 = vrcp.f32 %v694_v27 }
 0x666   :  { %v691_v28 = vpop.xlane.xlu1 %690 }
 0x667   :  { %9069 = vrcp.f32 %v691_v28 }
 0x66a   :  { %v8908_v30 = vpop.permute.xlu1 %8907 }
 0x66b   :  { %v8910_v31 = vunpack.i.h.bf16 %v8908_v30  ;;  %v8909_v32 = vunpack.i.l.bf16 %v8908_v30 }
 0x66d   :  { %v8409_v33 = vpack.c.bf16 %v8910_v31, %v8909_v32  ;;  %v9068_v35 = vpop.eup %9067 }
 0x66e   :  { %v698_v41 = vmul.f32 %v9068_v35, %v9064_v22  ;;  %v1153_v43 = vpop.permute.xlu1 %1152 }
 0x66f   :  { %8411 = vmatprep.subr.msk.bf16.mxu1 %vm9827_vm4, %v8409_v33 }
 0x671   :  { %v9070_v37 = vpop.eup %9069 }
 0x672   :  { %v697_v40 = vmul.f32 %v9070_v37, %v9066_v24 }
 0x674   :  { %8022 = vmatprep.mubr.msk.f32.mxu1 %vm676_vm5, %v697_v40 }
 0x675   :  { %8023 = vmatmul.mubr.msk.f32.vlgmr.msra.gmra.mrb[6].mxu1 %vm676_vm5, %v698_v41 }
 0x676   :  { %8414 = vmatpush3.bf16.xpose.msk.msra.mxu1 %vm9827_vm4, %v8409_v33  ;;  %8034 = vmatprep.mubr.msk.f32.mxu1 %vm588_vm3, %v864_v26 }
 0x677   :  { %8421 = vmatprep.subr.msk.bf16.mxu1 %vm9827_vm4, %v8419_v42 }
 0x67d   :  { %8035 = vmatmul.mubr.msk.f32.vlgmr.msra.gmra.mrb[8].mxu1 %vm588_vm3, %v866_v29 }
 0x67e   :  { %8424 = vmatpush3.bf16.xpose.msk.msra.mxu1 %vm9827_vm4, %v8419_v42  ;;  %8053 = vmatprep.mubr.msk.f32.mxu1 %vm588_vm3, %v1153_v43 }
 0x685   :  { %8054 = vmatmul.mubr.msk.f32.vlgmr.msra.gmra.mrb[10].mxu1 %vm588_vm3, %v1155_v44 }
 0x748   :  { %v8024_v46 = vpop.f32.mrb[6].mxu1 }
 0x749   :  { %v771_v47 = vpop.f32.mrb[7].mxu1 }
 0x74a   :  { %8027 = vmatprep.mubr.msk.f32.mxu0 %vm588_vm3, %v771_v47 }
 0x74b   :  { %8028 = vmatmul.mubr.msk.f32.vlgmr.msra.gmra.mrb[2].mxu0 %vm588_vm3, %v8024_v46 }
 0x750   :  { %v8036_v48 = vpop.f32.mrb[8].mxu1 }
 0x751   :  { %v955_v49 = vmul.f32 0.35355338, %v8036_v48  ;;  %v945_v50 = vpop.f32.mrb[9].mxu1 }
 0x752   :  { %v954_v51 = vmul.f32 0.35355338, %v945_v50 }
 0x753   :  { %v957_v52 = vadd.f32 %v955_v49, %v9841_v11 }
 0x754   :  { %v956_v53 = vadd.f32 %v954_v51, %v9838_v8 }
 0x755   :  { %v961_v54 = vsel %vm676_vm5, %v957_v52, -inf }
 0x756   :  { %962 = vmax.xlane.f32.xlu0 %v961_v54  ;;  %v958_v55 = vsel %vm676_vm5, %v956_v53, -inf }
 0x757   :  { %959 = vmax.xlane.f32.xlu1 %v958_v55 }
 0x758   :  { %v8055_v56 = vpop.f32.mrb[10].mxu1 }
 0x759   :  { %v1234_v57 = vpop.f32.mrb[11].mxu1  ;;  %v1244_v24 = vmul.f32 0.35355338, %v8055_v56 }
 0x75a   :  { %v1243_v59 = vmul.f32 0.35355338, %v1234_v57 }
 0x75b   :  { %v1246_v25 = vadd.f32 %v1244_v24, %v9841_v11 }
 0x75c   :  { %v1245_v61 = vadd.f32 %v1243_v59, %v9838_v8 }
 0x75d   :  { %v1250_v26 = vsel %vm676_vm5, %v1246_v25, -inf }
 0x75e   :  { %v1247_v63 = vsel %vm676_vm5, %v1245_v61, -inf }
 0x768   :  { %8917 = vrot.lane.b32.xlu1 %v9813_v0, %s9466_s8 }
 0x76c   :  { %1439 = vrot.lane.b32.xlu1 %v9803_v58, %s9470_s24 }
 0x770   :  { %1441 = vrot.lane.b32.xlu1 %v9807_v60, %s9470_s24 }
 0x794   :  { %1248 = vmax.xlane.f32.xlu1 %v1247_v63 }
 0x7a5   :  { %8927 = vrot.lane.b32.xlu1 %v9813_v0, %s9468_s19 }
 0x7a9   :  { %1726 = vrot.lane.b32.xlu1 %v9803_v58, %s9471_s30 }
 0x7ad   :  { %1728 = vrot.lane.b32.xlu1 %v9807_v60, %s9471_s30 }
 0x7e3   :  { %v963_v1 = vpop.xlane.xlu0 %962 }
 0x7e4   :  { %v965_v2 = vsub.f32 %v957_v52, %v963_v1  ;;  %v960_v3 = vpop.xlane.xlu1 %959 }
 0x7e5   :  { %v964_v5 = vsub.f32 %v956_v53, %v960_v3 }
 0x7e6   :  { %v968_v6 = vmul.f32 1.442695, %v965_v2 }
 0x7e7   :  { %v966_v7 = vmul.f32 1.442695, %v964_v5 }
 0x7e8   :  { %v8918_v9 = vpop.permute.xlu1 %8917 }
 0x7e9   :  { %9071 = vpow2.f32 %v966_v7  ;;  %v8920_v10 = vunpack.i.h.bf16 %v8918_v9  ;;  %v8919_v12 = vunpack.i.l.bf16 %v8918_v9 }
 0x7ea   :  { %9073 = vpow2.f32 %v968_v6 }
 0x7eb   :  { %v8415_v13 = vpack.c.bf16 %v8920_v10, %v8919_v12 }
 0x7ec   :  { %v1440_v14 = vpop.permute.xlu1 %1439 }
 0x7ed   :  { %8416 = vmatprep.subr.bf16.mxu0 %v8415_v13  ;;  %8072 = vmatprep.mubr.msk.f32.mxu1 %vm588_vm3, %v1440_v14  ;;  %v576_v14 = vld [vmem:[%s9556_s6 + $0x10] sm:$0xff] }
 0x7ee   :  { %8418 = vmatpush3.bf16.msra.mxu0 %v8415_v13 }
 0x7ef   :  { %8044 = vmatprep.subr.mxu0 %v575_v19 }
 0x7f0   :  { %v1442_v20 = vpop.permute.xlu1 %1441 }
 0x7f3   :  { %v9072_v15 = vpop.eup %9071 }
 0x7f4   :  { %v970_v16 = vsel %vm676_vm5, %v9072_v15, 0.0  ;;  %v9074_v17 = vpop.eup %9073 }
 0x7f5   :  { %971 = vadd.xlane.f32.xlu0 %v970_v16  ;;  %v973_v18 = vsel %vm676_vm5, %v9074_v17, 0.0 }
 0x7f9   :  { %974 = vadd.xlane.f32.xlu0 %v973_v18 }
 0x80f   :  { %8922 = vrot.lane.b32.xlu0 %v9811_v62, %s9472_s4 }
 0x821   :  { %v1249_v21 = vpop.xlane.xlu1 %1248 }
 0x822   :  { %v1253_v22 = vsub.f32 %v1245_v61, %v1249_v21 }
 0x824   :  { %v1255_v23 = vmul.f32 1.442695, %v1253_v22 }
 0x825   :  { %v8928_v35 = vpop.permute.xlu1 %8927 }
 0x826   :  { %9075 = vpow2.f32 %v1255_v23  ;;  %v8930_v39 = vunpack.i.h.bf16 %v8928_v35  ;;  %v8929_v40 = vunpack.i.l.bf16 %v8928_v35 }
 0x828   :  { %v8425_v43 = vpack.c.bf16 %v8930_v39, %v8929_v40 }
 0x829   :  { %v1727_v44 = vpop.permute.xlu1 %1726 }
 0x82d   :  { %v1729_v63 = vpop.permute.xlu1 %1728 }
 0x82e   :  { %1251 = vmax.xlane.f32.xlu0 %v1250_v26 }
 0x830   :  { %v9076_v27 = vpop.eup %9075 }
 0x831   :  { %v1259_v28 = vsel %vm676_vm5, %v9076_v27, 0.0 }
 0x832   :  { %1260 = vadd.xlane.f32.xlu0 %v1259_v28 }
 0x882   :  { %v972_v29 = vpop.xlane.xlu0 %971 }
 0x883   :  { %9077 = vrcp.f32 %v972_v29 }
 0x886   :  { %v975_v30 = vpop.xlane.xlu0 %974 }
 0x887   :  { %9079 = vrcp.f32 %v975_v30 }
 0x88a   :  { %v8923_v31 = vpop.permute.xlu0 %8922 }
 0x88b   :  { %v8925_v32 = vunpack.i.h.bf16 %v8923_v31  ;;  %v8924_v33 = vunpack.i.l.bf16 %v8923_v31 }
 0x88d   :  { %v9078_v34 = vpop.eup %9077  ;;  %v8429_v37 = vpack.c.bf16 %v8925_v32, %v8924_v33 }
 0x88e   :  { %v978_v38 = vmul.f32 %v9078_v34, %v9072_v15 }
 0x88f   :  { %8431 = vmatprep.subr.msk.bf16.mxu1 %vm9827_vm4, %v8429_v37 }
 0x890   :  { %8041 = vmatprep.mubr.msk.f32.mxu0 %vm676_vm5, %v978_v38  ;;  %8434 = vmatpush3.bf16.xpose.msk.msra.mxu1 %vm9827_vm4, %v8429_v37 }
 0x891   :  { %v9080_v41 = vpop.eup %9079 }
 0x892   :  { %v979_v42 = vmul.f32 %v9080_v41, %v9074_v17  ;;  %v577_v41 = vld [vmem:[%s9556_s6 + $0x18] sm:$0xff]  ;;  %s9477_s6 = smov 16  }
 0x894   :  { %8042 = vmatmul.mubr.msk.f32.vlgmr.msra.gmra.mrb[4].mxu0 %vm676_vm5, %v979_v42 }
 0x895   :  { %8045 = vmatpush3.msra.mxu0 %v575_v19 }
 0x896   :  { %8426 = vmatprep.subr.bf16.mxu0 %v8425_v43 }
 0x897   :  { %8073 = vmatmul.mubr.msk.f32.vlgmr.msra.gmra.mrb[12].mxu1 %vm588_vm3, %v1442_v20 }
 0x898   :  { %8091 = vmatprep.mubr.msk.f32.mxu1 %vm588_vm3, %v1727_v44 }
 0x8bb   :  { %v1252_v45 = vpop.xlane.xlu0 %1251 }
 0x8bc   :  { %v1254_v46 = vsub.f32 %v1246_v25, %v1252_v45 }
 0x8be   :  { %v1257_v47 = vmul.f32 1.442695, %v1254_v46 }
 0x8bf   :  { %v1261_v50 = vpop.xlane.xlu0 %1260 }
 0x8c0   :  { %9081 = vpow2.f32 %v1257_v47 }
 0x8c1   :  { %9083 = vrcp.f32 %v1261_v50 }
 0x8ca   :  { %v9082_v48 = vpop.eup %9081 }
 0x8cb   :  { %v1262_v49 = vsel %vm676_vm5, %v9082_v48, 0.0  ;;  %v9084_v56 = vpop.eup %9083 }
 0x8cc   :  { %1263 = vadd.xlane.f32.xlu0 %v1262_v49  ;;  %v1267_v1 = vmul.f32 %v9084_v56, %v9076_v27 }
 0x8e2   :  { %8932 = vrot.lane.b32.xlu0 %v9811_v62, %s9473_s0 }
 0x959   :  { %v1264_v51 = vpop.xlane.xlu0 %1263 }
 0x95a   :  { %9085 = vrcp.f32 %v1264_v51 }
 0x95d   :  { %v8933_v52 = vpop.permute.xlu0 %8932 }
 0x95e   :  { %v8935_v53 = vunpack.i.h.bf16 %v8933_v52  ;;  %v8934_v54 = vunpack.i.l.bf16 %v8933_v52 }
 0x960   :  { %v8439_v55 = vpack.c.bf16 %v8935_v53, %v8934_v54 }
 0x962   :  { %8441 = vmatprep.subr.msk.bf16.mxu1 %vm9827_vm4, %v8439_v55 }
 0x963   :  { %8444 = vmatpush3.bf16.xpose.msk.msra.mxu1 %vm9827_vm4, %v8439_v55 }
 0x964   :  { %v9086_v61 = vpop.eup %9085 }
 0x965   :  { %v1268_v7 = vmul.f32 %v9086_v61, %v9082_v48 }
 0x967   :  { %v8043_v57 = vpop.f32.mrb[4].mxu0 }
 0x968   :  { %v1060_v59 = vpop.f32.mrb[5].mxu0 }
 0x969   :  { %8046 = vmatprep.mubr.msk.f32.mxu0 %vm588_vm3, %v1060_v59 }
 0x96a   :  { %8047 = vmatmul.mubr.msk.f32.vlgmr.msra.gmra.mrb[2].mxu0 %vm588_vm3, %v8043_v57  ;;  %v8074_v2 = vpop.f32.mrb[12].mxu1  ;;  %8092 = vmatmul.mubr.msk.f32.vlgmr.msra.gmra.mrb[14].mxu1 %vm588_vm3, %v1729_v63 }
 0x96b   :  { %8428 = vmatpush3.bf16.msra.mxu0 %v8425_v43  ;;  %v1531_v3 = vmul.f32 0.35355338, %v8074_v2  ;;  %8060 = vmatprep.mubr.msk.f32.mxu0 %vm676_vm5, %v1267_v1  ;;  %v1521_v5 = vpop.f32.mrb[13].mxu1 }
 0x96c   :  { %v1530_v6 = vmul.f32 0.35355338, %v1521_v5  ;;  %8063 = vmatprep.subr.mxu0 %v576_v14 }
 0x96d   :  { %v1533_v9 = vadd.f32 %v1531_v3, %v9841_v11 }
 0x96e   :  { %8061 = vmatmul.mubr.msk.f32.vlgmr.msra.gmra.mrb[6].mxu0 %vm676_vm5, %v1268_v7  ;;  %v1532_v10 = vadd.f32 %v1530_v6, %v9838_v8 }
 0x96f   :  { %v1537_v12 = vsel %vm676_vm5, %v1533_v9, -inf  ;;  %8064 = vmatpush3.msra.mxu0 %v576_v14 }
 0x970   :  { %1538 = vmax.xlane.f32.xlu0 %v1537_v12  ;;  %v1534_v13 = vsel %vm676_vm5, %v1532_v10, -inf }
 0x971   :  { %1535 = vmax.xlane.f32.xlu1 %v1534_v13 }
 0x982   :  { %8937 = vrot.lane.b32.xlu1 %v9813_v0, %s9470_s24 }
 0x986   :  { %2013 = vrot.lane.b32.xlu1 %v9803_v58, %s9474_s2 }
 0x98a   :  { %2015 = vrot.lane.b32.xlu1 %v9807_v60, %s9474_s2 }
 0x9fd   :  { %v1539_v15 = vpop.xlane.xlu0 %1538 }
 0x9fe   :  { %v1541_v16 = vsub.f32 %v1533_v9, %v1539_v15  ;;  %v1536_v17 = vpop.xlane.xlu1 %1535 }
 0x9ff   :  { %v1540_v18 = vsub.f32 %v1532_v10, %v1536_v17 }
 0xa00   :  { %v1544_v19 = vmul.f32 1.442695, %v1541_v16 }
 0xa01   :  { %v1542_v20 = vmul.f32 1.442695, %v1540_v18 }
 0xa02   :  { %v8938_v21 = vpop.permute.xlu1 %8937 }
 0xa03   :  { %9087 = vpow2.f32 %v1542_v20  ;;  %v8940_v22 = vunpack.i.h.bf16 %v8938_v21  ;;  %v8939_v23 = vunpack.i.l.bf16 %v8938_v21 }
 0xa04   :  { %9089 = vpow2.f32 %v1544_v19 }
 0xa05   :  { %v8435_v24 = vpack.c.bf16 %v8940_v22, %v8939_v23 }
 0xa06   :  { %v2014_v25 = vpop.permute.xlu1 %2013 }
 0xa07   :  { %8436 = vmatprep.subr.bf16.mxu0 %v8435_v24  ;;  %8110 = vmatprep.mubr.msk.f32.mxu1 %vm588_vm3, %v2014_v25 }
 0xa0a   :  { %v2016_v52 = vpop.permute.xlu1 %2015 }
 0xa0d   :  { %v9088_v26 = vpop.eup %9087 }
 0xa0e   :  { %v1546_v27 = vsel %vm676_vm5, %v9088_v26, 0.0  ;;  %v9090_v28 = vpop.eup %9089 }
 0xa0f   :  { %1547 = vadd.xlane.f32.xlu0 %v1546_v27  ;;  %v1549_v29 = vsel %vm676_vm5, %v9090_v28, 0.0 }
 0xa13   :  { %1550 = vadd.xlane.f32.xlu0 %v1549_v29 }
 0xa29   :  { %8942 = vrot.lane.b32.xlu0 %v9811_v62, %s9475_s7 }
 0xa3d   :  { %v8093_v30 = vpop.f32.mrb[14].mxu1 }
 0xa3e   :  { %v1808_v31 = vpop.f32.mrb[15].mxu1  ;;  %v1818_v32 = vmul.f32 0.35355338, %v8093_v30 }
 0xa3f   :  { %v1817_v33 = vmul.f32 0.35355338, %v1808_v31 }
 0xa40   :  { %v1820_v39 = vadd.f32 %v1818_v32, %v9841_v11  ;;  %v578_v32 = vld [vmem:[%s9566_s20] sm:$0xff] }
 0xa41   :  { %v8062_v34 = vpop.f32.mrb[6].mxu0  ;;  %v1819_v35 = vadd.f32 %v1817_v33, %v9838_v8 }
 0xa42   :  { %v1347_v37 = vpop.f32.mrb[7].mxu0  ;;  %v1824_v40 = vsel %vm676_vm5, %v1820_v39, -inf }
 0xa43   :  { %8065 = vmatprep.mubr.msk.f32.mxu0 %vm588_vm3, %v1347_v37  ;;  %v1821_v38 = vsel %vm676_vm5, %v1819_v35, -inf }
 0xa44   :  { %1822 = vmax.xlane.f32.xlu1 %v1821_v38  ;;  %8066 = vmatmul.mubr.msk.f32.vlgmr.msra.gmra.mrb[2].mxu0 %vm588_vm3, %v8062_v34 }
 0xa45   :  { %8438 = vmatpush3.bf16.msra.mxu0 %v8435_v24 }
 0xa46   :  { %8082 = vmatprep.subr.mxu0 %v577_v41 }
 0xa48   :  { %1825 = vmax.xlane.f32.xlu0 %v1824_v40 }
 0xa55   :  { %8947 = vrot.lane.b32.xlu1 %v9813_v0, %s9471_s30 }
 0xa59   :  { %2300 = vrot.lane.b32.xlu1 %v9803_v58, %s9476_s10 }
 0xa5d   :  { %2302 = vrot.lane.b32.xlu1 %v9807_v60, %s9476_s10 }
 0xa9c   :  { %v1548_v42 = vpop.xlane.xlu0 %1547 }
 0xa9d   :  { %9091 = vrcp.f32 %v1548_v42 }
 0xaa0   :  { %v1551_v43 = vpop.xlane.xlu0 %1550 }
 0xaa1   :  { %9093 = vrcp.f32 %v1551_v43 }
 0xaa4   :  { %v8943_v44 = vpop.permute.xlu0 %8942 }
 0xaa5   :  { %v8945_v45 = vunpack.i.h.bf16 %v8943_v44  ;;  %v8944_v46 = vunpack.i.l.bf16 %v8943_v44 }
 0xaa7   :  { %v9092_v47 = vpop.eup %9091  ;;  %v8449_v48 = vpack.c.bf16 %v8945_v45, %v8944_v46 }
 0xaa8   :  { %v1554_v49 = vmul.f32 %v9092_v47, %v9088_v26 }
 0xaa9   :  { %8451 = vmatprep.subr.msk.bf16.mxu1 %vm9827_vm4, %v8449_v48 }
 0xaaa   :  { %8079 = vmatprep.mubr.msk.f32.mxu0 %vm676_vm5, %v1554_v49  ;;  %8454 = vmatpush3.bf16.xpose.msk.msra.mxu1 %vm9827_vm4, %v8449_v48 }
 0xaab   :  { %v9094_v50 = vpop.eup %9093 }
 0xaac   :  { %v1555_v51 = vmul.f32 %v9094_v50, %v9090_v28 }
 0xaae   :  { %8080 = vmatmul.mubr.msk.f32.vlgmr.msra.gmra.mrb[8].mxu0 %vm676_vm5, %v1555_v51 }
 0xaaf   :  { %8083 = vmatpush3.msra.mxu0 %v577_v41 }
 0xab1   :  { %8111 = vmatmul.mubr.msk.f32.vlgmr.msra.gmra.mrb[16].mxu1 %vm588_vm3, %v2016_v52 }
 0xad1   :  { %v1823_v53 = vpop.xlane.xlu1 %1822 }
 0xad2   :  { %v1827_v54 = vsub.f32 %v1819_v35, %v1823_v53 }
 0xad4   :  { %v1829_v55 = vmul.f32 1.442695, %v1827_v54 }
 0xad5   :  { %v1826_v56 = vpop.xlane.xlu0 %1825  ;;  %v8948_v57 = vpop.permute.xlu1 %8947 }
 0xad6   :  { %9095 = vpow2.f32 %v1829_v55  ;;  %v1828_v59 = vsub.f32 %v1820_v39, %v1826_v56  ;;  %v8950_v61 = vunpack.i.h.bf16 %v8948_v57  ;;  %v8949_v63 = vunpack.i.l.bf16 %v8948_v57 }
 0xad8   :  { %v1831_v1 = vmul.f32 1.442695, %v1828_v59  ;;  %v8445_v2 = vpack.c.bf16 %v8950_v61, %v8949_v63  ;;  %v579_v59 = vld [vmem:[%s9566_s20 + $0x8] sm:$0xff] }
 0xad9   :  { %v2301_v3 = vpop.permute.xlu1 %2300 }
 0xada   :  { %9097 = vpow2.f32 %v1831_v1  ;;  %8446 = vmatprep.subr.bf16.mxu0 %v8445_v2  ;;  %8129 = vmatprep.mubr.msk.f32.mxu1 %vm588_vm3, %v2301_v3 }
 0xadd   :  { %v2303_v21 = vpop.permute.xlu1 %2302 }
 0xae0   :  { %v9096_v5 = vpop.eup %9095 }
 0xae1   :  { %v1833_v6 = vsel %vm676_vm5, %v9096_v5, 0.0 }
 0xae2   :  { %1834 = vadd.xlane.f32.xlu0 %v1833_v6 }
 0xae4   :  { %v9098_v7 = vpop.eup %9097 }
 0xae5   :  { %v1836_v9 = vsel %vm676_vm5, %v9098_v7, 0.0 }
 0xae6   :  { %1837 = vadd.xlane.f32.xlu0 %v1836_v9 }
 0xafc   :  { %8952 = vrot.lane.b32.xlu0 %v9811_v62, %s9477_s6 }
 0xb6f   :  { %v1835_v10 = vpop.xlane.xlu0 %1834 }
 0xb70   :  { %9099 = vrcp.f32 %v1835_v10 }
 0xb73   :  { %v1838_v12 = vpop.xlane.xlu0 %1837 }
 0xb74   :  { %9101 = vrcp.f32 %v1838_v12 }
 0xb77   :  { %v8953_v13 = vpop.permute.xlu0 %8952 }
 0xb78   :  { %v8955_v14 = vunpack.i.h.bf16 %v8953_v13  ;;  %v8954_v15 = vunpack.i.l.bf16 %v8953_v13 }
 0xb7a   :  { %v8459_v16 = vpack.c.bf16 %v8955_v14, %v8954_v15  ;;  %v9100_v17 = vpop.eup %9099 }
 0xb7b   :  { %v1841_v22 = vmul.f32 %v9100_v17, %v9096_v5 }
 0xb7c   :  { %8461 = vmatprep.subr.msk.bf16.mxu1 %vm9827_vm4, %v8459_v16 }
 0xb7d   :  { %8464 = vmatpush3.bf16.xpose.msk.msra.mxu1 %vm9827_vm4, %v8459_v16 }
 0xb7e   :  { %v9102_v20 = vpop.eup %9101 }
 0xb7f   :  { %v1842_v27 = vmul.f32 %v9102_v20, %v9098_v7 }
 0xb81   :  { %v8081_v18 = vpop.f32.mrb[8].mxu0 }
 0xb82   :  { %v1634_v19 = vpop.f32.mrb[9].mxu0 }
 0xb83   :  { %8084 = vmatprep.mubr.msk.f32.mxu0 %vm588_vm3, %v1634_v19 }
 0xb84   :  { %8085 = vmatmul.mubr.msk.f32.vlgmr.msra.gmra.mrb[2].mxu0 %vm588_vm3, %v8081_v18  ;;  %v8112_v23 = vpop.f32.mrb[16].mxu1  ;;  %8130 = vmatmul.mubr.msk.f32.vlgmr.msra.gmra.mrb[18].mxu1 %vm588_vm3, %v2303_v21 }
 0xb85   :  { %8448 = vmatpush3.bf16.msra.mxu0 %v8445_v2  ;;  %v2105_v24 = vmul.f32 0.35355338, %v8112_v23  ;;  %8098 = vmatprep.mubr.msk.f32.mxu0 %vm676_vm5, %v1841_v22  ;;  %v2095_v25 = vpop.f32.mrb[17].mxu1  ;;  %v7465_v23 = vld [vmem:[%s9561_s12] ss:$0 sm:$0xff]  ;;  %s10900_s12 = sld [smem:[#allocation24_spill]] }
 0xb86   :  { %v2104_v26 = vmul.f32 0.35355338, %v2095_v25  ;;  %8101 = vmatprep.subr.mxu0 %v578_v32 }
 0xb87   :  { %v2107_v28 = vadd.f32 %v2105_v24, %v9841_v11 }
 0xb88   :  { %8099 = vmatmul.mubr.msk.f32.vlgmr.msra.gmra.mrb[10].mxu0 %vm676_vm5, %v1842_v27  ;;  %v2106_v29 = vadd.f32 %v2104_v26, %v9838_v8 }
 0xb89   :  { %v2111_v30 = vsel %vm676_vm5, %v2107_v28, -inf  ;;  %8102 = vmatpush3.msra.mxu0 %v578_v32  ;;  %v9288_v32 = vld [vmem:[%s9491_s5 + $0x8] sm:$0xff] }
 0xb8a   :  { %2112 = vmax.xlane.f32.xlu0 %v2111_v30  ;;  %v2108_v31 = vsel %vm676_vm5, %v2106_v29, -inf }
 0xb8b   :  { %2109 = vmax.xlane.f32.xlu1 %v2108_v31 }
 0xb9c   :  { %8957 = vrot.lane.b32.xlu1 %v9813_v0, %s9474_s2 }
 0xba0   :  { %2587 = vrot.lane.b32.xlu1 %v9803_v58, %s9478_s11 }
 0xba4   :  { %2589 = vrot.lane.b32.xlu1 %v9807_v60, %s9478_s11 }
 0xc17   :  { %v2113_v33 = vpop.xlane.xlu0 %2112 }
 0xc18   :  { %v2115_v34 = vsub.f32 %v2107_v28, %v2113_v33  ;;  %v2110_v35 = vpop.xlane.xlu1 %2109 }
 0xc19   :  { %v2114_v37 = vsub.f32 %v2106_v29, %v2110_v35  ;;  %v9287_v29 = vld [vmem:[%s9491_s5] sm:$0xff]  ;;  %s10899_s5 = sld [smem:[#allocation23_spill]] }
 0xc1a   :  { %v2118_v38 = vmul.f32 1.442695, %v2115_v34 }
 0xc1b   :  { %v2116_v39 = vmul.f32 1.442695, %v2114_v37 }
 0xc1c   :  { %v8958_v40 = vpop.permute.xlu1 %8957 }
 0xc1d   :  { %9103 = vpow2.f32 %v2116_v39  ;;  %v8960_v41 = vunpack.i.h.bf16 %v8958_v40  ;;  %v8959_v42 = vunpack.i.l.bf16 %v8958_v40 }
 0xc1e   :  { %9105 = vpow2.f32 %v2118_v38 }
 0xc1f   :  { %v8455_v43 = vpack.c.bf16 %v8960_v41, %v8959_v42 }
 0xc20   :  { %v2588_v44 = vpop.permute.xlu1 %2587 }
 0xc21   :  { %8456 = vmatprep.subr.bf16.mxu0 %v8455_v43  ;;  %8148 = vmatprep.mubr.msk.f32.mxu1 %vm588_vm3, %v2588_v44 }
 0xc24   :  { %v2590_v12 = vpop.permute.xlu1 %2589 }
 0xc27   :  { %v9104_v58 = vpop.eup %9103 }
 0xc28   :  { %v2120_v45 = vsel %vm676_vm5, %v9104_v58, 0.0  ;;  %v9106_v60 = vpop.eup %9105 }
 0xc29   :  { %2121 = vadd.xlane.f32.xlu0 %v2120_v45  ;;  %v2123_v46 = vsel %vm676_vm5, %v9106_v60, 0.0 }
 0xc2d   :  { %2124 = vadd.xlane.f32.xlu0 %v2123_v46 }
 0xc43   :  { %8962 = vrot.lane.b32.xlu0 %v9811_v62, %s9479_s15 }
 0xc57   :  { %v8086_v47 = vpop.f32.mrb[2].mxu0  ;;  %v8131_v48 = vpop.f32.mrb[18].mxu1 }
 0xc58   :  { %v1715_v49 = vpop.f32.mrb[3].mxu0  ;;  %v2382_v50 = vpop.f32.mrb[19].mxu1  ;;  %v2392_v51 = vmul.f32 0.35355338, %v8131_v48  ;;  %v8795_v28 = vadd.f32 %v8086_v47, %v7465_v23 }
 0xc59   :  { %v2391_v52 = vmul.f32 0.35355338, %v2382_v50  ;;  %v8796_v25 = vadd.f32 %v7465_v23, %v1715_v49  ;;  %v2934_v23 = vld [vmem:[%s9596_s21 + $0x70] sm:$0xff] }
 0xc5a   :  { %v2394_v57 = vadd.f32 %v2392_v51, %v9841_v11  ;;  %v10007_v33 = vadd.f32 %v9288_v32, %v8795_v28 }
 0xc5b   :  { %v8100_v53 = vpop.f32.mrb[10].mxu0  ;;  %v2393_v54 = vadd.f32 %v2391_v52, %v9838_v8  ;;  %v10003_v30 = vadd.f32 %v9287_v29, %v8796_v25  ;;  %v580_v25 = vld [vmem:[%s9566_s20 + $0x10] sm:$0xff] }
 0xc5c   :  { %v1921_v55 = vpop.f32.mrb[11].mxu0  ;;  %v2398_v62 = vsel %vm676_vm5, %v2394_v57, -inf  ;;  %v2881_v35 = vsel %vm278_vm0, %v10007_v33, 0.0 }
 0xc5d   :  { %8103 = vmatprep.mubr.msk.f32.mxu0 %vm588_vm3, %v1921_v55  ;;  %v2395_v56 = vsel %vm676_vm5, %v2393_v54, -inf  ;;  %v2878_v34 = vsel %vm278_vm0, %v10003_v30, 0.0 }
 0xc5e   :  { %2396 = vmax.xlane.f32.xlu1 %v2395_v56  ;;  %8104 = vmatmul.mubr.msk.f32.vlgmr.msra.gmra.mrb[12].mxu0 %vm588_vm3, %v8100_v53 }
 0xc5f   :  { %8458 = vmatpush3.bf16.msra.mxu0 %v8455_v43 }
 0xc60   :  { %8120 = vmatprep.subr.mxu0 %v579_v59 }
 0xc62   :  { %2399 = vmax.xlane.f32.xlu0 %v2398_v62 }
 0xc6f   :  { %8967 = vrot.lane.b32.xlu1 %v9813_v0, %s9476_s10 }
 0xcb6   :  { %v2122_v61 = vpop.xlane.xlu0 %2121 }
 0xcb7   :  { %9107 = vrcp.f32 %v2122_v61  ;;  %v2921_v61 = vld [vmem:[%s9596_s21 + $0x8] sm:$0xff] }
 0xcba   :  { %v2125_v63 = vpop.xlane.xlu0 %2124 }
 0xcbb   :  { %9109 = vrcp.f32 %v2125_v63 }
 0xcbe   :  { %v8963_v1 = vpop.permute.xlu0 %8962 }
 0xcbf   :  { %v8965_v2 = vunpack.i.h.bf16 %v8963_v1  ;;  %v8964_v3 = vunpack.i.l.bf16 %v8963_v1 }
 0xcc1   :  { %v9108_v5 = vpop.eup %9107  ;;  %v8469_v6 = vpack.c.bf16 %v8965_v2, %v8964_v3  ;;  %v2920_v2 = vld [vmem:[%s9596_s21] sm:$0xff]  ;;  %v2922_v3 = vld [vmem:[%s9596_s21 + $0x10] sm:$0xff] }
 0xcc2   :  { %v2128_v7 = vmul.f32 %v9108_v5, %v9104_v58  ;;  %v2925_v5 = vld [vmem:[%s9596_s21 + $0x28] sm:$0xff] }
 0xcc3   :  { %8471 = vmatprep.subr.msk.bf16.mxu1 %vm9827_vm4, %v8469_v6 }
 0xcc4   :  { %8117 = vmatprep.mubr.msk.f32.mxu0 %vm676_vm5, %v2128_v7  ;;  %8474 = vmatpush3.bf16.xpose.msk.msra.mxu1 %vm9827_vm4, %v8469_v6  ;;  %v2927_v6 = vld [vmem:[%s9596_s21 + $0x38] sm:$0xff] }
 0xcc5   :  { %v9110_v9 = vpop.eup %9109  ;;  %v8483_v7 = vpack.c.bf16 %v2927_v6, %v2925_v5 }
 0xcc6   :  { %v2129_v10 = vmul.f32 %v9110_v9, %v9106_v60  ;;  %v2924_v9 = vld [vmem:[%s9596_s21 + $0x20] sm:$0xff] }
 0xcc8   :  { %8118 = vmatmul.mubr.msk.f32.vlgmr.msra.gmra.mrb[14].mxu0 %vm676_vm5, %v2129_v10  ;;  %v2926_v10 = vld [vmem:[%s9596_s21 + $0x30] sm:$0xff] }
 0xcc9   :  { %8121 = vmatpush3.msra.mxu0 %v579_v59 }
 0xccb   :  { %8149 = vmatmul.mubr.msk.f32.vlgmr.msra.gmra.mrb[20].mxu1 %vm588_vm3, %v2590_v12  ;;  %v8485_v12 = vpack.c.bf16 %v2926_v10, %v2924_v9 }
 0xccc   :  { %3018 = vmatprep.mubr.f32.mxu1 %v9464_v36 }
 0xceb   :  { %v2397_v13 = vpop.xlane.xlu1 %2396 }
 0xcec   :  { %v2401_v14 = vsub.f32 %v2393_v54, %v2397_v13  ;;  %v2929_v13 = vld [vmem:[%s9596_s21 + $0x48] sm:$0xff] }
 0xcee   :  { %v2403_v15 = vmul.f32 1.442695, %v2401_v14  ;;  %v2931_v14 = vld [vmem:[%s9596_s21 + $0x58] sm:$0xff] }
 0xcef   :  { %v2400_v16 = vpop.xlane.xlu0 %2399  ;;  %v8968_v17 = vpop.permute.xlu1 %8967 }
 0xcf0   :  { %9111 = vpow2.f32 %v2403_v15  ;;  %v2402_v18 = vsub.f32 %v2394_v57, %v2400_v16  ;;  %v8970_v19 = vunpack.i.h.bf16 %v8968_v17  ;;  %v8969_v20 = vunpack.i.l.bf16 %v8968_v17  ;;  %v2928_v16 = vld [vmem:[%s9596_s21 + $0x40] sm:$0xff]  ;;  %v2930_v17 = vld [vmem:[%s9596_s21 + $0x50] sm:$0xff] }
 0xcf1   :  { %v8487_v15 = vpack.c.bf16 %v2931_v14, %v2929_v13 }
 0xcf2   :  { %v2405_v21 = vmul.f32 1.442695, %v2402_v18  ;;  %v8465_v22 = vpack.c.bf16 %v8970_v19, %v8969_v20  ;;  %v8489_v18 = vpack.c.bf16 %v2930_v17, %v2928_v16  ;;  %v2933_v19 = vld [vmem:[%s9596_s21 + $0x68] sm:$0xff]  ;;  %v2935_v20 = vld [vmem:[%s9596_s21 + $0x78] sm:$0xff] }
 0xcf4   :  { %9113 = vpow2.f32 %v2405_v21  ;;  %8466 = vmatprep.subr.bf16.mxu0 %v8465_v22  ;;  %v8491_v21 = vpack.c.bf16 %v2935_v20, %v2933_v19 }
 0xcfa   :  { %v9112_v24 = vpop.eup %9111 }
 0xcfb   :  { %v2407_v26 = vsel %vm676_vm5, %v9112_v24, 0.0 }
 0xcfc   :  { %2408 = vadd.xlane.f32.xlu0 %v2407_v26 }
 0xcfe   :  { %v9114_v27 = vpop.eup %9113 }
 0xcff   :  { %v2410_v31 = vsel %vm676_vm5, %v9114_v27, 0.0 }
 0xd00   :  { %2411 = vadd.xlane.f32.xlu0 %v2410_v31 }
 0xd04   :  { %2879 = vadd.xlane.f32.xlu0 %v2878_v34 }
 0xd08   :  { %2882 = vadd.xlane.f32.xlu0 %v2881_v35  ;;  %v7531_v35 = vld [vmem:[%s10899_s5] ss:$0 sm:$0xff]  ;;  %s10912_s5 = sld [smem:[#allocation25_spill]] }
 0xd89   :  { %v2409_v37 = vpop.xlane.xlu0 %2408 }
 0xd8a   :  { %9115 = vrcp.f32 %v2409_v37 }
 0xd8d   :  { %v2412_v38 = vpop.xlane.xlu0 %2411 }
 0xd8e   :  { %9117 = vrcp.f32 %v2412_v38 }
 0xd91   :  { %v2880_v39 = vpop.xlane.xlu0 %2879 }
 0xd92   :  { %v2884_v40 = vmul.f32 0.015625, %v2880_v39 }
 0xd94   :  { %v10014_v41 = vsub.f32 %v10003_v30, %v2884_v40  ;;  %v9116_v44 = vpop.eup %9115  ;;  %v7532_v40 = vld [vmem:[%s10900_s12] ss:$0 sm:$0xff]  ;;  %s10913_s12 = sld [smem:[#allocation26_spill]] }
 0xd95   :  { %v2883_v46 = vpop.xlane.xlu0 %2882  ;;  %v2415_v47 = vmul.f32 %v9116_v44, %v9112_v24 }
 0xd96   :  { %v2888_v42 = vmul.f32 %v10014_v41, %v10014_v41  ;;  %v2885_v51 = vmul.f32 0.015625, %v2883_v46 }
 0xd98   :  { %v2890_v43 = vsel %vm278_vm0, %v2888_v42, 0.0  ;;  %v9118_v60 = vpop.eup %9117  ;;  %v10025_v55 = vsub.f32 %v10007_v33, %v2885_v51 }
 0xd99   :  { %2891 = vadd.xlane.f32.xlu1 %v2890_v43  ;;  %v2416_v50 = vmul.f32 %v9118_v60, %v9114_v27 }
 0xd9a   :  { %v2889_v59 = vmul.f32 %v10025_v55, %v10025_v55 }
 0xd9b   :  { %v8119_v58 = vpop.f32.mrb[14].mxu0 }
 0xd9c   :  { %v2208_v45 = vpop.f32.mrb[15].mxu0  ;;  %v2893_v63 = vsel %vm278_vm0, %v2889_v59, 0.0 }
 0xd9d   :  { %8122 = vmatprep.mubr.msk.f32.mxu0 %vm588_vm3, %v2208_v45 }
 0xd9e   :  { %8123 = vmatmul.mubr.msk.f32.vlgmr.msra.gmra.mrb[12].mxu0 %vm588_vm3, %v8119_v58  ;;  %v8150_v48 = vpop.f32.mrb[20].mxu1 }
 0xd9f   :  { %8468 = vmatpush3.bf16.msra.mxu0 %v8465_v22  ;;  %8136 = vmatprep.mubr.msk.f32.mxu0 %vm676_vm5, %v2415_v47  ;;  %v2669_v49 = vpop.f32.mrb[21].mxu1  ;;  %v2679_v52 = vmul.f32 0.35355338, %v8150_v48  ;;  %v2932_v22 = vld [vmem:[%s9596_s21 + $0x60] sm:$0xff] }
 0xda0   :  { %v2678_v53 = vmul.f32 0.35355338, %v2669_v49  ;;  %v8493_v24 = vpack.c.bf16 %v2934_v23, %v2932_v22  ;;  %8139 = vmatprep.subr.mxu0 %v580_v25 }
 0xda1   :  { %v2681_v57 = vadd.f32 %v2679_v52, %v9841_v11  ;;  %v8481_v11 = vpack.c.bf16 %v2922_v3, %v2920_v2 }
 0xda2   :  { %8137 = vmatmul.mubr.msk.f32.vlgmr.msra.gmra.mrb[16].mxu0 %vm676_vm5, %v2416_v50  ;;  %v2680_v54 = vadd.f32 %v2678_v53, %v9838_v8  ;;  %v2923_v8 = vld [vmem:[%s9596_s21 + $0x18] sm:$0xff]  ;;  %s10901_s21 = sld [smem:[#allocation28_spill]] }
 0xda3   :  { %v2685_v62 = vsel %vm676_vm5, %v2681_v57, -inf  ;;  %v8479_v1 = vpack.c.bf16 %v2923_v8, %v2921_v61  ;;  %8140 = vmatpush3.msra.mxu0 %v580_v25 }
 0xda4   :  { %v2682_v56 = vsel %vm676_vm5, %v2680_v54, -inf }
 0xda5   :  { %2683 = vmax.xlane.f32.xlu0 %v2682_v56  ;;  %8480 = vmatprep.subr.bf16.mxu1 %v8479_v1  ;;  %v581_v1 = vld [vmem:[%s9566_s20 + $0x18] sm:$0xff]  ;;  %s10903_s20 = sld [smem:[#allocation34_spill]] }
 0xda6   :  { %8482 = vmatpush1.bf16.msra.mxu1 %v8481_v11 }
 0xda7   :  { %8484 = vmatprep.subr.bf16.mxu1 %v8483_v7 }
 0xda8   :  { %v3155_v7 = vld [vmem:[%s10901_s21 + $0x80] sm:$0xff]  ;;  %v3156_v9 = vld [vmem:[%s10901_s21 + $0x88] sm:$0xff] }
 0xda9   :  { %2686 = vmax.xlane.f32.xlu0 %v2685_v62  ;;  %v8495_v10 = vpack.c.bf16 %v3156_v9, %v3155_v7 }
 0xdaa   :  { %8486 = vmatpush1.bf16.msra.mxu1 %v8485_v12  ;;  %v2938_v12 = vlaneseq }
 0xdab   :  { %8488 = vmatprep.subr.bf16.mxu1 %v8487_v15  ;;  %v2936_v15 = vld [vmem:[%s10902_s27] sm:$0x3]  ;;  %s10915_s27 = sld [smem:[#allocation31_spill]] }
 0xdac   :  { %v2939_v13 = vshrl.u32 %v2938_v12, 7 }
 0xdad   :  { %2894 = vadd.xlane.f32.xlu0 %v2893_v63 }
 0xdae   :  { %8490 = vmatpush1.bf16.msra.mxu1 %v8489_v18  ;;  %v10069_v14 = vsub.s32 1, %v2939_v13  ;;  %v10079_v22 = vsub.s32 0, %v2939_v13 }
 0xdaf   :  { %8492 = vmatprep.subr.bf16.mxu1 %v8491_v21 }
 0xdb0   :  { %v2945_v16 = vrot.slane %v2936_v15, %v10069_v14  ;;  %v2941_v23 = vrot.slane %v2936_v15, %v10079_v22 }
 0xdb2   :  { %8494 = vmatpush1.bf16.msra.mxu1 %v8493_v24 }
 0xe26   :  { %v2892_v26 = vpop.xlane.xlu1 %2891 }
 0xe27   :  { %v2896_v27 = vmul.f32 0.015625, %v2892_v26 }
 0xe29   :  { %v2898_v28 = vadd.f32 1e-05, %v2896_v27 }
 0xe2b   :  { %9119 = vrsqrt.f32 %v2898_v28 }
 0xe32   :  { %v2684_v29 = vpop.xlane.xlu0 %2683 }
 0xe33   :  { %v2688_v31 = vsub.f32 %v2680_v54, %v2684_v29 }
 0xe35   :  { %v9120_v32 = vpop.eup %9119  ;;  %v2690_v34 = vmul.f32 1.442695, %v2688_v31 }
 0xe36   :  { %v2902_v37 = vmul.f32 %v9120_v32, %v10014_v41  ;;  %v2687_v38 = vpop.xlane.xlu0 %2686 }
 0xe37   :  { %9121 = vpow2.f32 %v2690_v34  ;;  %v2689_v39 = vsub.f32 %v2681_v57, %v2687_v38 }
 0xe38   :  { %v2910_v42 = vmul.f32 %v7531_v35, %v2902_v37 }
 0xe39   :  { %v2692_v43 = vmul.f32 1.442695, %v2689_v39 }
 0xe3a   :  { %v2895_v44 = vpop.xlane.xlu0 %2894  ;;  %v2918_v58 = vadd.f32 %v7532_v40, %v2910_v42 }
 0xe3b   :  { %9123 = vpow2.f32 %v2692_v43  ;;  %v2897_v45 = vmul.f32 0.015625, %v2895_v44 }
 0xe3c   :  { %7533 = vmatmul.mubr.msk.f32.vlgmr.msra.gmra.mrb[22].mxu1 %vm278_vm0, %v2918_v58 }
 0xe3d   :  { %v2899_v60 = vadd.f32 1e-05, %v2897_v45  ;;  %3024 = vmatprep.mubr.f32.mxu1 %v9464_v36 }
 0xe3f   :  { %9125 = vrsqrt.f32 %v2899_v60 }
 0xe41   :  { %v9122_v46 = vpop.eup %9121 }
 0xe42   :  { %v2694_v47 = vsel %vm676_vm5, %v9122_v46, 0.0 }
 0xe43   :  { %2695 = vadd.xlane.f32.xlu0 %v2694_v47 }
 0xe45   :  { %v9124_v41 = vpop.eup %9123 }
 0xe46   :  { %v2697_v48 = vsel %vm676_vm5, %v9124_v41, 0.0 }
 0xe47   :  { %2698 = vadd.xlane.f32.xlu0 %v2697_v48 }
 0xe49   :  { %v9126_v49 = vpop.eup %9125 }
 0xe4a   :  { %v2903_v50 = vmul.f32 %v9126_v49, %v10025_v55 }
 0xe4c   :  { %v2911_v51 = vmul.f32 %v7531_v35, %v2903_v50 }
 0xe4e   :  { %v2919_v52 = vadd.f32 %v7532_v40, %v2911_v51 }
 0xe50   :  { %7534 = vmatmul.mubr.msk.f32.gmra.mrb[24].mxu1 %vm278_vm0, %v2919_v52 }
 0xe51   :  { %3399 = vmatprep.mubr.f32.mxu1 %v9464_v36 }
 0xe5d   :  { %8972 = vrot.lane.b32.xlu0 %v9813_v0, %s9478_s11 }
 0xe75   :  { %v8138_v53 = vpop.f32.mrb[16].mxu0 }
 0xe76   :  { %v2495_v54 = vpop.f32.mrb[17].mxu0 }
 0xe77   :  { %8141 = vmatprep.mubr.msk.f32.mxu0 %vm588_vm3, %v2495_v54 }
 0xe78   :  { %8142 = vmatmul.mubr.msk.f32.vlgmr.msra.gmra.mrb[12].mxu0 %vm588_vm3, %v8138_v53 }
 0xed0   :  { %v2696_v56 = vpop.xlane.xlu0 %2695 }
 0xed1   :  { %9127 = vrcp.f32 %v2696_v56 }
 0xed4   :  { %v2699_v57 = vpop.xlane.xlu0 %2698 }
 0xed5   :  { %9129 = vrcp.f32 %v2699_v57 }
 0xed8   :  { %v8973_v55 = vpop.permute.xlu0 %8972 }
 0xed9   :  { %v8975_v62 = vunpack.i.h.bf16 %v8973_v55  ;;  %v8974_v59 = vunpack.i.l.bf16 %v8973_v55 }
 0xedb   :  { %v9128_v61 = vpop.eup %9127  ;;  %v8475_v8 = vpack.c.bf16 %v8975_v62, %v8974_v59 }
 0xedc   :  { %v2702_v63 = vmul.f32 %v9128_v61, %v9122_v46 }
 0xedd   :  { %8476 = vmatprep.subr.bf16.mxu0 %v8475_v8 }
 0xede   :  { %8478 = vmatpush3.bf16.msra.mxu0 %v8475_v8  ;;  %8155 = vmatprep.mubr.msk.f32.mxu0 %vm676_vm5, %v2702_v63 }
 0xedf   :  { %v9130_v0 = vpop.eup %9129  ;;  %8158 = vmatprep.subr.mxu0 %v581_v1 }
 0xee0   :  { %v2703_v2 = vmul.f32 %v9130_v0, %v9124_v41 }
 0xee2   :  { %8156 = vmatmul.mubr.msk.f32.vlgmr.msra.gmra.mrb[18].mxu0 %vm676_vm5, %v2703_v2 }
 0xee3   :  { %8159 = vmatpush3.msra.mxu0 %v581_v1 }
 0xee4   :  { %8496 = vmatprep.subr.bf16.mxu0 %v8495_v10 }
 0xf0f   :  { %v3020_v3 = vpop.f32.mrb[22].mxu1 }
 0xf10   :  { %v3022_v11 = vpop.f32.mrb[23].mxu1  ;;  %v10082_v25 = vadd.f32 %v3020_v3, %v2941_v23 }
 0xf11   :  { %v10073_v17 = vadd.f32 %v3022_v11, %v2945_v16 }
 0xf12   :  { %v10087_v28 = vmul.f32 0.70710677, %v10082_v25 }
 0xf13   :  { %v10076_v18 = vmul.f32 0.70710677, %v10073_v17 }
 0xf14   :  { %v3039_v34 = vand.u32 2147483647, %v10087_v28  ;;  %vm3119_vm7 = vcmp.ge.f32.partialorder %v10087_v28, 0.0 }
 0xf15   :  { %v3040_v19 = vand.u32 2147483647, %v10076_v18  ;;  %vm3120_vm6 = vcmp.ge.f32.partialorder %v10076_v18, 0.0 }
 0xf16   :  { %v3043_v39 = vmul.f32 0.3275911, %v3039_v34 }
 0xf17   :  { %v3044_v20 = vmul.f32 0.3275911, %v3040_v19  ;;  %v3096_v44 = vsub.f32 0.0, %v3040_v19 }
 0xf18   :  { %v3047_v58 = vadd.f32 1.0, %v3043_v39  ;;  %v3158_v39 = vld [vmem:[%s10901_s21 + $0x98] sm:$0xff] }
 0xf19   :  { %v3048_v21 = vadd.f32 1.0, %v3044_v20  ;;  %v3100_v47 = vmul.f32 %v3096_v44, %v3040_v19  ;;  %v3032_v44 = vmul.f32 0.5, %v10073_v17 }
 0xf1b   :  { %9131 = vrcp.f32 %v3048_v21  ;;  %v3105_v49 = vmul.f32 1.442695, %v3100_v47  ;;  %v3141_v47 = vld [vmem:[%s10901_s21 + $0x10] sm:$0xff] }
 0xf1c   :  { %9133 = vrcp.f32 %v3047_v58 }
 0xf23   :  { %v3026_v5 = vpop.f32.mrb[24].mxu1 }
 0xf24   :  { %v3028_v6 = vpop.f32.mrb[25].mxu1  ;;  %v10089_v29 = vadd.f32 %v3026_v5, %v2941_v23  ;;  %v3139_v23 = vld [vmem:[%s10901_s21] sm:$0xff] }
 0xf25   :  { %v9132_v24 = vpop.eup %9131  ;;  %v10084_v26 = vadd.f32 %v3028_v6, %v2945_v16  ;;  %v3095_v6 = vsub.f32 0.0, %v3039_v34 }
 0xf26   :  { %v3060_v27 = vmul.f32 1.0614054, %v9132_v24  ;;  %v10096_v35 = vmul.f32 0.70710677, %v10089_v29  ;;  %v10100_v51 = vpop.eup %9133 }
 0xf27   :  { %v10092_v31 = vmul.f32 0.70710677, %v10084_v26  ;;  %v3059_v54 = vmul.f32 1.0614054, %v10100_v51  ;;  %v3099_v15 = vmul.f32 %v3095_v6, %v3039_v34 }
 0xf28   :  { %v3064_v32 = vadd.f32 -1.4531521, %v3060_v27  ;;  %v3041_v40 = vand.u32 2147483647, %v10096_v35  ;;  %vm3121_vm9 = vcmp.ge.f32.partialorder %v10096_v35, 0.0 }
 0xf29   :  { %v3042_v37 = vand.u32 2147483647, %v10092_v31  ;;  %v3063_v59 = vadd.f32 -1.4531521, %v3059_v54  ;;  %v3103_v18 = vmul.f32 1.442695, %v3099_v15 }
 0xf2a   :  { %v3068_v38 = vmul.f32 %v9132_v24, %v3064_v32  ;;  %v3045_v45 = vmul.f32 0.3275911, %v3041_v40  ;;  %v3097_v16 = vsub.f32 0.0, %v3041_v40  ;;  %vm3122_vm8 = vcmp.ge.f32.partialorder %v10092_v31, 0.0 }
 0xf2b   :  { %v3046_v42 = vmul.f32 0.3275911, %v3042_v37  ;;  %v3067_v1 = vmul.f32 %v10100_v51, %v3063_v59  ;;  %v3098_v10 = vsub.f32 0.0, %v3042_v37  ;;  %v3144_v59 = vld [vmem:[%s10901_s21 + $0x28] sm:$0xff]  ;;  %v3034_v31 = vmul.f32 0.5, %v10084_v26 }
 0xf2c   :  { %v3072_v43 = vadd.f32 1.4214138, %v3068_v38  ;;  %v3049_v41 = vadd.f32 1.0, %v3045_v45  ;;  %v3157_v38 = vld [vmem:[%s10901_s21 + $0x90] sm:$0xff] }
 0xf2d   :  { %v3050_v60 = vadd.f32 1.0, %v3046_v42  ;;  %v3071_v11 = vadd.f32 1.4214138, %v3067_v1  ;;  %v3102_v21 = vmul.f32 %v3098_v10, %v3042_v37 }
 0xf2e   :  { %v3076_v46 = vmul.f32 %v9132_v24, %v3072_v43  ;;  %v3101_v43 = vmul.f32 %v3097_v16, %v3041_v40  ;;  %v3160_v40 = vld [vmem:[%s10901_s21 + $0xa8] sm:$0xff] }
 0xf2f   :  { %9135 = vrcp.f32 %v3050_v60  ;;  %v3075_v12 = vmul.f32 %v10100_v51, %v3071_v11  ;;  %v3109_v58 = vmul.f32 1.442695, %v3102_v21  ;;  %v3145_v11 = vld [vmem:[%s10901_s21 + $0x30] sm:$0xff] }
 0xf30   :  { %v3080_v48 = vadd.f32 -0.28449672, %v3076_v46  ;;  %9137 = vrcp.f32 %v3049_v41  ;;  %v8499_v46 = vpack.c.bf16 %v3158_v39, %v3157_v38  ;;  %v3142_v41 = vld [vmem:[%s10901_s21 + $0x18] sm:$0xff]  ;;  %v3107_v17 = vmul.f32 1.442695, %v3101_v43 }
 0xf31   :  { %9139 = vpow2.f32 %v3105_v49  ;;  %v3079_v27 = vadd.f32 -0.28449672, %v3075_v12 }
 0xf32   :  { %v3084_v50 = vmul.f32 %v9132_v24, %v3080_v48  ;;  %9141 = vpow2.f32 %v3103_v18  ;;  %v3150_v18 = vld [vmem:[%s10901_s21 + $0x58] sm:$0xff] }
 0xf33   :  { %v3083_v48 = vmul.f32 %v10100_v51, %v3079_v27  ;;  %9143 = vpow2.f32 %v3109_v58 }
 0xf34   :  { %v3088_v52 = vadd.f32 0.2548296, %v3084_v50  ;;  %v3159_v50 = vld [vmem:[%s10901_s21 + $0xa0] sm:$0xff]  ;;  %9145 = vpow2.f32 %v3107_v17  ;;  %v3153_v17 = vld [vmem:[%s10901_s21 + $0x70] sm:$0xff] }
 0xf36   :  { %v3092_v57 = vmul.f32 %v9132_v24, %v3088_v52  ;;  %v3140_v24 = vld [vmem:[%s10901_s21 + $0x8] sm:$0xff] }
 0xf37   :  { %v8497_v37 = vpack.c.bf16 %v3140_v24, %v3139_v23  ;;  %v3165_v24 = vld [vmem:[%s10901_s21 + $0xd0] sm:$0xff] }
 0xf39   :  { %v10102_v53 = vpop.eup %9135 }
 0xf3a   :  { %v10105_v56 = vpop.eup %9137  ;;  %v3062_v55 = vmul.f32 1.0614054, %v10102_v53 }
 0xf3b   :  { %v9140_v62 = vpop.eup %9139  ;;  %v3061_v61 = vmul.f32 1.0614054, %v10105_v56 }
 0xf3c   :  { %v3112_v8 = vmul.f32 %v9140_v62, %v3092_v57  ;;  %v3066_v63 = vadd.f32 -1.4531521, %v3062_v55  ;;  %v8501_v57 = vpack.c.bf16 %v3142_v41, %v3141_v47  ;;  %v8503_v55 = vpack.c.bf16 %v3160_v40, %v3159_v50  ;;  %v3143_v62 = vld [vmem:[%s10901_s21 + $0x20] sm:$0xff]  ;;  %v9142_v15 = vpop.eup %9141  ;;  %v3169_v41 = vld [vmem:[%s10901_s21 + $0xf0] sm:$0xff] }
 0xf3d   :  { %v3065_v0 = vadd.f32 -1.4531521, %v3061_v61  ;;  %v3087_v61 = vadd.f32 0.2548296, %v3083_v48  ;;  %v9144_v21 = vpop.eup %9143  ;;  %v3170_v48 = vld [vmem:[%s10901_s21 + $0xf8] sm:$0xff] }
 0xf3e   :  { %v3116_v2 = vsub.f32 1.0, %v3112_v8  ;;  %v3070_v3 = vmul.f32 %v10102_v53, %v3066_v63  ;;  %v3161_v8 = vld [vmem:[%s10901_s21 + $0xb0] sm:$0xff]  ;;  %v3162_v63 = vld [vmem:[%s10901_s21 + $0xb8] sm:$0xff]  ;;  %v9146_v38 = vpop.eup %9145 }
 0xf3f   :  { %v3069_v5 = vmul.f32 %v10105_v56, %v3065_v0  ;;  %v3091_v6 = vmul.f32 %v10100_v51, %v3087_v61  ;;  %v3166_v51 = vld [vmem:[%s10901_s21 + $0xd8] sm:$0xff] }
 0xf40   :  { %v3124_v7 = vsub.f32 0.0, %v3116_v2  ;;  %v3074_v9 = vadd.f32 1.4214138, %v3070_v3  ;;  %v8507_v3 = vpack.c.bf16 %v3162_v63, %v3161_v8  ;;  %v8515_v39 = vpack.c.bf16 %v3166_v51, %v3165_v24 }
 0xf41   :  { %v3073_v13 = vadd.f32 1.4214138, %v3069_v5  ;;  %v3146_v5 = vld [vmem:[%s10901_s21 + $0x38] sm:$0xff]  ;;  %v3111_v23 = vmul.f32 %v9142_v15, %v3091_v6  ;;  %v3648_v15 = vld [vmem:[%s10903_s20 + $0x30] sm:$0xff] }
 0xf42   :  { %v3128_v19 = vsel %vm3120_vm6, %v3116_v2, %v3124_v7  ;;  %v3078_v20 = vmul.f32 %v10102_v53, %v3074_v9  ;;  %v8505_v2 = vpack.c.bf16 %v3144_v59, %v3143_v62  ;;  %v3163_v7 = vld [vmem:[%s10901_s21 + $0xc0] sm:$0xff]  ;;  %v3164_v9 = vld [vmem:[%s10901_s21 + $0xc8] sm:$0xff]  ;;  %vm9481_vm6 = vmmov 0  }
 0xf43   :  { %v3132_v32 = vadd.f32 1.0, %v3128_v19  ;;  %v3077_v42 = vmul.f32 %v10105_v56, %v3073_v13  ;;  %v8509_v13 = vpack.c.bf16 %v3146_v5, %v3145_v11  ;;  %v8511_v16 = vpack.c.bf16 %v3164_v9, %v3163_v7  ;;  %v3147_v19 = vld [vmem:[%s10901_s21 + $0x40] sm:$0xff]  ;;  %v3643_v62 = vld [vmem:[%s10903_s20 + $0x8] sm:$0xff] }
 0xf44   :  { %v3082_v34 = vadd.f32 -0.28449672, %v3078_v20  ;;  %v3148_v20 = vld [vmem:[%s10901_s21 + $0x48] sm:$0xff]  ;;  %v3115_v43 = vsub.f32 1.0, %v3111_v23  ;;  %v3031_v11 = vmul.f32 0.5, %v10082_v25  ;;  %v3646_v9 = vld [vmem:[%s10903_s20 + $0x20] sm:$0xff] }
 0xf45   :  { %v3136_v49 = vmul.f32 %v3132_v32, %v3032_v44  ;;  %v3081_v52 = vadd.f32 -0.28449672, %v3077_v42  ;;  %v3149_v42 = vld [vmem:[%s10901_s21 + $0x50] sm:$0xff]  ;;  %v3168_v44 = vld [vmem:[%s10901_s21 + $0xe8] sm:$0xff] }
 0xf46   :  { %v3086_v54 = vmul.f32 %v10102_v53, %v3082_v34  ;;  %v3167_v34 = vld [vmem:[%s10901_s21 + $0xe0] sm:$0xff]  ;;  %v3123_v47 = vsub.f32 0.0, %v3115_v43 }
 0xf47   :  { %v3085_v1 = vmul.f32 %v10105_v56, %v3081_v52  ;;  %v8523_v52 = vpack.c.bf16 %v3170_v48, %v3169_v41 }
 0xf48   :  { %v3090_v0 = vadd.f32 0.2548296, %v3086_v54  ;;  %v3154_v54 = vld [vmem:[%s10901_s21 + $0x78] sm:$0xff] }
 0xf49   :  { %v3089_v10 = vadd.f32 0.2548296, %v3085_v1  ;;  %v8525_v8 = vpack.c.bf16 %v3154_v54, %v3153_v17 }
 0xf4a   :  { %v3094_v12 = vmul.f32 %v10102_v53, %v3090_v0  ;;  %v8513_v53 = vpack.c.bf16 %v3148_v20, %v3147_v19 }
 0xf4b   :  { %v3093_v27 = vmul.f32 %v10105_v56, %v3089_v10  ;;  %v8517_v56 = vpack.c.bf16 %v3150_v18, %v3149_v42  ;;  %v3647_v10 = vld [vmem:[%s10903_s20 + $0x28] sm:$0xff] }
 0xf4c   :  { %v3114_v32 = vmul.f32 %v9144_v21, %v3094_v12  ;;  %v3033_v12 = vmul.f32 0.5, %v10089_v29  ;;  %v8583_v26 = vpack.c.bf16 %v3647_v10, %v3646_v9  ;;  %v3639_v29 = vld [vmem:[%s10904_s16 + $0x8] sm:$0xff] }
 0xf4d   :  { %v3113_v58 = vmul.f32 %v9146_v38, %v3093_v27 }
 0xfb5   :  { %v8157_v45 = vpop.f32.mrb[18].mxu0 }
 0xfb6   :  { %v2782_v60 = vpop.f32.mrb[19].mxu0 }
 0xfb7   :  { %8160 = vmatprep.mubr.msk.f32.mxu0 %vm588_vm3, %v2782_v60  ;;  %v3151_v60 = vld [vmem:[%s10901_s21 + $0x60] sm:$0xff] }
 0xfb8   :  { %8161 = vmatmul.mubr.msk.f32.vlgmr.msra.gmra.mrb[12].mxu0 %vm588_vm3, %v8157_v45  ;;  %v3118_v45 = vsub.f32 1.0, %v3114_v32 }
 0xfb9   :  { %8498 = vmatpush3.bf16.msra.mxu0 %v8497_v37  ;;  %3235 = vmatprep.mubr.f32.mxu0 %v3136_v49  ;;  %v8519_v37 = vpack.c.bf16 %v3168_v44, %v3167_v34  ;;  %v3117_v49 = vsub.f32 1.0, %v3113_v58  ;;  %v7541_v44 = vld [vmem:[%s10906_s22] ss:$0 sm:$0xff] }
 0xfba   :  { %8500 = vmatprep.subr.bf16.mxu0 %v8499_v46  ;;  %v3152_v46 = vld [vmem:[%s10901_s21 + $0x68] sm:$0xff]  ;;  %v3126_v50 = vsub.f32 0.0, %v3118_v45  ;;  %s10914_s21 = sld [smem:[#allocation32_spill]] }
 0xfbb   :  { %v8521_v40 = vpack.c.bf16 %v3152_v46, %v3151_v60  ;;  %v3125_v59 = vsub.f32 0.0, %v3117_v49 }
 0xfbc   :  { %v3130_v61 = vsel %vm3122_vm8, %v3118_v45, %v3126_v50 }
 0xfbd   :  { %8502 = vmatpush3.bf16.msra.mxu0 %v8501_v57  ;;  %v3127_v57 = vsel %vm3119_vm7, %v3115_v43, %v3123_v47  ;;  %v3134_v1 = vadd.f32 1.0, %v3130_v61  ;;  %v3129_v0 = vsel %vm3121_vm9, %v3117_v49, %v3125_v59 }
 0xfbe   :  { %8504 = vmatprep.subr.bf16.mxu0 %v8503_v55  ;;  %v3642_v55 = vld [vmem:[%s10903_s20] sm:$0xff]  ;;  %v3131_v63 = vadd.f32 1.0, %v3127_v57  ;;  %v3133_v6 = vadd.f32 1.0, %v3129_v0 }
 0xfbf   :  { %v8575_v28 = vpack.c.bf16 %v3643_v62, %v3642_v55  ;;  %v3138_v35 = vmul.f32 %v3134_v1, %v3034_v31 }
 0xfc0   :  { %v3135_v5 = vmul.f32 %v3131_v63, %v3031_v11  ;;  %v3137_v25 = vmul.f32 %v3133_v6, %v3033_v12 }
 0xfc1   :  { %8506 = vmatpush3.bf16.msra.mxu0 %v8505_v2  ;;  %v3644_v2 = vld [vmem:[%s10903_s20 + $0x10] sm:$0xff] }
 0xfc2   :  { %8508 = vmatprep.subr.bf16.mxu0 %v8507_v3  ;;  %v3645_v3 = vld [vmem:[%s10903_s20 + $0x18] sm:$0xff] }
 0xfc3   :  { %v8579_v7 = vpack.c.bf16 %v3645_v3, %v3644_v2 }
 0xfc5   :  { %8510 = vmatpush3.bf16.msra.mxu0 %v8509_v13  ;;  %v3638_v13 = vld [vmem:[%s10904_s16] sm:$0xff] }
 0xfc6   :  { %8512 = vmatprep.subr.bf16.mxu0 %v8511_v16  ;;  %v3649_v16 = vld [vmem:[%s10903_s20 + $0x38] sm:$0xff]  ;;  %s10932_s20 = sld [smem:[#allocation21_spill]] }
 0xfc7   :  { %v8587_v19 = vpack.c.bf16 %v3649_v16, %v3648_v15 }
 0xfc9   :  { %8514 = vmatpush3.bf16.msra.mxu0 %v8513_v53 }
 0xfca   :  { %8516 = vmatprep.subr.bf16.mxu0 %v8515_v39  ;;  %v7535_v39 = vld [vmem:[%s10905_s18] ss:$0 sm:$0xff] }
 0xfcd   :  { %8518 = vmatpush3.bf16.msra.mxu0 %v8517_v56 }
 0xfce   :  { %8520 = vmatprep.subr.bf16.mxu0 %v8519_v37 }
 0xfd1   :  { %8522 = vmatpush3.bf16.msra.mxu0 %v8521_v40 }
 0xfd2   :  { %8524 = vmatprep.subr.bf16.mxu0 %v8523_v52 }
 0xfd5   :  { %8526 = vmatpush3.bf16.msra.mxu0 %v8525_v8 }
 0xfd6   :  { %8576 = vmatprep.subr.bf16.mxu0 %v8575_v28 }
 0xfd8   :  { %3236 = vmatmul.mubr.f32.vlgmr.msra.gmra.mrb[20].mxu0 %v3135_v5 }
 0xfd9   :  { %3240 = vmatprep.mubr.f32.mxu0 %v3138_v35  ;;  %8578 = vmatpush3.bf16.msra.mxu0 %v8575_v28 }
 0xfda   :  { %8580 = vmatprep.subr.bf16.mxu0 %v8579_v7 }
 0xfdc   :  { %3241 = vmatmul.mubr.f32.gmra.mrb[22].mxu0 %v3137_v25 }
 0xfdd   :  { %8582 = vmatpush3.bf16.msra.mxu0 %v8579_v7  ;;  %8179 = vmatprep.mubr.msk.f32.mxu0 %vm278_vm0, %v3638_v13 }
 0xfde   :  { %8584 = vmatprep.subr.bf16.mxu0 %v8583_v26 }
 0xfe1   :  { %8586 = vmatpush3.bf16.msra.mxu0 %v8583_v26 }
 0xfe2   :  { %8588 = vmatprep.subr.bf16.mxu0 %v8587_v19 }
 0xfe5   :  { %8590 = vmatpush3.bf16.msra.mxu0 %v8587_v19 }
 0xfe8   :  { %8180 = vmatmul.mubr.msk.f32.vlgmr.msra.gmra.mrb[24].mxu0 %vm278_vm0, %v3639_v29 }
 0xfe9   :  { %3922 = vmatprep.mubr.f32.mxu0 %v9464_v36 }
0x108b   :  { %v10174_v20 = vpop.f32.mrb[12].mxu0 }
0x108c   :  { %v10176_v21 = vpop.f32.mrb[13].mxu0 }
0x10ab   :  { %v7760_v23 = vpop.f32.mrb[20].mxu0 }
0x10ac   :  { %v7761_v24 = vpop.f32.mrb[21].mxu0 }
0x10ad   :  { %v7762_v51 = vadd.f32 %v7761_v24, %v7760_v23 }
0x10af   :  { %v7763_v27 = vpop.f32.mrb[22].mxu0  ;;  %v3246_v53 = vadd.f32 %v7762_v51, %v10003_v30 }
0x10b0   :  { %v7764_v32 = vpop.f32.mrb[23].mxu0 }
0x10b1   :  { %v7765_v38 = vadd.f32 %v7764_v32, %v7763_v27  ;;  %v10181_v18 = vadd.f32 %v7535_v39, %v3246_v53 }
0x10b3   :  { %v3247_v42 = vadd.f32 %v7765_v38, %v10007_v33 }
0x10b5   :  { %v10183_v43 = vadd.f32 %v7535_v39, %v3247_v42  ;;  %v7466_v39 = vld [vmem:[%s10907_s23] ss:$0 sm:$0xff] }
0x10b7   :  { %v8787_v34 = vpack.c.bf16 %v10183_v43, %v10181_v18 }
0x10bb   :  { %v8181_v58 = vpop.f32.mrb[24].mxu0 }
0x10bc   :  { %v3735_v45 = vadd.f32 %v8181_v58, %v7541_v44  ;;  %v3729_v56 = vpop.f32.mrb[25].mxu0 }
0x10bd   :  { %v3730_v37 = vadd.f32 %v7541_v44, %v3729_v56  ;;  %v10191_v56 = vadd.f32 %v7466_v39, %v10176_v21 }
0x10be   :  { %v3741_v60 = vmul.f32 0.70710677, %v3735_v45  ;;  %v3739_v51 = vmul.f32 0.5, %v3735_v45 }
0x10bf   :  { %v3740_v46 = vmul.f32 0.70710677, %v3730_v37  ;;  %v3738_v53 = vmul.f32 0.5, %v3730_v37  ;;  %v3259_v45 = vsel %vm278_vm0, %v10191_v56, 0.0 }
0x10c0   :  { %v3743_v47 = vand.u32 2147483647, %v3741_v60  ;;  %vm3783_vm10 = vcmp.ge.f32.partialorder %v3741_v60, 0.0  ;;  %v10195_v60 = vadd.f32 %v10174_v20, %v7466_v39 }
0x10c1   :  { %v3742_v30 = vand.u32 2147483647, %v3740_v46  ;;  %vm3782_vm11 = vcmp.ge.f32.partialorder %v3740_v46, 0.0 }
0x10c2   :  { %v3745_v41 = vmul.f32 0.3275911, %v3743_v47  ;;  %v3771_v50 = vsub.f32 0.0, %v3743_v47  ;;  %v3262_v37 = vsel %vm278_vm0, %v10195_v60, 0.0 }
0x10c3   :  { %v3744_v48 = vmul.f32 0.3275911, %v3742_v30  ;;  %v3770_v40 = vsub.f32 0.0, %v3742_v30 }
0x10c4   :  { %v3747_v49 = vadd.f32 1.0, %v3745_v41  ;;  %v3773_v17 = vmul.f32 %v3771_v50, %v3743_v47 }
0x10c5   :  { %v3746_v33 = vadd.f32 1.0, %v3744_v48  ;;  %v3772_v57 = vmul.f32 %v3770_v40, %v3742_v30 }
0x10c6   :  { %9147 = vrcp.f32 %v3747_v49  ;;  %v3776_v61 = vmul.f32 1.442695, %v3773_v17 }
0x10c7   :  { %9149 = vrcp.f32 %v3746_v33  ;;  %v3774_v63 = vmul.f32 1.442695, %v3772_v57 }
0x10c8   :  { %9151 = vpow2.f32 %v3776_v61 }
0x10c9   :  { %9153 = vpow2.f32 %v3774_v63 }
0x10d0   :  { %v9148_v52 = vpop.eup %9147 }
0x10d1   :  { %v9150_v54 = vpop.eup %9149  ;;  %v3753_v55 = vmul.f32 1.0614054, %v9148_v52 }
0x10d2   :  { %v3752_v62 = vmul.f32 1.0614054, %v9150_v54  ;;  %v9152_v12 = vpop.eup %9151 }
0x10d3   :  { %v3755_v59 = vadd.f32 -1.4531521, %v3753_v55  ;;  %v9154_v26 = vpop.eup %9153 }
0x10d4   :  { %v3754_v8 = vadd.f32 -1.4531521, %v3752_v62 }
0x10d5   :  { %v3757_v28 = vmul.f32 %v9148_v52, %v3755_v59 }
0x10d6   :  { %v3756_v1 = vmul.f32 %v9150_v54, %v3754_v8 }
0x10d7   :  { %v3759_v0 = vadd.f32 1.4214138, %v3757_v28  ;;  %v3837_v28 = vld [vmem:[%s10908_s26 + $0x8] sm:$0xff] }
0x10d8   :  { %v3758_v2 = vadd.f32 1.4214138, %v3756_v1  ;;  %v3839_v1 = vld [vmem:[%s10908_s26 + $0x18] sm:$0xff] }
0x10d9   :  { %v3761_v3 = vmul.f32 %v9148_v52, %v3759_v0  ;;  %v8591_v0 = vpack.c.bf16 %v3839_v1, %v3837_v28 }
0x10da   :  { %v3760_v11 = vmul.f32 %v9150_v54, %v3758_v2  ;;  %v3836_v2 = vld [vmem:[%s10908_s26] sm:$0xff] }
0x10db   :  { %v3763_v31 = vadd.f32 -0.28449672, %v3761_v3  ;;  %v3838_v3 = vld [vmem:[%s10908_s26 + $0x10] sm:$0xff]  ;;  %8592 = vmatprep.subr.bf16.mxu0 %v8591_v0 }
0x10dc   :  { %v3762_v5 = vadd.f32 -0.28449672, %v3760_v11  ;;  %v8593_v11 = vpack.c.bf16 %v3838_v3, %v3836_v2 }
0x10dd   :  { %v3765_v6 = vmul.f32 %v9148_v52, %v3763_v31  ;;  %v3841_v31 = vld [vmem:[%s10908_s26 + $0x28] sm:$0xff] }
0x10de   :  { %v3764_v7 = vmul.f32 %v9150_v54, %v3762_v5  ;;  %8594 = vmatpush1.bf16.msra.mxu0 %v8593_v11  ;;  %v3843_v5 = vld [vmem:[%s10908_s26 + $0x38] sm:$0xff] }
0x10df   :  { %v3767_v35 = vadd.f32 0.2548296, %v3765_v6  ;;  %v8595_v6 = vpack.c.bf16 %v3843_v5, %v3841_v31 }
0x10e0   :  { %v3766_v9 = vadd.f32 0.2548296, %v3764_v7  ;;  %v3840_v7 = vld [vmem:[%s10908_s26 + $0x20] sm:$0xff] }
0x10e1   :  { %v3769_v10 = vmul.f32 %v9148_v52, %v3767_v35  ;;  %v3842_v35 = vld [vmem:[%s10908_s26 + $0x30] sm:$0xff]  ;;  %8596 = vmatprep.subr.bf16.mxu0 %v8595_v6 }
0x10e2   :  { %v3768_v25 = vmul.f32 %v9150_v54, %v3766_v9  ;;  %v8597_v9 = vpack.c.bf16 %v3842_v35, %v3840_v7  ;;  %v7544_v35 = vld [vmem:[%s10910_s28] ss:$0 sm:$0xff] }
0x10e3   :  { %v3779_v13 = vmul.f32 %v9152_v12, %v3769_v10  ;;  %v3302_v10 = vld [vmem:[%s10909_s29 + $0x8] sm:$0xff]  ;;  %v3304_v12 = vld [vmem:[%s10909_s29 + $0x18] sm:$0xff] }
0x10e4   :  { %v3778_v15 = vmul.f32 %v9154_v26, %v3768_v25  ;;  %8598 = vmatpush1.bf16.msra.mxu0 %v8597_v9  ;;  %v3845_v25 = vld [vmem:[%s10908_s26 + $0x48] sm:$0xff]  ;;  %v8527_v26 = vpack.c.bf16 %v3304_v12, %v3302_v10  ;;  %v7545_v10 = vld [vmem:[%s10911_s1] ss:$0 sm:$0xff] }
0x10e5   :  { %v3781_v16 = vsub.f32 1.0, %v3779_v13  ;;  %v3847_v13 = vld [vmem:[%s10908_s26 + $0x58] sm:$0xff] }
0x10e6   :  { %v3780_v19 = vsub.f32 1.0, %v3778_v15  ;;  %v3301_v15 = vld [vmem:[%s10909_s29] sm:$0xff]  ;;  %8528 = vmatprep.subr.bf16.mxu1 %v8527_v26 }
0x10e7   :  { %v3785_v29 = vsub.f32 0.0, %v3781_v16 }
0x10e8   :  { %v3784_v23 = vsub.f32 0.0, %v3780_v19 }
0x10e9   :  { %v3787_v24 = vsel %vm3783_vm10, %v3781_v16, %v3785_v29  ;;  %v3303_v16 = vld [vmem:[%s10909_s29 + $0x10] sm:$0xff] }
0x10ea   :  { %v3789_v27 = vadd.f32 1.0, %v3787_v24  ;;  %v3786_v32 = vsel %vm3782_vm11, %v3780_v19, %v3784_v23  ;;  %v8599_v19 = vpack.c.bf16 %v3847_v13, %v3845_v25  ;;  %v8529_v29 = vpack.c.bf16 %v3303_v16, %v3301_v15  ;;  %v3844_v23 = vld [vmem:[%s10908_s26 + $0x40] sm:$0xff]  ;;  %v3846_v24 = vld [vmem:[%s10908_s26 + $0x50] sm:$0xff] }
0x10eb   :  { %v3788_v38 = vadd.f32 1.0, %v3786_v32  ;;  %v3308_v32 = vld [vmem:[%s10909_s29 + $0x38] sm:$0xff] }
0x10ec   :  { %v3791_v42 = vmul.f32 %v3789_v27, %v3739_v51  ;;  %v8601_v51 = vpack.c.bf16 %v3846_v24, %v3844_v23  ;;  %8600 = vmatprep.subr.bf16.mxu0 %v8599_v19  ;;  %8530 = vmatpush1.bf16.msra.mxu1 %v8529_v29  ;;  %v3306_v27 = vld [vmem:[%s10909_s29 + $0x28] sm:$0xff]  ;;  %v7536_v19 = vld [vmem:[%s10912_s5] ss:$0 sm:$0xff] }
0x10ed   :  { %v3790_v44 = vmul.f32 %v3788_v38, %v3738_v53  ;;  %v3849_v53 = vld [vmem:[%s10908_s26 + $0x68] sm:$0xff]  ;;  %v3851_v38 = vld [vmem:[%s10908_s26 + $0x78] sm:$0xff]  ;;  %v8531_v39 = vpack.c.bf16 %v3308_v32, %v3306_v27  ;;  %v7537_v23 = vld [vmem:[%s10913_s12] ss:$0 sm:$0xff] }
0x10ee   :  { %v3797_v58 = vsel %vm278_vm0, %v3791_v42, 0.0  ;;  %8602 = vmatpush1.bf16.msra.mxu0 %v8601_v51 }
0x10ef   :  { %3798 = vadd.xlane.f32.xlu0 %v3797_v58  ;;  %v3794_v47 = vsel %vm278_vm0, %v3790_v44, 0.0  ;;  %v3307_v58 = vld [vmem:[%s10909_s29 + $0x30] sm:$0xff]  ;;  %8532 = vmatprep.subr.bf16.mxu1 %v8531_v39 }
0x10f0   :  { %3795 = vadd.xlane.f32.xlu1 %v3794_v47  ;;  %v3848_v47 = vld [vmem:[%s10908_s26 + $0x60] sm:$0xff] }
0x10f4   :  { %3260 = vadd.xlane.f32.xlu1 %v3259_v45 }
0x10f8   :  { %3263 = vadd.xlane.f32.xlu1 %v3262_v37  ;;  %v3850_v37 = vld [vmem:[%s10908_s26 + $0x70] sm:$0xff] }
0x117c   :  { %v3799_v46 = vpop.xlane.xlu0 %3798 }
0x117d   :  { %v3801_v30 = vmul.f32 0.015625, %v3799_v46  ;;  %v3796_v41 = vpop.xlane.xlu1 %3795  ;;  %v8605_v46 = vpack.c.bf16 %v3850_v37, %v3848_v47  ;;  %v3539_v47 = vld [vmem:[%s10914_s21 + $0x98] sm:$0xff]  ;;  %v3522_v37 = vld [vmem:[%s10914_s21 + $0x10] sm:$0xff] }
0x117e   :  { %v3800_v21 = vmul.f32 0.015625, %v3796_v41  ;;  %v3312_v41 = vld [vmem:[%s10909_s29 + $0x58] sm:$0xff] }
0x117f   :  { %v10201_v48 = vsub.f32 %v3791_v42, %v3801_v30  ;;  %v8603_v42 = vpack.c.bf16 %v3851_v38, %v3849_v53  ;;  %v3310_v30 = vld [vmem:[%s10909_s29 + $0x48] sm:$0xff]  ;;  %v3536_v53 = vld [vmem:[%s10914_s21 + $0x80] sm:$0xff] }
0x1180   :  { %v10203_v49 = vsub.f32 %v3790_v44, %v3800_v21  ;;  %v3305_v44 = vld [vmem:[%s10909_s29 + $0x20] sm:$0xff]  ;;  %v8535_v21 = vpack.c.bf16 %v3312_v41, %v3310_v30  ;;  %v3537_v38 = vld [vmem:[%s10914_s21 + $0x88] sm:$0xff] }
0x1181   :  { %v3261_v33 = vpop.xlane.xlu1 %3260  ;;  %v3805_v17 = vmul.f32 %v10201_v48, %v10201_v48  ;;  %v8533_v45 = vpack.c.bf16 %v3307_v58, %v3305_v44  ;;  %8604 = vmatprep.subr.bf16.mxu0 %v8603_v42  ;;  %v8543_v39 = vpack.c.bf16 %v3537_v38, %v3536_v53  ;;  %v3520_v42 = vld [vmem:[%s10914_s21] sm:$0xff]  ;;  %v3521_v44 = vld [vmem:[%s10914_s21 + $0x8] sm:$0xff]  ;;  %v3538_v58 = vld [vmem:[%s10914_s21 + $0x90] sm:$0xff] }
0x1182   :  { %v3265_v50 = vmul.f32 0.015625, %v3261_v33  ;;  %v3804_v20 = vmul.f32 %v10203_v49, %v10203_v49  ;;  %v3309_v33 = vld [vmem:[%s10909_s29 + $0x40] sm:$0xff]  ;;  %8606 = vmatpush1.bf16.msra.mxu0 %v8605_v46  ;;  %v3523_v46 = vld [vmem:[%s10914_s21 + $0x18] sm:$0xff] }
0x1183   :  { %v3809_v62 = vsel %vm278_vm0, %v3805_v17, 0.0  ;;  %8534 = vmatpush1.bf16.msra.mxu1 %v8533_v45  ;;  %v3316_v17 = vld [vmem:[%s10909_s29 + $0x78] sm:$0xff]  ;;  %v8547_v45 = vpack.c.bf16 %v3539_v47, %v3538_v58  ;;  %v8549_v30 = vpack.c.bf16 %v3523_v46, %v3522_v37  ;;  %v3540_v41 = vld [vmem:[%s10914_s21 + $0xa0] sm:$0xff] }
0x1184   :  { %v10208_v40 = vsub.f32 %v10191_v56, %v3265_v50  ;;  %v3806_v52 = vsel %vm278_vm0, %v3804_v20, 0.0  ;;  %v3311_v50 = vld [vmem:[%s10909_s29 + $0x50] sm:$0xff]  ;;  %8536 = vmatprep.subr.bf16.mxu1 %v8535_v21  ;;  %v3541_v21 = vld [vmem:[%s10914_s21 + $0xa8] sm:$0xff] }
0x1185   :  { %3807 = vadd.xlane.f32.xlu1 %v3806_v52  ;;  %v3264_v54 = vpop.xlane.xlu1 %3263  ;;  %v8537_v20 = vpack.c.bf16 %v3311_v50, %v3309_v33  ;;  %v3314_v52 = vld [vmem:[%s10909_s29 + $0x68] sm:$0xff]  ;;  %v8551_v33 = vpack.c.bf16 %v3541_v21, %v3540_v41  ;;  %v3524_v50 = vld [vmem:[%s10914_s21 + $0x20] sm:$0xff] }
0x1186   :  { %v3266_v57 = vmul.f32 0.015625, %v3264_v54  ;;  %v3269_v59 = vmul.f32 %v10208_v40, %v10208_v40  ;;  %v8539_v54 = vpack.c.bf16 %v3316_v17, %v3314_v52  ;;  %v3542_v17 = vld [vmem:[%s10914_s21 + $0xb0] sm:$0xff] }
0x1187   :  { %8538 = vmatpush1.bf16.msra.mxu1 %v8537_v20  ;;  %v3525_v20 = vld [vmem:[%s10914_s21 + $0x28] sm:$0xff] }
0x1188   :  { %v10214_v55 = vsub.f32 %v10195_v60, %v3266_v57  ;;  %v3271_v61 = vsel %vm278_vm0, %v3269_v59, 0.0  ;;  %v3313_v57 = vld [vmem:[%s10909_s29 + $0x60] sm:$0xff]  ;;  %8540 = vmatprep.subr.bf16.mxu1 %v8539_v54  ;;  %v8553_v52 = vpack.c.bf16 %v3525_v20, %v3524_v50  ;;  %v3543_v54 = vld [vmem:[%s10914_s21 + $0xb8] sm:$0xff] }
0x1189   :  { %3810 = vadd.xlane.f32.xlu1 %v3809_v62  ;;  %v3315_v62 = vld [vmem:[%s10909_s29 + $0x70] sm:$0xff] }
0x118a   :  { %v3270_v8 = vmul.f32 %v10214_v55, %v10214_v55  ;;  %v8541_v59 = vpack.c.bf16 %v3315_v62, %v3313_v57  ;;  %v8555_v57 = vpack.c.bf16 %v3543_v54, %v3542_v17  ;;  %v3526_v62 = vld [vmem:[%s10914_s21 + $0x30] sm:$0xff] }
0x118c   :  { %v3274_v63 = vsel %vm278_vm0, %v3270_v8, 0.0  ;;  %8542 = vmatpush1.bf16.msra.mxu1 %v8541_v59  ;;  %v3527_v59 = vld [vmem:[%s10914_s21 + $0x38] sm:$0xff] }
0x118d   :  { %3272 = vadd.xlane.f32.xlu1 %v3271_v61  ;;  %8544 = vmatprep.subr.bf16.mxu1 %v8543_v39 }
0x1191   :  { %3275 = vadd.xlane.f32.xlu1 %v3274_v63 }
0x1212   :  { %v3808_v61 = vpop.xlane.xlu1 %3807 }
0x1213   :  { %v3812_v8 = vmul.f32 0.015625, %v3808_v61  ;;  %v8557_v61 = vpack.c.bf16 %v3527_v59, %v3526_v62 }
0x1215   :  { %v3814_v63 = vadd.f32 1e-05, %v3812_v8  ;;  %v3544_v8 = vld [vmem:[%s10914_s21 + $0xc0] sm:$0xff] }
0x1216   :  { %v3811_v28 = vpop.xlane.xlu1 %3810 }
0x1217   :  { %9155 = vrsqrt.f32 %v3814_v63  ;;  %v3813_v1 = vmul.f32 0.015625, %v3811_v28  ;;  %v3545_v63 = vld [vmem:[%s10914_s21 + $0xc8] sm:$0xff] }
0x1218   :  { %v8559_v28 = vpack.c.bf16 %v3545_v63, %v3544_v8 }
0x1219   :  { %v3815_v0 = vadd.f32 1e-05, %v3813_v1  ;;  %v3528_v1 = vld [vmem:[%s10914_s21 + $0x40] sm:$0xff] }
0x121a   :  { %v3273_v2 = vpop.xlane.xlu1 %3272 }
0x121b   :  { %9157 = vrsqrt.f32 %v3815_v0  ;;  %v3277_v3 = vmul.f32 0.015625, %v3273_v2  ;;  %v3529_v0 = vld [vmem:[%s10914_s21 + $0x48] sm:$0xff] }
0x121c   :  { %v8561_v2 = vpack.c.bf16 %v3529_v0, %v3528_v1 }
0x121d   :  { %v3279_v11 = vadd.f32 1e-05, %v3277_v3  ;;  %v3546_v3 = vld [vmem:[%s10914_s21 + $0xd0] sm:$0xff] }
0x121e   :  { %v3276_v31 = vpop.xlane.xlu1 %3275 }
0x121f   :  { %9159 = vrsqrt.f32 %v3279_v11  ;;  %v3278_v5 = vmul.f32 0.015625, %v3276_v31  ;;  %v3547_v11 = vld [vmem:[%s10914_s21 + $0xd8] sm:$0xff] }
0x1220   :  { %v8563_v31 = vpack.c.bf16 %v3547_v11, %v3546_v3 }
0x1221   :  { %v9156_v6 = vpop.eup %9155  ;;  %v3280_v7 = vadd.f32 1e-05, %v3278_v5  ;;  %v3530_v5 = vld [vmem:[%s10914_s21 + $0x50] sm:$0xff] }
0x1222   :  { %v3818_v9 = vmul.f32 %v9156_v6, %v10203_v49  ;;  %v3531_v6 = vld [vmem:[%s10914_s21 + $0x58] sm:$0xff] }
0x1223   :  { %9161 = vrsqrt.f32 %v3280_v7  ;;  %v8565_v7 = vpack.c.bf16 %v3531_v6, %v3530_v5 }
0x1224   :  { %v3826_v12 = vmul.f32 %v7544_v35, %v3818_v9  ;;  %v3549_v9 = vld [vmem:[%s10914_s21 + $0xe8] sm:$0xff] }
0x1225   :  { %v9158_v25 = vpop.eup %9157 }
0x1226   :  { %v3834_v26 = vadd.f32 %v7545_v10, %v3826_v12  ;;  %v3819_v13 = vmul.f32 %v9158_v25, %v10201_v48  ;;  %v3532_v12 = vld [vmem:[%s10914_s21 + $0x60] sm:$0xff]  ;;  %v3533_v25 = vld [vmem:[%s10914_s21 + $0x68] sm:$0xff] }
0x1228   :  { %7546 = vmatmul.mubr.msk.f32.vlgmr.msra.gmra.mrb[26].mxu0 %vm278_vm0, %v3834_v26  ;;  %v3827_v15 = vmul.f32 %v7544_v35, %v3819_v13  ;;  %v3548_v35 = vld [vmem:[%s10914_s21 + $0xe0] sm:$0xff]  ;;  %v8569_v26 = vpack.c.bf16 %v3533_v25, %v3532_v12  ;;  %v3550_v13 = vld [vmem:[%s10914_s21 + $0xf0] sm:$0xff] }
0x1229   :  { %v9160_v16 = vpop.eup %9159  ;;  %3928 = vmatprep.mubr.f32.mxu0 %v9464_v36 }
0x122a   :  { %v3283_v29 = vmul.f32 %v9160_v16, %v10208_v40  ;;  %v3835_v49 = vadd.f32 %v7545_v10, %v3827_v15  ;;  %v8567_v10 = vpack.c.bf16 %v3549_v9, %v3548_v35  ;;  %v3551_v15 = vld [vmem:[%s10914_s21 + $0xf8] sm:$0xff] }
0x122b   :  { %v8571_v16 = vpack.c.bf16 %v3551_v15, %v3550_v13 }
0x122c   :  { %v3291_v24 = vmul.f32 %v7536_v19, %v3283_v29  ;;  %7547 = vmatmul.mubr.msk.f32.gmra.mrb[28].mxu0 %vm278_vm0, %v3835_v49  ;;  %v3535_v29 = vld [vmem:[%s10914_s21 + $0x78] sm:$0xff] }
0x122d   :  { %v9162_v51 = vpop.eup %9161 }
0x122e   :  { %v3299_v48 = vadd.f32 %v7537_v23, %v3291_v24  ;;  %v3284_v27 = vmul.f32 %v9162_v51, %v10214_v55  ;;  %v8545_v55 = vpack.c.bf16 %v3521_v44, %v3520_v42  ;;  %v3317_v51 = vld [vmem:[%s10915_s27] sm:$0x3] }
0x1230   :  { %7538 = vmatmul.mubr.msk.f32.vlgmr.msra.gmra.mrb[26].mxu1 %vm278_vm0, %v3299_v48  ;;  %v3292_v32 = vmul.f32 %v7536_v19, %v3284_v27  ;;  %v3534_v19 = vld [vmem:[%s10914_s21 + $0x70] sm:$0xff]  ;;  %v3322_v27 = vrot.slane %v3317_v51, %v10079_v22 }
0x1231   :  { %3405 = vmatprep.mubr.f32.mxu1 %v9464_v36  ;;  %8546 = vmatpush3.bf16.msra.mxu1 %v8545_v55  ;;  %v8573_v49 = vpack.c.bf16 %v3535_v29, %v3534_v19 }
0x1232   :  { %v3300_v40 = vadd.f32 %v7537_v23, %v3292_v32  ;;  %8548 = vmatprep.subr.bf16.mxu1 %v8547_v45  ;;  %v3326_v32 = vrot.slane %v3317_v51, %v10069_v14 }
0x1234   :  { %7539 = vmatmul.mubr.msk.f32.gmra.mrb[28].mxu1 %vm278_vm0, %v3300_v40 }
0x1235   :  { %8550 = vmatpush3.bf16.msra.mxu1 %v8549_v30 }
0x1236   :  { %8552 = vmatprep.subr.bf16.mxu1 %v8551_v33 }
0x1239   :  { %8554 = vmatpush3.bf16.msra.mxu1 %v8553_v52 }
0x123a   :  { %8556 = vmatprep.subr.bf16.mxu1 %v8555_v57 }
0x123d   :  { %8558 = vmatpush3.bf16.msra.mxu1 %v8557_v61 }
0x123e   :  { %8560 = vmatprep.subr.bf16.mxu1 %v8559_v28 }
0x1241   :  { %8562 = vmatpush3.bf16.msra.mxu1 %v8561_v2 }
0x1242   :  { %8564 = vmatprep.subr.bf16.mxu1 %v8563_v31 }
0x1245   :  { %8566 = vmatpush3.bf16.msra.mxu1 %v8565_v7 }
0x1246   :  { %8568 = vmatprep.subr.bf16.mxu1 %v8567_v10 }
0x1249   :  { %8570 = vmatpush3.bf16.msra.mxu1 %v8569_v26 }
0x124a   :  { %8572 = vmatprep.subr.bf16.mxu1 %v8571_v16 }
0x124d   :  { %8574 = vmatpush3.bf16.msra.mxu1 %v8573_v49 }
0x12fb   :  { %v10301_v23 = vpop.f32.mrb[26].mxu0 }
0x12fc   :  { %v3926_v24 = vpop.f32.mrb[27].mxu0 }
0x12ff   :  { %v10304_v48 = vpop.f32.mrb[28].mxu0 }
0x1300   :  { %v3932_v40 = vpop.f32.mrb[29].mxu0  ;;  %v10310_v53 = vpack.i.bf16 %v10304_v48, %v10301_v23 }
0x1301   :  { %v8613_v38 = vpack.c.bf16 %v3932_v40, %v3926_v24  ;;  %v10312_v39 = vpack.i.bf16 %v3932_v40, %v3926_v24 }
0x1302   :  { %8977 = vrot.lane.b32.xlu1 %v10310_v53, %s9465_s3  ;;  %s10916_s3 = sld [smem:[#allocation33_spill]] }
0x1303   :  { %v3401_v42 = vpop.f32.mrb[26].mxu1  ;;  %8614 = vmatprep.subr.bf16.mxu0 %v8613_v38 }
0x1304   :  { %v10316_v44 = vadd.f32 %v3401_v42, %v3322_v27  ;;  %v3403_v55 = vpop.f32.mrb[27].mxu1  ;;  %8616 = vmatpush3.bf16.msra.mxu0 %v8613_v38 }
0x1305   :  { %v10318_v58 = vadd.f32 %v3403_v55, %v3326_v32 }
0x1306   :  { %v10321_v47 = vmul.f32 0.70710677, %v10316_v44  ;;  %8982 = vrot.lane.b32.xlu1 %v10310_v53, %s9469_s13  ;;  %s10918_s13 = sld [smem:[#allocation39_spill]] }
0x1307   :  { %v10326_v45 = vmul.f32 0.70710677, %v10318_v58  ;;  %v3407_v37 = vpop.f32.mrb[28].mxu1 }
0x1308   :  { %v3420_v46 = vand.u32 2147483647, %v10321_v47  ;;  %v10329_v30 = vadd.f32 %v3407_v37, %v3322_v27  ;;  %v3409_v41 = vpop.f32.mrb[29].mxu1  ;;  %vm3500_vm12 = vcmp.ge.f32.partialorder %v10321_v47, 0.0 }
0x1309   :  { %v3421_v21 = vand.u32 2147483647, %v10326_v45  ;;  %v10332_v33 = vadd.f32 %v3409_v41, %v3326_v32  ;;  %vm3501_vm13 = vcmp.ge.f32.partialorder %v10326_v45, 0.0 }
0x130a   :  { %v3424_v50 = vmul.f32 0.3275911, %v3420_v46  ;;  %v10335_v20 = vmul.f32 0.70710677, %v10329_v30  ;;  %4240 = vrot.lane.b32.xlu1 %v10304_v48, %s9466_s8  ;;  %v3476_v1 = vsub.f32 0.0, %v3420_v46 }
0x130b   :  { %v3425_v52 = vmul.f32 0.3275911, %v3421_v21  ;;  %v10340_v17 = vmul.f32 0.70710677, %v10332_v33  ;;  %v3477_v0 = vsub.f32 0.0, %v3421_v21 }
0x130c   :  { %v3428_v54 = vadd.f32 1.0, %v3424_v50  ;;  %v3422_v57 = vand.u32 2147483647, %v10335_v20  ;;  %v3480_v3 = vmul.f32 %v3476_v1, %v3420_v46  ;;  %vm3502_vm14 = vcmp.ge.f32.partialorder %v10335_v20, 0.0 }
0x130d   :  { %v3429_v62 = vadd.f32 1.0, %v3425_v52  ;;  %v3423_v59 = vand.u32 2147483647, %v10340_v17  ;;  %v3481_v6 = vmul.f32 %v3477_v0, %v3421_v21  ;;  %vm3503_vm15 = vcmp.ge.f32.partialorder %v10340_v17, 0.0 }
0x130e   :  { %9163 = vrcp.f32 %v3428_v54  ;;  %v3426_v61 = vmul.f32 0.3275911, %v3422_v57  ;;  %8987 = vrot.lane.b32.xlu1 %v10310_v53, %s9467_s14  ;;  %v3478_v11 = vsub.f32 0.0, %v3422_v57  ;;  %v3484_v12 = vmul.f32 1.442695, %v3480_v3  ;;  %s10917_s14 = sld [smem:[#allocation17_spill]] }
0x130f   :  { %9165 = vrcp.f32 %v3429_v62  ;;  %v3427_v8 = vmul.f32 0.3275911, %v3423_v59  ;;  %v3479_v7 = vsub.f32 0.0, %v3423_v59  ;;  %v3486_v16 = vmul.f32 1.442695, %v3481_v6 }
0x1310   :  { %v3430_v63 = vadd.f32 1.0, %v3426_v61  ;;  %v3482_v25 = vmul.f32 %v3478_v11, %v3422_v57 }
0x1311   :  { %v3431_v28 = vadd.f32 1.0, %v3427_v8  ;;  %v3483_v19 = vmul.f32 %v3479_v7, %v3423_v59 }
0x1312   :  { %9167 = vrcp.f32 %v3430_v63  ;;  %4527 = vrot.lane.b32.xlu1 %v10301_v23, %s9468_s19  ;;  %v3488_v32 = vmul.f32 1.442695, %v3482_v25 }
0x1313   :  { %9169 = vrcp.f32 %v3431_v28  ;;  %v3490_v55 = vmul.f32 1.442695, %v3483_v19 }
0x1314   :  { %9171 = vpow2.f32 %v3484_v12 }
0x1315   :  { %9173 = vpow2.f32 %v3486_v16 }
0x1316   :  { %4529 = vrot.lane.b32.xlu1 %v10304_v48, %s9468_s19  ;;  %9175 = vpow2.f32 %v3488_v32 }
0x1317   :  { %9177 = vpow2.f32 %v3490_v55  ;;  %v3413_v55 = vmul.f32 0.5, %v10318_v58  ;;  %v3414_v58 = vmul.f32 0.5, %v10329_v30 }
0x1318   :  { %v9164_v2 = vpop.eup %9163 }
0x1319   :  { %v9166_v31 = vpop.eup %9165  ;;  %v3440_v5 = vmul.f32 1.0614054, %v9164_v2 }
0x131a   :  { %v3441_v35 = vmul.f32 1.0614054, %v9166_v31 }
0x131b   :  { %v3444_v9 = vadd.f32 -1.4531521, %v3440_v5 }
0x131c   :  { %v9168_v10 = vpop.eup %9167  ;;  %v3445_v26 = vadd.f32 -1.4531521, %v3441_v35 }
0x131d   :  { %v9170_v13 = vpop.eup %9169  ;;  %v3448_v15 = vmul.f32 %v9164_v2, %v3444_v9  ;;  %v3442_v29 = vmul.f32 1.0614054, %v9168_v10 }
0x131e   :  { %v3449_v49 = vmul.f32 %v9166_v31, %v3445_v26  ;;  %v3443_v24 = vmul.f32 1.0614054, %v9170_v13  ;;  %v9172_v11 = vpop.eup %9171 }
0x131f   :  { %v3452_v51 = vadd.f32 1.4214138, %v3448_v15  ;;  %v3446_v27 = vadd.f32 -1.4531521, %v3442_v29  ;;  %v9174_v7 = vpop.eup %9173 }
0x1320   :  { %v3453_v40 = vadd.f32 1.4214138, %v3449_v49  ;;  %v3447_v38 = vadd.f32 -1.4531521, %v3443_v24  ;;  %v9176_v16 = vpop.eup %9175 }
0x1321   :  { %v3456_v42 = vmul.f32 %v9164_v2, %v3452_v51  ;;  %v3450_v37 = vmul.f32 %v9168_v10, %v3446_v27  ;;  %v9178_v49 = vpop.eup %9177 }
0x1322   :  { %v3457_v46 = vmul.f32 %v9166_v31, %v3453_v40  ;;  %v3451_v41 = vmul.f32 %v9170_v13, %v3447_v38 }
0x1323   :  { %v3460_v21 = vadd.f32 -0.28449672, %v3456_v42  ;;  %v3454_v50 = vadd.f32 1.4214138, %v3450_v37 }
0x1324   :  { %v3461_v52 = vadd.f32 -0.28449672, %v3457_v46  ;;  %v3455_v54 = vadd.f32 1.4214138, %v3451_v41 }
0x1325   :  { %v3464_v57 = vmul.f32 %v9164_v2, %v3460_v21  ;;  %v3458_v62 = vmul.f32 %v9168_v10, %v3454_v50 }
0x1326   :  { %v3465_v59 = vmul.f32 %v9166_v31, %v3461_v52  ;;  %v3459_v61 = vmul.f32 %v9170_v13, %v3455_v54  ;;  %v3415_v52 = vmul.f32 0.5, %v10332_v33 }
0x1327   :  { %v3468_v8 = vadd.f32 0.2548296, %v3464_v57  ;;  %v3462_v63 = vadd.f32 -0.28449672, %v3458_v62 }
0x1328   :  { %v3469_v28 = vadd.f32 0.2548296, %v3465_v59  ;;  %v3463_v1 = vadd.f32 -0.28449672, %v3459_v61 }
0x1329   :  { %v3472_v0 = vmul.f32 %v9164_v2, %v3468_v8  ;;  %v3466_v3 = vmul.f32 %v9168_v10, %v3462_v63 }
0x132a   :  { %v3473_v5 = vmul.f32 %v9166_v31, %v3469_v28  ;;  %v3467_v6 = vmul.f32 %v9170_v13, %v3463_v1 }
0x132b   :  { %v3492_v35 = vmul.f32 %v9172_v11, %v3472_v0  ;;  %v3470_v9 = vadd.f32 0.2548296, %v3466_v3 }
0x132c   :  { %v3493_v12 = vmul.f32 %v9174_v7, %v3473_v5  ;;  %v3471_v25 = vadd.f32 0.2548296, %v3467_v6  ;;  %v7540_v6 = vld [vmem:[%s10916_s3] ss:$0 sm:$0xff] }
0x132d   :  { %v3496_v26 = vsub.f32 1.0, %v3492_v35  ;;  %v3474_v15 = vmul.f32 %v9168_v10, %v3470_v9 }
0x132e   :  { %v3497_v19 = vsub.f32 1.0, %v3493_v12  ;;  %v3475_v29 = vmul.f32 %v9170_v13, %v3471_v25  ;;  %v3412_v13 = vmul.f32 0.5, %v10316_v44 }
0x132f   :  { %v3504_v24 = vsub.f32 0.0, %v3496_v26  ;;  %v3494_v51 = vmul.f32 %v9176_v16, %v3474_v15  ;;  %v10378_v15 = vld [vmem:[%s10917_s14] sm:$0xff] }
0x1330   :  { %v3505_v2 = vsub.f32 0.0, %v3497_v19  ;;  %v3495_v27 = vmul.f32 %v9178_v49, %v3475_v29  ;;  %v10381_v29 = vld [vmem:[%s10917_s14 + $0x8] sm:$0xff] }
0x1331   :  { %v3508_v32 = vsel %vm3500_vm12, %v3496_v26, %v3504_v24  ;;  %v3498_v31 = vsub.f32 1.0, %v3494_v51 }
0x1332   :  { %v3512_v40 = vadd.f32 1.0, %v3508_v32  ;;  %v3509_v38 = vsel %vm3501_vm13, %v3497_v19, %v3505_v2  ;;  %v3499_v42 = vsub.f32 1.0, %v3495_v27 }
0x1333   :  { %v3513_v10 = vadd.f32 1.0, %v3509_v38  ;;  %v3506_v37 = vsub.f32 0.0, %v3498_v31 }
0x1334   :  { %v3507_v46 = vsub.f32 0.0, %v3499_v42  ;;  %v3516_v21 = vmul.f32 %v3512_v40, %v3412_v13 }
0x1335   :  { %v3517_v47 = vmul.f32 %v3513_v10, %v3413_v55  ;;  %v3510_v41 = vsel %vm3502_vm14, %v3498_v31, %v3506_v37 }
0x1336   :  { %v3511_v50 = vsel %vm3503_vm15, %v3499_v42, %v3507_v46  ;;  %v3514_v45 = vadd.f32 1.0, %v3510_v41 }
0x1337   :  { %3616 = vmatprep.mubr.f32.mxu1 %v3517_v47  ;;  %v3515_v54 = vadd.f32 1.0, %v3511_v50 }
0x1338   :  { %3617 = vmatmul.mubr.f32.vlgmr.msra.gmra.mrb[30].mxu1 %v3516_v21  ;;  %v3518_v62 = vmul.f32 %v3514_v45, %v3414_v58 }
0x1339   :  { %v3519_v57 = vmul.f32 %v3515_v54, %v3415_v52 }
0x133b   :  { %3621 = vmatprep.mubr.f32.mxu1 %v3519_v57 }
0x133c   :  { %3622 = vmatmul.mubr.f32.gmra.mrb[32].mxu1 %v3518_v62 }
0x133d   :  { %8186 = vmatprep.mubr.msk.f32.mxu1 %vm588_vm3, %v10301_v23 }
0x1374   :  { %v8978_v44 = vpop.permute.xlu1 %8977 }
0x1375   :  { %v8980_v20 = vunpack.i.h.bf16 %v8978_v44  ;;  %v8979_v17 = vunpack.i.l.bf16 %v8978_v44 }
0x1377   :  { %v8607_v59 = vpack.c.bf16 %v8980_v20, %v8979_v17  ;;  %v3951_v20 = vld [vmem:[%s10918_s13] sm:$0xff] }
0x1378   :  { %v8983_v61 = vpop.permute.xlu1 %8982 }
0x1379   :  { %v8985_v8 = vunpack.i.h.bf16 %v8983_v61  ;;  %v8984_v33 = vunpack.i.l.bf16 %v8983_v61  ;;  %8609 = vmatprep.subr.msk.bf16.mxu1 %vm9827_vm4, %v8607_v59 }
0x137a   :  { %8612 = vmatpush3.bf16.xpose.msk.msra.mxu1 %vm9827_vm4, %v8607_v59 }
0x137b   :  { %v8617_v30 = vpack.c.bf16 %v8985_v8, %v8984_v33  ;;  %8196 = vmatprep.subr.mxu1 %v3951_v20 }
0x137c   :  { %v4241_v46 = vpop.permute.xlu1 %4240 }
0x137d   :  { %8619 = vmatprep.subr.msk.bf16.mxu0 %vm9827_vm4, %v8617_v30 }
0x1380   :  { %v8988_v41 = vpop.permute.xlu1 %8987 }
0x1381   :  { %8187 = vmatmul.mubr.msk.f32.vlgmr.msra.gmra.mrb[34].mxu1 %vm588_vm3, %v10304_v48  ;;  %v8990_v50 = vunpack.i.h.bf16 %v8988_v41  ;;  %v8989_v45 = vunpack.i.l.bf16 %v8988_v41 }
0x1382   :  { %8197 = vmatpush3.msra.mxu1 %v3951_v20 }
0x1383   :  { %v8627_v58 = vpack.c.bf16 %v8990_v50, %v8989_v45 }
0x1384   :  { %v4528_v62 = vpop.permute.xlu1 %4527 }
0x1388   :  { %v4530_v44 = vpop.permute.xlu1 %4529 }
0x140b   :  { %v7798_v63 = vpop.f32.mrb[30].mxu1 }
0x140c   :  { %v7799_v28 = vpop.f32.mrb[31].mxu1 }
0x140d   :  { %v7800_v1 = vadd.f32 %v7799_v28, %v7798_v63 }
0x140f   :  { %v7801_v0 = vpop.f32.mrb[32].mxu1  ;;  %v3627_v11 = vadd.f32 %v10191_v56, %v7800_v1 }
0x1410   :  { %v7802_v3 = vpop.f32.mrb[33].mxu1 }
0x1411   :  { %v7803_v5 = vadd.f32 %v7802_v3, %v7801_v0  ;;  %v10371_v35 = vadd.f32 %v7540_v6, %v3627_v11 }
0x1413   :  { %v3628_v7 = vadd.f32 %v10195_v60, %v7803_v5 }
0x1415   :  { %v10373_v9 = vadd.f32 %v7540_v6, %v3628_v7 }
0x1417   :  { %v8784_v12 = vpack.c.bf16 %v10373_v9, %v10371_v35  ;;  %v6908_v35 = vld [vmem:[%s9731_s25 + $0x68] sm:$0xff] }
0x1454   :  { %v8188_v25 = vpop.f32.mrb[34].mxu1 }
0x1455   :  { %v4039_v26 = vpop.f32.mrb[35].mxu1  ;;  %v4049_v16 = vmul.f32 0.35355338, %v8188_v25 }
0x1456   :  { %v4048_v19 = vmul.f32 0.35355338, %v4039_v26 }
0x1457   :  { %v4051_v60 = vadd.f32 %v4049_v16, %v10381_v29 }
0x1458   :  { %v4050_v56 = vadd.f32 %v4048_v19, %v10378_v15 }
0x1459   :  { %v4055_v24 = vsel %vm676_vm5, %v4051_v60, -inf }
0x145a   :  { %v4052_v49 = vsel %vm676_vm5, %v4050_v56, -inf }
0x145b   :  { %4053 = vmax.xlane.f32.xlu0 %v4052_v49 }
0x145f   :  { %4056 = vmax.xlane.f32.xlu0 %v4055_v24 }
0x14e8   :  { %v4054_v51 = vpop.xlane.xlu0 %4053 }
0x14e9   :  { %v4058_v2 = vsub.f32 %v4050_v56, %v4054_v51 }
0x14eb   :  { %v4060_v27 = vmul.f32 1.442695, %v4058_v2 }
0x14ec   :  { %v4057_v32 = vpop.xlane.xlu0 %4056 }
0x14ed   :  { %9179 = vpow2.f32 %v4060_v27  ;;  %v4059_v31 = vsub.f32 %v4051_v60, %v4057_v32 }
0x14ef   :  { %v4062_v40 = vmul.f32 1.442695, %v4059_v31 }
0x14f1   :  { %9181 = vpow2.f32 %v4062_v40 }
0x14f7   :  { %v9180_v38 = vpop.eup %9179 }
0x14f8   :  { %v4064_v42 = vsel %vm676_vm5, %v9180_v38, 0.0 }
0x14f9   :  { %4065 = vadd.xlane.f32.xlu0 %v4064_v42 }
0x14fb   :  { %v9182_v55 = vpop.eup %9181 }
0x14fc   :  { %v4067_v10 = vsel %vm676_vm5, %v9182_v55, 0.0 }
0x14fd   :  { %4068 = vadd.xlane.f32.xlu0 %v4067_v10 }
0x1513   :  { %4238 = vrot.lane.b32.xlu0 %v10301_v23, %s9466_s8 }
0x1586   :  { %v4066_v37 = vpop.xlane.xlu0 %4065 }
0x1587   :  { %9183 = vrcp.f32 %v4066_v37 }
0x158a   :  { %v4069_v13 = vpop.xlane.xlu0 %4068 }
0x158b   :  { %9185 = vrcp.f32 %v4069_v13 }
0x158e   :  { %v4239_v57 = vpop.permute.xlu0 %4238 }
0x1591   :  { %v9184_v47 = vpop.eup %9183 }
0x1592   :  { %v4072_v21 = vmul.f32 %v9184_v47, %v9180_v38 }
0x1594   :  { %8193 = vmatprep.mubr.msk.f32.mxu0 %vm676_vm5, %v4072_v21 }
0x1595   :  { %v9186_v52 = vpop.eup %9185 }
0x1596   :  { %v4073_v54 = vmul.f32 %v9186_v52, %v9182_v55 }
0x1598   :  { %8194 = vmatmul.mubr.msk.f32.vlgmr.msra.gmra.mrb[30].mxu0 %vm676_vm5, %v4073_v54 }
0x1599   :  { %8622 = vmatpush3.bf16.xpose.msk.msra.mxu0 %vm9827_vm4, %v8617_v30  ;;  %8205 = vmatprep.mubr.msk.f32.mxu0 %vm588_vm3, %v4239_v57 }
0x159a   :  { %8629 = vmatprep.subr.msk.bf16.mxu0 %vm9827_vm4, %v8627_v58 }
0x15a0   :  { %8206 = vmatmul.mubr.msk.f32.vlgmr.msra.gmra.mrb[32].mxu0 %vm588_vm3, %v4241_v46 }
0x15a1   :  { %8632 = vmatpush3.bf16.xpose.msk.msra.mxu0 %vm9827_vm4, %v8627_v58  ;;  %8224 = vmatprep.mubr.msk.f32.mxu0 %vm588_vm3, %v4528_v62 }
0x15a8   :  { %8225 = vmatmul.mubr.msk.f32.vlgmr.msra.gmra.mrb[34].mxu0 %vm588_vm3, %v4530_v44 }
0x166b   :  { %v8195_v17 = vpop.f32.mrb[30].mxu0 }
0x166c   :  { %v4146_v59 = vpop.f32.mrb[31].mxu0 }
0x166d   :  { %8198 = vmatprep.mubr.msk.f32.mxu1 %vm588_vm3, %v4146_v59 }
0x166e   :  { %8199 = vmatmul.mubr.msk.f32.vlgmr.msra.gmra.mrb[36].mxu1 %vm588_vm3, %v8195_v17 }
0x1673   :  { %v8207_v61 = vpop.f32.mrb[32].mxu0 }
0x1674   :  { %v4330_v8 = vmul.f32 0.35355338, %v8207_v61  ;;  %v4320_v33 = vpop.f32.mrb[33].mxu0 }
0x1675   :  { %v4329_v30 = vmul.f32 0.35355338, %v4320_v33 }
0x1676   :  { %v4332_v63 = vadd.f32 %v4330_v8, %v10381_v29 }
0x1677   :  { %v4331_v28 = vadd.f32 %v4329_v30, %v10378_v15 }
0x1678   :  { %v4336_v1 = vsel %vm676_vm5, %v4332_v63, -inf }
0x1679   :  { %4337 = vmax.xlane.f32.xlu0 %v4336_v1  ;;  %v4333_v0 = vsel %vm676_vm5, %v4331_v28, -inf }
0x167a   :  { %4334 = vmax.xlane.f32.xlu1 %v4333_v0 }
0x167b   :  { %v8226_v3 = vpop.f32.mrb[34].mxu0 }
0x167c   :  { %v4609_v11 = vpop.f32.mrb[35].mxu0  ;;  %v4619_v2 = vmul.f32 0.35355338, %v8226_v3 }
0x167d   :  { %v4618_v24 = vmul.f32 0.35355338, %v4609_v11 }
0x167e   :  { %v4621_v32 = vadd.f32 %v4619_v2, %v10381_v29 }
0x167f   :  { %v4620_v51 = vadd.f32 %v4618_v24, %v10378_v15 }
0x1680   :  { %v4625_v31 = vsel %vm676_vm5, %v4621_v32, -inf }
0x1681   :  { %v4622_v27 = vsel %vm676_vm5, %v4620_v51, -inf }
0x1706   :  { %v4338_v5 = vpop.xlane.xlu0 %4337 }
0x1707   :  { %v4340_v6 = vsub.f32 %v4332_v63, %v4338_v5  ;;  %v4335_v7 = vpop.xlane.xlu1 %4334  ;;  %v3952_v5 = vld [vmem:[%s10918_s13 + $0x8] sm:$0xff] }
0x1708   :  { %v4339_v25 = vsub.f32 %v4331_v28, %v4335_v7 }
0x1709   :  { %v4343_v26 = vmul.f32 1.442695, %v4340_v6 }
0x170a   :  { %v4341_v16 = vmul.f32 1.442695, %v4339_v25 }
0x170b   :  { %9187 = vpow2.f32 %v4343_v26 }
0x170c   :  { %9189 = vpow2.f32 %v4341_v16 }
0x1715   :  { %v9188_v19 = vpop.eup %9187 }
0x1716   :  { %v9190_v56 = vpop.eup %9189  ;;  %v4348_v49 = vsel %vm676_vm5, %v9188_v19, 0.0 }
0x1717   :  { %4349 = vadd.xlane.f32.xlu1 %v4348_v49  ;;  %v4345_v60 = vsel %vm676_vm5, %v9190_v56, 0.0 }
0x1718   :  { %4346 = vadd.xlane.f32.xlu0 %v4345_v60 }
0x1728   :  { %8997 = vrot.lane.b32.xlu1 %v10310_v53, %s9472_s4  ;;  %s10923_s4 = sld [smem:[#allocation43_spill]] }
0x172c   :  { %4814 = vrot.lane.b32.xlu1 %v10301_v23, %s9470_s24 }
0x172e   :  { %8992 = vrot.lane.b32.xlu0 %v10312_v39, %s9466_s8  ;;  %s10919_s8 = sld [smem:[#allocation41_spill]] }
0x1730   :  { %4816 = vrot.lane.b32.xlu1 %v10304_v48, %s9470_s24 }
0x174d   :  { %4623 = vmax.xlane.f32.xlu0 %v4622_v27 }
0x1754   :  { %4626 = vmax.xlane.f32.xlu1 %v4625_v31 }
0x1765   :  { %9007 = vrot.lane.b32.xlu1 %v10310_v53, %s9473_s0  ;;  %s10924_s0 = sld [smem:[#allocation44_spill]] }
0x1769   :  { %5101 = vrot.lane.b32.xlu1 %v10301_v23, %s9471_s30 }
0x176d   :  { %5103 = vrot.lane.b32.xlu1 %v10304_v48, %s9471_s30 }
0x17a4   :  { %v4350_v40 = vpop.xlane.xlu1 %4349 }
0x17a5   :  { %9191 = vrcp.f32 %v4350_v40  ;;  %v4347_v38 = vpop.xlane.xlu0 %4346 }
0x17a6   :  { %9193 = vrcp.f32 %v4347_v38 }
0x17a8   :  { %v8998_v42 = vpop.permute.xlu1 %8997 }
0x17a9   :  { %v9000_v55 = vunpack.i.h.bf16 %v8998_v42  ;;  %v8999_v10 = vunpack.i.l.bf16 %v8998_v42  ;;  %v8993_v37 = vpop.permute.xlu0 %8992 }
0x17aa   :  { %v8995_v13 = vunpack.i.h.bf16 %v8993_v37  ;;  %v8994_v46 = vunpack.i.l.bf16 %v8993_v37 }
0x17ab   :  { %v8637_v47 = vpack.c.bf16 %v9000_v55, %v8999_v10 }
0x17ac   :  { %v8623_v41 = vpack.c.bf16 %v8995_v13, %v8994_v46  ;;  %v4815_v21 = vpop.permute.xlu1 %4814 }
0x17ad   :  { %8639 = vmatprep.subr.msk.bf16.mxu0 %vm9827_vm4, %v8637_v47  ;;  %8243 = vmatprep.mubr.msk.f32.mxu0 %vm588_vm3, %v4815_v21  ;;  %v3953_v21 = vld [vmem:[%s10918_s13 + $0x10] sm:$0xff] }
0x17ae   :  { %8624 = vmatprep.subr.bf16.mxu1 %v8623_v41  ;;  %8642 = vmatpush3.bf16.xpose.msk.msra.mxu0 %vm9827_vm4, %v8637_v47 }
0x17af   :  { %v9192_v50 = vpop.eup %9191  ;;  %8626 = vmatpush3.bf16.msra.mxu1 %v8623_v41 }
0x17b0   :  { %v9194_v45 = vpop.eup %9193  ;;  %v4354_v54 = vmul.f32 %v9192_v50, %v9188_v19  ;;  %v4817_v58 = vpop.permute.xlu1 %4816  ;;  %8215 = vmatprep.subr.mxu1 %v3952_v5 }
0x17b1   :  { %v4353_v52 = vmul.f32 %v9194_v45, %v9190_v56 }
0x17b3   :  { %8212 = vmatprep.mubr.msk.f32.mxu1 %vm676_vm5, %v4353_v52 }
0x17b4   :  { %8213 = vmatmul.mubr.msk.f32.vlgmr.msra.gmra.mrb[38].mxu1 %vm676_vm5, %v4354_v54 }
0x17b5   :  { %8244 = vmatmul.mubr.msk.f32.vlgmr.msra.gmra.mrb[36].mxu0 %vm588_vm3, %v4817_v58  ;;  %8216 = vmatpush3.msra.mxu1 %v3952_v5 }
0x17da   :  { %v4624_v57 = vpop.xlane.xlu0 %4623 }
0x17db   :  { %v4628_v62 = vsub.f32 %v4620_v51, %v4624_v57 }
0x17dd   :  { %v4630_v17 = vmul.f32 1.442695, %v4628_v62 }
0x17e1   :  { %v4627_v44 = vpop.xlane.xlu1 %4626 }
0x17e2   :  { %v4629_v20 = vsub.f32 %v4621_v32, %v4627_v44 }
0x17e4   :  { %v4632_v59 = vmul.f32 1.442695, %v4629_v20 }
0x17e5   :  { %v9008_v61 = vpop.permute.xlu1 %9007 }
0x17e6   :  { %9195 = vpow2.f32 %v4632_v59  ;;  %v9010_v8 = vunpack.i.h.bf16 %v9008_v61  ;;  %v9009_v33 = vunpack.i.l.bf16 %v9008_v61 }
0x17e7   :  { %9197 = vpow2.f32 %v4630_v17 }
0x17e8   :  { %v8647_v30 = vpack.c.bf16 %v9010_v8, %v9009_v33 }
0x17e9   :  { %v5102_v63 = vpop.permute.xlu1 %5101 }
0x17ea   :  { %8649 = vmatprep.subr.msk.bf16.mxu0 %vm9827_vm4, %v8647_v30  ;;  %8262 = vmatprep.mubr.msk.f32.mxu0 %vm588_vm3, %v5102_v63 }
0x17eb   :  { %8652 = vmatpush3.bf16.xpose.msk.msra.mxu0 %vm9827_vm4, %v8647_v30 }
0x17ed   :  { %v5104_v1 = vpop.permute.xlu1 %5103 }
0x17f0   :  { %v9196_v28 = vpop.eup %9195 }
0x17f1   :  { %v4637_v0 = vsel %vm676_vm5, %v9196_v28, 0.0  ;;  %v9198_v3 = vpop.eup %9197 }
0x17f2   :  { %4638 = vadd.xlane.f32.xlu0 %v4637_v0  ;;  %8263 = vmatmul.mubr.msk.f32.vlgmr.msra.gmra.mrb[38].mxu0 %vm588_vm3, %v5104_v1  ;;  %v4634_v11 = vsel %vm676_vm5, %v9198_v3, 0.0 }
0x17f6   :  { %4635 = vadd.xlane.f32.xlu0 %v4634_v11 }
0x180c   :  { %9002 = vrot.lane.b32.xlu0 %v10312_v39, %s9468_s19  ;;  %s10920_s19 = sld [smem:[#allocation40_spill]] }
0x187f   :  { %v4639_v6 = vpop.xlane.xlu0 %4638 }
0x1880   :  { %9199 = vrcp.f32 %v4639_v6 }
0x1883   :  { %v4636_v7 = vpop.xlane.xlu0 %4635 }
0x1884   :  { %9201 = vrcp.f32 %v4636_v7 }
0x1887   :  { %v8214_v25 = vpop.f32.mrb[38].mxu1  ;;  %v9003_v26 = vpop.permute.xlu0 %9002 }
0x1888   :  { %v9005_v16 = vunpack.i.h.bf16 %v9003_v26  ;;  %v9004_v19 = vunpack.i.l.bf16 %v9003_v26  ;;  %v4435_v56 = vpop.f32.mrb[39].mxu1  ;;  %v8245_v49 = vpop.f32.mrb[36].mxu0 }
0x1889   :  { %v4906_v60 = vmul.f32 0.35355338, %v8245_v49  ;;  %8217 = vmatprep.mubr.msk.f32.mxu1 %vm588_vm3, %v4435_v56  ;;  %v4896_v24 = vpop.f32.mrb[37].mxu0 }
0x188a   :  { %v8633_v51 = vpack.c.bf16 %v9005_v16, %v9004_v19  ;;  %v4905_v2 = vmul.f32 0.35355338, %v4896_v24  ;;  %8218 = vmatmul.mubr.msk.f32.vlgmr.msra.gmra.mrb[36].mxu1 %vm588_vm3, %v8214_v25  ;;  %v9200_v31 = vpop.eup %9199 }
0x188b   :  { %v4908_v27 = vadd.f32 %v4906_v60, %v10381_v29  ;;  %v4643_v10 = vmul.f32 %v9200_v31, %v9196_v28 }
0x188c   :  { %v4907_v32 = vadd.f32 %v4905_v2, %v10378_v15  ;;  %8634 = vmatprep.subr.bf16.mxu1 %v8633_v51 }
0x188d   :  { %8636 = vmatpush3.bf16.msra.mxu1 %v8633_v51  ;;  %v4912_v40 = vsel %vm676_vm5, %v4908_v27, -inf }
0x188e   :  { %v9202_v38 = vpop.eup %9201  ;;  %4913 = vmax.xlane.f32.xlu1 %v4912_v40  ;;  %v4909_v42 = vsel %vm676_vm5, %v4907_v32, -inf  ;;  %8234 = vmatprep.subr.mxu1 %v3953_v21 }
0x188f   :  { %4910 = vmax.xlane.f32.xlu0 %v4909_v42  ;;  %v4642_v55 = vmul.f32 %v9202_v38, %v9198_v3 }
0x1891   :  { %8231 = vmatprep.mubr.msk.f32.mxu1 %vm676_vm5, %v4642_v55 }
0x1892   :  { %8232 = vmatmul.mubr.msk.f32.vlgmr.msra.gmra.mrb[40].mxu1 %vm676_vm5, %v4643_v10 }
0x1893   :  { %8235 = vmatpush3.msra.mxu1 %v3953_v21 }
0x189f   :  { %9017 = vrot.lane.b32.xlu1 %v10310_v53, %s9475_s7  ;;  %s10926_s7 = sld [smem:[#allocation47_spill]] }
0x18a3   :  { %5388 = vrot.lane.b32.xlu1 %v10301_v23, %s9474_s2 }
0x18a7   :  { %5390 = vrot.lane.b32.xlu1 %v10304_v48, %s9474_s2 }
0x18c5   :  { %v8264_v37 = vpop.f32.mrb[38].mxu0 }
0x18c6   :  { %v5193_v13 = vmul.f32 0.35355338, %v8264_v37  ;;  %v5183_v46 = vpop.f32.mrb[39].mxu0 }
0x18c7   :  { %v5192_v3 = vmul.f32 0.35355338, %v5183_v46 }
0x18c8   :  { %v5195_v47 = vadd.f32 %v5193_v13, %v10381_v29 }
0x18c9   :  { %v5194_v25 = vadd.f32 %v5192_v3, %v10378_v15 }
0x18ca   :  { %v5199_v41 = vsel %vm676_vm5, %v5195_v47, -inf }
0x18cb   :  { %5200 = vmax.xlane.f32.xlu1 %v5199_v41  ;;  %v5196_v16 = vsel %vm676_vm5, %v5194_v25, -inf }
0x18dc   :  { %9027 = vrot.lane.b32.xlu1 %v10310_v53, %s9477_s6  ;;  %s10928_s6 = sld [smem:[#allocation18_spill]] }
0x18e0   :  { %5675 = vrot.lane.b32.xlu1 %v10301_v23, %s9476_s10 }
0x18e2   :  { %v7013_v9 = vld [vmem:[%s10928_s6] sm:$0x3] }
0x18e4   :  { %5677 = vrot.lane.b32.xlu1 %v10304_v48, %s9476_s10 }
0x191b   :  { %v4914_v50 = vpop.xlane.xlu1 %4913 }
0x191c   :  { %v4916_v45 = vsub.f32 %v4908_v27, %v4914_v50  ;;  %v4911_v52 = vpop.xlane.xlu0 %4910 }
0x191d   :  { %v4915_v54 = vsub.f32 %v4907_v32, %v4911_v52 }
0x191e   :  { %v4919_v58 = vmul.f32 1.442695, %v4916_v45 }
0x191f   :  { %v4917_v57 = vmul.f32 1.442695, %v4915_v54  ;;  %v9018_v62 = vpop.permute.xlu1 %9017 }
0x1920   :  { %9203 = vpow2.f32 %v4919_v58  ;;  %v9020_v44 = vunpack.i.h.bf16 %v9018_v62  ;;  %v9019_v20 = vunpack.i.l.bf16 %v9018_v62  ;;  %v3954_v58 = vld [vmem:[%s10918_s13 + $0x18] sm:$0xff] }
0x1921   :  { %9205 = vpow2.f32 %v4917_v57 }
0x1922   :  { %v8657_v17 = vpack.c.bf16 %v9020_v44, %v9019_v20 }
0x1923   :  { %v5389_v59 = vpop.permute.xlu1 %5388 }
0x1924   :  { %8659 = vmatprep.subr.msk.bf16.mxu0 %vm9827_vm4, %v8657_v17  ;;  %8281 = vmatprep.mubr.msk.f32.mxu0 %vm588_vm3, %v5389_v59 }
0x1925   :  { %8662 = vmatpush3.bf16.xpose.msk.msra.mxu0 %vm9827_vm4, %v8657_v17 }
0x1927   :  { %v5391_v8 = vpop.permute.xlu1 %5390 }
0x192a   :  { %v9204_v61 = vpop.eup %9203 }
0x192b   :  { %v4924_v33 = vsel %vm676_vm5, %v9204_v61, 0.0  ;;  %v9206_v30 = vpop.eup %9205 }
0x192c   :  { %8282 = vmatmul.mubr.msk.f32.vlgmr.msra.gmra.mrb[40].mxu0 %vm588_vm3, %v5391_v8  ;;  %4925 = vadd.xlane.f32.xlu0 %v4924_v33  ;;  %v4921_v63 = vsel %vm676_vm5, %v9206_v30, 0.0 }
0x1930   :  { %4922 = vadd.xlane.f32.xlu0 %v4921_v63 }
0x1946   :  { %9012 = vrot.lane.b32.xlu0 %v10312_v39, %s9470_s24  ;;  %s10921_s24 = sld [smem:[#allocation42_spill]] }
0x1958   :  { %v5201_v28 = vpop.xlane.xlu1 %5200 }
0x1959   :  { %v5203_v1 = vsub.f32 %v5195_v47, %v5201_v28 }
0x195b   :  { %v5206_v0 = vmul.f32 1.442695, %v5203_v1 }
0x195c   :  { %v9028_v11 = vpop.permute.xlu1 %9027 }
0x195d   :  { %9207 = vpow2.f32 %v5206_v0  ;;  %v9030_v5 = vunpack.i.h.bf16 %v9028_v11  ;;  %v9029_v6 = vunpack.i.l.bf16 %v9028_v11 }
0x195f   :  { %v8667_v7 = vpack.c.bf16 %v9030_v5, %v9029_v6 }
0x1960   :  { %v5676_v26 = vpop.permute.xlu1 %5675 }
0x1961   :  { %8669 = vmatprep.subr.msk.bf16.mxu0 %vm9827_vm4, %v8667_v7  ;;  %8300 = vmatprep.mubr.msk.f32.mxu0 %vm588_vm3, %v5676_v26 }
0x1962   :  { %8672 = vmatpush3.bf16.xpose.msk.msra.mxu0 %vm9827_vm4, %v8667_v7 }
0x1964   :  { %v5678_v60 = vpop.permute.xlu1 %5677 }
0x1965   :  { %v8233_v19 = vpop.f32.mrb[40].mxu1  ;;  %5197 = vmax.xlane.f32.xlu0 %v5196_v16 }
0x1966   :  { %v4722_v56 = vpop.f32.mrb[41].mxu1 }
0x1967   :  { %v10489_v49 = vpop.eup %9207  ;;  %8236 = vmatprep.mubr.msk.f32.mxu1 %vm588_vm3, %v4722_v56 }
0x1968   :  { %8237 = vmatmul.mubr.msk.f32.vlgmr.msra.gmra.mrb[36].mxu1 %vm588_vm3, %v8233_v19  ;;  %v5211_v24 = vsel %vm676_vm5, %v10489_v49, 0.0 }
0x1969   :  { %8301 = vmatmul.mubr.msk.f32.vlgmr.msra.gmra.mrb[42].mxu0 %vm588_vm3, %v5678_v60  ;;  %5212 = vadd.xlane.f32.xlu0 %v5211_v24 }
0x19b9   :  { %v4926_v51 = vpop.xlane.xlu0 %4925 }
0x19ba   :  { %9209 = vrcp.f32 %v4926_v51 }
0x19bd   :  { %v4923_v2 = vpop.xlane.xlu0 %4922 }
0x19be   :  { %9211 = vrcp.f32 %v4923_v2 }
0x19c1   :  { %v9013_v27 = vpop.permute.xlu0 %9012 }
0x19c2   :  { %v9015_v32 = vunpack.i.h.bf16 %v9013_v27  ;;  %v9014_v31 = vunpack.i.l.bf16 %v9013_v27 }
0x19c4   :  { %v8643_v40 = vpack.c.bf16 %v9015_v32, %v9014_v31  ;;  %v9210_v38 = vpop.eup %9209 }
0x19c5   :  { %v4930_v10 = vmul.f32 %v9210_v38, %v9204_v61  ;;  %v3955_v38 = vld [vmem:[%s10919_s8] sm:$0xff] }
0x19c6   :  { %8644 = vmatprep.subr.bf16.mxu1 %v8643_v40 }
0x19c7   :  { %8646 = vmatpush3.bf16.msra.mxu1 %v8643_v40 }
0x19c8   :  { %v9212_v42 = vpop.eup %9211  ;;  %8253 = vmatprep.subr.mxu1 %v3954_v58 }
0x19c9   :  { %v4929_v55 = vmul.f32 %v9212_v42, %v9206_v30 }
0x19cb   :  { %8250 = vmatprep.mubr.msk.f32.mxu1 %vm676_vm5, %v4929_v55 }
0x19cc   :  { %8251 = vmatmul.mubr.msk.f32.vlgmr.msra.gmra.mrb[42].mxu1 %vm676_vm5, %v4930_v10 }
0x19cd   :  { %8254 = vmatpush3.msra.mxu1 %v3954_v58  ;;  %v7548_v58 = vld [vmem:[%s10920_s19] ss:$0 sm:$0xff] }
0x19f2   :  { %v5198_v37 = vpop.xlane.xlu0 %5197 }
0x19f3   :  { %v5202_v13 = vsub.f32 %v5194_v25, %v5198_v37 }
0x19f5   :  { %v5204_v46 = vmul.f32 1.442695, %v5202_v13 }
0x19f6   :  { %v5213_v8 = vpop.xlane.xlu0 %5212 }
0x19f7   :  { %9213 = vpow2.f32 %v5204_v46 }
0x19ff   :  { %v8283_v47 = vpop.f32.mrb[40].mxu0 }
0x1a00   :  { %v5480_v41 = vmul.f32 0.35355338, %v8283_v47  ;;  %v5470_v21 = vpop.f32.mrb[41].mxu0 }
0x1a01   :  { %v9214_v50 = vpop.eup %9213  ;;  %v5479_v57 = vmul.f32 0.35355338, %v5470_v21 }
0x1a02   :  { %v5482_v45 = vadd.f32 %v5480_v41, %v10381_v29  ;;  %v5208_v52 = vsel %vm676_vm5, %v9214_v50, 0.0 }
0x1a03   :  { %5209 = vadd.xlane.f32.xlu0 %v5208_v52  ;;  %v5481_v62 = vadd.f32 %v5479_v57, %v10378_v15 }
0x1a04   :  { %v5486_v54 = vsel %vm676_vm5, %v5482_v45, -inf }
0x1a05   :  { %5487 = vmax.xlane.f32.xlu1 %v5486_v54  ;;  %v5483_v44 = vsel %vm676_vm5, %v5481_v62, -inf }
0x1a16   :  { %9037 = vrot.lane.b32.xlu1 %v10310_v53, %s9479_s15  ;;  %s10931_s15 = sld [smem:[#allocation19_spill]] }
0x1a19   :  { %9022 = vrot.lane.b32.xlu0 %v10312_v39, %s9471_s30  ;;  %s10922_s30 = sld [smem:[#allocation45_spill]] }
0x1a1a   :  { %5962 = vrot.lane.b32.xlu1 %v10301_v23, %s9478_s11 }
0x1a1e   :  { %5964 = vrot.lane.b32.xlu1 %v10304_v48, %s9478_s11 }
0x1a38   :  { %5484 = vmax.xlane.f32.xlu0 %v5483_v44 }
0x1a3c   :  { %v8302_v20 = vpop.f32.mrb[42].mxu0 }
0x1a3d   :  { %v5767_v53 = vmul.f32 0.35355338, %v8302_v20  ;;  %v5757_v17 = vpop.f32.mrb[43].mxu0 }
0x1a3e   :  { %v5766_v10 = vmul.f32 0.35355338, %v5757_v17 }
0x1a3f   :  { %v5769_v59 = vadd.f32 %v5767_v53, %v10381_v29 }
0x1a40   :  { %v5768_v37 = vadd.f32 %v5766_v10, %v10378_v15 }
0x1a41   :  { %v5773_v61 = vsel %vm676_vm5, %v5769_v59, -inf }
0x1a42   :  { %5774 = vmax.xlane.f32.xlu1 %v5773_v61  ;;  %v5770_v13 = vsel %vm676_vm5, %v5768_v37, -inf }
0x1a90   :  { %v5210_v33 = vpop.xlane.xlu0 %5209 }
0x1a91   :  { %9215 = vrcp.f32 %v5210_v33 }
0x1a92   :  { %v5488_v23 = vpop.xlane.xlu1 %5487  ;;  %9217 = vrcp.f32 %v5213_v8 }
0x1a93   :  { %v5490_v30 = vsub.f32 %v5482_v45, %v5488_v23 }
0x1a94   :  { %v9023_v63 = vpop.permute.xlu0 %9022 }
0x1a95   :  { %v5493_v48 = vmul.f32 1.442695, %v5490_v30  ;;  %v9025_v28 = vunpack.i.h.bf16 %v9023_v63  ;;  %v9024_v1 = vunpack.i.l.bf16 %v9023_v63 }
0x1a96   :  { %v9038_v0 = vpop.permute.xlu1 %9037 }
0x1a97   :  { %9219 = vpow2.f32 %v5493_v48  ;;  %v8653_v3 = vpack.c.bf16 %v9025_v28, %v9024_v1  ;;  %v9040_v11 = vunpack.i.h.bf16 %v9038_v0  ;;  %v9039_v5 = vunpack.i.l.bf16 %v9038_v0 }
0x1a99   :  { %v8677_v6 = vpack.c.bf16 %v9040_v11, %v9039_v5  ;;  %8654 = vmatprep.subr.bf16.mxu1 %v8653_v3 }
0x1a9a   :  { %v5963_v7 = vpop.permute.xlu1 %5962 }
0x1a9b   :  { %8679 = vmatprep.subr.msk.bf16.mxu0 %vm9827_vm4, %v8677_v6  ;;  %8319 = vmatprep.mubr.msk.f32.mxu0 %vm588_vm3, %v5963_v7  ;;  %v9216_v25 = vpop.eup %9215 }
0x1a9c   :  { %8682 = vmatpush3.bf16.xpose.msk.msra.mxu0 %vm9827_vm4, %v8677_v6  ;;  %v9218_v16 = vpop.eup %9217  ;;  %v5216_v51 = vmul.f32 %v9216_v25, %v9214_v50  ;;  %v3956_v6 = vld [vmem:[%s10919_s8 + $0x8] sm:$0xff]  ;;  %v9289_v25 = vld [vmem:[%s10904_s16] sm:$0xff] }
0x1a9d   :  { %v5217_v4 = vmul.f32 %v9218_v16, %v10489_v49 }
0x1a9e   :  { %v5965_v60 = vpop.permute.xlu1 %5964 }
0x1a9f   :  { %v8252_v26 = vpop.f32.mrb[42].mxu1 }
0x1aa0   :  { %v5009_v19 = vpop.f32.mrb[43].mxu1 }
0x1aa1   :  { %v10519_v56 = vpop.eup %9219  ;;  %8255 = vmatprep.mubr.msk.f32.mxu1 %vm588_vm3, %v5009_v19 }
0x1aa2   :  { %8256 = vmatmul.mubr.msk.f32.vlgmr.msra.gmra.mrb[36].mxu1 %vm588_vm3, %v8252_v26  ;;  %v5498_v24 = vsel %vm676_vm5, %v10519_v56, 0.0 }
0x1aa3   :  { %8656 = vmatpush3.bf16.msra.mxu1 %v8653_v3  ;;  %8320 = vmatmul.mubr.msk.f32.vlgmr.msra.gmra.mrb[44].mxu0 %vm588_vm3, %v5965_v60 }
0x1aa4   :  { %5499 = vadd.xlane.f32.xlu0 %v5498_v24  ;;  %8269 = vmatprep.mubr.msk.f32.mxu1 %vm676_vm5, %v5216_v51 }
0x1aa5   :  { %6393 = vmatprep.mubr.f32.mxu0 %v9464_v36  ;;  %8272 = vmatprep.subr.mxu1 %v3955_v38 }
0x1aa6   :  { %8270 = vmatmul.mubr.msk.f32.vlgmr.msra.gmra.mrb[44].mxu1 %vm676_vm5, %v5217_v4 }
0x1aa7   :  { %8273 = vmatpush3.msra.mxu1 %v3955_v38 }
0x1ac5   :  { %v5485_v2 = vpop.xlane.xlu0 %5484 }
0x1ac6   :  { %v5489_v27 = vsub.f32 %v5481_v62, %v5485_v2 }
0x1ac8   :  { %v5491_v32 = vmul.f32 1.442695, %v5489_v27 }
0x1aca   :  { %9221 = vpow2.f32 %v5491_v32 }
0x1acf   :  { %v5775_v49 = vpop.xlane.xlu1 %5774 }
0x1ad0   :  { %v5777_v42 = vsub.f32 %v5769_v59, %v5775_v49 }
0x1ad2   :  { %v5780_v55 = vmul.f32 1.442695, %v5777_v42 }
0x1ad4   :  { %v9222_v31 = vpop.eup %9221  ;;  %9223 = vpow2.f32 %v5780_v55 }
0x1ad5   :  { %v5495_v40 = vsel %vm676_vm5, %v9222_v31, 0.0 }
0x1ad6   :  { %5496 = vadd.xlane.f32.xlu0 %v5495_v40 }
0x1ade   :  { %v10536_v46 = vpop.eup %9223 }
0x1adf   :  { %v5785_v47 = vsel %vm676_vm5, %v10536_v46, 0.0 }
0x1aec   :  { %9032 = vrot.lane.b32.xlu0 %v10312_v39, %s9474_s2  ;;  %s10925_s2 = sld [smem:[#allocation48_spill]] }
0x1b0b   :  { %5771 = vmax.xlane.f32.xlu0 %v5770_v13  ;;  %v9290_v13 = vld [vmem:[%s10904_s16 + $0x8] sm:$0xff]  ;;  %s9482_s16 = smov [#allocation11]  }
0x1b0c   :  { %s7396_s18 = sshll.u32 %s9482_s16, 4  ;;  %s7397_s18 = int_to_ptr.vmem [resolvable:$true] %s7396_s18 }
0x1b0d   :  { %s9379_s22 = scalar_lea.vmem %s7397_s18, 32  ;;  %p9384_p5 = scmp.lt.s32.totalorder %s7397_s18, %s7397_s18 }
0x1b0e   :  { %p9380_p4 = scmp.ne.s32.totalorder %s7397_s18, %s9379_s22  ;;  %p9385_p6 = scmp.lt.s32.totalorder %s9379_s22, %s9379_s22 }
0x1b0f   :  { %5786 = vadd.xlane.f32.xlu0 %v5785_v47 }
0x1b10   :  { %p9386_p7 = por %p9385_p6, %p9384_p5 }
0x1b12   :  { %p9387_p8 = pnand %p9386_p7, %p9380_p4 }
0x1b31   :  { %v5500_v41 = vpop.xlane.xlu0 %5499 }
0x1b63   :  { %v5497_v21 = vpop.xlane.xlu0 %5496 }
0x1b64   :  { %9225 = vrcp.f32 %v5497_v21 }
0x1b65   :  { %9227 = vrcp.f32 %v5500_v41 }
0x1b67   :  { %v9033_v50 = vpop.permute.xlu0 %9032 }
0x1b68   :  { %v9035_v45 = vunpack.i.h.bf16 %v9033_v50  ;;  %v9034_v52 = vunpack.i.l.bf16 %v9033_v50 }
0x1b6a   :  { %v8663_v54 = vpack.c.bf16 %v9035_v45, %v9034_v52  ;;  %v3957_v45 = vld [vmem:[%s10919_s8 + $0x10] sm:$0xff] }
0x1b6c   :  { %8664 = vmatprep.subr.bf16.mxu1 %v8663_v54 }
0x1b6e   :  { %v9226_v61 = vpop.eup %9225 }
0x1b6f   :  { %v9228_v30 = vpop.eup %9227  ;;  %v5503_v28 = vmul.f32 %v9226_v61, %v9222_v31 }
0x1b70   :  { %v5504_v1 = vmul.f32 %v9228_v30, %v10519_v56 }
0x1b75   :  { %v8257_v57 = vpop.f32.mrb[36].mxu1 }
0x1b76   :  { %v10541_v62 = vadd.f32 %v8257_v57, %v7548_v58  ;;  %v5090_v44 = vpop.f32.mrb[37].mxu1  ;;  %v8321_v20 = vpop.f32.mrb[44].mxu0 }
0x1b77   :  { %v6044_v53 = vpop.f32.mrb[45].mxu0  ;;  %v6054_v17 = vmul.f32 0.35355338, %v8321_v20  ;;  %v8800_v7 = vadd.f32 %v7548_v58, %v5090_v44 }
0x1b78   :  { %v6053_v59 = vmul.f32 0.35355338, %v6044_v53  ;;  %v10567_v47 = vadd.f32 %v9290_v13, %v10541_v62  ;;  %v6306_v13 = vld [vmem:[%s10922_s30 + $0x58] sm:$0xff] }
0x1b79   :  { %v8271_v8 = vpop.f32.mrb[44].mxu1  ;;  %v6056_v63 = vadd.f32 %v6054_v17, %v10381_v29  ;;  %v10557_v26 = vadd.f32 %v9289_v25, %v8800_v7 }
0x1b7a   :  { %v6055_v33 = vadd.f32 %v6053_v59, %v10378_v15  ;;  %v5296_v23 = vpop.f32.mrb[45].mxu1  ;;  %v6256_v52 = vsel %vm278_vm0, %v10567_v47, 0.0 }
0x1b7b   :  { %8274 = vmatprep.mubr.msk.f32.mxu1 %vm588_vm3, %v5296_v23  ;;  %v6060_v15 = vsel %vm676_vm5, %v6056_v63, -inf  ;;  %v6253_v16 = vsel %vm278_vm0, %v10557_v26, 0.0 }
0x1b7c   :  { %8275 = vmatmul.mubr.msk.f32.vlgmr.msra.gmra.mrb[46].mxu1 %vm588_vm3, %v8271_v8  ;;  %v6057_v48 = vsel %vm676_vm5, %v6055_v33, -inf }
0x1b7d   :  { %8666 = vmatpush3.bf16.msra.mxu1 %v8663_v54  ;;  %6058 = vmax.xlane.f32.xlu1 %v6057_v48 }
0x1b7e   :  { %8288 = vmatprep.mubr.msk.f32.mxu1 %vm676_vm5, %v5503_v28  ;;  %8291 = vmatprep.subr.mxu1 %v3956_v6  ;;  %v7549_v28 = vld [vmem:[%s10921_s24] ss:$0 sm:$0xff] }
0x1b80   :  { %8289 = vmatmul.mubr.msk.f32.vlgmr.msra.gmra.mrb[48].mxu1 %vm676_vm5, %v5504_v1 }
0x1b81   :  { %6061 = vmax.xlane.f32.xlu1 %v6060_v15  ;;  %8292 = vmatpush3.msra.mxu1 %v3956_v6 }
0x1b98   :  { %v5772_v0 = vpop.xlane.xlu0 %5771 }
0x1b99   :  { %v5776_v29 = vsub.f32 %v5768_v37, %v5772_v0 }
0x1b9b   :  { %v5778_v3 = vmul.f32 1.442695, %v5776_v29 }
0x1b9c   :  { %v5787_v40 = vpop.xlane.xlu0 %5786 }
0x1b9d   :  { %9229 = vpow2.f32 %v5778_v3 }
0x1ba7   :  { %v9230_v11 = vpop.eup %9229 }
0x1ba8   :  { %v5782_v5 = vsel %vm676_vm5, %v9230_v11, 0.0 }
0x1ba9   :  { %5783 = vadd.xlane.f32.xlu0 %v5782_v5 }
0x1bbf   :  { %9042 = vrot.lane.b32.xlu0 %v10312_v39, %s9476_s10  ;;  %s10927_s10 = sld [smem:[#allocation46_spill]] }
0x1bde   :  { %6254 = vadd.xlane.f32.xlu0 %v6253_v16 }
0x1c0a   :  { %v6059_v19 = vpop.xlane.xlu1 %6058 }
0x1c0b   :  { %v6063_v56 = vsub.f32 %v6055_v33, %v6059_v19  ;;  %v3958_v33 = vld [vmem:[%s10919_s8 + $0x18] sm:$0xff] }
0x1c0d   :  { %v6065_v51 = vmul.f32 1.442695, %v6063_v56 }
0x1c0e   :  { %v6062_v60 = vpop.xlane.xlu1 %6061 }
0x1c0f   :  { %v6064_v24 = vsub.f32 %v6056_v63, %v6062_v60 }
0x1c11   :  { %v6067_v4 = vmul.f32 1.442695, %v6064_v24 }
0x1c13   :  { %9231 = vpow2.f32 %v6067_v4  ;;  %v6298_v4 = vld [vmem:[%s10922_s30 + $0x18] sm:$0xff] }
0x1c14   :  { %9233 = vpow2.f32 %v6065_v51  ;;  %v6296_v51 = vld [vmem:[%s10922_s30 + $0x8] sm:$0xff] }
0x1c1d   :  { %v9232_v2 = vpop.eup %9231 }
0x1c1e   :  { %v6072_v27 = vsel %vm676_vm5, %v9232_v2, 0.0  ;;  %v9234_v32 = vpop.eup %9233 }
0x1c1f   :  { %6073 = vadd.xlane.f32.xlu1 %v6072_v27  ;;  %v6069_v31 = vsel %vm676_vm5, %v9234_v32, 0.0  ;;  %v6295_v27 = vld [vmem:[%s10922_s30] sm:$0xff] }
0x1c23   :  { %6070 = vadd.xlane.f32.xlu1 %v6069_v31 }
0x1c34   :  { %9047 = vrot.lane.b32.xlu1 %v10312_v39, %s9478_s11  ;;  %s10929_s11 = sld [smem:[#allocation49_spill]] }
0x1c36   :  { %v5784_v38 = vpop.xlane.xlu0 %5783 }
0x1c37   :  { %9235 = vrcp.f32 %v5784_v38  ;;  %v6302_v38 = vld [vmem:[%s10922_s30 + $0x38] sm:$0xff] }
0x1c38   :  { %9237 = vrcp.f32 %v5787_v40  ;;  %v6300_v40 = vld [vmem:[%s10922_s30 + $0x28] sm:$0xff] }
0x1c3a   :  { %v9043_v49 = vpop.permute.xlu0 %9042 }
0x1c3b   :  { %v9045_v42 = vunpack.i.h.bf16 %v9043_v49  ;;  %v9044_v55 = vunpack.i.l.bf16 %v9043_v49  ;;  %v8691_v49 = vpack.c.bf16 %v6302_v38, %v6300_v40 }
0x1c3d   :  { %v8673_v10 = vpack.c.bf16 %v9045_v42, %v9044_v55  ;;  %v6299_v42 = vld [vmem:[%s10922_s30 + $0x20] sm:$0xff]  ;;  %v6301_v55 = vld [vmem:[%s10922_s30 + $0x30] sm:$0xff] }
0x1c3f   :  { %8674 = vmatprep.subr.bf16.mxu1 %v8673_v10 }
0x1c41   :  { %v9236_v37 = vpop.eup %9235 }
0x1c42   :  { %v9238_v50 = vpop.eup %9237  ;;  %v5790_v39 = vmul.f32 %v9236_v37, %v9230_v11  ;;  %v6304_v37 = vld [vmem:[%s10922_s30 + $0x48] sm:$0xff] }
0x1c43   :  { %v5791_v54 = vmul.f32 %v9238_v50, %v10536_v46  ;;  %v6305_v50 = vld [vmem:[%s10922_s30 + $0x50] sm:$0xff] }
0x1c53   :  { %v8290_v41 = vpop.f32.mrb[48].mxu1 }
0x1c54   :  { %v5583_v21 = vpop.f32.mrb[49].mxu1 }
0x1c55   :  { %8293 = vmatprep.mubr.msk.f32.mxu1 %vm588_vm3, %v5583_v21  ;;  %v6303_v21 = vld [vmem:[%s10922_s30 + $0x40] sm:$0xff] }
0x1c56   :  { %8294 = vmatmul.mubr.msk.f32.vlgmr.msra.gmra.mrb[46].mxu1 %vm588_vm3, %v8290_v41  ;;  %v8695_v41 = vpack.c.bf16 %v6306_v13, %v6304_v37  ;;  %v6687_v37 = vld [vmem:[%s10925_s2 + $0x58] sm:$0xff] }
0x1c57   :  { %8676 = vmatpush3.bf16.msra.mxu1 %v8673_v10  ;;  %8307 = vmatprep.mubr.msk.f32.mxu1 %vm676_vm5, %v5790_v39  ;;  %v8693_v10 = vpack.c.bf16 %v6301_v55, %v6299_v42  ;;  %v8697_v39 = vpack.c.bf16 %v6305_v50, %v6303_v21  ;;  %v6682_v42 = vld [vmem:[%s10925_s2 + $0x30] sm:$0xff] }
0x1c58   :  { %6257 = vadd.xlane.f32.xlu1 %v6256_v52  ;;  %8310 = vmatprep.subr.mxu1 %v3957_v45  ;;  %v6310_v52 = vld [vmem:[%s10922_s30 + $0x78] sm:$0xff]  ;;  %v6686_v21 = vld [vmem:[%s10925_s2 + $0x50] sm:$0xff] }
0x1c5a   :  { %8308 = vmatmul.mubr.msk.f32.vlgmr.msra.gmra.mrb[50].mxu1 %vm676_vm5, %v5791_v54  ;;  %v6307_v54 = vld [vmem:[%s10922_s30 + $0x60] sm:$0xff] }
0x1c5b   :  { %8311 = vmatpush3.msra.mxu1 %v3957_v45  ;;  %v6308_v45 = vld [vmem:[%s10922_s30 + $0x68] sm:$0xff] }
0x1c6b   :  { %v6255_v48 = vpop.xlane.xlu0 %6254 }
0x1c6c   :  { %v6259_v1 = vmul.f32 0.015625, %v6255_v48 }
0x1c6e   :  { %v10588_v11 = vsub.f32 %v10557_v26, %v6259_v1 }
0x1c70   :  { %v6263_v19 = vmul.f32 %v10588_v11, %v10588_v11 }
0x1c72   :  { %v6265_v56 = vsel %vm278_vm0, %v6263_v19, 0.0  ;;  %v6679_v19 = vld [vmem:[%s10925_s2 + $0x18] sm:$0xff] }
0x1cac   :  { %v6074_v58 = vpop.xlane.xlu1 %6073 }
0x1cb0   :  { %v6071_v57 = vpop.xlane.xlu1 %6070 }
0x1cb1   :  { %9239 = vrcp.f32 %v6071_v57  ;;  %v6309_v57 = vld [vmem:[%s10922_s30 + $0x70] sm:$0xff] }
0x1cb2   :  { %9241 = vrcp.f32 %v6074_v58  ;;  %v8699_v58 = vpack.c.bf16 %v6310_v52, %v6308_v45  ;;  %v6691_v45 = vld [vmem:[%s10925_s2 + $0x78] sm:$0xff] }
0x1cb4   :  { %v9048_v62 = vpop.permute.xlu1 %9047 }
0x1cb5   :  { %v9050_v44 = vunpack.i.h.bf16 %v9048_v62  ;;  %v9049_v20 = vunpack.i.l.bf16 %v9048_v62  ;;  %v8701_v62 = vpack.c.bf16 %v6309_v57, %v6307_v54  ;;  %v6688_v54 = vld [vmem:[%s10925_s2 + $0x60] sm:$0xff] }
0x1cb7   :  { %v8683_v53 = vpack.c.bf16 %v9050_v44, %v9049_v20 }
0x1cb9   :  { %8684 = vmatprep.subr.bf16.mxu1 %v8683_v53 }
0x1cbb   :  { %v9240_v17 = vpop.eup %9239 }
0x1cbc   :  { %v9242_v8 = vpop.eup %9241  ;;  %v6077_v46 = vmul.f32 %v9240_v17, %v9234_v32  ;;  %v6297_v32 = vld [vmem:[%s10922_s30 + $0x10] sm:$0xff] }
0x1cbd   :  { %v6078_v23 = vmul.f32 %v9242_v8, %v9232_v2  ;;  %v8687_v2 = vpack.c.bf16 %v6298_v4, %v6296_v51  ;;  %v8689_v31 = vpack.c.bf16 %v6297_v32, %v6295_v27  ;;  %v6678_v51 = vld [vmem:[%s10925_s2 + $0x10] sm:$0xff] }
0x1cbf   :  { %8688 = vmatprep.subr.bf16.mxu0 %v8687_v2 }
0x1cc0   :  { %8690 = vmatpush1.bf16.msra.mxu0 %v8689_v31  ;;  %v6681_v31 = vld [vmem:[%s10925_s2 + $0x28] sm:$0xff] }
0x1cc1   :  { %8692 = vmatprep.subr.bf16.mxu0 %v8691_v49  ;;  %v6680_v49 = vld [vmem:[%s10925_s2 + $0x20] sm:$0xff] }
0x1cc2   :  { %v8741_v55 = vpack.c.bf16 %v6682_v42, %v6680_v49  ;;  %v6541_v49 = vld [vmem:[%s10926_s7 + $0xd8] sm:$0xff] }
0x1cc4   :  { %8694 = vmatpush1.bf16.msra.mxu0 %v8693_v10 }
0x1cc5   :  { %8696 = vmatprep.subr.bf16.mxu0 %v8695_v41  ;;  %v6684_v41 = vld [vmem:[%s10925_s2 + $0x40] sm:$0xff] }
0x1cc6   :  { %v8745_v50 = vpack.c.bf16 %v6686_v21, %v6684_v41  ;;  %v6542_v21 = vld [vmem:[%s10926_s7 + $0xe0] sm:$0xff] }
0x1cc8   :  { %8698 = vmatpush1.bf16.msra.mxu0 %v8697_v39  ;;  %v6689_v39 = vld [vmem:[%s10925_s2 + $0x68] sm:$0xff] }
0x1cc9   :  { %8700 = vmatprep.subr.bf16.mxu0 %v8699_v58  ;;  %v8747_v52 = vpack.c.bf16 %v6691_v45, %v6689_v39  ;;  %v6690_v58 = vld [vmem:[%s10925_s2 + $0x70] sm:$0xff] }
0x1cca   :  { %v8749_v57 = vpack.c.bf16 %v6690_v58, %v6688_v54  ;;  %v6527_v54 = vld [vmem:[%s10926_s7 + $0x68] sm:$0xff] }
0x1ccc   :  { %8702 = vmatpush1.bf16.msra.mxu0 %v8701_v62  ;;  %v6530_v62 = vld [vmem:[%s10926_s7 + $0x80] sm:$0xff] }
0x1ce5   :  { %v6258_v0 = vpop.xlane.xlu1 %6257 }
0x1ce6   :  { %v6260_v5 = vmul.f32 0.015625, %v6258_v0 }
0x1ce8   :  { %v10595_v25 = vsub.f32 %v10567_v47, %v6260_v5 }
0x1cea   :  { %v6264_v60 = vmul.f32 %v10595_v25, %v10595_v25 }
0x1cec   :  { %v6268_v24 = vsel %vm278_vm0, %v6264_v60, 0.0 }
0x1d2d   :  { %v8309_v59 = vpop.f32.mrb[50].mxu1 }
0x1d2e   :  { %v5870_v61 = vpop.f32.mrb[51].mxu1 }
0x1d2f   :  { %8312 = vmatprep.mubr.msk.f32.mxu1 %vm588_vm3, %v5870_v61 }
0x1d30   :  { %8313 = vmatmul.mubr.msk.f32.vlgmr.msra.gmra.mrb[46].mxu1 %vm588_vm3, %v8309_v59 }
0x1d31   :  { %8686 = vmatpush3.bf16.msra.mxu1 %v8683_v53  ;;  %8326 = vmatprep.mubr.msk.f32.mxu1 %vm676_vm5, %v6077_v46 }
0x1d32   :  { %8329 = vmatprep.subr.mxu1 %v3958_v33 }
0x1d34   :  { %8327 = vmatmul.mubr.msk.f32.vlgmr.msra.gmra.mrb[52].mxu1 %vm676_vm5, %v6078_v23 }
0x1d35   :  { %8330 = vmatpush3.msra.mxu1 %v3958_v33 }
0x1e07   :  { %v8328_v30 = vpop.f32.mrb[52].mxu1 }
0x1e08   :  { %v6157_v63 = vpop.f32.mrb[53].mxu1 }
0x1e09   :  { %8331 = vmatprep.mubr.msk.f32.mxu1 %vm588_vm3, %v6157_v63 }
0x1e0a   :  { %8332 = vmatmul.mubr.msk.f32.vlgmr.msra.gmra.mrb[46].mxu1 %vm588_vm3, %v8328_v30 }
0x1edd   :  { %v8333_v15 = vpop.f32.mrb[46].mxu1 }
0x1ede   :  { %v6238_v29 = vpop.f32.mrb[47].mxu1  ;;  %v10590_v6 = vadd.f32 %v8333_v15, %v7549_v28 }
0x1edf   :  { %v10585_v3 = vadd.f32 %v7549_v28, %v6238_v29  ;;  %v7614_v29 = vld [vmem:[%s10923_s4] ss:$0 sm:$0xff] }
0x1ee0   :  { %v6637_v16 = vsel %vm278_vm0, %v10590_v6, 0.0 }
0x1ee1   :  { %v6634_v7 = vsel %vm278_vm0, %v10585_v3, 0.0 }
0x1ee2   :  { %6635 = vadd.xlane.f32.xlu0 %v6634_v7  ;;  %v7615_v7 = vld [vmem:[%s10924_s0] ss:$0 sm:$0xff] }
0x1ee6   :  { %6638 = vadd.xlane.f32.xlu0 %v6637_v16  ;;  %v6677_v16 = vld [vmem:[%s10925_s2 + $0x8] sm:$0xff] }
0x1ee7   :  { %v8735_v60 = vpack.c.bf16 %v6679_v19, %v6677_v16  ;;  %v6537_v16 = vld [vmem:[%s10926_s7 + $0xb8] sm:$0xff] }
0x1ee9   :  { %8736 = vmatprep.subr.bf16.mxu0 %v8735_v60  ;;  %v6521_v60 = vld [vmem:[%s10926_s7 + $0x38] sm:$0xff] }
0x1eea   :  { %6266 = vadd.xlane.f32.xlu0 %v6265_v56 }
0x1eee   :  { %6269 = vadd.xlane.f32.xlu0 %v6268_v24  ;;  %v6676_v24 = vld [vmem:[%s10925_s2] sm:$0xff] }
0x1eef   :  { %v8737_v2 = vpack.c.bf16 %v6678_v51, %v6676_v24  ;;  %v6538_v51 = vld [vmem:[%s10926_s7 + $0xc0] sm:$0xff] }
0x1f6f   :  { %v6636_v44 = vpop.xlane.xlu0 %6635 }
0x1f70   :  { %v6640_v20 = vmul.f32 0.015625, %v6636_v44  ;;  %v6531_v44 = vld [vmem:[%s10926_s7 + $0x88] sm:$0xff] }
0x1f72   :  { %v10622_v53 = vsub.f32 %v10585_v3, %v6640_v20  ;;  %v8703_v20 = vpack.c.bf16 %v6531_v44, %v6530_v62  ;;  %v6545_v62 = vld [vmem:[%s10926_s7 + $0xf8] sm:$0xff] }
0x1f73   :  { %v6639_v17 = vpop.xlane.xlu0 %6638 }
0x1f74   :  { %v6641_v59 = vmul.f32 0.015625, %v6639_v17  ;;  %v6644_v61 = vmul.f32 %v10622_v53, %v10622_v53  ;;  %v6514_v17 = vld [vmem:[%s10926_s7] sm:$0xff]  ;;  %8704 = vmatprep.subr.bf16.mxu1 %v8703_v20  ;;  %v6528_v20 = vld [vmem:[%s10926_s7 + $0x70] sm:$0xff] }
0x1f76   :  { %v10627_v8 = vsub.f32 %v10590_v6, %v6641_v59  ;;  %v6646_v46 = vsel %vm278_vm0, %v6644_v61, 0.0  ;;  %v6515_v59 = vld [vmem:[%s10926_s7 + $0x8] sm:$0xff] }
0x1f77   :  { %6647 = vadd.xlane.f32.xlu0 %v6646_v46  ;;  %v6267_v33 = vpop.xlane.xlu0 %6266  ;;  %v8705_v61 = vpack.c.bf16 %v6515_v59, %v6514_v17  ;;  %v6532_v46 = vld [vmem:[%s10926_s7 + $0x90] sm:$0xff]  ;;  %v6529_v17 = vld [vmem:[%s10926_s7 + $0x78] sm:$0xff] }
0x1f78   :  { %v6271_v23 = vmul.f32 0.015625, %v6267_v33  ;;  %v6645_v30 = vmul.f32 %v10627_v8, %v10627_v8  ;;  %v6533_v33 = vld [vmem:[%s10926_s7 + $0x98] sm:$0xff]  ;;  %v8733_v59 = vpack.c.bf16 %v6529_v17, %v6528_v20 }
0x1f79   :  { %8706 = vmatpush3.bf16.msra.mxu1 %v8705_v61 }
0x1f7a   :  { %v6273_v63 = vadd.f32 1e-05, %v6271_v23  ;;  %v6649_v48 = vsel %vm278_vm0, %v6645_v30, 0.0  ;;  %v8707_v23 = vpack.c.bf16 %v6533_v33, %v6532_v46  ;;  %v6516_v30 = vld [vmem:[%s10926_s7 + $0x10] sm:$0xff]  ;;  %v7619_v46 = vld [vmem:[#allocation3] ss:$0 sm:$0xff] }
0x1f7b   :  { %6650 = vadd.xlane.f32.xlu1 %v6649_v48  ;;  %v6270_v28 = vpop.xlane.xlu0 %6269 }
0x1f7c   :  { %9243 = vrsqrt.f32 %v6273_v63  ;;  %v6272_v1 = vmul.f32 0.015625, %v6270_v28  ;;  %v6517_v63 = vld [vmem:[%s10926_s7 + $0x18] sm:$0xff]  ;;  %8708 = vmatprep.subr.bf16.mxu1 %v8707_v23  ;;  %v6534_v28 = vld [vmem:[%s10926_s7 + $0xa0] sm:$0xff] }
0x1f7d   :  { %v8709_v48 = vpack.c.bf16 %v6517_v63, %v6516_v30  ;;  %v7620_v23 = vld [vmem:[#allocation6] ss:$0 sm:$0xff]  ;;  %v9480_v30 = vmov 0.0|0.0  }
0x1f7e   :  { %v6274_v15 = vadd.f32 1e-05, %v6272_v1  ;;  %v6535_v1 = vld [vmem:[%s10926_s7 + $0xa8] sm:$0xff] }
0x1f7f   :  { %8710 = vmatpush3.bf16.msra.mxu1 %v8709_v48 }
0x1f80   :  { %9245 = vrsqrt.f32 %v6274_v15  ;;  %v8711_v15 = vpack.c.bf16 %v6535_v1, %v6534_v28 }
0x1f82   :  { %8712 = vmatprep.subr.bf16.mxu1 %v8711_v15 }
0x1f86   :  { %v9244_v0 = vpop.eup %9243 }
0x1f87   :  { %v6277_v5 = vmul.f32 %v9244_v0, %v10588_v11  ;;  %v6683_v11 = vld [vmem:[%s10925_s2 + $0x38] sm:$0xff]  ;;  %v6518_v0 = vld [vmem:[%s10926_s7 + $0x20] sm:$0xff] }
0x1f88   :  { %v8739_v38 = vpack.c.bf16 %v6683_v11, %v6681_v31 }
0x1f89   :  { %v6285_v56 = vmul.f32 %v7614_v29, %v6277_v5 }
0x1f8a   :  { %v9246_v4 = vpop.eup %9245 }
0x1f8b   :  { %v6293_v27 = vadd.f32 %v7615_v7, %v6285_v56  ;;  %v6278_v32 = vmul.f32 %v9246_v4, %v10595_v25  ;;  %v6685_v25 = vld [vmem:[%s10925_s2 + $0x48] sm:$0xff]  ;;  %v6520_v56 = vld [vmem:[%s10926_s7 + $0x30] sm:$0xff] }
0x1f8c   :  { %v8743_v13 = vpack.c.bf16 %v6687_v37, %v6685_v25  ;;  %v8717_v24 = vpack.c.bf16 %v6521_v60, %v6520_v56  ;;  %v6539_v4 = vld [vmem:[%s10926_s7 + $0xc8] sm:$0xff]  ;;  %v6525_v25 = vld [vmem:[%s10926_s7 + $0x58] sm:$0xff] }
0x1f8d   :  { %7616 = vmatmul.mubr.msk.f32.vlgmr.msra.gmra.mrb[46].mxu0 %vm278_vm0, %v6293_v27  ;;  %v6286_v40 = vmul.f32 %v7614_v29, %v6278_v32  ;;  %v6519_v29 = vld [vmem:[%s10926_s7 + $0x28] sm:$0xff]  ;;  %v6522_v27 = vld [vmem:[%s10926_s7 + $0x40] sm:$0xff] }
0x1f8e   :  { %6399 = vmatprep.mubr.f32.mxu0 %v9464_v36  ;;  %8738 = vmatpush1.bf16.msra.mxu0 %v8737_v2  ;;  %v8713_v5 = vpack.c.bf16 %v6519_v29, %v6518_v0  ;;  %v8719_v2 = vpack.c.bf16 %v6539_v4, %v6538_v51  ;;  %v6523_v32 = vld [vmem:[%s10926_s7 + $0x48] sm:$0xff]  ;;  %v6311_v29 = vld [vmem:[%s10927_s10] sm:$0x3] }
0x1f8f   :  { %v6294_v10 = vadd.f32 %v7615_v7, %v6286_v40  ;;  %8740 = vmatprep.subr.bf16.mxu0 %v8739_v38  ;;  %v6536_v7 = vld [vmem:[%s10926_s7 + $0xb0] sm:$0xff]  ;;  %v8721_v11 = vpack.c.bf16 %v6523_v32, %v6522_v27 }
0x1f90   :  { %8714 = vmatpush3.bf16.msra.mxu1 %v8713_v5  ;;  %v8715_v19 = vpack.c.bf16 %v6537_v16, %v6536_v7  ;;  %v6540_v38 = vld [vmem:[%s10926_s7 + $0xd0] sm:$0xff]  ;;  %v6320_v5 = vrot.slane %v6311_v29, %v10069_v14 }
0x1f91   :  { %7617 = vmatmul.mubr.msk.f32.gmra.mrb[48].mxu0 %vm278_vm0, %v6294_v10  ;;  %v6524_v10 = vld [vmem:[%s10926_s7 + $0x50] sm:$0xff] }
0x1f92   :  { %8742 = vmatpush1.bf16.msra.mxu0 %v8741_v55  ;;  %6774 = vmatprep.mubr.f32.mxu0 %v9464_v36  ;;  %v8723_v55 = vpack.c.bf16 %v6541_v49, %v6540_v38 }
0x1f93   :  { %8744 = vmatprep.subr.bf16.mxu0 %v8743_v13  ;;  %8716 = vmatprep.subr.bf16.mxu1 %v8715_v19  ;;  %v8725_v13 = vpack.c.bf16 %v6525_v25, %v6524_v10 }
0x1f94   :  { %8718 = vmatpush3.bf16.msra.mxu1 %v8717_v24 }
0x1f95   :  { %8720 = vmatprep.subr.bf16.mxu1 %v8719_v2 }
0x1f96   :  { %8746 = vmatpush1.bf16.msra.mxu0 %v8745_v50  ;;  %v6543_v50 = vld [vmem:[%s10926_s7 + $0xe8] sm:$0xff] }
0x1f97   :  { %8748 = vmatprep.subr.bf16.mxu0 %v8747_v52  ;;  %v8727_v45 = vpack.c.bf16 %v6543_v50, %v6542_v21  ;;  %v6526_v52 = vld [vmem:[%s10926_s7 + $0x60] sm:$0xff] }
0x1f98   :  { %8722 = vmatpush3.bf16.msra.mxu1 %v8721_v11  ;;  %v8729_v58 = vpack.c.bf16 %v6527_v54, %v6526_v52 }
0x1f99   :  { %8724 = vmatprep.subr.bf16.mxu1 %v8723_v55 }
0x1f9a   :  { %8750 = vmatpush1.bf16.msra.mxu0 %v8749_v57  ;;  %v6544_v57 = vld [vmem:[%s10926_s7 + $0xf0] sm:$0xff] }
0x1f9b   :  { %v8731_v44 = vpack.c.bf16 %v6545_v62, %v6544_v57 }
0x1f9c   :  { %8726 = vmatpush3.bf16.msra.mxu1 %v8725_v13 }
0x1f9d   :  { %8728 = vmatprep.subr.bf16.mxu1 %v8727_v45 }
0x1fa0   :  { %8730 = vmatpush3.bf16.msra.mxu1 %v8729_v58 }
0x1fa1   :  { %8732 = vmatprep.subr.bf16.mxu1 %v8731_v44 }
0x1fa4   :  { %8734 = vmatpush3.bf16.msra.mxu1 %v8733_v59 }
0x1fa5   :  { %8783 = vmatprep.subr.bf16.mxu1 %v9480_v30 }
0x2004   :  { %v6648_v31 = vpop.xlane.xlu0 %6647 }
0x2005   :  { %v6652_v40 = vmul.f32 0.015625, %v6648_v31 }
0x2007   :  { %v6654_v42 = vadd.f32 1e-05, %v6652_v40 }
0x2008   :  { %v6651_v37 = vpop.xlane.xlu1 %6650 }
0x2009   :  { %9247 = vrsqrt.f32 %v6654_v42  ;;  %v6653_v41 = vmul.f32 0.015625, %v6651_v37 }
0x200b   :  { %v6655_v39 = vadd.f32 1e-05, %v6653_v41 }
0x200d   :  { %9249 = vrsqrt.f32 %v6655_v39 }
0x2013   :  { %v9248_v61 = vpop.eup %9247 }
0x2014   :  { %v6658_v33 = vmul.f32 %v9248_v61, %v10622_v53  ;;  %v6316_v53 = vrot.slane %v6311_v29, %v10079_v22 }
0x2016   :  { %v6666_v63 = vmul.f32 %v7619_v46, %v6658_v33 }
0x2017   :  { %v9250_v48 = vpop.eup %9249 }
0x2018   :  { %v6674_v28 = vadd.f32 %v7620_v23, %v6666_v63  ;;  %v6659_v1 = vmul.f32 %v9250_v48, %v10627_v8 }
0x201a   :  { %7621 = vmatmul.mubr.msk.f32.vlgmr.msra.gmra.mrb[50].mxu0 %vm278_vm0, %v6674_v28  ;;  %v6667_v15 = vmul.f32 %v7619_v46, %v6659_v1 }
0x201b   :  { %6780 = vmatprep.mubr.f32.mxu0 %v9464_v36 }
0x201c   :  { %v6675_v0 = vadd.f32 %v7620_v23, %v6667_v15 }
0x201e   :  { %7622 = vmatmul.mubr.msk.f32.gmra.mrb[52].mxu0 %vm278_vm0, %v6675_v0 }
0x2060   :  { %v6395_v7 = vpop.f32.mrb[46].mxu0 }
0x2061   :  { %v10698_v16 = vadd.f32 %v6395_v7, %v6316_v53  ;;  %v6397_v19 = vpop.f32.mrb[47].mxu0 }
0x2062   :  { %v10700_v56 = vadd.f32 %v6397_v19, %v6320_v5 }
0x2063   :  { %v10703_v8 = vmul.f32 0.70710677, %v10698_v16 }
0x2064   :  { %v10706_v60 = vmul.f32 0.70710677, %v10700_v56  ;;  %v6401_v24 = vpop.f32.mrb[48].mxu0 }
0x2065   :  { %v6414_v51 = vand.u32 2147483647, %v10703_v8  ;;  %v10709_v4 = vadd.f32 %v6401_v24, %v6316_v53  ;;  %v6403_v2 = vpop.f32.mrb[49].mxu0  ;;  %vm6494_vm1 = vcmp.ge.f32.partialorder %v10703_v8, 0.0  ;;  %v6407_v8 = vmul.f32 0.5, %v10700_v56 }
0x2066   :  { %v6415_v27 = vand.u32 2147483647, %v10706_v60  ;;  %v10712_v32 = vadd.f32 %v6403_v2, %v6320_v5  ;;  %vm6495_vm2 = vcmp.ge.f32.partialorder %v10706_v60, 0.0 }
0x2067   :  { %v6418_v31 = vmul.f32 0.3275911, %v6414_v51  ;;  %v10715_v11 = vmul.f32 0.70710677, %v10709_v4  ;;  %v6470_v21 = vsub.f32 0.0, %v6414_v51 }
0x2068   :  { %v6419_v40 = vmul.f32 0.3275911, %v6415_v27  ;;  %v10718_v38 = vmul.f32 0.70710677, %v10712_v32  ;;  %v6471_v50 = vsub.f32 0.0, %v6415_v27 }
0x2069   :  { %v6422_v49 = vadd.f32 1.0, %v6418_v31  ;;  %v6416_v42 = vand.u32 2147483647, %v10715_v11  ;;  %v6474_v45 = vmul.f32 %v6470_v21, %v6414_v51  ;;  %vm6496_vm3 = vcmp.ge.f32.partialorder %v10715_v11, 0.0 }
0x206a   :  { %v6423_v55 = vadd.f32 1.0, %v6419_v40  ;;  %v6417_v10 = vand.u32 2147483647, %v10718_v38  ;;  %v6475_v57 = vmul.f32 %v6471_v50, %v6415_v27  ;;  %vm6497_vm4 = vcmp.ge.f32.partialorder %v10718_v38, 0.0 }
0x206b   :  { %9251 = vrcp.f32 %v6422_v49  ;;  %v6420_v25 = vmul.f32 0.3275911, %v6416_v42  ;;  %v6472_v52 = vsub.f32 0.0, %v6416_v42  ;;  %v6478_v59 = vmul.f32 1.442695, %v6474_v45  ;;  %v6911_v49 = vld [vmem:[%s9731_s25 + $0x80] sm:$0xff] }
0x206c   :  { %9253 = vrcp.f32 %v6423_v55  ;;  %v6421_v37 = vmul.f32 0.3275911, %v6417_v10  ;;  %v6473_v62 = vsub.f32 0.0, %v6417_v10  ;;  %v6480_v63 = vmul.f32 1.442695, %v6475_v57 }
0x206d   :  { %v6424_v13 = vadd.f32 1.0, %v6420_v25  ;;  %v6476_v61 = vmul.f32 %v6472_v52, %v6416_v42  ;;  %v6912_v42 = vld [vmem:[%s9731_s25 + $0x88] sm:$0xff]  ;;  %v6408_v38 = vmul.f32 0.5, %v10709_v4  ;;  %v6923_v4 = vld [vmem:[%s9731_s25 + $0xe0] sm:$0xff] }
0x206e   :  { %v6425_v41 = vadd.f32 1.0, %v6421_v37  ;;  %v6477_v48 = vmul.f32 %v6473_v62, %v6417_v10  ;;  %v8751_v25 = vpack.c.bf16 %v6912_v42, %v6911_v49  ;;  %v6895_v37 = vld [vmem:[%s9731_s25] sm:$0xff]  ;;  %v6913_v62 = vld [vmem:[%s9731_s25 + $0x90] sm:$0xff] }
0x206f   :  { %9255 = vrcp.f32 %v6424_v13  ;;  %v6482_v53 = vmul.f32 1.442695, %v6476_v61  ;;  %v6896_v13 = vld [vmem:[%s9731_s25 + $0x8] sm:$0xff] }
0x2070   :  { %9257 = vrcp.f32 %v6425_v41  ;;  %v6484_v24 = vmul.f32 1.442695, %v6477_v48  ;;  %v8753_v50 = vpack.c.bf16 %v6896_v13, %v6895_v37  ;;  %8752 = vmatprep.subr.bf16.mxu0 %v8751_v25  ;;  %v6917_v13 = vld [vmem:[%s9731_s25 + $0xb0] sm:$0xff] }
0x2071   :  { %9259 = vpow2.f32 %v6478_v59 }
0x2072   :  { %9261 = vpow2.f32 %v6480_v63  ;;  %8754 = vmatpush3.bf16.msra.mxu0 %v8753_v50 }
0x2073   :  { %9263 = vpow2.f32 %v6482_v53 }
0x2074   :  { %9265 = vpow2.f32 %v6484_v24 }
0x2075   :  { %v9252_v39 = vpop.eup %9251 }
0x2076   :  { %v9254_v54 = vpop.eup %9253  ;;  %v6434_v58 = vmul.f32 1.0614054, %v9252_v39 }
0x2077   :  { %v6435_v44 = vmul.f32 1.0614054, %v9254_v54 }
0x2078   :  { %v6438_v20 = vadd.f32 -1.4531521, %v6434_v58 }
0x2079   :  { %v10722_v17 = vpop.eup %9255  ;;  %v6439_v46 = vadd.f32 -1.4531521, %v6435_v44  ;;  %v6914_v44 = vld [vmem:[%s9731_s25 + $0x98] sm:$0xff] }
0x207a   :  { %v10724_v33 = vpop.eup %9257  ;;  %v6442_v23 = vmul.f32 %v9252_v39, %v6438_v20  ;;  %v6436_v28 = vmul.f32 1.0614054, %v10722_v17  ;;  %v8755_v61 = vpack.c.bf16 %v6914_v44, %v6913_v62 }
0x207b   :  { %v6443_v1 = vmul.f32 %v9254_v54, %v6439_v46  ;;  %v6437_v15 = vmul.f32 1.0614054, %v10724_v33  ;;  %v6897_v46 = vld [vmem:[%s9731_s25 + $0x10] sm:$0xff] }
0x207c   :  { %v6446_v0 = vadd.f32 1.4214138, %v6442_v23  ;;  %v6440_v29 = vadd.f32 -1.4531521, %v6436_v28  ;;  %v6898_v23 = vld [vmem:[%s9731_s25 + $0x18] sm:$0xff]  ;;  %8756 = vmatprep.subr.bf16.mxu0 %v8755_v61 }
0x207d   :  { %v6447_v5 = vadd.f32 1.4214138, %v6443_v1  ;;  %v6441_v7 = vadd.f32 -1.4531521, %v6437_v15  ;;  %v8757_v28 = vpack.c.bf16 %v6898_v23, %v6897_v46  ;;  %v9260_v1 = vpop.eup %9259  ;;  %v6919_v46 = vld [vmem:[%s9731_s25 + $0xc0] sm:$0xff]  ;;  %v6920_v23 = vld [vmem:[%s9731_s25 + $0xc8] sm:$0xff] }
0x207e   :  { %v6450_v19 = vmul.f32 %v9252_v39, %v6446_v0  ;;  %v6444_v51 = vmul.f32 %v10722_v17, %v6440_v29  ;;  %v9262_v29 = vpop.eup %9261 }
0x207f   :  { %v6451_v2 = vmul.f32 %v9254_v54, %v6447_v5  ;;  %v6445_v27 = vmul.f32 %v10724_v33, %v6441_v7  ;;  %8758 = vmatpush3.bf16.msra.mxu0 %v8757_v28  ;;  %v6915_v7 = vld [vmem:[%s9731_s25 + $0xa0] sm:$0xff]  ;;  %v9264_v49 = vpop.eup %9263 }
0x2080   :  { %v6454_v31 = vadd.f32 -0.28449672, %v6450_v19  ;;  %v6448_v40 = vadd.f32 1.4214138, %v6444_v51  ;;  %v6916_v19 = vld [vmem:[%s9731_s25 + $0xa8] sm:$0xff]  ;;  %v6903_v28 = vld [vmem:[%s9731_s25 + $0x40] sm:$0xff] }
0x2081   :  { %v6455_v55 = vadd.f32 -0.28449672, %v6451_v2  ;;  %v6449_v10 = vadd.f32 1.4214138, %v6445_v27  ;;  %v6899_v2 = vld [vmem:[%s9731_s25 + $0x20] sm:$0xff]  ;;  %v6900_v27 = vld [vmem:[%s9731_s25 + $0x28] sm:$0xff] }
0x2082   :  { %v6458_v41 = vmul.f32 %v9252_v39, %v6454_v31  ;;  %v6452_v21 = vmul.f32 %v10722_v17, %v6448_v40 }
0x2083   :  { %v6459_v45 = vmul.f32 %v9254_v54, %v6455_v55  ;;  %v6453_v52 = vmul.f32 %v10724_v33, %v6449_v10  ;;  %v9266_v10 = vpop.eup %9265 }
0x2084   :  { %v6462_v58 = vadd.f32 0.2548296, %v6458_v41  ;;  %v6456_v57 = vadd.f32 -0.28449672, %v6452_v21  ;;  %v6918_v41 = vld [vmem:[%s9731_s25 + $0xb8] sm:$0xff] }
0x2085   :  { %v6463_v20 = vadd.f32 0.2548296, %v6459_v45  ;;  %v6457_v59 = vadd.f32 -0.28449672, %v6453_v52  ;;  %v6901_v45 = vld [vmem:[%s9731_s25 + $0x30] sm:$0xff]  ;;  %v6902_v52 = vld [vmem:[%s9731_s25 + $0x38] sm:$0xff] }
0x2086   :  { %v6466_v63 = vmul.f32 %v9252_v39, %v6462_v58  ;;  %v6460_v48 = vmul.f32 %v10722_v17, %v6456_v57  ;;  %v8759_v39 = vpack.c.bf16 %v6916_v19, %v6915_v7  ;;  %v8765_v57 = vpack.c.bf16 %v6902_v52, %v6901_v45  ;;  %v6921_v7 = vld [vmem:[%s9731_s25 + $0xd0] sm:$0xff]  ;;  %v6922_v19 = vld [vmem:[%s9731_s25 + $0xd8] sm:$0xff] }
0x2087   :  { %v6467_v15 = vmul.f32 %v9254_v54, %v6463_v20  ;;  %v6461_v0 = vmul.f32 %v10724_v33, %v6457_v59  ;;  %v8761_v54 = vpack.c.bf16 %v6900_v27, %v6899_v2 }
0x2088   :  { %v6486_v53 = vmul.f32 %v9260_v1, %v6466_v63  ;;  %v6464_v5 = vadd.f32 0.2548296, %v6460_v48  ;;  %8760 = vmatprep.subr.bf16.mxu0 %v8759_v39  ;;  %v6406_v63 = vmul.f32 0.5, %v10698_v16  ;;  %v8767_v48 = vpack.c.bf16 %v6920_v23, %v6919_v46  ;;  %v6904_v1 = vld [vmem:[%s9731_s25 + $0x48] sm:$0xff]  ;;  %v6906_v39 = vld [vmem:[%s9731_s25 + $0x58] sm:$0xff] }
0x2089   :  { %v6487_v24 = vmul.f32 %v9262_v29, %v6467_v15  ;;  %v6465_v51 = vadd.f32 0.2548296, %v6461_v0  ;;  %8762 = vmatpush3.bf16.msra.mxu0 %v8761_v54  ;;  %v8769_v0 = vpack.c.bf16 %v6904_v1, %v6903_v28  ;;  %v6409_v16 = vmul.f32 0.5, %v10712_v32  ;;  %v6907_v54 = vld [vmem:[%s9731_s25 + $0x60] sm:$0xff] }
0x208a   :  { %v6490_v31 = vsub.f32 1.0, %v6486_v53  ;;  %v6468_v40 = vmul.f32 %v10722_v17, %v6464_v5  ;;  %v8763_v17 = vpack.c.bf16 %v6918_v41, %v6917_v13  ;;  %v6692_v13 = vld [vmem:[%s10929_s11] sm:$0x3] }
0x208b   :  { %v6491_v42 = vsub.f32 1.0, %v6487_v24  ;;  %v6469_v55 = vmul.f32 %v10724_v33, %v6465_v51  ;;  %v8771_v24 = vpack.c.bf16 %v6922_v19, %v6921_v7  ;;  %v6905_v51 = vld [vmem:[%s9731_s25 + $0x50] sm:$0xff]  ;;  %v6697_v41 = vrot.slane %v6692_v13, %v10079_v22 }
0x208c   :  { %v6498_v25 = vsub.f32 0.0, %v6490_v31  ;;  %v6488_v37 = vmul.f32 %v9264_v49, %v6468_v40  ;;  %8764 = vmatprep.subr.bf16.mxu0 %v8763_v17  ;;  %v8773_v2 = vpack.c.bf16 %v6906_v39, %v6905_v51  ;;  %v6925_v49 = vld [vmem:[%s9731_s25 + $0xf0] sm:$0xff] }
0x208d   :  { %v6499_v21 = vsub.f32 0.0, %v6491_v42  ;;  %v6489_v50 = vmul.f32 %v9266_v10, %v6469_v55  ;;  %8766 = vmatpush3.bf16.msra.mxu0 %v8765_v57  ;;  %v6909_v10 = vld [vmem:[%s9731_s25 + $0x70] sm:$0xff] }
0x208e   :  { %v6502_v58 = vsel %vm6494_vm1, %v6490_v31, %v6498_v25  ;;  %v6492_v33 = vsub.f32 1.0, %v6488_v37  ;;  %8768 = vmatprep.subr.bf16.mxu0 %v8767_v48  ;;  %v6924_v31 = vld [vmem:[%s9731_s25 + $0xe8] sm:$0xff]  ;;  %v6910_v25 = vld [vmem:[%s9731_s25 + $0x78] sm:$0xff] }
0x208f   :  { %v6506_v62 = vadd.f32 1.0, %v6502_v58  ;;  %v6503_v44 = vsel %vm6495_vm2, %v6491_v42, %v6499_v21  ;;  %v6493_v20 = vsub.f32 1.0, %v6489_v50  ;;  %v8775_v40 = vpack.c.bf16 %v6924_v31, %v6923_v4  ;;  %v6926_v42 = vld [vmem:[%s9731_s25 + $0xf8] sm:$0xff]  ;;  %s10930_s25 = sld [smem:[#allocation20_spill]] }
0x2090   :  { %v6507_v59 = vadd.f32 1.0, %v6503_v44  ;;  %v6500_v61 = vsub.f32 0.0, %v6492_v33  ;;  %v8779_v55 = vpack.c.bf16 %v6926_v42, %v6925_v49  ;;  %v8781_v37 = vpack.c.bf16 %v6910_v25, %v6909_v10 }
0x2091   :  { %v6501_v60 = vsub.f32 0.0, %v6493_v20  ;;  %v6510_v29 = vmul.f32 %v6506_v62, %v6406_v63  ;;  %8770 = vmatpush3.bf16.msra.mxu0 %v8769_v0  ;;  %v6701_v21 = vrot.slane %v6692_v13, %v10069_v14 }
0x2092   :  { %v6511_v15 = vmul.f32 %v6507_v59, %v6407_v8  ;;  %v6504_v56 = vsel %vm6496_vm3, %v6492_v33, %v6500_v61  ;;  %8772 = vmatprep.subr.bf16.mxu0 %v8771_v24 }
0x2093   :  { %v6505_v53 = vsel %vm6497_vm4, %v6493_v20, %v6501_v60  ;;  %v6508_v5 = vadd.f32 1.0, %v6504_v56 }
0x2094   :  { %6610 = vmatprep.mubr.f32.mxu1 %v6511_v15  ;;  %v6509_v11 = vadd.f32 1.0, %v6505_v53 }
0x2095   :  { %6611 = vmatmul.mubr.f32.vlgmr.msra.gmra.mrb[54].mxu1 %v6510_v29  ;;  %v6512_v27 = vmul.f32 %v6508_v5, %v6408_v38  ;;  %8774 = vmatpush3.bf16.msra.mxu0 %v8773_v2 }
0x2096   :  { %8785 = vmatpush3.bf16.msra.mxu1 %v8784_v12  ;;  %v6513_v32 = vmul.f32 %v6509_v11, %v6409_v16  ;;  %v8777_v12 = vpack.c.bf16 %v6908_v35, %v6907_v54  ;;  %8776 = vmatprep.subr.bf16.mxu0 %v8775_v40 }
0x2097   :  { %8786 = vmatprep.subr.bf16.mxu1 %v9480_v30 }
0x2098   :  { %6615 = vmatprep.mubr.f32.mxu1 %v6513_v32 }
0x2099   :  { %6616 = vmatmul.mubr.f32.gmra.mrb[56].mxu1 %v6512_v27  ;;  %8778 = vmatpush3.bf16.msra.mxu0 %v8777_v12 }
0x209a   :  { %8338 = vmatprep.mubr.msk.f32.mxu1 %vm9481_vm6, %v9464_v36  ;;  %8780 = vmatprep.subr.bf16.mxu0 %v8779_v55 }
0x209d   :  { %8339 = vmatmul.mubr.msk.f32.vlgmr.msra.gmra.mrb[58].mxu1 %vm676_vm5, %v7013_v9  ;;  %8782 = vmatpush3.bf16.msra.mxu0 %v8781_v37 }
0x209e   :  { %8788 = vmatpush3.bf16.msra.mxu1 %v8787_v34  ;;  %8345 = vmatprep.mubr.msk.f32.mxu1 %vm9481_vm6, %v9464_v36 }
0x209f   :  { %8789 = vmatprep.subr.bf16.mxu1 %v9480_v30 }
0x20a1   :  { %8346 = vmatmul.mubr.msk.f32.vlgmr.msra.gmra.mrb[60].mxu1 %vm676_vm5, %v7013_v9 }
0x20a2   :  { %8352 = vmatprep.mubr.msk.f32.mxu1 %vm9481_vm6, %v9464_v36 }
0x20ed   :  { %v6776_v18 = vpop.f32.mrb[50].mxu0 }
0x20ee   :  { %v10796_v43 = vadd.f32 %v6776_v18, %v6697_v41  ;;  %v6778_v34 = vpop.f32.mrb[51].mxu0 }
0x20ef   :  { %v10798_v50 = vadd.f32 %v6778_v34, %v6701_v21 }
0x20f0   :  { %v10801_v17 = vmul.f32 0.70710677, %v10796_v43 }
0x20f1   :  { %v10804_v45 = vmul.f32 0.70710677, %v10798_v50  ;;  %v6782_v52 = vpop.f32.mrb[52].mxu0 }
0x20f2   :  { %v6795_v58 = vand.u32 2147483647, %v10801_v17  ;;  %v10807_v33 = vadd.f32 %v6782_v52, %v6697_v41  ;;  %v6784_v22 = vpop.f32.mrb[53].mxu0  ;;  %vm6875_vm7 = vcmp.ge.f32.partialorder %v10801_v17, 0.0 }
0x20f3   :  { %v6796_v14 = vand.u32 2147483647, %v10804_v45  ;;  %v10810_v57 = vadd.f32 %v6784_v22, %v6701_v21  ;;  %vm6876_vm8 = vcmp.ge.f32.partialorder %v10804_v45, 0.0 }
0x20f4   :  { %v6799_v62 = vmul.f32 0.3275911, %v6795_v58  ;;  %v10813_v44 = vmul.f32 0.70710677, %v10807_v33  ;;  %v6851_v1 = vsub.f32 0.0, %v6795_v58 }
0x20f5   :  { %v6800_v20 = vmul.f32 0.3275911, %v6796_v14  ;;  %v10816_v8 = vmul.f32 0.70710677, %v10810_v57  ;;  %v6852_v15 = vsub.f32 0.0, %v6796_v14 }
0x20f6   :  { %v6803_v59 = vadd.f32 1.0, %v6799_v62  ;;  %v6797_v61 = vand.u32 2147483647, %v10813_v44  ;;  %v6855_v0 = vmul.f32 %v6851_v1, %v6795_v58  ;;  %vm6877_vm9 = vcmp.ge.f32.partialorder %v10813_v44, 0.0 }
0x20f7   :  { %v6804_v46 = vadd.f32 1.0, %v6800_v20  ;;  %v6798_v23 = vand.u32 2147483647, %v10816_v8  ;;  %v6856_v16 = vmul.f32 %v6852_v15, %v6796_v14  ;;  %vm6878_vm10 = vcmp.ge.f32.partialorder %v10816_v8, 0.0 }
0x20f8   :  { %9267 = vrcp.f32 %v6803_v59  ;;  %v6801_v63 = vmul.f32 0.3275911, %v6797_v61  ;;  %v6853_v29 = vsub.f32 0.0, %v6797_v61  ;;  %v6859_v24 = vmul.f32 1.442695, %v6855_v0 }
0x20f9   :  { %9269 = vrcp.f32 %v6804_v46  ;;  %v6802_v60 = vmul.f32 0.3275911, %v6798_v23  ;;  %v6854_v11 = vsub.f32 0.0, %v6798_v23  ;;  %v6861_v27 = vmul.f32 1.442695, %v6856_v16 }
0x20fa   :  { %v6805_v48 = vadd.f32 1.0, %v6801_v63  ;;  %v6857_v51 = vmul.f32 %v6853_v29, %v6797_v61 }
0x20fb   :  { %v6806_v28 = vadd.f32 1.0, %v6802_v60  ;;  %v6858_v4 = vmul.f32 %v6854_v11, %v6798_v23 }
0x20fc   :  { %9271 = vrcp.f32 %v6805_v48  ;;  %v6863_v12 = vmul.f32 1.442695, %v6857_v51 }
0x20fd   :  { %9273 = vrcp.f32 %v6806_v28  ;;  %v6865_v10 = vmul.f32 1.442695, %v6858_v4 }
0x20fe   :  { %9275 = vpow2.f32 %v6859_v24 }
0x20ff   :  { %9277 = vpow2.f32 %v6861_v27 }
0x2100   :  { %9279 = vpow2.f32 %v6863_v12 }
0x2101   :  { %9281 = vpow2.f32 %v6865_v10 }
0x2102   :  { %v9268_v56 = vpop.eup %9267 }
0x2103   :  { %v9270_v53 = vpop.eup %9269  ;;  %v6815_v5 = vmul.f32 1.0614054, %v9268_v56 }
0x2104   :  { %v6816_v7 = vmul.f32 1.0614054, %v9270_v53 }
0x2105   :  { %v6819_v19 = vadd.f32 -1.4531521, %v6815_v5 }
0x2106   :  { %v9272_v38 = vpop.eup %9271  ;;  %v6820_v39 = vadd.f32 -1.4531521, %v6816_v7 }
0x2107   :  { %v9274_v32 = vpop.eup %9273  ;;  %v6823_v2 = vmul.f32 %v9268_v56, %v6819_v19  ;;  %v6817_v31 = vmul.f32 1.0614054, %v9272_v38 }
0x2108   :  { %v6824_v40 = vmul.f32 %v9270_v53, %v6820_v39  ;;  %v6818_v54 = vmul.f32 1.0614054, %v9274_v32  ;;  %v9276_v63 = vpop.eup %9275 }
0x2109   :  { %v6827_v35 = vadd.f32 1.4214138, %v6823_v2  ;;  %v6821_v9 = vadd.f32 -1.4531521, %v6817_v31  ;;  %v9278_v28 = vpop.eup %9277 }
0x210a   :  { %v6828_v49 = vadd.f32 1.4214138, %v6824_v40  ;;  %v6822_v42 = vadd.f32 -1.4531521, %v6818_v54  ;;  %v9280_v11 = vpop.eup %9279  ;;  %v6788_v54 = vmul.f32 0.5, %v10798_v50  ;;  %v6789_v50 = vmul.f32 0.5, %v10807_v33 }
0x210b   :  { %v6831_v55 = vmul.f32 %v9268_v56, %v6827_v35  ;;  %v6825_v25 = vmul.f32 %v9272_v38, %v6821_v9  ;;  %v9282_v24 = vpop.eup %9281 }
0x210c   :  { %v6832_v37 = vmul.f32 %v9270_v53, %v6828_v49  ;;  %v6826_v13 = vmul.f32 %v9274_v32, %v6822_v42 }
0x210d   :  { %v6835_v41 = vadd.f32 -0.28449672, %v6831_v55  ;;  %v6829_v21 = vadd.f32 1.4214138, %v6825_v25  ;;  %v6790_v55 = vmul.f32 0.5, %v10810_v57 }
0x210e   :  { %v6836_v18 = vadd.f32 -0.28449672, %v6832_v37  ;;  %v6830_v34 = vadd.f32 1.4214138, %v6826_v13 }
0x210f   :  { %v6839_v52 = vmul.f32 %v9268_v56, %v6835_v41  ;;  %v6833_v58 = vmul.f32 %v9272_v38, %v6829_v21 }
0x2110   :  { %v6840_v22 = vmul.f32 %v9270_v53, %v6836_v18  ;;  %v6834_v14 = vmul.f32 %v9274_v32, %v6830_v34  ;;  %v7618_v34 = vld [vmem:[#allocation8] ss:$0 sm:$0xff] }
0x2111   :  { %v6843_v62 = vadd.f32 0.2548296, %v6839_v52  ;;  %v6837_v20 = vadd.f32 -0.28449672, %v6833_v58 }
0x2112   :  { %v6844_v59 = vadd.f32 0.2548296, %v6840_v22  ;;  %v6838_v61 = vadd.f32 -0.28449672, %v6834_v14 }
0x2113   :  { %v6847_v46 = vmul.f32 %v9268_v56, %v6843_v62  ;;  %v6841_v23 = vmul.f32 %v9272_v38, %v6837_v20 }
0x2114   :  { %v6848_v60 = vmul.f32 %v9270_v53, %v6844_v59  ;;  %v6842_v48 = vmul.f32 %v9274_v32, %v6838_v61  ;;  %v7090_v61 = vld [vmem:[%s10930_s25] sm:$0x3] }
0x2115   :  { %v6867_v1 = vmul.f32 %v9276_v63, %v6847_v46  ;;  %v6845_v15 = vadd.f32 0.2548296, %v6841_v23 }
0x2116   :  { %v6868_v0 = vmul.f32 %v9278_v28, %v6848_v60  ;;  %v6846_v29 = vadd.f32 0.2548296, %v6842_v48 }
0x2117   :  { %v6871_v5 = vsub.f32 1.0, %v6867_v1  ;;  %v6849_v16 = vmul.f32 %v9272_v38, %v6845_v15 }
0x2118   :  { %v6872_v7 = vsub.f32 1.0, %v6868_v0  ;;  %v6850_v19 = vmul.f32 %v9274_v32, %v6846_v29  ;;  %v6787_v32 = vmul.f32 0.5, %v10796_v43  ;;  %v7623_v0 = vld [vmem:[#allocation9] ss:$0 sm:$0xff] }
0x2119   :  { %v6879_v51 = vsub.f32 0.0, %v6871_v5  ;;  %v6869_v39 = vmul.f32 %v9280_v11, %v6849_v16 }
0x211a   :  { %v6880_v56 = vsub.f32 0.0, %v6872_v7  ;;  %v6870_v2 = vmul.f32 %v9282_v24, %v6850_v19 }
0x211b   :  { %v6883_v27 = vsel %vm6875_vm7, %v6871_v5, %v6879_v51  ;;  %v6873_v53 = vsub.f32 1.0, %v6869_v39  ;;  %v7237_v51 = vld [vmem:[%s10932_s20] sm:$0x3] }
0x211c   :  { %v6887_v4 = vadd.f32 1.0, %v6883_v27  ;;  %v6884_v31 = vsel %vm6876_vm8, %v6872_v7, %v6880_v56  ;;  %v6874_v40 = vsub.f32 1.0, %v6870_v2  ;;  %v7014_v7 = vld [vmem:[%s10931_s15] sm:$0x3]  ;;  %v7386_v27 = vstv %s9741_s9 }
0x211d   :  { %v6888_v38 = vadd.f32 1.0, %v6884_v31  ;;  %v6881_v35 = vsub.f32 0.0, %v6873_v53 }
0x211e   :  { %v6882_v9 = vsub.f32 0.0, %v6874_v40  ;;  %v6891_v49 = vmul.f32 %v6887_v4, %v6787_v32 }
0x211f   :  { %v6892_v17 = vmul.f32 %v6888_v38, %v6788_v54  ;;  %v6885_v12 = vsel %vm6877_vm9, %v6873_v53, %v6881_v35 }
0x2120   :  { %v6886_v42 = vsel %vm6878_vm10, %v6874_v40, %v6882_v9  ;;  %v6889_v45 = vadd.f32 1.0, %v6885_v12 }
0x2121   :  { %6991 = vmatprep.mubr.f32.mxu0 %v6892_v17  ;;  %v6890_v10 = vadd.f32 1.0, %v6886_v42 }
0x2122   :  { %6992 = vmatmul.mubr.f32.vlgmr.msra.gmra.mrb[54].mxu0 %v6891_v49  ;;  %v6893_v37 = vmul.f32 %v6889_v45, %v6789_v50 }
0x2123   :  { %v6894_v25 = vmul.f32 %v6890_v10, %v6790_v55 }
0x2125   :  { %6996 = vmatprep.mubr.f32.mxu0 %v6894_v25 }
0x2126   :  { %6997 = vmatmul.mubr.f32.gmra.mrb[56].mxu0 %v6893_v37 }
0x2168   :  { %v7934_v43 = vpop.f32.mrb[54].mxu1 }
0x2169   :  { %v7935_v44 = vpop.f32.mrb[55].mxu1 }
0x216a   :  { %v7936_v13 = vadd.f32 %v7935_v44, %v7934_v43 }
0x216c   :  { %v7937_v8 = vpop.f32.mrb[56].mxu1  ;;  %v6621_v21 = vadd.f32 %v7936_v13, %v10557_v26 }
0x216d   :  { %v7938_v41 = vpop.f32.mrb[57].mxu1 }
0x216e   :  { %v7939_v18 = vadd.f32 %v7938_v41, %v7937_v8  ;;  %v6630_v52 = vadd.f32 %v7618_v34, %v6621_v21 }
0x2170   :  { %v6622_v57 = vadd.f32 %v7939_v18, %v10567_v47  ;;  %v7084_v22 = vpop.f32.mrb[58].mxu1 }
0x2171   :  { %v7088_v14 = vmul.f32 1.442695, %v7084_v22  ;;  %v8340_v62 = vpop.f32.mrb[59].mxu1 }
0x2172   :  { %v6631_v58 = vadd.f32 %v7618_v34, %v6622_v57 }
0x2173   :  { %9283 = vpow2.f32 %v7088_v14 }
0x2174   :  { %v8793_v33 = vpack.c.bf16 %v6631_v58, %v6630_v52  ;;  %v7158_v20 = vpop.f32.mrb[60].mxu1 }
0x2175   :  { %v8347_v59 = vpop.f32.mrb[61].mxu1 }
0x217d   :  { %v9284_v46 = vpop.eup %9283 }
0x217e   :  { %v7091_v23 = vmul.f32 %v9284_v46, %v7090_v61 }
0x2180   :  { %v7159_v63 = vadd.f32 %v7158_v20, %v7091_v23 }
0x21f5   :  { %v7972_v60 = vpop.f32.mrb[54].mxu0 }
0x21f6   :  { %v7973_v26 = vpop.f32.mrb[55].mxu0 }
0x21f7   :  { %v7974_v48 = vadd.f32 %v7973_v26, %v7972_v60 }
0x21f9   :  { %v7975_v28 = vpop.f32.mrb[56].mxu0  ;;  %v7002_v47 = vadd.f32 %v10585_v3, %v7974_v48 }
0x21fa   :  { %v7976_v1 = vpop.f32.mrb[57].mxu0 }
0x21fb   :  { %v7977_v15 = vadd.f32 %v7976_v1, %v7975_v28  ;;  %v7011_v5 = vadd.f32 %v7623_v0, %v7002_v47 }
0x21fd   :  { %v7003_v29 = vadd.f32 %v10590_v6, %v7977_v15 }
0x21ff   :  { %v7012_v16 = vadd.f32 %v7623_v0, %v7003_v29 }
0x2201   :  { %v8790_v11 = vpack.c.bf16 %v7012_v16, %v7011_v5 }
0x2203   :  { %8791 = vmatpush3.bf16.msra.mxu1 %v8790_v11 }
0x2204   :  { %8792 = vmatprep.subr.bf16.mxu1 %v9480_v30 }
0x2206   :  { %8353 = vmatmul.mubr.msk.f32.vlgmr.msra.gmra.mrb[62].mxu1 %vm676_vm5, %v7014_v7 }
0x2207   :  { %8794 = vmatpush3.bf16.msra.mxu1 %v8793_v33  ;;  %8359 = vmatprep.mubr.msk.f32.mxu1 %vm9481_vm6, %v9464_v36 }
0x2208   :  { %8362 = vmatprep.subr.mxu1 %v9464_v36 }
0x220a   :  { %8360 = vmatmul.mubr.msk.f32.vlgmr.msra.gmra.mrb[64].mxu1 %vm676_vm5, %v7014_v7  ;;  %vm7388_vm5 = vcmask 9216  }
0x220b   :  { %8364 = vmatprep.mubr.msk.f32.mxu1 %vm9481_vm6, %v9464_v36 }
0x22d9   :  { %v7231_v3 = vpop.f32.mrb[62].mxu1 }
0x22da   :  { %v7235_v6 = vmul.f32 1.442695, %v7231_v3  ;;  %v8354_v19 = vpop.f32.mrb[63].mxu1 }
0x22dc   :  { %9285 = vpow2.f32 %v7235_v6 }
0x22dd   :  { %v7305_v24 = vpop.f32.mrb[64].mxu1 }
0x22de   :  { %v8361_v30 = vpop.f32.mrb[65].mxu1 }
0x22e6   :  { %v9286_v39 = vpop.eup %9285 }
0x22e7   :  { %v7238_v56 = vmul.f32 %v9286_v39, %v7237_v51 }
0x22e9   :  { %v7306_v2 = vadd.f32 %v7305_v24, %v7238_v56 }
0x22eb   :  { %8363 = vmatpush3.xpose.msk.msra.mxu1 %vm278_vm0, %v7306_v2 }
0x22ee   :  { %8365 = vmatmul.mubr.msk.f32.vlgmr.msra.gmra.mrb[66].mxu1 %vm278_vm0, %v7159_v63 }
0x23c1   :  { %v7382_v53 = vpop.f32.mrb[66].mxu1 }
0x23c2   :  { %v7387_v36 = vmul.f32 %v7386_v27, %v7382_v53  ;;  %v8366_v4 = vpop.f32.mrb[67].mxu1 }
0x23c4   :  { %7389 = vst.msk [vmem:[#allocation11] sm:$0x3] %vm7388_vm5, %v7387_v36 }
0x23c5   :  { %9390 = shalt.err (!%p9387_p8)
}
0x23c6   :  { %s9391_s23 = scalar_lea.hbm %s9746_s17, 32 }
0x23c7   :  { %p9392_p9 = scmp.ne.s32.totalorder %s9746_s17, %s9391_s23  ;;  %p9395_p10 = scmp.lt.u32.totalorder %s9391_s23, %s9746_s17 }
0x23c9   :  { %p9397_p11 = pnand %p9395_p10, %p9392_p9 }
0x23cb   :  { %9400 = shalt.err (!%p9397_p11)
}
0x23cc   :  { %7399 = dma.vmem_to_hbm [thread:$0]  %s7397_s18, 32, %s9746_s17, [#allocation5]  }
0x23cd   :  { %9407 = dma.done.wait [#allocation5], 32  }
0x23ce   :  { %9408 = vsyncadd [#allocation5], 4294967264 }
0x23cf   :  { %7403 = vsyncpa [#allocation4], 1 }
0x23d0   :  { %7404 = vsyncpa [#allocation7], 1 }
0x23d1   :  { %7405 = vsyncpa [#allocation10], 1 }
0x23d2   :  { %7406 = vsyncpa [#allocation5], 1 }

</bundles_post_ra>
